<compile_context>
chip_gen: v7x
topology: tpu7x:2x2x1
jax: 0.10.0
libtpu: 0.0.40
codegen_flags: <defaults>
</compile_context>

<pallas_src>
import functools

import jax
import jax.numpy as jnp
from jax.experimental import pallas as pl
from jax.experimental.pallas import tpu as pltpu


def _round_up(x, m):
    return (x + m - 1) // m * m


def _vmem_limit_bytes():
    """Generation-aware VMEM limit (review item): ~60% of physical VMEM."""
    try:
        cap = int(pltpu.get_tpu_info().vmem_capacity_bytes)
    except Exception:  # query unavailable (e.g. AOT/CPU trace) -> assume 128 MiB
        cap = 128 * 1024 * 1024
    return max(32 * 1024 * 1024, min(int(cap * 0.6), 96 * 1024 * 1024))


def _pick_batch_block(n, hw, target=256):
    """Smallest divisor of n whose block gives matmul M = nb*hw >= target."""
    nb = 1
    for d in range(1, n + 1):
        if n % d == 0:
            nb = d
            if d * hw >= target:
                break
    return nb


def _pick_row_tile(h, w, co_pad, budget_bytes=128 * 1024):
    """Largest row tile whose f32 accumulator (th*W, co_pad) fits the budget."""
    return max(1, min(h, budget_bytes // (w * co_pad * 4)))


# ---------------------------------------------------------------------------
# Kernel 1: ConvTranspose2d(k=2, s=2) written directly into the F.pad + conv
# halo padded NHWC buffer (N, H+2, W+2, c2p); borders zeroed in-kernel.
# ---------------------------------------------------------------------------
def _upconv2x2_kernel(x_ref, w_ref, b_ref, o_ref, *, H1, W1, Cp, r0, c0):
    nb, _, _, cin = x_ref.shape
    x = x_ref[...].reshape(nb * H1 * W1, cin)                 # M = nb*H1*W1
    y = jnp.dot(x, w_ref[...], preferred_element_type=jnp.float32)
    y = (y + b_ref[...]).astype(o_ref.dtype)
    y = y.reshape(nb, H1, W1, 2, 2, Cp)                       # (..., i, j, co)

    o_ref[...] = jnp.zeros_like(o_ref)                        # halo + F.pad gap
    # TODO(synk): switch to lax.fori_loop for very large H1 (code size).
    for i in range(2):
        yi = y[:, :, :, i, :, :].reshape(nb, H1, 2 * W1, Cp)  # merge (w, j)
        for h in range(H1):
            o_ref[:, r0 + 2 * h + i, c0:c0 + 2 * W1, :] = yi[:, h]


def conv_transpose2x2_s2_padded(x1_nhwc, w_iohw, b, c_out_pad, H, W):
    """x1: (N,H1,W1,Cin); w: (Cin,Cout,2,2) -> padded (N, H+2, W+2, c_out_pad)."""
    N, H1, W1, Cin = x1_nhwc.shape
    Cout = w_iohw.shape[1]
    Cp = c_out_pad
    dh, dw = H - 2 * H1, W - 2 * W1
    r0, c0 = 1 + dh // 2, 1 + dw // 2
    Hp, Wp = H + 2, W + 2

    # weight columns ordered (i, j, co); co zero-padded to Cp.
    w = jnp.pad(w_iohw, ((0, 0), (0, Cp - Cout), (0, 0), (0, 0)))
    w = jnp.transpose(w, (0, 2, 3, 1)).reshape(Cin, 4 * Cp).astype(jnp.bfloat16)
    bias = jnp.tile(jnp.pad(b, (0, Cp - Cout)), 4).reshape(1, 4 * Cp)
    bias = bias.astype(jnp.float32)

    nb = _pick_batch_block(N, H1 * W1)                        # merge batch into M
    kernel = functools.partial(_upconv2x2_kernel, H1=H1, W1=W1, Cp=Cp,
                               r0=r0, c0=c0)
    return pl.pallas_call(
        kernel,
        out_shape=jax.ShapeDtypeStruct((N, Hp, Wp, Cp), jnp.bfloat16),
        grid_spec=pltpu.PrefetchScalarGridSpec(
            num_scalar_prefetch=0,
            grid=(N // nb,),
            in_specs=[
                pl.BlockSpec((nb, H1, W1, Cin), lambda n: (n, 0, 0, 0)),
                pl.BlockSpec((Cin, 4 * Cp), lambda n: (0, 0)),
                pl.BlockSpec((1, 4 * Cp), lambda n: (0, 0)),
            ],
            out_specs=pl.BlockSpec((nb, Hp, Wp, Cp), lambda n: (n, 0, 0, 0)),
        ),
        compiler_params=pltpu.CompilerParams(
            dimension_semantics=("parallel",),
            vmem_limit_bytes=_vmem_limit_bytes()),
    )(x1_nhwc.astype(jnp.bfloat16), w, bias)


# ---------------------------------------------------------------------------
# Kernel 2: fused 3x3 conv (+ folded BN + ReLU) over >=1 halo-padded NHWC
# inputs.  dx-hoisted window slices; im2col-in-VMEM (one dot, K = 9*C) for
# lane-aligned inputs; per-tap dots otherwise.  Output may carry its own
# 1-px halo (borders zeroed at r == 0) so the next conv needs no jnp.pad.
# ---------------------------------------------------------------------------
def _conv3x3_fused_kernel(*refs, n_in, th, W, H, out_off):
    x_refs = refs[:n_in]
    w_refs = refs[n_in:2 * n_in]
    b_ref = refs[2 * n_in]
    o_ref = refs[2 * n_in + 1]
    co = o_ref.shape[-1]
    r = pl.program_id(1)
    # Clamped start: ragged last tile overlaps (idempotent recompute), so th
    # does not have to divide H.
    row0 = jnp.minimum(r * th, H - th)

    if out_off:                                   # zero halo border once per n
        @pl.when(r == 0)
        def _():
            o_ref[...] = jnp.zeros_like(o_ref)

    acc = None
    for x_ref, w_ref in zip(x_refs, w_refs):
        C = x_ref.shape[-1]
        # 3 width-shifted windows (one misaligned slice per dx, not per tap).
        wins = [x_ref[0, pl.ds(row0, th + 2), dx:dx + W, :] for dx in range(3)]
        # taps in dy-major order to match the (9*C, co) weight row layout.
        pieces = [wins[dx][dy:dy + th] for dy in range(3) for dx in range(3)]
        if C % 128 == 0:
            # im2col in VMEM: one MXU dot with K = 9*C.
            patch = jnp.concatenate(pieces, axis=-1).reshape(th * W, 9 * C)
            part = jnp.dot(patch, w_ref[...],
                           preferred_element_type=jnp.float32)
        else:
            # tiny / unaligned channel count: per-tap dots.
            part = None
            for t, piece in enumerate(pieces):
                d = jnp.dot(piece.reshape(th * W, C),
                            w_ref[t * C:(t + 1) * C, :],
                            preferred_element_type=jnp.float32)
                part = d if part is None else part + d
        acc = part if acc is None else acc + part

    acc = jnp.maximum(acc + b_ref[...], 0.0)      # folded-BN bias + ReLU (f32)
    o_ref[0, pl.ds(out_off + row0, th), out_off:out_off + W, :] = (
        acc.reshape(th, W, co).astype(o_ref.dtype))


def conv3x3_bn_relu(xs_padded, ws, bias, out_dtype, out_halo):
    """xs_padded[i]: (N, H+2, W+2, Ci) bf16; ws[i]: (9*Ci, Co_pad) bf16;
    bias: (1, Co_pad) f32 -> (N, H+2*out_halo, W+2*out_halo, Co_pad)."""
    n_in = len(xs_padded)
    N, Hp, Wp = xs_padded[0].shape[:3]
    H, W = Hp - 2, Wp - 2
    co_pad = ws[0].shape[-1]
    th = _pick_row_tile(H, W, co_pad)
    Ho, Wo = H + 2 * out_halo, W + 2 * out_halo

    # TODO(synk): row-tile the input blocks with a halo + tile the K reduction
    #             for production channel counts on v7x (64 MiB VMEM).
    in_specs = [pl.BlockSpec((1,) + x.shape[1:], lambda n, r: (n, 0, 0, 0))
                for x in xs_padded]
    in_specs += [pl.BlockSpec(w.shape, lambda n, r: (0, 0)) for w in ws]
    in_specs.append(pl.BlockSpec(bias.shape, lambda n, r: (0, 0)))

    kernel = functools.partial(_conv3x3_fused_kernel, n_in=n_in, th=th,
                               W=W, H=H, out_off=out_halo)
    return pl.pallas_call(
        kernel,
        out_shape=jax.ShapeDtypeStruct((N, Ho, Wo, co_pad), out_dtype),
        grid_spec=pltpu.PrefetchScalarGridSpec(
            num_scalar_prefetch=0,
            grid=(N, pl.cdiv(H, th)),
            in_specs=in_specs,
            # Output block is resident across the row-tile axis (needed for the
            # zero halo border), hence that axis is "arbitrary".
            out_specs=pl.BlockSpec((1, Ho, Wo, co_pad),
                                   lambda n, r: (n, 0, 0, 0)),
        ),
        compiler_params=pltpu.CompilerParams(
            dimension_semantics=("parallel", "arbitrary"),
            vmem_limit_bytes=_vmem_limit_bytes()),
    )(*xs_padded, *ws, bias)


# ---------------------------------------------------------------------------
# Parameter prep (BN folding, weight layout) — tiny JAX glue.
# ---------------------------------------------------------------------------
def _fold_bn(conv_b, bn, eps=1e-5):
    gamma, beta, mean, var = bn
    scale = gamma / jnp.sqrt(var + eps)
    return scale, scale * (conv_b - mean) + beta


def _prep_conv_weight(w_oihw, scale, co_pad, ci_pad=None):
    """(Co,Ci,3,3)*scale[Co] -> (9*ci_pad, co_pad) bf16, row = tap*ci_pad + ci,
    tap = dy*3 + dx (matches the kernel's im2col / per-tap ordering)."""
    co, ci = w_oihw.shape[:2]
    w = w_oihw * scale[:, None, None, None]
    w = jnp.transpose(w, (2, 3, 1, 0)).reshape(9, ci, co)
    ci_pad = ci if ci_pad is None else ci_pad
    w = jnp.pad(w, ((0, 0), (0, ci_pad - ci), (0, co_pad - co)))
    return w.reshape(9 * ci_pad, co_pad).astype(jnp.bfloat16)


# ---------------------------------------------------------------------------
# Up module (bilinear=False): upsample -> pad -> concat -> DoubleConv
# ---------------------------------------------------------------------------
def init_up_params(key, in_ch, out_ch):
    ks = jax.random.split(key, 8)
    n = lambda k, s: (0.1 * jax.random.normal(k, s)).astype(jnp.float32)

    def bn(k):
        return tuple(v.astype(jnp.float32) for v in (
            1.0 + 0.1 * jax.random.normal(jax.random.fold_in(k, 0), (out_ch,)),
            0.1 * jax.random.normal(jax.random.fold_in(k, 1), (out_ch,)),
            0.1 * jax.random.normal(jax.random.fold_in(k, 2), (out_ch,)),
            1.0 + jnp.abs(0.1 * jax.random.normal(jax.random.fold_in(k, 3), (out_ch,))),
        ))

    return {
        "up_w": n(ks[0], (in_ch, in_ch // 2, 2, 2)),   # ConvTranspose2d weight
        "up_b": n(ks[1], (in_ch // 2,)),
        "conv1_w": n(ks[2], (out_ch, in_ch, 3, 3)),
        "conv1_b": n(ks[3], (out_ch,)),
        "bn1": bn(ks[4]),
        "conv2_w": n(ks[5], (out_ch, out_ch, 3, 3)),
        "conv2_b": n(ks[6], (out_ch,)),
        "bn2": bn(ks[7]),
    }


def up_forward(params, x1_nchw, x2_nchw):
    """x1: (N, in_ch, H1, W1), x2: (N, in_ch//2, H, W) -> (N, out_ch, H, W)."""
    x1 = jnp.transpose(x1_nchw, (0, 2, 3, 1))
    x2 = jnp.transpose(x2_nchw, (0, 2, 3, 1))
    N, H, W, C2 = x2.shape
    out_ch = params["conv1_w"].shape[0]
    c2p = _round_up(max(C2, 128), 128)   # lane-dense upsampled branch
    co_pad = _round_up(out_ch, 128)      # lane-dense conv outputs

    # 1+2) ConvTranspose2d(in_ch, in_ch//2, k=2, s=2), F.pad to x2's spatial
    #      dims AND the conv-1 halo, all written by one kernel (no jnp.pad).
    y_pad = conv_transpose2x2_s2_padded(x1, params["up_w"], params["up_b"],
                                        c2p, H, W)

    # x2: bf16 cast + 1-px halo in one fused XLA pass (tiny 4-channel tensor).
    x2_pad = jnp.pad(x2.astype(jnp.bfloat16), ((0, 0), (1, 1), (1, 1), (0, 0)))

    # 3+4a) concat([x2, y]) fused into conv1 (split folded weights); conv1
    #       writes its output with its own halo so conv2 needs no jnp.pad.
    s1, b1 = _fold_bn(params["conv1_b"], params["bn1"])
    w1_x2 = _prep_conv_weight(params["conv1_w"][:, :C2], s1, co_pad)
    w1_y = _prep_conv_weight(params["conv1_w"][:, C2:], s1, co_pad, ci_pad=c2p)
    b1 = jnp.pad(b1, (0, co_pad - out_ch)).reshape(1, co_pad).astype(jnp.float32)
    h_pad = conv3x3_bn_relu([x2_pad, y_pad], [w1_x2, w1_y], b1,
                            jnp.bfloat16, out_halo=1)

    # 4b) second conv of DoubleConv (bf16 output halves the final HBM write).
    s2, b2 = _fold_bn(params["conv2_b"], params["bn2"])
    w2 = _prep_conv_weight(params["conv2_w"], s2, co_pad, ci_pad=co_pad)
    b2 = jnp.pad(b2, (0, co_pad - out_ch)).reshape(1, co_pad).astype(jnp.float32)
    out = conv3x3_bn_relu([h_pad], [w2], b2, jnp.bfloat16, out_halo=0)

    # Drop channel padding, back to NCHW f32 (PyTorch module interface).
    return jnp.transpose(out[..., :out_ch].astype(jnp.float32), (0, 3, 1, 2))


if __name__ == "__main__":
    in_ch, out_ch = 8, 4
    key = jax.random.PRNGKey(0)
    k1, k2, kp = jax.random.split(key, 3)

    # x1: deeper UNet feature map (half spatial res, full channels);
    # x2: skip connection (double spatial res, in_ch//2 channels).
    x1 = jax.random.normal(k1, (2, in_ch, 8, 8), dtype=jnp.float32)         # NCHW
    x2 = jax.random.normal(k2, (2, in_ch // 2, 16, 16), dtype=jnp.float32)  # NCHW

    params = init_up_params(kp, in_ch, out_ch)

    out = jax.jit(up_forward)(params, x1, x2)
    jax.block_until_ready(out)
    assert out.shape == (2, out_ch, 16, 16), out.shape
    print("KERNEL_OK")
</pallas_src>

<mosaic_0001>
module attributes {stable_mosaic.version = 11 : i64} {
  func.func @_upconv2x2_kernel(%arg0: i32, %arg1: memref<2x8x8x8xbf16, #tpu.memory_space<vmem>>, %arg2: memref<8x512xbf16, #tpu.memory_space<vmem>>, %arg3: memref<1x512xf32, #tpu.memory_space<vmem>>, %arg4: memref<2x18x18x128xbf16, #tpu.memory_space<vmem>>) attributes {dimension_semantics = [#tpu.dimension_semantics<parallel>], iteration_bounds = array<i64: 1>, scalar_prefetch = 0 : i64, scratch_operands = 0 : i64, tpu.core_type = #tpu.core_type<tc>, window_params = [{transform_indices = @transform_0, window_bounds = array<i64: 2, 8, 8, 8>}, {pipeline_mode = #tpu.pipeline_mode<synchronous>, transform_indices = @transform_1, window_bounds = array<i64: 8, 512>}, {pipeline_mode = #tpu.pipeline_mode<synchronous>, transform_indices = @transform_2, window_bounds = array<i64: 1, 512>}, {transform_indices = @transform_3, window_bounds = array<i64: 2, 18, 18, 128>}]} {
    %c0 = arith.constant 0 : index
    %c0_0 = arith.constant 0 : index
    %c0_1 = arith.constant 0 : index
    %c0_2 = arith.constant 0 : index
    %0 = vector.load %arg1[%c0, %c0_0, %c0_1, %c0_2] : memref<2x8x8x8xbf16, #tpu.memory_space<vmem>>, vector<2x8x8x8xbf16>
    %1 = vector.shape_cast %0 : vector<2x8x8x8xbf16> to vector<128x8xbf16>
    %c0_3 = arith.constant 0 : index
    %c0_4 = arith.constant 0 : index
    %2 = vector.load %arg2[%c0_3, %c0_4] : memref<8x512xbf16, #tpu.memory_space<vmem>>, vector<8x512xbf16>
    %cst = arith.constant dense<0.000000e+00> : vector<128x512xf32>
    %3 = tpu.matmul %1, %2, %cst {dimension_numbers = #tpu.dot_dimension_numbers<[1], [0], [0], [1], [0, 0, 1, 1], [], []>} : vector<128x8xbf16>, vector<8x512xbf16>, vector<128x512xf32> -> vector<128x512xf32>
    %c0_5 = arith.constant 0 : index
    %c0_6 = arith.constant 0 : index
    %4 = vector.load %arg3[%c0_5, %c0_6] : memref<1x512xf32, #tpu.memory_space<vmem>>, vector<1x512xf32>
    %5 = vector.broadcast %4 : vector<1x512xf32> to vector<128x512xf32>
    %6 = arith.addf %3, %5 : vector<128x512xf32>
    %7 = arith.truncf %6 : vector<128x512xf32> to vector<128x512xbf16>
    %8 = vector.shape_cast %7 : vector<128x512xbf16> to vector<2x8x8x2x2x128xbf16>
    %cst_7 = arith.constant 0.000000e+00 : bf16
    %9 = vector.broadcast %cst_7 : bf16 to vector<2x18x18x128xbf16>
    %c0_8 = arith.constant 0 : index
    %c0_9 = arith.constant 0 : index
    %c0_10 = arith.constant 0 : index
    %c0_11 = arith.constant 0 : index
    %10 = vector.load %arg4[%c0_8, %c0_9, %c0_10, %c0_11] : memref<2x18x18x128xbf16, #tpu.memory_space<vmem>>, vector<2x18x18x128xbf16>
    tpu.vector_store %arg4[%c0_8, %c0_9, %c0_10, %c0_11], %9 {strides = array<i32>} : memref<2x18x18x128xbf16, #tpu.memory_space<vmem>>, vector<2x18x18x128xbf16>,
    %11 = vector.extract_strided_slice %8 {offsets = [0, 0, 0, 0, 0, 0], sizes = [2, 8, 8, 1, 2, 128], strides = [1, 1, 1, 1, 1, 1]} : vector<2x8x8x2x2x128xbf16> to vector<2x8x8x1x2x128xbf16>
    %12 = vector.shape_cast %11 : vector<2x8x8x1x2x128xbf16> to vector<2x8x8x2x128xbf16>
    %13 = vector.shape_cast %12 : vector<2x8x8x2x128xbf16> to vector<2x8x16x128xbf16>
    %14 = vector.extract_strided_slice %13 {offsets = [0, 0, 0, 0], sizes = [2, 1, 16, 128], strides = [1, 1, 1, 1]} : vector<2x8x16x128xbf16> to vector<2x1x16x128xbf16>
    %15 = vector.shape_cast %14 : vector<2x1x16x128xbf16> to vector<2x16x128xbf16>
    %c0_12 = arith.constant 0 : index
    %c1 = arith.constant 1 : index
    %c1_13 = arith.constant 1 : index
    %c0_14 = arith.constant 0 : index
    %16 = vector.load %arg4[%c0_12, %c1, %c1_13, %c0_14] : memref<2x18x18x128xbf16, #tpu.memory_space<vmem>>, vector<2x1x16x128xbf16>
    %17 = vector.shape_cast %16 : vector<2x1x16x128xbf16> to vector<2x16x128xbf16>
    %18 = vector.shape_cast %15 : vector<2x16x128xbf16> to vector<2x1x16x128xbf16>
    tpu.vector_store %arg4[%c0_12, %c1, %c1_13, %c0_14], %18 {strides = array<i32>} : memref<2x18x18x128xbf16, #tpu.memory_space<vmem>>, vector<2x1x16x128xbf16>,
    %19 = vector.extract_strided_slice %13 {offsets = [0, 1, 0, 0], sizes = [2, 1, 16, 128], strides = [1, 1, 1, 1]} : vector<2x8x16x128xbf16> to vector<2x1x16x128xbf16>
    %20 = vector.shape_cast %19 : vector<2x1x16x128xbf16> to vector<2x16x128xbf16>
    %c0_15 = arith.constant 0 : index
    %c3 = arith.constant 3 : index
    %c1_16 = arith.constant 1 : index
    %c0_17 = arith.constant 0 : index
    %21 = vector.load %arg4[%c0_15, %c3, %c1_16, %c0_17] : memref<2x18x18x128xbf16, #tpu.memory_space<vmem>>, vector<2x1x16x128xbf16>
    %22 = vector.shape_cast %21 : vector<2x1x16x128xbf16> to vector<2x16x128xbf16>
    %23 = vector.shape_cast %20 : vector<2x16x128xbf16> to vector<2x1x16x128xbf16>
    tpu.vector_store %arg4[%c0_15, %c3, %c1_16, %c0_17], %23 {strides = array<i32>} : memref<2x18x18x128xbf16, #tpu.memory_space<vmem>>, vector<2x1x16x128xbf16>,
    %24 = vector.extract_strided_slice %13 {offsets = [0, 2, 0, 0], sizes = [2, 1, 16, 128], strides = [1, 1, 1, 1]} : vector<2x8x16x128xbf16> to vector<2x1x16x128xbf16>
    %25 = vector.shape_cast %24 : vector<2x1x16x128xbf16> to vector<2x16x128xbf16>
    %c0_18 = arith.constant 0 : index
    %c5 = arith.constant 5 : index
    %c1_19 = arith.constant 1 : index
    %c0_20 = arith.constant 0 : index
    %26 = vector.load %arg4[%c0_18, %c5, %c1_19, %c0_20] : memref<2x18x18x128xbf16, #tpu.memory_space<vmem>>, vector<2x1x16x128xbf16>
    %27 = vector.shape_cast %26 : vector<2x1x16x128xbf16> to vector<2x16x128xbf16>
    %28 = vector.shape_cast %25 : vector<2x16x128xbf16> to vector<2x1x16x128xbf16>
    tpu.vector_store %arg4[%c0_18, %c5, %c1_19, %c0_20], %28 {strides = array<i32>} : memref<2x18x18x128xbf16, #tpu.memory_space<vmem>>, vector<2x1x16x128xbf16>,
    %29 = vector.extract_strided_slice %13 {offsets = [0, 3, 0, 0], sizes = [2, 1, 16, 128], strides = [1, 1, 1, 1]} : vector<2x8x16x128xbf16> to vector<2x1x16x128xbf16>
    %30 = vector.shape_cast %29 : vector<2x1x16x128xbf16> to vector<2x16x128xbf16>
    %c0_21 = arith.constant 0 : index
    %c7 = arith.constant 7 : index
    %c1_22 = arith.constant 1 : index
    %c0_23 = arith.constant 0 : index
    %31 = vector.load %arg4[%c0_21, %c7, %c1_22, %c0_23] : memref<2x18x18x128xbf16, #tpu.memory_space<vmem>>, vector<2x1x16x128xbf16>
    %32 = vector.shape_cast %31 : vector<2x1x16x128xbf16> to vector<2x16x128xbf16>
    %33 = vector.shape_cast %30 : vector<2x16x128xbf16> to vector<2x1x16x128xbf16>
    tpu.vector_store %arg4[%c0_21, %c7, %c1_22, %c0_23], %33 {strides = array<i32>} : memref<2x18x18x128xbf16, #tpu.memory_space<vmem>>, vector<2x1x16x128xbf16>,
    %34 = vector.extract_strided_slice %13 {offsets = [0, 4, 0, 0], sizes = [2, 1, 16, 128], strides = [1, 1, 1, 1]} : vector<2x8x16x128xbf16> to vector<2x1x16x128xbf16>
    %35 = vector.shape_cast %34 : vector<2x1x16x128xbf16> to vector<2x16x128xbf16>
    %c0_24 = arith.constant 0 : index
    %c9 = arith.constant 9 : index
    %c1_25 = arith.constant 1 : index
    %c0_26 = arith.constant 0 : index
    %36 = vector.load %arg4[%c0_24, %c9, %c1_25, %c0_26] : memref<2x18x18x128xbf16, #tpu.memory_space<vmem>>, vector<2x1x16x128xbf16>
    %37 = vector.shape_cast %36 : vector<2x1x16x128xbf16> to vector<2x16x128xbf16>
    %38 = vector.shape_cast %35 : vector<2x16x128xbf16> to vector<2x1x16x128xbf16>
    tpu.vector_store %arg4[%c0_24, %c9, %c1_25, %c0_26], %38 {strides = array<i32>} : memref<2x18x18x128xbf16, #tpu.memory_space<vmem>>, vector<2x1x16x128xbf16>,
    %39 = vector.extract_strided_slice %13 {offsets = [0, 5, 0, 0], sizes = [2, 1, 16, 128], strides = [1, 1, 1, 1]} : vector<2x8x16x128xbf16> to vector<2x1x16x128xbf16>
    %40 = vector.shape_cast %39 : vector<2x1x16x128xbf16> to vector<2x16x128xbf16>
    %c0_27 = arith.constant 0 : index
    %c11 = arith.constant 11 : index
    %c1_28 = arith.constant 1 : index
    %c0_29 = arith.constant 0 : index
    %41 = vector.load %arg4[%c0_27, %c11, %c1_28, %c0_29] : memref<2x18x18x128xbf16, #tpu.memory_space<vmem>>, vector<2x1x16x128xbf16>
    %42 = vector.shape_cast %41 : vector<2x1x16x128xbf16> to vector<2x16x128xbf16>
    %43 = vector.shape_cast %40 : vector<2x16x128xbf16> to vector<2x1x16x128xbf16>
    tpu.vector_store %arg4[%c0_27, %c11, %c1_28, %c0_29], %43 {strides = array<i32>} : memref<2x18x18x128xbf16, #tpu.memory_space<vmem>>, vector<2x1x16x128xbf16>,
    %44 = vector.extract_strided_slice %13 {offsets = [0, 6, 0, 0], sizes = [2, 1, 16, 128], strides = [1, 1, 1, 1]} : vector<2x8x16x128xbf16> to vector<2x1x16x128xbf16>
    %45 = vector.shape_cast %44 : vector<2x1x16x128xbf16> to vector<2x16x128xbf16>
    %c0_30 = arith.constant 0 : index
    %c13 = arith.constant 13 : index
    %c1_31 = arith.constant 1 : index
    %c0_32 = arith.constant 0 : index
    %46 = vector.load %arg4[%c0_30, %c13, %c1_31, %c0_32] : memref<2x18x18x128xbf16, #tpu.memory_space<vmem>>, vector<2x1x16x128xbf16>
    %47 = vector.shape_cast %46 : vector<2x1x16x128xbf16> to vector<2x16x128xbf16>
    %48 = vector.shape_cast %45 : vector<2x16x128xbf16> to vector<2x1x16x128xbf16>
    tpu.vector_store %arg4[%c0_30, %c13, %c1_31, %c0_32], %48 {strides = array<i32>} : memref<2x18x18x128xbf16, #tpu.memory_space<vmem>>, vector<2x1x16x128xbf16>,
    %49 = vector.extract_strided_slice %13 {offsets = [0, 7, 0, 0], sizes = [2, 1, 16, 128], strides = [1, 1, 1, 1]} : vector<2x8x16x128xbf16> to vector<2x1x16x128xbf16>
    %50 = vector.shape_cast %49 : vector<2x1x16x128xbf16> to vector<2x16x128xbf16>
    %c0_33 = arith.constant 0 : index
    %c15 = arith.constant 15 : index
    %c1_34 = arith.constant 1 : index
    %c0_35 = arith.constant 0 : index
    %51 = vector.load %arg4[%c0_33, %c15, %c1_34, %c0_35] : memref<2x18x18x128xbf16, #tpu.memory_space<vmem>>, vector<2x1x16x128xbf16>
    %52 = vector.shape_cast %51 : vector<2x1x16x128xbf16> to vector<2x16x128xbf16>
    %53 = vector.shape_cast %50 : vector<2x16x128xbf16> to vector<2x1x16x128xbf16>
    tpu.vector_store %arg4[%c0_33, %c15, %c1_34, %c0_35], %53 {strides = array<i32>} : memref<2x18x18x128xbf16, #tpu.memory_space<vmem>>, vector<2x1x16x128xbf16>,
    %54 = vector.extract_strided_slice %8 {offsets = [0, 0, 0, 1, 0, 0], sizes = [2, 8, 8, 1, 2, 128], strides = [1, 1, 1, 1, 1, 1]} : vector<2x8x8x2x2x128xbf16> to vector<2x8x8x1x2x128xbf16>
    %55 = vector.shape_cast %54 : vector<2x8x8x1x2x128xbf16> to vector<2x8x8x2x128xbf16>
    %56 = vector.shape_cast %55 : vector<2x8x8x2x128xbf16> to vector<2x8x16x128xbf16>
    %57 = vector.extract_strided_slice %56 {offsets = [0, 0, 0, 0], sizes = [2, 1, 16, 128], strides = [1, 1, 1, 1]} : vector<2x8x16x128xbf16> to vector<2x1x16x128xbf16>
    %58 = vector.shape_cast %57 : vector<2x1x16x128xbf16> to vector<2x16x128xbf16>
    %c0_36 = arith.constant 0 : index
    %c2 = arith.constant 2 : index
    %c1_37 = arith.constant 1 : index
    %c0_38 = arith.constant 0 : index
    %59 = vector.load %arg4[%c0_36, %c2, %c1_37, %c0_38] : memref<2x18x18x128xbf16, #tpu.memory_space<vmem>>, vector<2x1x16x128xbf16>
    %60 = vector.shape_cast %59 : vector<2x1x16x128xbf16> to vector<2x16x128xbf16>
    %61 = vector.shape_cast %58 : vector<2x16x128xbf16> to vector<2x1x16x128xbf16>
    tpu.vector_store %arg4[%c0_36, %c2, %c1_37, %c0_38], %61 {strides = array<i32>} : memref<2x18x18x128xbf16, #tpu.memory_space<vmem>>, vector<2x1x16x128xbf16>,
    %62 = vector.extract_strided_slice %56 {offsets = [0, 1, 0, 0], sizes = [2, 1, 16, 128], strides = [1, 1, 1, 1]} : vector<2x8x16x128xbf16> to vector<2x1x16x128xbf16>
    %63 = vector.shape_cast %62 : vector<2x1x16x128xbf16> to vector<2x16x128xbf16>
    %c0_39 = arith.constant 0 : index
    %c4 = arith.constant 4 : index
    %c1_40 = arith.constant 1 : index
    %c0_41 = arith.constant 0 : index
    %64 = vector.load %arg4[%c0_39, %c4, %c1_40, %c0_41] : memref<2x18x18x128xbf16, #tpu.memory_space<vmem>>, vector<2x1x16x128xbf16>
    %65 = vector.shape_cast %64 : vector<2x1x16x128xbf16> to vector<2x16x128xbf16>
    %66 = vector.shape_cast %63 : vector<2x16x128xbf16> to vector<2x1x16x128xbf16>
    tpu.vector_store %arg4[%c0_39, %c4, %c1_40, %c0_41], %66 {strides = array<i32>} : memref<2x18x18x128xbf16, #tpu.memory_space<vmem>>, vector<2x1x16x128xbf16>,
    %67 = vector.extract_strided_slice %56 {offsets = [0, 2, 0, 0], sizes = [2, 1, 16, 128], strides = [1, 1, 1, 1]} : vector<2x8x16x128xbf16> to vector<2x1x16x128xbf16>
    %68 = vector.shape_cast %67 : vector<2x1x16x128xbf16> to vector<2x16x128xbf16>
    %c0_42 = arith.constant 0 : index
    %c6 = arith.constant 6 : index
    %c1_43 = arith.constant 1 : index
    %c0_44 = arith.constant 0 : index
    %69 = vector.load %arg4[%c0_42, %c6, %c1_43, %c0_44] : memref<2x18x18x128xbf16, #tpu.memory_space<vmem>>, vector<2x1x16x128xbf16>
    %70 = vector.shape_cast %69 : vector<2x1x16x128xbf16> to vector<2x16x128xbf16>
    %71 = vector.shape_cast %68 : vector<2x16x128xbf16> to vector<2x1x16x128xbf16>
    tpu.vector_store %arg4[%c0_42, %c6, %c1_43, %c0_44], %71 {strides = array<i32>} : memref<2x18x18x128xbf16, #tpu.memory_space<vmem>>, vector<2x1x16x128xbf16>,
    %72 = vector.extract_strided_slice %56 {offsets = [0, 3, 0, 0], sizes = [2, 1, 16, 128], strides = [1, 1, 1, 1]} : vector<2x8x16x128xbf16> to vector<2x1x16x128xbf16>
    %73 = vector.shape_cast %72 : vector<2x1x16x128xbf16> to vector<2x16x128xbf16>
    %c0_45 = arith.constant 0 : index
    %c8 = arith.constant 8 : index
    %c1_46 = arith.constant 1 : index
    %c0_47 = arith.constant 0 : index
    %74 = vector.load %arg4[%c0_45, %c8, %c1_46, %c0_47] : memref<2x18x18x128xbf16, #tpu.memory_space<vmem>>, vector<2x1x16x128xbf16>
    %75 = vector.shape_cast %74 : vector<2x1x16x128xbf16> to vector<2x16x128xbf16>
    %76 = vector.shape_cast %73 : vector<2x16x128xbf16> to vector<2x1x16x128xbf16>
    tpu.vector_store %arg4[%c0_45, %c8, %c1_46, %c0_47], %76 {strides = array<i32>} : memref<2x18x18x128xbf16, #tpu.memory_space<vmem>>, vector<2x1x16x128xbf16>,
    %77 = vector.extract_strided_slice %56 {offsets = [0, 4, 0, 0], sizes = [2, 1, 16, 128], strides = [1, 1, 1, 1]} : vector<2x8x16x128xbf16> to vector<2x1x16x128xbf16>
    %78 = vector.shape_cast %77 : vector<2x1x16x128xbf16> to vector<2x16x128xbf16>
    %c0_48 = arith.constant 0 : index
    %c10 = arith.constant 10 : index
    %c1_49 = arith.constant 1 : index
    %c0_50 = arith.constant 0 : index
    %79 = vector.load %arg4[%c0_48, %c10, %c1_49, %c0_50] : memref<2x18x18x128xbf16, #tpu.memory_space<vmem>>, vector<2x1x16x128xbf16>
    %80 = vector.shape_cast %79 : vector<2x1x16x128xbf16> to vector<2x16x128xbf16>
    %81 = vector.shape_cast %78 : vector<2x16x128xbf16> to vector<2x1x16x128xbf16>
    tpu.vector_store %arg4[%c0_48, %c10, %c1_49, %c0_50], %81 {strides = array<i32>} : memref<2x18x18x128xbf16, #tpu.memory_space<vmem>>, vector<2x1x16x128xbf16>,
    %82 = vector.extract_strided_slice %56 {offsets = [0, 5, 0, 0], sizes = [2, 1, 16, 128], strides = [1, 1, 1, 1]} : vector<2x8x16x128xbf16> to vector<2x1x16x128xbf16>
    %83 = vector.shape_cast %82 : vector<2x1x16x128xbf16> to vector<2x16x128xbf16>
    %c0_51 = arith.constant 0 : index
    %c12 = arith.constant 12 : index
    %c1_52 = arith.constant 1 : index
    %c0_53 = arith.constant 0 : index
    %84 = vector.load %arg4[%c0_51, %c12, %c1_52, %c0_53] : memref<2x18x18x128xbf16, #tpu.memory_space<vmem>>, vector<2x1x16x128xbf16>
    %85 = vector.shape_cast %84 : vector<2x1x16x128xbf16> to vector<2x16x128xbf16>
    %86 = vector.shape_cast %83 : vector<2x16x128xbf16> to vector<2x1x16x128xbf16>
    tpu.vector_store %arg4[%c0_51, %c12, %c1_52, %c0_53], %86 {strides = array<i32>} : memref<2x18x18x128xbf16, #tpu.memory_space<vmem>>, vector<2x1x16x128xbf16>,
    %87 = vector.extract_strided_slice %56 {offsets = [0, 6, 0, 0], sizes = [2, 1, 16, 128], strides = [1, 1, 1, 1]} : vector<2x8x16x128xbf16> to vector<2x1x16x128xbf16>
    %88 = vector.shape_cast %87 : vector<2x1x16x128xbf16> to vector<2x16x128xbf16>
    %c0_54 = arith.constant 0 : index
    %c14 = arith.constant 14 : index
    %c1_55 = arith.constant 1 : index
    %c0_56 = arith.constant 0 : index
    %89 = vector.load %arg4[%c0_54, %c14, %c1_55, %c0_56] : memref<2x18x18x128xbf16, #tpu.memory_space<vmem>>, vector<2x1x16x128xbf16>
    %90 = vector.shape_cast %89 : vector<2x1x16x128xbf16> to vector<2x16x128xbf16>
    %91 = vector.shape_cast %88 : vector<2x16x128xbf16> to vector<2x1x16x128xbf16>
    tpu.vector_store %arg4[%c0_54, %c14, %c1_55, %c0_56], %91 {strides = array<i32>} : memref<2x18x18x128xbf16, #tpu.memory_space<vmem>>, vector<2x1x16x128xbf16>,
    %92 = vector.extract_strided_slice %56 {offsets = [0, 7, 0, 0], sizes = [2, 1, 16, 128], strides = [1, 1, 1, 1]} : vector<2x8x16x128xbf16> to vector<2x1x16x128xbf16>
    %93 = vector.shape_cast %92 : vector<2x1x16x128xbf16> to vector<2x16x128xbf16>
    %c0_57 = arith.constant 0 : index
    %c16 = arith.constant 16 : index
    %c1_58 = arith.constant 1 : index
    %c0_59 = arith.constant 0 : index
    %94 = vector.load %arg4[%c0_57, %c16, %c1_58, %c0_59] : memref<2x18x18x128xbf16, #tpu.memory_space<vmem>>, vector<2x1x16x128xbf16>
    %95 = vector.shape_cast %94 : vector<2x1x16x128xbf16> to vector<2x16x128xbf16>
    %96 = vector.shape_cast %93 : vector<2x16x128xbf16> to vector<2x1x16x128xbf16>
    tpu.vector_store %arg4[%c0_57, %c16, %c1_58, %c0_59], %96 {strides = array<i32>} : memref<2x18x18x128xbf16, #tpu.memory_space<vmem>>, vector<2x1x16x128xbf16>,
    return
  }
  func.func @transform_0(%arg0: i32) -> (i32, i32, i32, i32) {
    %c0_i32 = arith.constant 0 : i32
    %c0_i32_0 = arith.constant 0 : i32
    %c0_i32_1 = arith.constant 0 : i32
    %c0_i32_2 = arith.constant 0 : i32
    return %arg0, %c0_i32, %c0_i32_0, %c0_i32_1 : i32, i32, i32, i32
  }
  func.func @transform_1(%arg0: i32) -> (i32, i32) {
    %c0_i32 = arith.constant 0 : i32
    %c0_i32_0 = arith.constant 0 : i32
    %c0_i32_1 = arith.constant 0 : i32
    return %c0_i32, %c0_i32_0 : i32, i32
  }
  func.func @transform_2(%arg0: i32) -> (i32, i32) {
    %c0_i32 = arith.constant 0 : i32
    %c0_i32_0 = arith.constant 0 : i32
    %c0_i32_1 = arith.constant 0 : i32
    return %c0_i32, %c0_i32_0 : i32, i32
  }
  func.func @transform_3(%arg0: i32) -> (i32, i32, i32, i32) {
    %c0_i32 = arith.constant 0 : i32
    %c0_i32_0 = arith.constant 0 : i32
    %c0_i32_1 = arith.constant 0 : i32
    %c0_i32_2 = arith.constant 0 : i32
    return %arg0, %c0_i32, %c0_i32_0, %c0_i32_1 : i32, i32, i32, i32
  }
}

module attributes {stable_mosaic.version = 11 : i64} {
  func.func @_conv3x3_fused_kernel(%arg0: i32, %arg1: i32, %arg2: memref<1x18x18x4xbf16, #tpu.memory_space<vmem>>, %arg3: memref<1x18x18x128xbf16, #tpu.memory_space<vmem>>, %arg4: memref<36x128xbf16, #tpu.memory_space<vmem>>, %arg5: memref<1152x128xbf16, #tpu.memory_space<vmem>>, %arg6: memref<1x128xf32, #tpu.memory_space<vmem>>, %arg7: memref<1x18x18x128xbf16, #tpu.memory_space<vmem>>) attributes {dimension_semantics = [#tpu.dimension_semantics<parallel>, #tpu.dimension_semantics<arbitrary>], iteration_bounds = array<i64: 2, 1>, scalar_prefetch = 0 : i64, scratch_operands = 0 : i64, tpu.core_type = #tpu.core_type<tc>, window_params = [{transform_indices = @transform_0, window_bounds = array<i64: 1, 18, 18, 4>}, {transform_indices = @transform_1, window_bounds = array<i64: 1, 18, 18, 128>}, {pipeline_mode = #tpu.pipeline_mode<synchronous>, transform_indices = @transform_2, window_bounds = array<i64: 36, 128>}, {pipeline_mode = #tpu.pipeline_mode<synchronous>, transform_indices = @transform_3, window_bounds = array<i64: 1152, 128>}, {pipeline_mode = #tpu.pipeline_mode<synchronous>, transform_indices = @transform_4, window_bounds = array<i64: 1, 128>}, {transform_indices = @transform_5, window_bounds = array<i64: 1, 18, 18, 128>}]} {
    %c16_i32 = arith.constant 16 : i32
    %0 = arith.muli %arg1, %c16_i32 : i32
    %c0_i32 = arith.constant 0 : i32
    %1 = arith.minsi %0, %c0_i32 : i32
    %c0_i32_0 = arith.constant 0 : i32
    %2 = arith.cmpi eq, %arg1, %c0_i32_0 : i32
    %3 = arith.extui %2 : i1 to i32
    %c0_i32_1 = arith.constant 0 : i32
    %4 = arith.cmpi ne, %3, %c0_i32_1 : i32
    scf.if %4 {
      %cst_44 = arith.constant 0.000000e+00 : bf16
      %93 = vector.broadcast %cst_44 : bf16 to vector<1x18x18x128xbf16>
      %c0_45 = arith.constant 0 : index
      %c0_46 = arith.constant 0 : index
      %c0_47 = arith.constant 0 : index
      %c0_48 = arith.constant 0 : index
      %94 = vector.load %arg7[%c0_45, %c0_46, %c0_47, %c0_48] : memref<1x18x18x128xbf16, #tpu.memory_space<vmem>>, vector<1x18x18x128xbf16>
      tpu.vector_store %arg7[%c0_45, %c0_46, %c0_47, %c0_48], %93 {strides = array<i32>} : memref<1x18x18x128xbf16, #tpu.memory_space<vmem>>, vector<1x18x18x128xbf16>,
    } else {
    }
    %c0 = arith.constant 0 : index
    %5 = arith.index_cast %1 : i32 to index
    %c0_2 = arith.constant 0 : index
    %c0_3 = arith.constant 0 : index
    %6 = vector.load %arg2[%c0, %5, %c0_2, %c0_3] : memref<1x18x18x4xbf16, #tpu.memory_space<vmem>>, vector<1x18x16x4xbf16>
    %7 = vector.shape_cast %6 : vector<1x18x16x4xbf16> to vector<18x16x4xbf16>
    %c0_4 = arith.constant 0 : index
    %8 = arith.index_cast %1 : i32 to index
    %c1 = arith.constant 1 : index
    %c0_5 = arith.constant 0 : index
    %9 = vector.load %arg2[%c0_4, %8, %c1, %c0_5] : memref<1x18x18x4xbf16, #tpu.memory_space<vmem>>, vector<1x18x16x4xbf16>
    %10 = vector.shape_cast %9 : vector<1x18x16x4xbf16> to vector<18x16x4xbf16>
    %c0_6 = arith.constant 0 : index
    %11 = arith.index_cast %1 : i32 to index
    %c2 = arith.constant 2 : index
    %c0_7 = arith.constant 0 : index
    %12 = vector.load %arg2[%c0_6, %11, %c2, %c0_7] : memref<1x18x18x4xbf16, #tpu.memory_space<vmem>>, vector<1x18x16x4xbf16>
    %13 = vector.shape_cast %12 : vector<1x18x16x4xbf16> to vector<18x16x4xbf16>
    %14 = vector.extract_strided_slice %7 {offsets = [0, 0, 0], sizes = [16, 16, 4], strides = [1, 1, 1]} : vector<18x16x4xbf16> to vector<16x16x4xbf16>
    %15 = vector.extract_strided_slice %10 {offsets = [0, 0, 0], sizes = [16, 16, 4], strides = [1, 1, 1]} : vector<18x16x4xbf16> to vector<16x16x4xbf16>
    %16 = vector.extract_strided_slice %13 {offsets = [0, 0, 0], sizes = [16, 16, 4], strides = [1, 1, 1]} : vector<18x16x4xbf16> to vector<16x16x4xbf16>
    %17 = vector.extract_strided_slice %7 {offsets = [1, 0, 0], sizes = [16, 16, 4], strides = [1, 1, 1]} : vector<18x16x4xbf16> to vector<16x16x4xbf16>
    %18 = vector.extract_strided_slice %10 {offsets = [1, 0, 0], sizes = [16, 16, 4], strides = [1, 1, 1]} : vector<18x16x4xbf16> to vector<16x16x4xbf16>
    %19 = vector.extract_strided_slice %13 {offsets = [1, 0, 0], sizes = [16, 16, 4], strides = [1, 1, 1]} : vector<18x16x4xbf16> to vector<16x16x4xbf16>
    %20 = vector.extract_strided_slice %7 {offsets = [2, 0, 0], sizes = [16, 16, 4], strides = [1, 1, 1]} : vector<18x16x4xbf16> to vector<16x16x4xbf16>
    %21 = vector.extract_strided_slice %10 {offsets = [2, 0, 0], sizes = [16, 16, 4], strides = [1, 1, 1]} : vector<18x16x4xbf16> to vector<16x16x4xbf16>
    %22 = vector.extract_strided_slice %13 {offsets = [2, 0, 0], sizes = [16, 16, 4], strides = [1, 1, 1]} : vector<18x16x4xbf16> to vector<16x16x4xbf16>
    %23 = vector.shape_cast %14 : vector<16x16x4xbf16> to vector<256x4xbf16>
    %c0_8 = arith.constant 0 : index
    %c0_9 = arith.constant 0 : index
    %24 = vector.load %arg4[%c0_8, %c0_9] : memref<36x128xbf16, #tpu.memory_space<vmem>>, vector<4x128xbf16>
    %cst = arith.constant dense<0.000000e+00> : vector<256x128xf32>
    %25 = tpu.matmul %23, %24, %cst {dimension_numbers = #tpu.dot_dimension_numbers<[1], [0], [0], [1], [0, 0, 1, 1], [], []>} : vector<256x4xbf16>, vector<4x128xbf16>, vector<256x128xf32> -> vector<256x128xf32>
    %26 = vector.shape_cast %15 : vector<16x16x4xbf16> to vector<256x4xbf16>
    %c4 = arith.constant 4 : index
    %c0_10 = arith.constant 0 : index
    %27 = vector.load %arg4[%c4, %c0_10] : memref<36x128xbf16, #tpu.memory_space<vmem>>, vector<4x128xbf16>
    %cst_11 = arith.constant dense<0.000000e+00> : vector<256x128xf32>
    %28 = tpu.matmul %26, %27, %cst_11 {dimension_numbers = #tpu.dot_dimension_numbers<[1], [0], [0], [1], [0, 0, 1, 1], [], []>} : vector<256x4xbf16>, vector<4x128xbf16>, vector<256x128xf32> -> vector<256x128xf32>
    %29 = arith.addf %25, %28 : vector<256x128xf32>
    %30 = vector.shape_cast %16 : vector<16x16x4xbf16> to vector<256x4xbf16>
    %c8 = arith.constant 8 : index
    %c0_12 = arith.constant 0 : index
    %31 = vector.load %arg4[%c8, %c0_12] : memref<36x128xbf16, #tpu.memory_space<vmem>>, vector<4x128xbf16>
    %cst_13 = arith.constant dense<0.000000e+00> : vector<256x128xf32>
    %32 = tpu.matmul %30, %31, %cst_13 {dimension_numbers = #tpu.dot_dimension_numbers<[1], [0], [0], [1], [0, 0, 1, 1], [], []>} : vector<256x4xbf16>, vector<4x128xbf16>, vector<256x128xf32> -> vector<256x128xf32>
    %33 = arith.addf %29, %32 : vector<256x128xf32>
    %34 = vector.shape_cast %17 : vector<16x16x4xbf16> to vector<256x4xbf16>
    %c12 = arith.constant 12 : index
    %c0_14 = arith.constant 0 : index
    %35 = vector.load %arg4[%c12, %c0_14] : memref<36x128xbf16, #tpu.memory_space<vmem>>, vector<4x128xbf16>
    %cst_15 = arith.constant dense<0.000000e+00> : vector<256x128xf32>
    %36 = tpu.matmul %34, %35, %cst_15 {dimension_numbers = #tpu.dot_dimension_numbers<[1], [0], [0], [1], [0, 0, 1, 1], [], []>} : vector<256x4xbf16>, vector<4x128xbf16>, vector<256x128xf32> -> vector<256x128xf32>
    %37 = arith.addf %33, %36 : vector<256x128xf32>
    %38 = vector.shape_cast %18 : vector<16x16x4xbf16> to vector<256x4xbf16>
    %c16 = arith.constant 16 : index
    %c0_16 = arith.constant 0 : index
    %39 = vector.load %arg4[%c16, %c0_16] : memref<36x128xbf16, #tpu.memory_space<vmem>>, vector<4x128xbf16>
    %cst_17 = arith.constant dense<0.000000e+00> : vector<256x128xf32>
    %40 = tpu.matmul %38, %39, %cst_17 {dimension_numbers = #tpu.dot_dimension_numbers<[1], [0], [0], [1], [0, 0, 1, 1], [], []>} : vector<256x4xbf16>, vector<4x128xbf16>, vector<256x128xf32> -> vector<256x128xf32>
    %41 = arith.addf %37, %40 : vector<256x128xf32>
    %42 = vector.shape_cast %19 : vector<16x16x4xbf16> to vector<256x4xbf16>
    %c20 = arith.constant 20 : index
    %c0_18 = arith.constant 0 : index
    %43 = vector.load %arg4[%c20, %c0_18] : memref<36x128xbf16, #tpu.memory_space<vmem>>, vector<4x128xbf16>
    %cst_19 = arith.constant dense<0.000000e+00> : vector<256x128xf32>
    %44 = tpu.matmul %42, %43, %cst_19 {dimension_numbers = #tpu.dot_dimension_numbers<[1], [0], [0], [1], [0, 0, 1, 1], [], []>} : vector<256x4xbf16>, vector<4x128xbf16>, vector<256x128xf32> -> vector<256x128xf32>
    %45 = arith.addf %41, %44 : vector<256x128xf32>
    %46 = vector.shape_cast %20 : vector<16x16x4xbf16> to vector<256x4xbf16>
    %c24 = arith.constant 24 : index
    %c0_20 = arith.constant 0 : index
    %47 = vector.load %arg4[%c24, %c0_20] : memref<36x128xbf16, #tpu.memory_space<vmem>>, vector<4x128xbf16>
    %cst_21 = arith.constant dense<0.000000e+00> : vector<256x128xf32>
    %48 = tpu.matmul %46, %47, %cst_21 {dimension_numbers = #tpu.dot_dimension_numbers<[1], [0], [0], [1], [0, 0, 1, 1], [], []>} : vector<256x4xbf16>, vector<4x128xbf16>, vector<256x128xf32> -> vector<256x128xf32>
    %49 = arith.addf %45, %48 : vector<256x128xf32>
    %50 = vector.shape_cast %21 : vector<16x16x4xbf16> to vector<256x4xbf16>
    %c28 = arith.constant 28 : index
    %c0_22 = arith.constant 0 : index
    %51 = vector.load %arg4[%c28, %c0_22] : memref<36x128xbf16, #tpu.memory_space<vmem>>, vector<4x128xbf16>
    %cst_23 = arith.constant dense<0.000000e+00> : vector<256x128xf32>
    %52 = tpu.matmul %50, %51, %cst_23 {dimension_numbers = #tpu.dot_dimension_numbers<[1], [0], [0], [1], [0, 0, 1, 1], [], []>} : vector<256x4xbf16>, vector<4x128xbf16>, vector<256x128xf32> -> vector<256x128xf32>
    %53 = arith.addf %49, %52 : vector<256x128xf32>
    %54 = vector.shape_cast %22 : vector<16x16x4xbf16> to vector<256x4xbf16>
    %c32 = arith.constant 32 : index
    %c0_24 = arith.constant 0 : index
    %55 = vector.load %arg4[%c32, %c0_24] : memref<36x128xbf16, #tpu.memory_space<vmem>>, vector<4x128xbf16>
    %cst_25 = arith.constant dense<0.000000e+00> : vector<256x128xf32>
    %56 = tpu.matmul %54, %55, %cst_25 {dimension_numbers = #tpu.dot_dimension_numbers<[1], [0], [0], [1], [0, 0, 1, 1], [], []>} : vector<256x4xbf16>, vector<4x128xbf16>, vector<256x128xf32> -> vector<256x128xf32>
    %57 = arith.addf %53, %56 : vector<256x128xf32>
    %c0_26 = arith.constant 0 : index
    %58 = arith.index_cast %1 : i32 to index
    %c0_27 = arith.constant 0 : index
    %c0_28 = arith.constant 0 : index
    %59 = vector.load %arg3[%c0_26, %58, %c0_27, %c0_28] : memref<1x18x18x128xbf16, #tpu.memory_space<vmem>>, vector<1x18x16x128xbf16>
    %60 = vector.shape_cast %59 : vector<1x18x16x128xbf16> to vector<18x16x128xbf16>
    %c0_29 = arith.constant 0 : index
    %61 = arith.index_cast %1 : i32 to index
    %c1_30 = arith.constant 1 : index
    %c0_31 = arith.constant 0 : index
    %62 = vector.load %arg3[%c0_29, %61, %c1_30, %c0_31] : memref<1x18x18x128xbf16, #tpu.memory_space<vmem>>, vector<1x18x16x128xbf16>
    %63 = vector.shape_cast %62 : vector<1x18x16x128xbf16> to vector<18x16x128xbf16>
    %c0_32 = arith.constant 0 : index
    %64 = arith.index_cast %1 : i32 to index
    %c2_33 = arith.constant 2 : index
    %c0_34 = arith.constant 0 : index
    %65 = vector.load %arg3[%c0_32, %64, %c2_33, %c0_34] : memref<1x18x18x128xbf16, #tpu.memory_space<vmem>>, vector<1x18x16x128xbf16>
    %66 = vector.shape_cast %65 : vector<1x18x16x128xbf16> to vector<18x16x128xbf16>
    %67 = vector.extract_strided_slice %60 {offsets = [0, 0, 0], sizes = [16, 16, 128], strides = [1, 1, 1]} : vector<18x16x128xbf16> to vector<16x16x128xbf16>
    %68 = vector.extract_strided_slice %63 {offsets = [0, 0, 0], sizes = [16, 16, 128], strides = [1, 1, 1]} : vector<18x16x128xbf16> to vector<16x16x128xbf16>
    %69 = vector.extract_strided_slice %66 {offsets = [0, 0, 0], sizes = [16, 16, 128], strides = [1, 1, 1]} : vector<18x16x128xbf16> to vector<16x16x128xbf16>
    %70 = vector.extract_strided_slice %60 {offsets = [1, 0, 0], sizes = [16, 16, 128], strides = [1, 1, 1]} : vector<18x16x128xbf16> to vector<16x16x128xbf16>
    %71 = vector.extract_strided_slice %63 {offsets = [1, 0, 0], sizes = [16, 16, 128], strides = [1, 1, 1]} : vector<18x16x128xbf16> to vector<16x16x128xbf16>
    %72 = vector.extract_strided_slice %66 {offsets = [1, 0, 0], sizes = [16, 16, 128], strides = [1, 1, 1]} : vector<18x16x128xbf16> to vector<16x16x128xbf16>
    %73 = vector.extract_strided_slice %60 {offsets = [2, 0, 0], sizes = [16, 16, 128], strides = [1, 1, 1]} : vector<18x16x128xbf16> to vector<16x16x128xbf16>
    %74 = vector.extract_strided_slice %63 {offsets = [2, 0, 0], sizes = [16, 16, 128], strides = [1, 1, 1]} : vector<18x16x128xbf16> to vector<16x16x128xbf16>
    %75 = vector.extract_strided_slice %66 {offsets = [2, 0, 0], sizes = [16, 16, 128], strides = [1, 1, 1]} : vector<18x16x128xbf16> to vector<16x16x128xbf16>
    %76 = tpu.concatenate %67, %68, %69, %70, %71, %72, %73, %74, %75 in 2 : vector<16x16x128xbf16>, vector<16x16x128xbf16>, vector<16x16x128xbf16>, vector<16x16x128xbf16>, vector<16x16x128xbf16>, vector<16x16x128xbf16>, vector<16x16x128xbf16>, vector<16x16x128xbf16>, vector<16x16x128xbf16> -> vector<16x16x1152xbf16>
    %77 = vector.shape_cast %76 : vector<16x16x1152xbf16> to vector<256x1152xbf16>
    %c0_35 = arith.constant 0 : index
    %c0_36 = arith.constant 0 : index
    %78 = vector.load %arg5[%c0_35, %c0_36] : memref<1152x128xbf16, #tpu.memory_space<vmem>>, vector<1152x128xbf16>
    %cst_37 = arith.constant dense<0.000000e+00> : vector<256x128xf32>
    %79 = tpu.matmul %77, %78, %cst_37 {dimension_numbers = #tpu.dot_dimension_numbers<[1], [0], [0], [1], [0, 0, 1, 1], [], []>} : vector<256x1152xbf16>, vector<1152x128xbf16>, vector<256x128xf32> -> vector<256x128xf32>
    %80 = arith.addf %57, %79 : vector<256x128xf32>
    %c0_38 = arith.constant 0 : index
    %c0_39 = arith.constant 0 : index
    %81 = vector.load %arg6[%c0_38, %c0_39] : memref<1x128xf32, #tpu.memory_space<vmem>>, vector<1x128xf32>
    %82 = vector.broadcast %81 : vector<1x128xf32> to vector<256x128xf32>
    %83 = arith.addf %80, %82 : vector<256x128xf32>
    %cst_40 = arith.constant 0.000000e+00 : f32
    %84 = vector.broadcast %cst_40 : f32 to vector<256x128xf32>
    %85 = arith.maximumf %83, %84 : vector<256x128xf32>
    %86 = vector.shape_cast %85 : vector<256x128xf32> to vector<16x16x128xf32>
    %87 = arith.truncf %86 : vector<16x16x128xf32> to vector<16x16x128xbf16>
    %c1_i32 = arith.constant 1 : i32
    %88 = arith.addi %c1_i32, %1 : i32
    %c0_41 = arith.constant 0 : index
    %89 = arith.index_cast %88 : i32 to index
    %c1_42 = arith.constant 1 : index
    %c0_43 = arith.constant 0 : index
    %90 = vector.load %arg7[%c0_41, %89, %c1_42, %c0_43] : memref<1x18x18x128xbf16, #tpu.memory_space<vmem>>, vector<1x16x16x128xbf16>
    %91 = vector.shape_cast %90 : vector<1x16x16x128xbf16> to vector<16x16x128xbf16>
    %92 = vector.shape_cast %87 : vector<16x16x128xbf16> to vector<1x16x16x128xbf16>
    tpu.vector_store %arg7[%c0_41, %89, %c1_42, %c0_43], %92 {strides = array<i32>} : memref<1x18x18x128xbf16, #tpu.memory_space<vmem>>, vector<1x16x16x128xbf16>,
    return
  }
  func.func @transform_0(%arg0: i32, %arg1: i32) -> (i32, i32, i32, i32) {
    %c0_i32 = arith.constant 0 : i32
    %c0_i32_0 = arith.constant 0 : i32
    %c0_i32_1 = arith.constant 0 : i32
    %c0_i32_2 = arith.constant 0 : i32
    return %arg0, %c0_i32, %c0_i32_0, %c0_i32_1 : i32, i32, i32, i32
  }
  func.func @transform_1(%arg0: i32, %arg1: i32) -> (i32, i32, i32, i32) {
    %c0_i32 = arith.constant 0 : i32
    %c0_i32_0 = arith.constant 0 : i32
    %c0_i32_1 = arith.constant 0 : i32
    %c0_i32_2 = arith.constant 0 : i32
    return %arg0, %c0_i32, %c0_i32_0, %c0_i32_1 : i32, i32, i32, i32
  }
  func.func @transform_2(%arg0: i32, %arg1: i32) -> (i32, i32) {
    %c0_i32 = arith.constant 0 : i32
    %c0_i32_0 = arith.constant 0 : i32
    %c0_i32_1 = arith.constant 0 : i32
    return %c0_i32, %c0_i32_0 : i32, i32
  }
  func.func @transform_3(%arg0: i32, %arg1: i32) -> (i32, i32) {
    %c0_i32 = arith.constant 0 : i32
    %c0_i32_0 = arith.constant 0 : i32
    %c0_i32_1 = arith.constant 0 : i32
    return %c0_i32, %c0_i32_0 : i32, i32
  }
  func.func @transform_4(%arg0: i32, %arg1: i32) -> (i32, i32) {
    %c0_i32 = arith.constant 0 : i32
    %c0_i32_0 = arith.constant 0 : i32
    %c0_i32_1 = arith.constant 0 : i32
    return %c0_i32, %c0_i32_0 : i32, i32
  }
  func.func @transform_5(%arg0: i32, %arg1: i32) -> (i32, i32, i32, i32) {
    %c0_i32 = arith.constant 0 : i32
    %c0_i32_0 = arith.constant 0 : i32
    %c0_i32_1 = arith.constant 0 : i32
    %c0_i32_2 = arith.constant 0 : i32
    return %arg0, %c0_i32, %c0_i32_0, %c0_i32_1 : i32, i32, i32, i32
  }
}

module attributes {stable_mosaic.version = 11 : i64} {
  func.func @_conv3x3_fused_kernel(%arg0: i32, %arg1: i32, %arg2: memref<1x18x18x128xbf16, #tpu.memory_space<vmem>>, %arg3: memref<1152x128xbf16, #tpu.memory_space<vmem>>, %arg4: memref<1x128xf32, #tpu.memory_space<vmem>>, %arg5: memref<1x16x16x128xbf16, #tpu.memory_space<vmem>>) attributes {dimension_semantics = [#tpu.dimension_semantics<parallel>, #tpu.dimension_semantics<arbitrary>], iteration_bounds = array<i64: 2, 1>, scalar_prefetch = 0 : i64, scratch_operands = 0 : i64, tpu.core_type = #tpu.core_type<tc>, window_params = [{transform_indices = @transform_0, window_bounds = array<i64: 1, 18, 18, 128>}, {pipeline_mode = #tpu.pipeline_mode<synchronous>, transform_indices = @transform_1, window_bounds = array<i64: 1152, 128>}, {pipeline_mode = #tpu.pipeline_mode<synchronous>, transform_indices = @transform_2, window_bounds = array<i64: 1, 128>}, {transform_indices = @transform_3, window_bounds = array<i64: 1, 16, 16, 128>}]} {
    %c16_i32 = arith.constant 16 : i32
    %0 = arith.muli %arg1, %c16_i32 : i32
    %c0_i32 = arith.constant 0 : i32
    %1 = arith.minsi %0, %c0_i32 : i32
    %c0 = arith.constant 0 : index
    %2 = arith.index_cast %1 : i32 to index
    %c0_0 = arith.constant 0 : index
    %c0_1 = arith.constant 0 : index
    %3 = vector.load %arg2[%c0, %2, %c0_0, %c0_1] : memref<1x18x18x128xbf16, #tpu.memory_space<vmem>>, vector<1x18x16x128xbf16>
    %4 = vector.shape_cast %3 : vector<1x18x16x128xbf16> to vector<18x16x128xbf16>
    %c0_2 = arith.constant 0 : index
    %5 = arith.index_cast %1 : i32 to index
    %c1 = arith.constant 1 : index
    %c0_3 = arith.constant 0 : index
    %6 = vector.load %arg2[%c0_2, %5, %c1, %c0_3] : memref<1x18x18x128xbf16, #tpu.memory_space<vmem>>, vector<1x18x16x128xbf16>
    %7 = vector.shape_cast %6 : vector<1x18x16x128xbf16> to vector<18x16x128xbf16>
    %c0_4 = arith.constant 0 : index
    %8 = arith.index_cast %1 : i32 to index
    %c2 = arith.constant 2 : index
    %c0_5 = arith.constant 0 : index
    %9 = vector.load %arg2[%c0_4, %8, %c2, %c0_5] : memref<1x18x18x128xbf16, #tpu.memory_space<vmem>>, vector<1x18x16x128xbf16>
    %10 = vector.shape_cast %9 : vector<1x18x16x128xbf16> to vector<18x16x128xbf16>
    %11 = vector.extract_strided_slice %4 {offsets = [0, 0, 0], sizes = [16, 16, 128], strides = [1, 1, 1]} : vector<18x16x128xbf16> to vector<16x16x128xbf16>
    %12 = vector.extract_strided_slice %7 {offsets = [0, 0, 0], sizes = [16, 16, 128], strides = [1, 1, 1]} : vector<18x16x128xbf16> to vector<16x16x128xbf16>
    %13 = vector.extract_strided_slice %10 {offsets = [0, 0, 0], sizes = [16, 16, 128], strides = [1, 1, 1]} : vector<18x16x128xbf16> to vector<16x16x128xbf16>
    %14 = vector.extract_strided_slice %4 {offsets = [1, 0, 0], sizes = [16, 16, 128], strides = [1, 1, 1]} : vector<18x16x128xbf16> to vector<16x16x128xbf16>
    %15 = vector.extract_strided_slice %7 {offsets = [1, 0, 0], sizes = [16, 16, 128], strides = [1, 1, 1]} : vector<18x16x128xbf16> to vector<16x16x128xbf16>
    %16 = vector.extract_strided_slice %10 {offsets = [1, 0, 0], sizes = [16, 16, 128], strides = [1, 1, 1]} : vector<18x16x128xbf16> to vector<16x16x128xbf16>
    %17 = vector.extract_strided_slice %4 {offsets = [2, 0, 0], sizes = [16, 16, 128], strides = [1, 1, 1]} : vector<18x16x128xbf16> to vector<16x16x128xbf16>
    %18 = vector.extract_strided_slice %7 {offsets = [2, 0, 0], sizes = [16, 16, 128], strides = [1, 1, 1]} : vector<18x16x128xbf16> to vector<16x16x128xbf16>
    %19 = vector.extract_strided_slice %10 {offsets = [2, 0, 0], sizes = [16, 16, 128], strides = [1, 1, 1]} : vector<18x16x128xbf16> to vector<16x16x128xbf16>
    %20 = tpu.concatenate %11, %12, %13, %14, %15, %16, %17, %18, %19 in 2 : vector<16x16x128xbf16>, vector<16x16x128xbf16>, vector<16x16x128xbf16>, vector<16x16x128xbf16>, vector<16x16x128xbf16>, vector<16x16x128xbf16>, vector<16x16x128xbf16>, vector<16x16x128xbf16>, vector<16x16x128xbf16> -> vector<16x16x1152xbf16>
    %21 = vector.shape_cast %20 : vector<16x16x1152xbf16> to vector<256x1152xbf16>
    %c0_6 = arith.constant 0 : index
    %c0_7 = arith.constant 0 : index
    %22 = vector.load %arg3[%c0_6, %c0_7] : memref<1152x128xbf16, #tpu.memory_space<vmem>>, vector<1152x128xbf16>
    %cst = arith.constant dense<0.000000e+00> : vector<256x128xf32>
    %23 = tpu.matmul %21, %22, %cst {dimension_numbers = #tpu.dot_dimension_numbers<[1], [0], [0], [1], [0, 0, 1, 1], [], []>} : vector<256x1152xbf16>, vector<1152x128xbf16>, vector<256x128xf32> -> vector<256x128xf32>
    %c0_8 = arith.constant 0 : index
    %c0_9 = arith.constant 0 : index
    %24 = vector.load %arg4[%c0_8, %c0_9] : memref<1x128xf32, #tpu.memory_space<vmem>>, vector<1x128xf32>
    %25 = vector.broadcast %24 : vector<1x128xf32> to vector<256x128xf32>
    %26 = arith.addf %23, %25 : vector<256x128xf32>
    %cst_10 = arith.constant 0.000000e+00 : f32
    %27 = vector.broadcast %cst_10 : f32 to vector<256x128xf32>
    %28 = arith.maximumf %26, %27 : vector<256x128xf32>
    %29 = vector.shape_cast %28 : vector<256x128xf32> to vector<16x16x128xf32>
    %30 = arith.truncf %29 : vector<16x16x128xf32> to vector<16x16x128xbf16>
    %c0_i32_11 = arith.constant 0 : i32
    %31 = arith.addi %c0_i32_11, %1 : i32
    %c0_12 = arith.constant 0 : index
    %32 = arith.index_cast %31 : i32 to index
    %c0_13 = arith.constant 0 : index
    %c0_14 = arith.constant 0 : index
    %33 = vector.load %arg5[%c0_12, %32, %c0_13, %c0_14] : memref<1x16x16x128xbf16, #tpu.memory_space<vmem>>, vector<1x16x16x128xbf16>
    %34 = vector.shape_cast %33 : vector<1x16x16x128xbf16> to vector<16x16x128xbf16>
    %35 = vector.shape_cast %30 : vector<16x16x128xbf16> to vector<1x16x16x128xbf16>
    tpu.vector_store %arg5[%c0_12, %32, %c0_13, %c0_14], %35 {strides = array<i32>} : memref<1x16x16x128xbf16, #tpu.memory_space<vmem>>, vector<1x16x16x128xbf16>,
    return
  }
  func.func @transform_0(%arg0: i32, %arg1: i32) -> (i32, i32, i32, i32) {
    %c0_i32 = arith.constant 0 : i32
    %c0_i32_0 = arith.constant 0 : i32
    %c0_i32_1 = arith.constant 0 : i32
    %c0_i32_2 = arith.constant 0 : i32
    return %arg0, %c0_i32, %c0_i32_0, %c0_i32_1 : i32, i32, i32, i32
  }
  func.func @transform_1(%arg0: i32, %arg1: i32) -> (i32, i32) {
    %c0_i32 = arith.constant 0 : i32
    %c0_i32_0 = arith.constant 0 : i32
    %c0_i32_1 = arith.constant 0 : i32
    return %c0_i32, %c0_i32_0 : i32, i32
  }
  func.func @transform_2(%arg0: i32, %arg1: i32) -> (i32, i32) {
    %c0_i32 = arith.constant 0 : i32
    %c0_i32_0 = arith.constant 0 : i32
    %c0_i32_1 = arith.constant 0 : i32
    return %c0_i32, %c0_i32_0 : i32, i32
  }
  func.func @transform_3(%arg0: i32, %arg1: i32) -> (i32, i32, i32, i32) {
    %c0_i32 = arith.constant 0 : i32
    %c0_i32_0 = arith.constant 0 : i32
    %c0_i32_1 = arith.constant 0 : i32
    %c0_i32_2 = arith.constant 0 : i32
    return %arg0, %c0_i32, %c0_i32_0, %c0_i32_1 : i32, i32, i32, i32
  }
}

</mosaic_0001>

<bundles_post_ra>
// kernel: tile.8
= control target key start
LH: loop header
LB: loop body
LE: loop exit
PB: predicated region body
PF: predicated region fallthrough
CT: control target
= control target key end

     0   :  { %2 = vsyncpa [#allocation1], 0  ;;  %s68_s0 = inlined_call_operand.vmem [shape: f32[128], index: 0, kind: input, shape index: {}]   ;;  %s69_s1 = inlined_call_operand.hbm [shape: f32[4,128], index: 1, kind: output, shape index: {}]  }
   0x1   :  { %v5_v0 = vld [vmem:[%s68_s0] ss:$0 sm:$0xff]  ;;  %s42_s0 = smov [#allocation0]  }
   0x2   :  { %6 = vst [vmem:[#allocation0] sm:$0xf] %v5_v0  ;;  %s11_s8 = sshll.u32 %s42_s0, 4  ;;  %s12_s8 = int_to_ptr.vmem [resolvable:$true] %s11_s8 }
   0x3   :  { %s18_s9 = scalar_lea.vmem %s12_s8, 64  ;;  %p23_p1 = scmp.lt.s32.totalorder %s12_s8, %s12_s8 }
   0x4   :  { %p19_p0 = scmp.ne.s32.totalorder %s12_s8, %s18_s9  ;;  %p24_p2 = scmp.lt.s32.totalorder %s18_s9, %s18_s9 }
   0x6   :  { %p25_p3 = por %p24_p2, %p23_p1 }
   0x8   :  { %p26_p4 = pnand %p25_p3, %p19_p0 }
   0xa   :  { %29 = shalt.err (!%p26_p4)
}
   0xb   :  { %s30_s12 = scalar_lea.hbm %s69_s1, 64 }
   0xc   :  { %p31_p5 = scmp.ne.s32.totalorder %s69_s1, %s30_s12  ;;  %p34_p6 = scmp.lt.u32.totalorder %s30_s12, %s69_s1 }
   0xe   :  { %p36_p7 = pnand %p34_p6, %p31_p5 }
  0x10   :  { %39 = shalt.err (!%p36_p7)
}
  0x11   :  { %14 = dma.vmem_to_hbm [thread:$0]  %s12_s8, 64, %s69_s1, [#allocation1]  }
  0x12   :  { %40 = dma.done.wait [#allocation1], 64  }
  0x13   :  { %41 = vsyncadd [#allocation1], 4294967232 }
  0x14   :  { %16 = vsyncpa [#allocation1], 1 }

// kernel: up_forward.5
= control target key start
LH: loop header
LB: loop body
LE: loop exit
PB: predicated region body
PF: predicated region fallthrough
CT: control target
= control target key end

     0   :  { %8 = vsyncpa [#allocation3], 0  ;;  %s4963_s0 = inlined_call_operand.hbm [shape: bf16[2,18,18,128], index: 0, kind: input, shape index: {}]   ;;  %s4964_s1 = inlined_call_operand.hbm [shape: bf16[1152,128], index: 1, kind: input, shape index: {}]   ;;  %s4965_s2 = inlined_call_operand.hbm [shape: f32[1,128], index: 2, kind: input, shape index: {}]   ;;  %s4966_s3 = inlined_call_operand.hbm [shape: bf16[2,16,16,128], index: 3, kind: output, shape index: {}]  }
   0x1   :  { %10 = vsyncpa [#allocation3 + $0x1], 0 }
   0x2   :  { %11 = vsyncpa [#allocation6], 0 }
   0x3   :  { %12 = vsyncpa [#allocation4], 0 }
   0x4   :  { %14 = vsyncpa [#allocation4 + $0x1], 0  ;;  %s3793_s12 = smov 0   ;;  %s3795_s13 = smov 0  }
   0x5   :  { %s3797_s14 = smov 0   ;;  %s3799_s15 = smov 0  }
   0x6   :  { %s3801_s16 = smov 0   ;;  %s3803_s17 = smov 0  }
   0x7 LB: > { %s2532_s18 = sadd.s32 4294967295, %s3763_s17   ;;  %s2533_s19 = sadd.s32 4294967294, %s3763_s17   ;;  %s3763_s17 = sphi %s3803_s17, %s20_s17   ;;  %s3759_s16 = sphi %s3801_s16, %s4995_s16   ;;  %s3755_s15 = sphi %s3799_s15, %s4994_s15   ;;  %s3751_s14 = sphi %s3797_s14, %s4993_s14   ;;  %s3747_s13 = sphi %s3795_s13, %s4992_s13   ;;  %s3743_s12 = sphi %s3793_s12, %s4991_s12  }
   0x8   : > { %p52_p0 = scmp.ne.s32.totalorder %s3747_s13, %s3743_s12  ;;  %p3827_p1 = scmp.eq.s32.totalorder %s2532_s18, 0 }
   0x9   : > { %p3831_p2 = scmp.eq.s32.totalorder %s2532_s18, 1  ;;  %p124_p3 = scmp.eq.s32.totalorder %s2533_s19, 1 }
   0xa   : > { %s4974_s20 = scalar_select %p3827_p1, 1, 0 }
   0xb   : > { %p3837_p4 = por %p3827_p1, %p52_p0  ;;  %p2534_p5 = scmp.ge.s32.totalorder %s3763_s17, 1 }
   0xc   : > { %p3842_p6 = por %p124_p3, %p52_p0  ;;  %p131_p7 = scmp.lt.s32.totalorder %s3763_s17, 3 }
   0xd   : > { %s4976_s22 = scalar_select %p3837_p4, 1, 0 }
   0xe   : > { %s4977_s23 = scalar_select %p3842_p6, 1, 0 }
   0xf   : > { %p3847_p8 = pnand %p2534_p5, %p131_p7  ;;  %s3765_s25 = smov [#allocation5]  }
  0x10   : > { %s143_s26 = sshll.u32 %s3765_s25, 4  ;;  %s3766_s28 = smov [#allocation7]   ;;  %s3851_s26 = int_to_ptr.vmem [resolvable:$true] %s143_s26 }
  0x11   : > { %p3386_p9 = pneg %p3847_p8  ;;  %s157_s29 = sshll.u32 %s3766_s28, 4  ;;  %s3862_s29 = int_to_ptr.vmem [resolvable:$true] %s157_s29 }
  0x12   : > { %s3591_s5 = scalar_lea.hbm %s4964_s1, 9216 }
  0x13   : > { %p3858_p11 = pnand %p3386_p9, %p3827_p1  ;;  %p3592_p12 = scmp.ne.s32.totalorder %s4964_s1, %s3591_s5 }
  0x14   : > { %p3598_p5 = scmp.lt.u32.totalorder %s3591_s5, %s4964_s1 }
  0x15   : > { %p3593_p13 = pneg %p3858_p11 }
  0x17   : > { %p3594_p0 = pnand %p3593_p13, %p3592_p12 }
  0x19   : > { %p3595_p3 = pneg %p3594_p0 }
  0x1b   : > { %p3600_p7 = pnand %p3598_p5, %p3595_p3 }
  0x1d   : > { %3603 = shalt.err (!%p3600_p7)
}
  0x1e   : > { %s3604_s10 = scalar_lea.vmem %s3851_s26, 9216  ;;  %p3612_p1 = scmp.lt.s32.totalorder %s3851_s26, %s3851_s26 }
  0x1f   : > { %p3605_p9 = scmp.ne.s32.totalorder %s3851_s26, %s3604_s10  ;;  %p3613_p12 = scmp.lt.s32.totalorder %s3604_s10, %s3604_s10 }
  0x21   : > { %p3607_p10 = pnand %p3605_p9, %p3593_p13  ;;  %p3614_p0 = por %p3613_p12, %p3612_p1 }
  0x23   : > { %p3608_p6 = pneg %p3607_p10 }
  0x25   : > { %p3615_p4 = pnand %p3614_p0, %p3608_p6 }
  0x27   : > { %3618 = shalt.err (!%p3615_p4)
}
  0x28   : > { %s3767_s11 = smov 64   ;;  %s3768_s18 = smov 4  }
  0x29   : > { %3389 = dma.hbm_to_vmem [thread:$0]  (!%p3858_p11), %s4964_s1, 9216, %s3851_s26, [#allocation6], %s3767_s11, %s3767_s11, %s3768_s18  }
  0x2a   : > { %s3619_s4 = scalar_lea.hbm %s4965_s2, 16 }
  0x2b   : > { %p3620_p1 = scmp.ne.s32.totalorder %s4965_s2, %s3619_s4  ;;  %p3626_p10 = scmp.lt.u32.totalorder %s3619_s4, %s4965_s2 }
  0x2d   : > { %p3622_p4 = pnand %p3620_p1, %p3593_p13 }
  0x2f   : > { %p3623_p6 = pneg %p3622_p4 }
  0x31   : > { %p3628_p3 = pnand %p3626_p10, %p3623_p6 }
  0x33   : > { %3631 = shalt.err (!%p3628_p3)
}
  0x34   : > { %s3632_s26 = scalar_lea.vmem %s3862_s29, 16  ;;  %s3639_s9 = scalar_lea.vmem %s3862_s29, 32 }
  0x35   : > { %p3633_p5 = scmp.ne.s32.totalorder %s3862_s29, %s3632_s26  ;;  %p3640_p12 = scmp.lt.s32.totalorder %s3862_s29, %s3862_s29 }
  0x36   : > { %p3641_p0 = scmp.lt.s32.totalorder %s3639_s9, %s3632_s26 }
  0x37   : > { %p3635_p7 = pnand %p3633_p5, %p3593_p13 }
  0x38   : > { %p3642_p1 = por %p3641_p0, %p3640_p12 }
  0x39   : > { %p3636_p9 = pneg %p3635_p7 }
  0x3b   : > { %p3643_p4 = pnand %p3642_p1, %p3636_p9 }
  0x3d   : > { %3646 = shalt.err (!%p3643_p4)
}
  0x3e   : > { %3392 = dma.hbm_to_vmem [thread:$0]  (!%p3858_p11), %s4965_s2, 16, %s3862_s29, [#allocation6]  }
  0x3f   : > { %s32_s25 = sadd.s32 1, %s3759_s16  ;;  %s39_s28 = sadd.s32 1, %s3751_s14 }
  0x40   : > { %p34_p13 = scmp.ge.s32.totalorder %s32_s25, 2  ;;  %p46_p6 = scmp.ne.s32.totalorder %s3751_s14, %s3747_s13 }
  0x41   : > { %p47_p10 = scmp.eq.s32.totalorder %s3763_s17, 0  ;;  %p3403_p3 = scmp.lt.s32.totalorder %s3763_s17, 2 }
  0x42   : > { %s4997_s25 = smov (%p34_p13, %s32_s25), 0  ;;  %p3930_p7 = por %p3831_p2, %p46_p6 }
  0x43   : > { %p48_p5 = por %p47_p10, %p46_p6  ;;  %s36_s30 = ssub.s32 %s3759_s16, %s4997_s25 }
  0x44   : > { %s4980_s27 = scalar_select %p3930_p7, 1, 0 }
  0x45   : > { %s168_s4 = sand.u32 1, %s3751_s14   ;;  %p37_p9 = scmp.eq.s32.totalorder %s36_s30, 0 }
  0x46   : > { %s3371_s29 = smul.u32 216, %s168_s4  ;;  %p3937_p11 = pnand %p3403_p3, %p48_p5 }
  0x47   : > { %s3942_s6 = scalar_select %p37_p9, %s3751_s14, %s39_s28  }
  0x48   : > { %s3372_s7 = smul.u32 3456, %s3759_s16  ;;  %s172_s8 = scalar_lea.vmem [#allocation2], %s3371_s29 }
  0x49   : > { %s179_s26 = sshll.u32 %s172_s8, 4  ;;  %s3952_s19 = scalar_lea.sflag [#allocation3], %s168_s4  ;;  %s3950_s26 = int_to_ptr.vmem [resolvable:$true] %s179_s26 }
  0x4a   : > { %s3948_s10 = scalar_lea.hbm %s4963_s0, %s3372_s7  ;;  %p3649_p12 = pneg %p3937_p11 }
  0x4b   : > { %s3647_s30 = scalar_lea.hbm %s3948_s10, 3456  ;;  %s3652_s7 = scalar_lea.hbm %s4963_s0, 6912 }
  0x4c   : > { %p3648_p2 = scmp.ne.s32.totalorder %s3948_s10, %s3647_s30  ;;  %p3653_p4 = scmp.lt.u32.totalorder %s3948_s10, %s4963_s0 }
  0x4d   : > { %p3654_p13 = scmp.lt.u32.totalorder %s3652_s7, %s3647_s30  ;;  %p3656_p10 = scmp.lt.u32.totalorder %s3647_s30, %s3948_s10 }
  0x4e   : > { %p3650_p0 = pnand %p3649_p12, %p3648_p2 }
  0x4f   : > { %p3655_p6 = por %p3654_p13, %p3653_p4 }
  0x50   : > { %p3651_p1 = pneg %p3650_p0 }
  0x51   : > { %p3657_p3 = por %p3656_p10, %p3655_p6 }
  0x53   : > { %p3658_p5 = pnand %p3657_p3, %p3651_p1 }
  0x55   : > { %3661 = shalt.err (!%p3658_p5)
}
  0x56   : > { %s3662_s4 = scalar_lea.vmem %s3950_s26, 3456  ;;  %s3769_s9 = smov [#allocation2]  }
  0x57   : > { %p3663_p9 = scmp.ne.s32.totalorder %s3950_s26, %s3662_s4  ;;  %s3667_s28 = sshll.u32 %s3769_s9, 4  ;;  %s3668_s28 = int_to_ptr.vmem [resolvable:$false] %s3667_s28 }
  0x58   : > { %s3669_s29 = scalar_lea.vmem %s3668_s28, 6912  ;;  %p3670_p7 = scmp.lt.s32.totalorder %s3950_s26, %s3668_s28 }
  0x59   : > { %p3665_p2 = pnand %p3663_p9, %p3649_p12  ;;  %p3671_p4 = scmp.lt.s32.totalorder %s3669_s29, %s3662_s4 }
  0x5b   : > { %p3666_p0 = pneg %p3665_p2  ;;  %p3672_p13 = por %p3671_p4, %p3670_p7 }
  0x5d   : > { %p3673_p6 = pnand %p3672_p13, %p3666_p0 }
  0x5f   : > { %3676 = shalt.err (!%p3673_p6)
}
  0x60   : > { %3396 = dma.hbm_to_vmem [thread:$0]  (!%p3937_p11), %s3948_s10, 3456, %s3950_s26, %s3952_s19, %s3767_s11, %s3767_s11, %s3768_s18  }
  0x61   : > { %191 = sbr.rel (%p3847_p8) target bundleno = 665 (0x299), region = 32 }
  0x68   : > { %s3986_s30 = sand.u32 1, %s3747_s13   ;;  %p4982_p7 = scmp.ne.s32.totalorder %s4976_s22, 0 }
  0x69   : > { %s3373_s7 = smul.u32 216, %s3986_s30  ;;  %s194_s8 = scalar_lea.sflag [#allocation3], %s3986_s30 }
  0x6b   : > { %s3990_s21 = scalar_lea.vmem [#allocation2], %s3373_s7 }
  0x6c   : > { %3730 = dma.done.wait (%p4982_p7), %s194_s8, 3456  }
  0x6d   : > { %3732 = vsyncadd (%p4982_p7), %s194_s8, 4294963840  ;;  %p4983_p11 = scmp.ne.s32.totalorder %s4974_s20, 0 }
  0x6f   : > { %3734 = dma.done.wait (%p4983_p11), [#allocation6], 9232  }
  0x70   : > { %3736 = vsyncadd (%p4983_p11), [#allocation6], 4294958064  ;;  %v3461_v0 = vld [vmem:[#allocation5 + $0x40] sm:$0xff]   ;;  %v3463_v2 = vld [vmem:[#allocation5 + $0x48] sm:$0xff]   ;;  %vm451_vm0 = vsmask.f32 7424 }
  0x71   : > { %v3462_v1 = vld [vmem:[#allocation5] sm:$0xff]   ;;  %2835 = vmatprep.subr.bf16.mxu0 %v3461_v0  ;;  %3355 = vmatprep.subr.bf16.mxu1 %v3461_v0  ;;  %v3464_v3 = vld [vmem:[#allocation5 + $0x8] sm:$0xff]   ;;  %v3465_v4 = vld [vmem:[#allocation5 + $0x50] sm:$0xff]   ;;  %vm708_vm1 = vcmask 1046528   ;;  %s2542_s20 = sshll.u32 %s3986_s30, 7  ;;  %s2739_s24 = sshll.u32 %s3755_s15, 11 }
  0x72   : > { %2836 = vmatpush3.bf16.msra.mxu0 %v3462_v1  ;;  %3363 = vmatpush3.bf16.msra.mxu1 %v3462_v1  ;;  %v3466_v5 = vld [vmem:[#allocation5 + $0x10] sm:$0xff]   ;;  %v3467_v6 = vld [vmem:[#allocation5 + $0x58] sm:$0xff]   ;;  %v3469_v8 = vld [vmem:[#allocation5 + $0x60] sm:$0xff]   ;;  %s4855_s22 = scalar_lea.vmem [#allocation8], %s2542_s20  ;;  %s4911_s26 = scalar_lea.hbm %s4966_s3, %s2739_s24 }
  0x73   : > { %2837 = vmatprep.subr.bf16.mxu0 %v3463_v2  ;;  %3356 = vmatprep.subr.bf16.mxu1 %v3463_v2  ;;  %v3468_v7 = vld [vmem:[#allocation5 + $0x18] sm:$0xff]   ;;  %v3470_v9 = vld [vmem:[#allocation5 + $0x20] sm:$0xff]   ;;  %v3471_v10 = vld [vmem:[#allocation5 + $0x68] sm:$0xff]   ;;  %s2428_s11 = sshll.u32 %s4855_s22, 4  ;;  %s2415_s10 = scalar_lea.sflag [#allocation4], %s3986_s30  ;;  %s4913_s11 = int_to_ptr.vmem [resolvable:$true] %s2428_s11 }
  0x74   : > { %v235_v11 = vld [vmem:[%s3990_s21] sm:$0xf]  ;;  %v4002_v12 = vld [vmem:[%s3990_s21 + $0x4] sm:$0xf]  ;;  %v259_v15 = vld [vmem:[%s3990_s21 + $0x90] sm:$0xf] }
  0x75   : > { %v4005_v13 = vcombine.low %v235_v11, %v4002_v12  ;;  %v4008_v14 = vld [vmem:[%s3990_s21 + $0x8] ss:$0 sps:$4 sm:$0x11]   ;;  %v260_v16 = vld [vmem:[%s3990_s21 + $0x94] sm:$0xf]  ;;  %v3472_v17 = vld [vmem:[#allocation5 + $0x28] sm:$0xff]  }
  0x76   : > { %2838 = vmatpush3.bf16.msra.mxu0 %v3464_v3  ;;  %3364 = vmatpush3.bf16.msra.mxu1 %v3464_v3  ;;  %v460_v20 = vshll.u32 %v4008_v14, 16  ;;  %v3473_v21 = vld [vmem:[#allocation5 + $0x70] sm:$0xff]   ;;  %v4015_v22 = vcombine.low %v259_v15, %v260_v16  ;;  %v3480_v23 = vld [vmem:[%s3990_s21 + $0x98] ss:$0 sps:$4 sm:$0x11]   ;;  %v3475_v30 = vld [vmem:[#allocation5 + $0x78] sm:$0xff]  }
  0x77   : > { %2839 = vmatprep.subr.bf16.mxu0 %v3465_v4  ;;  %3357 = vmatprep.subr.bf16.mxu1 %v3465_v4  ;;  %v453_v18 = vshrl.u32 %v4005_v13, 16  ;;  %v455_v19 = vshll.u32 %v4005_v13, 16  ;;  %v3474_v26 = vld [vmem:[#allocation5 + $0x30] sm:$0xff]   ;;  %v604_v29 = vshll.u32 %v3480_v23, 16  ;;  %v3476_v34 = vld [vmem:[#allocation5 + $0x38] sm:$0xff]   ;;  %v3481_v37 = vld [vmem:[#allocation5 + $0xc0] sm:$0xff]  }
  0x78   : > { %v462_v25 = vrot.slane %v460_v20, 1  ;;  %v597_v27 = vshrl.u32 %v4015_v22, 16  ;;  %v599_v28 = vshll.u32 %v4015_v22, 16  ;;  %v237_v38 = vld [vmem:[%s3990_s21 + $0xc] sm:$0xf]  ;;  %v3484_v40 = vld [vmem:[#allocation5 + $0x140] sm:$0xff]  }
  0x79   : > { %v457_v24 = vrot.slane %v455_v19, 1  ;;  %v606_v33 = vrot.slane %v604_v29, 1  ;;  %v4023_v39 = vld [vmem:[%s3990_s21 + $0x10] sm:$0xf]  ;;  %v261_v44 = vld [vmem:[%s3990_s21 + $0x9c] sm:$0xf] }
  0x7a   : > { %2840 = vmatpush3.bf16.msra.mxu0 %v3466_v5  ;;  %3365 = vmatpush3.bf16.msra.mxu1 %v3466_v5  ;;  %v601_v32 = vrot.slane %v599_v28, 1  ;;  %v4026_v41 = vcombine.low %v237_v38, %v4023_v39  ;;  %v4029_v42 = vld [vmem:[%s3990_s21 + $0x14] ss:$0 sps:$4 sm:$0x11]   ;;  %v262_v45 = vld [vmem:[%s3990_s21 + $0xa0] sm:$0xf] }
  0x7b   : > { %2841 = vmatprep.subr.bf16.mxu0 %v3467_v6  ;;  %3358 = vmatprep.subr.bf16.mxu1 %v3467_v6  ;;  %v458_v31 = vor.u32 %v457_v24, %v453_v18  ;;  %v3482_v46 = vld [vmem:[#allocation5 + $0x80] sm:$0xff]   ;;  %v472_v50 = vshll.u32 %v4029_v42, 16  ;;  %v4040_v51 = vcombine.low %v261_v44, %v262_v45  ;;  %v3490_v52 = vld [vmem:[%s3990_s21 + $0xa4] ss:$0 sps:$4 sm:$0x11]   ;;  %v3493_v16 = vld [vmem:[#allocation5 + $0xd8] sm:$0xff]  }
  0x7c   : > { %v602_v36 = vor.u32 %v601_v32, %v597_v27  ;;  %v3486_v47 = vld [vmem:[#allocation5 + $0x100] sm:$0xff]   ;;  %v465_v48 = vshrl.u32 %v4026_v41, 16  ;;  %v467_v49 = vshll.u32 %v4026_v41, 16  ;;  %v3483_v57 = vld [vmem:[#allocation5 + $0xc8] sm:$0xff]   ;;  %v616_v58 = vshll.u32 %v3490_v52, 16  ;;  %v3491_v3 = vld [vmem:[#allocation5 + $0xd0] sm:$0xff]  }
  0x7d   : > { %v463_v35 = vsel %vm451_vm0, %v458_v31, %v462_v25  ;;  %v474_v54 = vrot.slane %v472_v50, 1  ;;  %v609_v55 = vshrl.u32 %v4040_v51, 16  ;;  %v611_v56 = vshll.u32 %v4040_v51, 16  ;;  %v3485_v61 = vld [vmem:[#allocation5 + $0x88] sm:$0xff]   ;;  %v263_v6 = vld [vmem:[%s3990_s21 + $0xa8] sm:$0xf] }
  0x7e   : > { %2842 = vmatpush3.bf16.msra.mxu0 %v3468_v7  ;;  %3366 = vmatpush3.bf16.msra.mxu1 %v3468_v7  ;;  %v4032_v43 = vsel %vm451_vm0, %v602_v36, %v606_v33  ;;  %v469_v53 = vrot.slane %v467_v49, 1  ;;  %v618_v62 = vrot.slane %v616_v58, 1  ;;  %v239_v63 = vld [vmem:[%s3990_s21 + $0x18] sm:$0xf]  ;;  %v4049_v0 = vld [vmem:[%s3990_s21 + $0x1c] sm:$0xf] }
  0x7f   : > { %2843 = vmatprep.subr.bf16.mxu0 %v3469_v8  ;;  %3359 = vmatprep.subr.bf16.mxu1 %v3469_v8  ;;  %v613_v60 = vrot.slane %v611_v56, 1  ;;  %v4055_v4 = vcombine.low %v239_v63, %v4049_v0  ;;  %v4058_v5 = vld [vmem:[%s3990_s21 + $0x20] ss:$0 sps:$4 sm:$0x11]   ;;  %v4063_v7 = vld [vmem:[%s3990_s21 + $0xac] sm:$0xf] }
  0x80   : > { %1446 = vmatprep.mubr.bf16.mxu0 %v463_v35  ;;  %1542 = vmatprep.mubr.bf16.mxu1 %v4032_v43  ;;  %v470_v59 = vor.u32 %v469_v53, %v465_v48  ;;  %v4072_v15 = vld [vmem:[%s3990_s21 + $0xb0] ss:$0 sps:$4 sm:$0x11]   ;;  %v3502_v28 = vld [vmem:[#allocation5 + $0x108] sm:$0xff]   ;;  %v265_v44 = vld [vmem:[%s3990_s21 + $0xb4] sm:$0xf] }
  0x81   : > { %v614_v2 = vor.u32 %v613_v60, %v609_v55  ;;  %v479_v11 = vshll.u32 %v4055_v4, 16  ;;  %v628_v20 = vshll.u32 %v4072_v15, 16  ;;  %v3494_v29 = vld [vmem:[#allocation5 + $0x98] sm:$0xff]   ;;  %v3499_v32 = vld [vmem:[#allocation5 + $0xe0] sm:$0xff]   ;;  %v241_v33 = vld [vmem:[%s3990_s21 + $0x24] sm:$0xf] }
  0x82   : > { %2844 = vmatpush3.bf16.msra.mxu0 %v3470_v9  ;;  %3367 = vmatpush3.bf16.msra.mxu1 %v3470_v9  ;;  %v4052_v1 = vsel %vm451_vm0, %v470_v59, %v474_v54  ;;  %v3492_v9 = vld [vmem:[#allocation5 + $0x90] sm:$0xff]   ;;  %v3501_v35 = vld [vmem:[#allocation5 + $0xa0] sm:$0xff]   ;;  %v3504_v56 = vld [vmem:[#allocation5 + $0xa8] sm:$0xff]   ;;  %s3677_s19 = scalar_lea.vmem %s4913_s11, 2048  ;;  %p4988_p12 = scmp.ne.s32.totalorder %s4980_s27, 0 }
  0x83   : > { %2845 = vmatprep.subr.bf16.mxu0 %v3471_v10  ;;  %3360 = vmatprep.subr.bf16.mxu1 %v3471_v10  ;;  %v4066_v8 = vsel %vm451_vm0, %v614_v2, %v618_v62  ;;  %v477_v10 = vshrl.u32 %v4055_v4, 16  ;;  %v481_v18 = vrot.slane %v479_v11, 1  ;;  %v4102_v45 = vld [vmem:[%s3990_s21 + $0xb8] sm:$0xf]  ;;  %v3509_v60 = vld [vmem:[#allocation5 + $0xf0] sm:$0xff]   ;;  %p3678_p8 = scmp.ne.s32.totalorder %s4913_s11, %s3677_s19  ;;  %s3770_s15 = smov [#allocation8]  }
  0x84   : > { %v4109_v49 = vcombine.low %v265_v44, %v4102_v45  ;;  %v4112_v50 = vld [vmem:[%s3990_s21 + $0xbc] ss:$0 sps:$4 sm:$0x11]   ;;  %v3512_v62 = vld [vmem:[#allocation5 + $0x150] sm:$0xff]   ;;  %v4126_v11 = vld [vmem:[%s3990_s21 + $0x34] sm:$0xf] }
  0x85   : > { %v482_v25 = vor.u32 %v481_v18, %v477_v10  ;;  %v243_v10 = vld [vmem:[%s3990_s21 + $0x30] sm:$0xf]  ;;  %p3679_p1 = pnand %p3678_p8, %p4988_p12  ;;  %s3681_s4 = sshll.u32 %s3770_s15, 4  ;;  %s3682_s4 = int_to_ptr.vmem [resolvable:$false] %s3681_s4 }
  0x86   : > { %2846 = vmatpush3.bf16.msra.mxu0 %v3472_v17  ;;  %3368 = vmatpush3.bf16.msra.mxu1 %v3472_v17  ;;  %v4076_v17 = vcombine.low %v263_v6, %v4063_v7  ;;  %v633_v54 = vshrl.u32 %v4109_v49, 16  ;;  %v635_v55 = vshll.u32 %v4109_v49, 16  ;;  %v710_v6 = vrot.slane %v4008_v14, 1  ;;  %v289_v14 = vld [vmem:[%s3990_s21] sm:$0xe]  ;;  %v3524_v44 = vld [vmem:[#allocation5 + $0x118] sm:$0xff]   ;;  %p3684_p3 = scmp.lt.s32.totalorder %s4913_s11, %s3682_s4 }
  0x87   : > { %2847 = vmatprep.subr.bf16.mxu0 %v3473_v21  ;;  %3361 = vmatprep.subr.bf16.mxu1 %v3473_v21  ;;  %v3500_v21 = vld [vmem:[#allocation5 + $0x148] sm:$0xff]   ;;  %v4132_v18 = vcombine.low %v243_v10, %v4126_v11  ;;  %p3680_p10 = pneg %p3679_p1  ;;  %s3683_s9 = scalar_lea.vmem %s3682_s4, 4096 }
  0x88   : > { %v621_v23 = vshrl.u32 %v4076_v17, 16  ;;  %v623_v24 = vshll.u32 %v4076_v17, 16  ;;  %v637_v59 = vrot.slane %v635_v55, 1  ;;  %p3685_p5 = scmp.lt.s32.totalorder %s3683_s9, %s3677_s19 }
  0x8a   : > { %2848 = vmatpush3.bf16.msra.mxu0 %v3474_v26  ;;  %3369 = vmatpush3.bf16.msra.mxu1 %v3474_v26  ;;  %v630_v26 = vrot.slane %v628_v20, 1  ;;  %v625_v27 = vrot.slane %v623_v24, 1  ;;  %v638_v2 = vor.u32 %v637_v59, %v633_v54  ;;  %v3513_v20 = vld [vmem:[#allocation5 + $0xb8] sm:$0xff]   ;;  %v3519_v54 = vld [vmem:[#allocation5 + $0x180] sm:$0xff]   ;;  %p3686_p9 = por %p3685_p5, %p3684_p3 }
  0x8b   : > { %2849 = vmatprep.subr.bf16.mxu0 %v3475_v30  ;;  %3362 = vmatprep.subr.bf16.mxu1 %v3475_v30 }
  0x8c   : > { %v626_v31 = vor.u32 %v625_v27, %v621_v23  ;;  %v503_v23 = vshll.u32 %v4132_v18, 16  ;;  %v245_v27 = vld [vmem:[%s3990_s21 + $0x3c] sm:$0xf]  ;;  %p3687_p2 = pnand %p3686_p9, %p3680_p10 }
  0x8e   : > { %2850 = vmatpush3.bf16.msra.mxu0 %v3476_v34  ;;  %3370 = vmatpush3.bf16.msra.mxu1 %v3476_v34  ;;  %v4089_v34 = vld [vmem:[%s3990_s21 + $0x28] sm:$0xf]  ;;  %v4098_v38 = vsel %vm451_vm0, %v626_v31, %v630_v26  ;;  %v3518_v26 = vld [vmem:[#allocation5 + $0x1c0] sm:$0xff]  }
  0x8f   : > { %2947 = vmatprep.subr.bf16.mxu1 %v3481_v37  ;;  %3059 = vmatprep.subr.bf16.mxu0 %v3484_v40  ;;  %v4092_v36 = vcombine.low %v241_v33, %v4089_v34  ;;  %v4095_v37 = vld [vmem:[%s3990_s21 + $0x2c] ss:$0 sps:$4 sm:$0x11]   ;;  %v3503_v40 = vld [vmem:[#allocation5 + $0xe8] sm:$0xff]  }
  0x90   : > { %v496_v48 = vshll.u32 %v4095_v37, 16 }
  0x91   : > { %1447 = vmatmul.mubr.bf16.vlgmr.msra.gmra.mrb[0].mxu0 %v4005_v13  ;;  %1543 = vmatmul.mubr.bf16.vlgmr.msra.gmra.mrb[0].mxu1 %v4015_v22  ;;  %v484_v13 = vshll.u32 %v4058_v5, 16 }
  0x92   : > { %2948 = vmatpush3.bf16.msra.mxu1 %v3482_v46  ;;  %3060 = vmatpush3.bf16.msra.mxu0 %v3486_v47  ;;  %v489_v46 = vshrl.u32 %v4092_v36, 16  ;;  %v491_v47 = vshll.u32 %v4092_v36, 16  ;;  %v498_v53 = vrot.slane %v496_v48, 1 }
  0x93   : > { %2949 = vmatprep.subr.bf16.mxu1 %v3483_v57  ;;  %1454 = vmatprep.mubr.bf16.mxu0 %v4052_v1  ;;  %v486_v19 = vrot.slane %v484_v13, 1  ;;  %v640_v57 = vshll.u32 %v4112_v50, 16 }
  0x94   : > { %1550 = vmatprep.mubr.bf16.mxu1 %v4066_v8  ;;  %3061 = vmatprep.subr.bf16.mxu0 %v3500_v21  ;;  %v493_v52 = vrot.slane %v491_v47, 1  ;;  %v501_v21 = vshrl.u32 %v4132_v18, 16 }
  0x95   : > { %v4084_v30 = vsel %vm451_vm0, %v482_v25, %v486_v19  ;;  %v4135_v19 = vld [vmem:[%s3990_s21 + $0x38] ss:$0 sps:$4 sm:$0x11]   ;;  %v2575_v25 = vcombine.low %v289_v14, %v4002_v12  ;;  %v4154_v12 = vld [vmem:[%s3990_s21 + $0x44] ss:$0 sps:$4 sm:$0x11]  }
  0x96   : > { %2950 = vmatpush3.bf16.msra.mxu1 %v3485_v61  ;;  %3062 = vmatpush3.bf16.msra.mxu0 %v3502_v28  ;;  %v494_v58 = vor.u32 %v493_v52, %v489_v46  ;;  %v642_v61 = vrot.slane %v640_v57, 1  ;;  %v508_v24 = vshll.u32 %v4135_v19, 16  ;;  %v4147_v28 = vld [vmem:[%s3990_s21 + $0x40] sm:$0xf]  ;;  %v247_v57 = vld [vmem:[%s3990_s21 + $0x48] sm:$0xf] }
  0x97   : > { %2951 = vmatprep.subr.bf16.mxu1 %v3491_v3  ;;  %v3510_v3 = vld [vmem:[#allocation5 + $0xb0] sm:$0xff]   ;;  %3063 = vmatprep.subr.bf16.mxu0 %v3512_v62  ;;  %v4151_v33 = vcombine.low %v245_v27, %v4147_v28  ;;  %v3528_v62 = vld [vmem:[#allocation5 + $0x1c8] sm:$0xff]  }
  0x98   : > { %v4120_v63 = vsel %vm451_vm0, %v494_v58, %v498_v53  ;;  %v4129_v13 = vsel %vm451_vm0, %v638_v2, %v642_v61  ;;  %v510_v31 = vrot.slane %v508_v24, 1  ;;  %v4167_v58 = vld [vmem:[%s3990_s21 + $0x4c] sm:$0xf]  ;;  %v4189_v27 = vld [vmem:[%s3990_s21 + $0x58] sm:$0xf] }
  0x99   : > { %1455 = vmatmul.mubr.bf16.gmra.mrb[4].mxu0 %v4026_v41  ;;  %1551 = vmatmul.mubr.bf16.gmra.mrb[4].mxu1 %v4040_v51  ;;  %4984 = vst [vmem:[#allocation12_spill] sm:$0xff] %v4129_v13  ;;  %v513_v47 = vshrl.u32 %v4151_v33, 16  ;;  %v515_v48 = vshll.u32 %v4151_v33, 16  ;;  %v4172_v61 = vcombine.low %v247_v57, %v4167_v58 }
  0x9a   : > { %2952 = vmatpush3.bf16.msra.mxu1 %v3492_v9  ;;  %1462 = vmatprep.mubr.bf16.mxu0 %v4084_v30  ;;  %v3514_v9 = vld [vmem:[#allocation5 + $0x110] sm:$0xff]  }
  0x9b   : > { %2953 = vmatprep.subr.bf16.mxu1 %v3493_v16  ;;  %1558 = vmatprep.mubr.bf16.mxu1 %v4098_v38  ;;  %v3511_v16 = vld [vmem:[#allocation5 + $0xf8] sm:$0xff]   ;;  %v517_v55 = vrot.slane %v515_v48, 1  ;;  %v527_v10 = vshll.u32 %v4172_v61, 16  ;;  %v716_v48 = vrot.slane %v4058_v5, 1 }
  0x9c   : > { %3064 = vmatpush3.bf16.msra.mxu0 %v3514_v9  ;;  %v3530_v9 = vld [vmem:[#allocation5 + $0x160] sm:$0xff]  }
  0x9d   : > { %v518_v2 = vor.u32 %v517_v55, %v513_v47  ;;  %v4206_v47 = vld [vmem:[%s3990_s21 + $0x64] sm:$0xf]  ;;  %v4218_v55 = vld [vmem:[%s3990_s21 + $0x68] ss:$0 sps:$4 sm:$0x11]  }
  0x9e   : > { %2954 = vmatpush3.bf16.msra.mxu1 %v3494_v29  ;;  %v505_v29 = vrot.slane %v503_v23, 1  ;;  %v3531_v23 = vld [vmem:[#allocation5 + $0x120] sm:$0xff]  }
  0x9f   : > { %2955 = vmatprep.subr.bf16.mxu1 %v3499_v32  ;;  %v709_v32 = vrot.slane %v2575_v25, 1  ;;  %v249_v25 = vld [vmem:[%s3990_s21 + $0x54] sm:$0xf] }
  0xa0   : > { %v506_v46 = vor.u32 %v505_v29, %v501_v21  ;;  %v529_v21 = vrot.slane %v527_v10, 1  ;;  %v3545_v10 = vld [vmem:[#allocation5 + $0x170] sm:$0xff]  }
  0xa1   : > { %1463 = vmatmul.mubr.bf16.gmra.mrb[8].mxu0 %v4055_v4  ;;  %1559 = vmatmul.mubr.bf16.gmra.mrb[8].mxu1 %v4076_v17  ;;  %v711_v53 = vsel %vm708_vm1, %v709_v32, %v710_v6  ;;  %v3529_v6 = vld [vmem:[#allocation5 + $0x188] sm:$0xff]   ;;  %v4196_v32 = vcombine.low %v249_v25, %v4189_v27  ;;  %v556_v25 = vshll.u32 %v4218_v55, 16 }
  0xa2   : > { %2956 = vmatpush3.bf16.msra.mxu1 %v3501_v35  ;;  %1470 = vmatprep.mubr.bf16.mxu0 %v4120_v63  ;;  %v3523_v35 = vld [vmem:[#allocation5 + $0x158] sm:$0xff]   ;;  %v4161_v52 = vsel %vm451_vm0, %v506_v46, %v510_v31 }
  0xa3   : > { %2957 = vmatprep.subr.bf16.mxu1 %v3503_v40  ;;  %1566 = vmatprep.mubr.bf16.mxu1 %v4129_v13  ;;  %v290_v40 = vld [vmem:[%s3990_s21 + $0xc] sm:$0xe]  ;;  %4985 = vst [vmem:[#allocation13_spill] sm:$0xff] %v4196_v32 }
  0xa4   : > { %3065 = vmatprep.subr.bf16.mxu0 %v3523_v35  ;;  %v4199_v35 = vld [vmem:[%s3990_s21 + $0x5c] ss:$0 sps:$4 sm:$0x11]  }
  0xa5   : > { %3066 = vmatpush3.bf16.msra.mxu0 %v3524_v44  ;;  %v3538_v44 = vld [vmem:[#allocation5 + $0x168] sm:$0xff]  }
  0xa6   : > { %2958 = vmatpush3.bf16.msra.mxu1 %v3504_v56  ;;  %v2576_v56 = vcombine.low %v290_v40, %v4023_v39  ;;  %v525_v39 = vshrl.u32 %v4172_v61, 16  ;;  %3067 = vmatprep.subr.bf16.mxu0 %v3530_v9  ;;  %v251_v40 = vld [vmem:[%s3990_s21 + $0x60] sm:$0xf] }
  0xa7   : > { %2959 = vmatprep.subr.bf16.mxu1 %v3509_v60  ;;  %v713_v60 = vrot.slane %v4029_v42, 1 }
  0xa8   : > { %v712_v14 = vrot.slane %v2576_v56, 1  ;;  %v3539_v56 = vld [vmem:[#allocation5 + $0x1d0] sm:$0xff]  }
  0xa9   : > { %1471 = vmatmul.mubr.bf16.gmra.mrb[12].mxu0 %v4092_v36  ;;  %1567 = vmatmul.mubr.bf16.gmra.mrb[12].mxu1 %v4109_v49 }
  0xaa   : > { %2960 = vmatpush3.bf16.msra.mxu1 %v3510_v3  ;;  %1607 = vmatprep.mubr.bf16.mxu1 %v4026_v41  ;;  %v520_v41 = vshll.u32 %v4154_v12, 16  ;;  %v4175_v3 = vld [vmem:[%s3990_s21 + $0x50] ss:$0 sps:$4 sm:$0x11]   ;;  %v4192_v29 = vsel %vm708_vm1, %v712_v14, %v713_v60  ;;  %v292_v60 = vld [vmem:[%s3990_s21 + $0x24] sm:$0xe] }
  0xab   : > { %2961 = vmatprep.subr.bf16.mxu1 %v3511_v16  ;;  %1478 = vmatprep.mubr.bf16.mxu0 %v4161_v52  ;;  %v291_v16 = vld [vmem:[%s3990_s21 + $0x18] sm:$0xe]  ;;  %v2578_v14 = vcombine.low %v292_v60, %v4089_v34  ;;  %v4244_v34 = vld [vmem:[%s3990_s21 + $0x74] ss:$0 sps:$4 sm:$0x11]  }
  0xac   : > { %v522_v59 = vrot.slane %v520_v41, 1  ;;  %3068 = vmatpush3.bf16.msra.mxu0 %v3531_v23  ;;  %v2577_v31 = vcombine.low %v291_v16, %v4049_v0  ;;  %v537_v41 = vshrl.u32 %v4196_v32, 16  ;;  %v539_v0 = vshll.u32 %v4196_v32, 16  ;;  %v3551_v60 = vld [vmem:[#allocation5 + $0x198] sm:$0xff]  }
  0xad   : > { %3069 = vmatprep.subr.bf16.mxu0 %v3538_v44  ;;  %v3550_v44 = vld [vmem:[#allocation5 + $0x1d8] sm:$0xff]  }
  0xae   : > { %2962 = vmatpush3.bf16.msra.mxu1 %v3513_v20  ;;  %v4182_v42 = vsel %vm451_vm0, %v518_v2, %v522_v59  ;;  %v532_v20 = vshll.u32 %v4175_v3, 16  ;;  %v715_v5 = vrot.slane %v2577_v31, 1  ;;  %v541_v57 = vrot.slane %v539_v0, 1 }
  0xaf   : > { %3171 = vmatprep.subr.bf16.mxu1 %v3518_v26  ;;  %v530_v26 = vor.u32 %v529_v21, %v525_v39  ;;  %v3541_v39 = vld [vmem:[#allocation5 + $0x190] sm:$0xff]   ;;  %v4231_v21 = vld [vmem:[%s3990_s21 + $0x70] sm:$0xf] }
  0xb0   : > { %v534_v24 = vrot.slane %v532_v20, 1  ;;  %v542_v2 = vor.u32 %v541_v57, %v537_v41  ;;  %v4226_v16 = vsel %vm708_vm1, %v715_v5, %v716_v48  ;;  %v253_v20 = vld [vmem:[%s3990_s21 + $0x6c] sm:$0xf]  ;;  %v718_v48 = vrot.slane %v2578_v14, 1  ;;  %v255_v5 = vld [vmem:[%s3990_s21 + $0x78] sm:$0xf] }
  0xb1   : > { %1479 = vmatmul.mubr.bf16.gmra.mrb[16].mxu0 %v4132_v18  ;;  %1608 = vmatmul.mubr.bf16.vlgmr.msra.gmra.mrb[16].mxu1 %v711_v53  ;;  %v544_v53 = vshll.u32 %v4199_v35, 16  ;;  %v4239_v31 = vcombine.low %v253_v20, %v4231_v21  ;;  %v719_v41 = vrot.slane %v4095_v37, 1  ;;  %v294_v14 = vld [vmem:[%s3990_s21 + $0x3c] sm:$0xe] }
  0xb2   : > { %3172 = vmatpush3.bf16.msra.mxu1 %v3519_v54  ;;  %1615 = vmatprep.mubr.bf16.mxu1 %v4055_v4  ;;  %v4203_v46 = vsel %vm451_vm0, %v530_v26, %v534_v24  ;;  %v4215_v54 = vcombine.low %v251_v40, %v4206_v47  ;;  %v293_v26 = vld [vmem:[%s3990_s21 + $0x30] sm:$0xe]  ;;  %v3546_v40 = vld [vmem:[#allocation5 + $0x130] sm:$0xff]  }
  0xb3   : > { %1486 = vmatprep.mubr.bf16.mxu0 %v4182_v42  ;;  %3173 = vmatprep.subr.bf16.mxu1 %v3528_v62  ;;  %v546_v59 = vrot.slane %v544_v53, 1  ;;  %v558_v53 = vrot.slane %v556_v25, 1  ;;  %v2579_v57 = vcombine.low %v293_v26, %v4126_v11  ;;  %v4273_v25 = vld [vmem:[%s3990_s21 + $0x80] ss:$0 sps:$4 sm:$0x11]   ;;  %v3556_v26 = vld [vmem:[#allocation5 + $0x138] sm:$0xff]  }
  0xb4   : > { %v551_v62 = vshll.u32 %v4215_v54, 16  ;;  %v549_v9 = vshrl.u32 %v4215_v54, 16 }
  0xb5   : > { %v4234_v23 = vsel %vm451_vm0, %v542_v2, %v546_v59  ;;  %v4253_v59 = vld [vmem:[%s3990_s21 + $0x7c] sm:$0xf]  ;;  %v4257_v2 = vsel %vm708_vm1, %v718_v48, %v719_v41  ;;  %v721_v11 = vrot.slane %v2579_v57, 1  ;;  %v257_v48 = vld [vmem:[%s3990_s21 + $0x84] sm:$0xf] }
  0xb6   : > { %3174 = vmatpush3.bf16.msra.mxu1 %v3529_v6  ;;  %v3540_v6 = vld [vmem:[#allocation5 + $0x128] sm:$0xff]   ;;  %v553_v24 = vrot.slane %v551_v62, 1  ;;  %v568_v62 = vshll.u32 %v4244_v34, 16  ;;  %v4278_v41 = vld [vmem:[%s3990_s21 + $0x88] sm:$0xf] }
  0xb7   : > { %3175 = vmatprep.subr.bf16.mxu1 %v3539_v56  ;;  %3070 = vmatpush3.bf16.msra.mxu0 %v3540_v6  ;;  %v563_v56 = vshll.u32 %v4239_v31, 16  ;;  %v561_v6 = vshrl.u32 %v4239_v31, 16 }
  0xb8   : > { %3071 = vmatprep.subr.bf16.mxu0 %v3545_v10  ;;  %v554_v0 = vor.u32 %v553_v24, %v549_v9  ;;  %v722_v10 = vrot.slane %v4135_v19, 1  ;;  %v570_v20 = vrot.slane %v568_v62, 1  ;;  %v3555_v24 = vld [vmem:[#allocation5 + $0x178] sm:$0xff]   ;;  %v3558_v19 = vld [vmem:[#allocation5 + $0x1e0] sm:$0xff]  }
  0xb9   : > { %1487 = vmatmul.mubr.bf16.gmra.mrb[20].mxu0 %v4151_v33  ;;  %1616 = vmatmul.mubr.bf16.gmra.mrb[20].mxu1 %v4192_v29  ;;  %v565_v9 = vrot.slane %v563_v56, 1  ;;  %v3559_v56 = vld [vmem:[#allocation5 + $0x1a0] sm:$0xff]  }
  0xba   : > { %1494 = vmatprep.mubr.bf16.mxu0 %v4203_v46  ;;  %1623 = vmatprep.mubr.bf16.mxu1 %v4092_v36  ;;  %v4260_v37 = vsel %vm451_vm0, %v554_v0, %v558_v53  ;;  %v2580_v0 = vcombine.low %v294_v14, %v4147_v28  ;;  %v725_v53 = vrot.slane %v4154_v12, 1  ;;  %v4293_v28 = vcombine.low %v257_v48, %v4278_v41  ;;  %v3563_v12 = vld [vmem:[#allocation5 + $0x1e8] sm:$0xff]   ;;  %v4301_v14 = vld [vmem:[%s3990_s21 + $0x8c] ss:$0 sps:$4 sm:$0x11]  }
  0xbb   : > { %3176 = vmatpush3.bf16.msra.mxu1 %v3541_v39  ;;  %3072 = vmatpush3.bf16.msra.mxu0 %v3546_v40  ;;  %v4264_v39 = vcombine.low %v255_v5, %v4253_v59  ;;  %v566_v40 = vor.u32 %v565_v9, %v561_v6  ;;  %v4283_v5 = vsel %vm708_vm1, %v721_v11, %v722_v10  ;;  %v580_v9 = vshll.u32 %v4273_v25, 16  ;;  %v3564_v10 = vld [vmem:[#allocation5 + $0x1a8] sm:$0xff]   ;;  %v3569_v48 = vld [vmem:[#allocation5 + $0x1b0] sm:$0xff]  }
  0xbc   : > { %3177 = vmatprep.subr.bf16.mxu1 %v3550_v44  ;;  %3073 = vmatprep.subr.bf16.mxu0 %v3555_v24  ;;  %v724_v11 = vrot.slane %v2580_v0, 1 }
  0xbd   : > { %v575_v44 = vshll.u32 %v4264_v39, 16  ;;  %v573_v57 = vshrl.u32 %v4264_v39, 16  ;;  %v4289_v62 = vsel %vm451_vm0, %v566_v40, %v570_v20  ;;  %v3568_v20 = vld [vmem:[#allocation5 + $0x1f0] sm:$0xff]  }
  0xbe   : > { %v295_v40 = vld [vmem:[%s3990_s21 + $0x48] sm:$0xe] }
  0xbf   : > { %3178 = vmatpush3.bf16.msra.mxu1 %v3551_v60  ;;  %3074 = vmatpush3.bf16.msra.mxu0 %v3556_v26  ;;  %v4286_v60 = vld [vmem:[#allocation5 + $0x200] sm:$0xff]   ;;  %v577_v6 = vrot.slane %v575_v44, 1  ;;  %v582_v26 = vrot.slane %v580_v9, 1  ;;  %v587_v44 = vshll.u32 %v4293_v28, 16  ;;  %v2581_v0 = vcombine.low %v295_v40, %v4167_v58  ;;  %v3573_v9 = vld [vmem:[#allocation5 + $0x1f8] sm:$0xff]  }
  0xc0   : > { %3179 = vmatprep.subr.bf16.mxu1 %v3558_v19  ;;  %3307 = vmatprep.subr.bf16.mxu0 %v4286_v60  ;;  %v4306_v19 = vsel %vm708_vm1, %v724_v11, %v725_v53  ;;  %v3574_v53 = vld [vmem:[#allocation5 + $0x1b8] sm:$0xff]   ;;  %v755_v40 = vrot.slane %v4112_v50, 1  ;;  %v731_v50 = vrot.slane %v4199_v35, 1 }
  0xc1   : > { %1495 = vmatmul.mubr.bf16.gmra.mrb[24].mxu0 %v4172_v61  ;;  %1624 = vmatmul.mubr.bf16.gmra.mrb[24].mxu1 %v4226_v16  ;;  %v578_v24 = vor.u32 %v577_v6, %v573_v57  ;;  %v585_v57 = vshrl.u32 %v4293_v28, 16  ;;  %v589_v6 = vrot.slane %v587_v44, 1  ;;  %v727_v58 = vrot.slane %v2581_v0, 1 }
  0xc2   : > { %1502 = vmatprep.mubr.bf16.mxu0 %v4234_v23  ;;  %1631 = vmatprep.mubr.bf16.mxu1 %v4132_v18 }
  0xc3   : > { %3180 = vmatpush3.bf16.msra.mxu1 %v3559_v56  ;;  %v592_v56 = vshll.u32 %v4301_v14, 16  ;;  %v4311_v13 = vsel %vm451_vm0, %v578_v24, %v582_v26  ;;  %v304_v24 = vld [vmem:[%s3990_s21 + $0xb4] sm:$0xe] }
  0xc4   : > { %3181 = vmatprep.subr.bf16.mxu1 %v3563_v12  ;;  %v728_v12 = vrot.slane %v4175_v3, 1  ;;  %v2590_v26 = vcombine.low %v304_v24, %v4102_v45 }
  0xc5   : > { %v594_v11 = vrot.slane %v592_v56, 1 }
  0xc6   : > { %v4324_v44 = vsel %vm708_vm1, %v727_v58, %v728_v12  ;;  %v3565_v58 = vld [vmem:[#allocation5 + $0x208] sm:$0xff]   ;;  %v3570_v12 = vld [vmem:[#allocation5 + $0x210] sm:$0xff]  }
  0xc7   : > { %3182 = vmatpush3.bf16.msra.mxu1 %v3564_v10  ;;  %v296_v10 = vld [vmem:[%s3990_s21 + $0x54] sm:$0xe] }
  0xc8   : > { %3183 = vmatprep.subr.bf16.mxu1 %v3568_v20  ;;  %v590_v20 = vor.u32 %v589_v6, %v585_v57  ;;  %v734_v6 = vrot.slane %v4218_v55, 1  ;;  %v299_v55 = vld [vmem:[%s3990_s21 + $0x78] sm:$0xe] }
  0xc9   : > { %1503 = vmatmul.mubr.bf16.gmra.mrb[28].mxu0 %v4196_v32  ;;  %1632 = vmatmul.mubr.bf16.gmra.mrb[28].mxu1 %v4257_v2 }
  0xca   : > { %1510 = vmatprep.mubr.bf16.mxu0 %v4260_v37  ;;  %1639 = vmatprep.mubr.bf16.mxu1 %v4151_v33  ;;  %v4328_v0 = vsel %vm451_vm0, %v590_v20, %v594_v11  ;;  %v2585_v11 = vcombine.low %v299_v55, %v4253_v59  ;;  %v3578_v20 = vld [vmem:[#allocation5 + $0x220] sm:$0xff]   ;;  %v3590_v55 = vld [vmem:[%s3990_s21 + $0xa4] ss:$0 sps:$4 sm:$0x11]  }
  0xcb   : > { %3184 = vmatpush3.bf16.msra.mxu1 %v3569_v48  ;;  %v2582_v48 = vcombine.low %v296_v10, %v4189_v27  ;;  %v297_v27 = vld [vmem:[%s3990_s21 + $0x60] sm:$0xe]  ;;  %v300_v10 = vld [vmem:[%s3990_s21 + $0x84] sm:$0xe] }
  0xcc   : > { %3185 = vmatprep.subr.bf16.mxu1 %v3573_v9  ;;  %v2583_v57 = vcombine.low %v297_v27, %v4206_v47  ;;  %v298_v9 = vld [vmem:[%s3990_s21 + $0x6c] sm:$0xe]  ;;  %v2586_v24 = vcombine.low %v300_v10, %v4278_v41  ;;  %v752_v10 = vrot.slane %v4072_v15, 1 }
  0xcd   : > { %v730_v45 = vrot.slane %v2582_v48, 1  ;;  %v301_v48 = vld [vmem:[%s3990_s21 + $0x90] sm:$0xe]  ;;  %v3580_v41 = vld [vmem:[#allocation5 + $0x230] sm:$0xff]  }
  0xcf   : > { %3186 = vmatpush3.bf16.msra.mxu1 %v3574_v53  ;;  %v4340_v56 = vsel %vm708_vm1, %v730_v45, %v731_v50  ;;  %v2584_v53 = vcombine.low %v298_v9, %v4231_v21  ;;  %v3587_v50 = vld [vmem:[%s3990_s21 + $0x94] sm:$0xf]  ;;  %v302_v9 = vld [vmem:[%s3990_s21 + $0x9c] sm:$0xe] }
  0xd0   : > { %v2587_v27 = vcombine.low %v301_v48, %v3587_v50 }
  0xd1   : > { %1511 = vmatmul.mubr.bf16.gmra.mrb[32].mxu0 %v4215_v54  ;;  %1640 = vmatmul.mubr.bf16.gmra.mrb[32].mxu1 %v4283_v5  ;;  %v736_v47 = vrot.slane %v2584_v53, 1 }
  0xd2   : > { %1518 = vmatprep.mubr.bf16.mxu0 %v4289_v62  ;;  %1647 = vmatprep.mubr.bf16.mxu1 %v4172_v61 }
  0xd9   : > { %1519 = vmatmul.mubr.bf16.gmra.mrb[36].mxu0 %v4239_v31  ;;  %1648 = vmatmul.mubr.bf16.gmra.mrb[36].mxu1 %v4306_v19 }
  0xda   : > { %1526 = vmatprep.mubr.bf16.mxu0 %v4311_v13  ;;  %1655 = vmatprep.mubr.bf16.mxu1 %v4196_v32  ;;  %v754_v32 = vrot.slane %v2590_v26, 1  ;;  %v3579_v26 = vld [vmem:[#allocation5 + $0x228] sm:$0xff]  }
  0xdc   : > { %v4331_v3 = vsel %vm708_vm1, %v754_v32, %v755_v40  ;;  %v733_v32 = vrot.slane %v2583_v57, 1  ;;  %v743_v40 = vrot.slane %v4301_v14, 1  ;;  %v3581_v57 = vld [vmem:[#allocation5 + $0x238] sm:$0xff]   ;;  %v745_v14 = vrot.slane %v2587_v27, 1 }
  0xde   : > { %v4350_v35 = vsel %vm708_vm1, %v733_v32, %v734_v6  ;;  %v3588_v32 = vld [vmem:[%s3990_s21 + $0x98] ss:$0 sps:$4 sm:$0x11]  }
  0xdf   : > { %v746_v6 = vrot.slane %v3588_v32, 1 }
  0xe1   : > { %1527 = vmatmul.mubr.bf16.gmra.mrb[40].mxu0 %v4264_v39  ;;  %1656 = vmatmul.mubr.bf16.gmra.mrb[40].mxu1 %v4324_v44  ;;  %v4391_v53 = vsel %vm708_vm1, %v745_v14, %v746_v6 }
  0xe2   : > { %1534 = vmatprep.mubr.bf16.mxu0 %v4328_v0  ;;  %1663 = vmatprep.mubr.bf16.mxu1 %v4215_v54 }
  0xe9   : > { %1535 = vmatmul.mubr.bf16.gmra.mrb[44].mxu0 %v4293_v28  ;;  %1664 = vmatmul.mubr.bf16.gmra.mrb[44].mxu1 %v4340_v56 }
  0xea   : > { %1671 = vmatprep.mubr.bf16.mxu1 %v4239_v31  ;;  %1768 = vmatprep.mubr.bf16.mxu0 %v4192_v29  ;;  %v737_v29 = vrot.slane %v4244_v34, 1  ;;  %v739_v34 = vrot.slane %v2585_v11, 1  ;;  %v303_v11 = vld [vmem:[%s3990_s21 + $0xa8] sm:$0xe] }
  0xec   : > { %v4361_v21 = vsel %vm708_vm1, %v736_v47, %v737_v29 }
  0xf1   : > { %1672 = vmatmul.mubr.bf16.gmra.mrb[48].mxu1 %v4350_v35  ;;  %1769 = vmatmul.mubr.bf16.vlgmr.msra.gmra.mrb[48].mxu0 %v4052_v1  ;;  %v3575_v1 = vld [vmem:[#allocation5 + $0x218] sm:$0xff]  }
  0xf2   : > { %3308 = vmatpush3.bf16.msra.mxu0 %v4286_v60  ;;  %1679 = vmatprep.mubr.bf16.mxu1 %v4264_v39  ;;  %v740_v60 = vrot.slane %v4273_v25, 1  ;;  %v742_v25 = vrot.slane %v2586_v24, 1  ;;  %v268_v24 = vld [vmem:[%s3990_s21 + $0xc4] sm:$0xf] }
  0xf3   : > { %1776 = vmatprep.mubr.bf16.mxu0 %v4226_v16  ;;  %3309 = vmatprep.subr.bf16.mxu0 %v3565_v58 }
  0xf4   : > { %v4371_v59 = vsel %vm708_vm1, %v739_v34, %v740_v60  ;;  %v4381_v45 = vsel %vm708_vm1, %v742_v25, %v743_v40  ;;  %v2589_v34 = vcombine.low %v303_v11, %v4063_v7  ;;  %v3582_v7 = vld [vmem:[%s3990_s21 + $0xc8] ss:$0 sps:$4 sm:$0x11]  }
  0xf6   : > { %3310 = vmatpush3.bf16.msra.mxu0 %v3565_v58  ;;  %v3589_v58 = vld [vmem:[%s3990_s21 + $0xa0] sm:$0xf]  ;;  %v751_v60 = vrot.slane %v2589_v34, 1 }
  0xf7   : > { %3311 = vmatprep.subr.bf16.mxu0 %v3570_v12  ;;  %v2588_v47 = vcombine.low %v302_v9, %v3589_v58 }
  0xf9   : > { %1680 = vmatmul.mubr.bf16.gmra.mrb[52].mxu1 %v4361_v21  ;;  %1777 = vmatmul.mubr.bf16.gmra.mrb[52].mxu0 %v4084_v30  ;;  %v748_v29 = vrot.slane %v2588_v47, 1 }
  0xfa   : > { %1687 = vmatprep.mubr.bf16.mxu1 %v4293_v28  ;;  %1784 = vmatprep.mubr.bf16.mxu0 %v4257_v2 }
  0xfb   : > { %3312 = vmatpush3.bf16.msra.mxu0 %v3570_v12  ;;  %v749_v12 = vrot.slane %v3590_v55, 1 }
  0xfc   : > { %3313 = vmatprep.subr.bf16.mxu0 %v3575_v1 }
  0xff   : > { %3314 = vmatpush3.bf16.msra.mxu0 %v3575_v1  ;;  %v4401_v1 = vsel %vm708_vm1, %v748_v29, %v749_v12 }
 0x100   : > { %3315 = vmatprep.subr.bf16.mxu0 %v3578_v20 }
 0x101   : > { %1688 = vmatmul.mubr.bf16.gmra.mrb[56].mxu1 %v4371_v59  ;;  %1785 = vmatmul.mubr.bf16.gmra.mrb[56].mxu0 %v4120_v63 }
 0x102   : > { %1695 = vmatprep.mubr.bf16.mxu1 %v4015_v22  ;;  %1792 = vmatprep.mubr.bf16.mxu0 %v4283_v5 }
 0x103   : > { %3316 = vmatpush3.bf16.msra.mxu0 %v3578_v20  ;;  %v267_v20 = vld [vmem:[%s3990_s21 + $0xc0] sm:$0xf] }
 0x104   : > { %3317 = vmatprep.subr.bf16.mxu0 %v3579_v26  ;;  %v4414_v25 = vcombine.low %v267_v20, %v268_v24 }
 0x107   : > { %3318 = vmatpush3.bf16.msra.mxu0 %v3579_v26  ;;  %v4412_v26 = vsel %vm708_vm1, %v751_v60, %v752_v10 }
 0x108   : > { %3319 = vmatprep.subr.bf16.mxu0 %v3580_v41 }
 0x109   : > { %1696 = vmatmul.mubr.bf16.gmra.mrb[60].mxu1 %v4381_v45  ;;  %1793 = vmatmul.mubr.bf16.gmra.mrb[60].mxu0 %v4161_v52 }
 0x10a   : > { %1703 = vmatprep.mubr.bf16.mxu1 %v4040_v51  ;;  %1800 = vmatprep.mubr.bf16.mxu0 %v4306_v19 }
 0x10b   : > { %3320 = vmatpush3.bf16.msra.mxu0 %v3580_v41 }
 0x10c   : > { %3321 = vmatprep.subr.bf16.mxu0 %v3581_v57 }
 0x10f   : > { %3322 = vmatpush3.bf16.msra.mxu0 %v3581_v57 }
 0x111   : > { %1704 = vmatmul.mubr.bf16.gmra.mrb[64].mxu1 %v4391_v53  ;;  %1801 = vmatmul.mubr.bf16.gmra.mrb[64].mxu0 %v4182_v42 }
 0x112   : > { %1711 = vmatprep.mubr.bf16.mxu1 %v4076_v17  ;;  %1808 = vmatprep.mubr.bf16.mxu0 %v4324_v44 }
 0x119   : > { %1712 = vmatmul.mubr.bf16.gmra.mrb[68].mxu1 %v4401_v1  ;;  %1809 = vmatmul.mubr.bf16.gmra.mrb[68].mxu0 %v4203_v46 }
 0x11a   : > { %1719 = vmatprep.mubr.bf16.mxu1 %v4109_v49  ;;  %1816 = vmatprep.mubr.bf16.mxu0 %v4340_v56 }
 0x121   : > { %1720 = vmatmul.mubr.bf16.gmra.mrb[72].mxu1 %v4412_v26  ;;  %1817 = vmatmul.mubr.bf16.gmra.mrb[72].mxu0 %v4234_v23 }
 0x122   : > { %1727 = vmatprep.mubr.bf16.mxu1 %v4414_v25  ;;  %1824 = vmatprep.mubr.bf16.mxu0 %v4350_v35 }
 0x129   : > { %1728 = vmatmul.mubr.bf16.gmra.mrb[76].mxu1 %v4331_v3  ;;  %1825 = vmatmul.mubr.bf16.gmra.mrb[76].mxu0 %v4260_v37 }
 0x12a   : > { %1832 = vmatprep.mubr.bf16.mxu0 %v4361_v21  ;;  %1929 = vmatprep.mubr.bf16.mxu1 %v4084_v30  ;;  %v4986_v30 = vld [vmem:[#allocation13_spill] sm:$0xff] }
 0x131   : > { %1833 = vmatmul.mubr.bf16.gmra.mrb[80].mxu0 %v4289_v62  ;;  %1930 = vmatmul.mubr.bf16.vlgmr.msra.gmra.mrb[80].mxu1 %v4055_v4  ;;  %v305_v4 = vld [vmem:[%s3990_s21 + $0xc0] sm:$0xe] }
 0x132   : > { %1840 = vmatprep.mubr.bf16.mxu0 %v4371_v59  ;;  %1937 = vmatprep.mubr.bf16.mxu1 %v4120_v63  ;;  %v2593_v15 = vcombine.low %v305_v4, %v268_v24 }
 0x134   : > { %v798_v63 = vrot.slane %v2593_v15, 1 }
 0x139   : > { %1841 = vmatmul.mubr.bf16.gmra.mrb[84].mxu0 %v4311_v13  ;;  %1938 = vmatmul.mubr.bf16.gmra.mrb[84].mxu1 %v4092_v36  ;;  %v785_v36 = vshll.u32 %v4414_v25, 16 }
 0x13a   : > { %1848 = vmatprep.mubr.bf16.mxu0 %v4381_v45  ;;  %1945 = vmatprep.mubr.bf16.mxu1 %v4161_v52 }
 0x13b   : > { %v787_v52 = vrot.slane %v785_v36, 1 }
 0x141   : > { %1849 = vmatmul.mubr.bf16.gmra.mrb[88].mxu0 %v4328_v0  ;;  %1946 = vmatmul.mubr.bf16.gmra.mrb[88].mxu1 %v4132_v18  ;;  %v799_v18 = vrot.slane %v3582_v7, 1 }
 0x142   : > { %1856 = vmatprep.mubr.bf16.mxu0 %v4391_v53  ;;  %1953 = vmatprep.mubr.bf16.mxu1 %v4182_v42 }
 0x143   : > { %v4453_v42 = vsel %vm708_vm1, %v798_v63, %v799_v18 }
 0x149   : > { %1857 = vmatmul.mubr.bf16.gmra.mrb[92].mxu0 %v4032_v43  ;;  %1954 = vmatmul.mubr.bf16.gmra.mrb[92].mxu1 %v4151_v33  ;;  %v783_v33 = vshrl.u32 %v4414_v25, 16 }
 0x14a   : > { %1864 = vmatprep.mubr.bf16.mxu0 %v4401_v1  ;;  %1961 = vmatprep.mubr.bf16.mxu1 %v4203_v46  ;;  %v4987_v46 = vld [vmem:[#allocation12_spill] sm:$0xff] }
 0x151   : > { %1865 = vmatmul.mubr.bf16.gmra.mrb[96].mxu0 %v4066_v8  ;;  %1962 = vmatmul.mubr.bf16.gmra.mrb[96].mxu1 %v4172_v61  ;;  %v790_v61 = vshll.u32 %v3582_v7, 16 }
 0x152   : > { %1872 = vmatprep.mubr.bf16.mxu0 %v4412_v26  ;;  %1969 = vmatprep.mubr.bf16.mxu1 %v4234_v23  ;;  %v788_v23 = vor.u32 %v787_v52, %v783_v33 }
 0x159   : > { %1873 = vmatmul.mubr.bf16.gmra.mrb[100].mxu0 %v4098_v38  ;;  %1970 = vmatmul.mubr.bf16.gmra.mrb[100].mxu1 %v4986_v30 }
 0x15a   : > { %1880 = vmatprep.mubr.bf16.mxu0 %v4331_v3  ;;  %1977 = vmatprep.mubr.bf16.mxu1 %v4260_v37  ;;  %v792_v37 = vrot.slane %v790_v61, 1 }
 0x15c   : > { %v4464_v6 = vsel %vm451_vm0, %v788_v23, %v792_v37 }
 0x161   : > { %1881 = vmatmul.mubr.bf16.gmra.mrb[104].mxu0 %v4987_v46  ;;  %1978 = vmatmul.mubr.bf16.gmra.mrb[104].mxu1 %v4215_v54 }
 0x162   : > { %1888 = vmatprep.mubr.bf16.mxu0 %v4453_v42  ;;  %1985 = vmatprep.mubr.bf16.mxu1 %v4289_v62 }
 0x164   : > { %v2923_v40 = vpop.f32.mrb[0].mxu1  ;;  %v2851_v48 = vpop.f32.mrb[0].mxu0 }
 0x165   : > { %v2924_v41 = vpop.f32.mrb[1].mxu1  ;;  %v2852_v50 = vpop.f32.mrb[1].mxu0 }
 0x166   : > { %v4459_v27 = vadd.f32 %v2924_v41, %v2923_v40  ;;  %v2926_v57 = vpop.f32.mrb[2].mxu1  ;;  %v4461_v14 = vadd.f32 %v2852_v50, %v2851_v48  ;;  %v2854_v32 = vpop.f32.mrb[2].mxu0 }
 0x167   : > { %v2927_v54 = vpop.f32.mrb[3].mxu1  ;;  %v2855_v9 = vpop.f32.mrb[3].mxu0 }
 0x168   : > { %v4466_v58 = vadd.f32 %v2927_v54, %v2926_v57  ;;  %v4468_v62 = vadd.f32 %v2855_v9, %v2854_v32 }
 0x169   : > { %1889 = vmatmul.mubr.bf16.gmra.mrb[108].mxu0 %v4464_v6  ;;  %1986 = vmatmul.mubr.bf16.gmra.mrb[108].mxu1 %v4239_v31 }
 0x16a   : > { %1993 = vmatprep.mubr.bf16.mxu1 %v4311_v13  ;;  %3323 = vmatprep.mubr.bf16.mxu0 %v4226_v16 }
 0x16c   : > { %v2929_v47 = vpop.f32.mrb[4].mxu1  ;;  %v2857_v29 = vpop.f32.mrb[4].mxu0 }
 0x16d   : > { %v2930_v55 = vpop.f32.mrb[5].mxu1  ;;  %v2858_v12 = vpop.f32.mrb[5].mxu0 }
 0x16e   : > { %v4474_v11 = vadd.f32 %v2930_v55, %v2929_v47  ;;  %v2932_v34 = vpop.f32.mrb[6].mxu1  ;;  %v4476_v60 = vadd.f32 %v2858_v12, %v2857_v29  ;;  %v2860_v10 = vpop.f32.mrb[6].mxu0 }
 0x16f   : > { %v2933_v20 = vpop.f32.mrb[7].mxu1  ;;  %v2861_v24 = vpop.f32.mrb[7].mxu0 }
 0x170   : > { %v4478_v4 = vadd.f32 %v2933_v20, %v2932_v34  ;;  %v4480_v7 = vadd.f32 %v2861_v24, %v2860_v10 }
 0x171   : > { %1994 = vmatmul.mubr.bf16.gmra.mrb[112].mxu1 %v4264_v39  ;;  %3324 = vmatmul.mubr.bf16.vlgmr.msra.gmra.mrb[112].mxu0 %v4257_v2 }
 0x172   : > { %2001 = vmatprep.mubr.bf16.mxu1 %v4328_v0  ;;  %3327 = vmatprep.mubr.bf16.mxu0 %v4283_v5 }
 0x174   : > { %v2935_v13 = vpop.f32.mrb[8].mxu1  ;;  %v2863_v16 = vpop.f32.mrb[8].mxu0 }
 0x175   : > { %v2936_v31 = vpop.f32.mrb[9].mxu1  ;;  %v2864_v15 = vpop.f32.mrb[9].mxu0 }
 0x176   : > { %v4486_v30 = vadd.f32 %v2936_v31, %v2935_v13  ;;  %v2938_v36 = vpop.f32.mrb[10].mxu1  ;;  %v4488_v63 = vadd.f32 %v2864_v15, %v2863_v16  ;;  %v2866_v18 = vpop.f32.mrb[10].mxu0  ;;  %v269_v16 = vld [vmem:[%s3990_s21 + $0xcc] sm:$0xf]  ;;  %v4530_v31 = vld [vmem:[%s3990_s21 + $0xd0] sm:$0xf] }
 0x177   : > { %v2939_v33 = vpop.f32.mrb[11].mxu1  ;;  %v2867_v52 = vpop.f32.mrb[11].mxu0 }
 0x178   : > { %v4490_v61 = vadd.f32 %v2939_v33, %v2938_v36  ;;  %v4492_v39 = vadd.f32 %v2867_v52, %v2866_v18 }
 0x179   : > { %2002 = vmatmul.mubr.bf16.gmra.mrb[116].mxu1 %v4293_v28  ;;  %3328 = vmatmul.mubr.bf16.gmra.mrb[116].mxu0 %v4306_v19 }
 0x17a   : > { %2009 = vmatprep.mubr.bf16.mxu1 %v4032_v43  ;;  %3331 = vmatprep.mubr.bf16.mxu0 %v4324_v44  ;;  %v4510_v44 = vld [vmem:[#allocation7] ss:$0 sm:$0xff] }
 0x17b   : > { %v1449_v47 = vadd.f32 %v4461_v14, %v4510_v44  ;;  %v1457_v36 = vadd.f32 %v4476_v60, %v4510_v44 }
 0x17c   : > { %v2941_v2 = vpop.f32.mrb[12].mxu1  ;;  %v2869_v5 = vpop.f32.mrb[12].mxu0 }
 0x17d   : > { %v2942_v0 = vpop.f32.mrb[13].mxu1  ;;  %v2870_v23 = vpop.f32.mrb[13].mxu0 }
 0x17e   : > { %v4498_v37 = vadd.f32 %v2942_v0, %v2941_v2  ;;  %v2944_v40 = vpop.f32.mrb[14].mxu1  ;;  %v4500_v48 = vadd.f32 %v2870_v23, %v2869_v5  ;;  %v2872_v41 = vpop.f32.mrb[14].mxu0  ;;  %v1460_v2 = vadd.f32 %v4480_v7, %v4510_v44 }
 0x17f   : > { %v2945_v50 = vpop.f32.mrb[15].mxu1  ;;  %v2873_v57 = vpop.f32.mrb[15].mxu0 }
 0x180   : > { %v4502_v32 = vadd.f32 %v2945_v50, %v2944_v40  ;;  %v4504_v28 = vadd.f32 %v2873_v57, %v2872_v41  ;;  %v4552_v40 = vld [vmem:[%s3990_s21 + $0xd4] ss:$0 sps:$4 sm:$0x11]  }
 0x181   : > { %2010 = vmatmul.mubr.bf16.gmra.mrb[120].mxu1 %v4015_v22  ;;  %3332 = vmatmul.mubr.bf16.gmra.mrb[120].mxu0 %v4340_v56 }
 0x182   : > { %2017 = vmatprep.mubr.bf16.mxu1 %v4066_v8  ;;  %3335 = vmatprep.mubr.bf16.mxu0 %v4350_v35  ;;  %v1452_v35 = vadd.f32 %v4468_v62, %v4510_v44 }
 0x184   : > { %v2963_v43 = vpop.f32.mrb[16].mxu1  ;;  %v2875_v19 = vpop.f32.mrb[16].mxu0 }
 0x185   : > { %v2964_v54 = vpop.f32.mrb[17].mxu1  ;;  %v2876_v9 = vpop.f32.mrb[17].mxu0 }
 0x186   : > { %v2965_v29 = vadd.f32 %v2964_v54, %v2963_v43  ;;  %v2966_v55 = vpop.f32.mrb[18].mxu1  ;;  %v4514_v12 = vadd.f32 %v2876_v9, %v2875_v19  ;;  %v2878_v22 = vpop.f32.mrb[18].mxu0  ;;  %v1465_v19 = vadd.f32 %v4488_v63, %v4510_v44 }
 0x187   : > { %v2967_v56 = vpop.f32.mrb[19].mxu1  ;;  %v2879_v8 = vpop.f32.mrb[19].mxu0 }
 0x188   : > { %v4518_v34 = vadd.f32 %v2965_v29, %v1449_v47  ;;  %v2968_v10 = vadd.f32 %v2967_v56, %v2966_v55  ;;  %v4520_v20 = vadd.f32 %v2879_v8, %v2878_v22  ;;  %v819_v55 = vshll.u32 %v4552_v40, 16 }
 0x189   : > { %2018 = vmatmul.mubr.bf16.gmra.mrb[124].mxu1 %v4040_v51  ;;  %3336 = vmatmul.mubr.bf16.gmra.mrb[124].mxu0 %v4361_v21  ;;  %v1468_v22 = vadd.f32 %v4492_v39, %v4510_v44 }
 0x18a   : > { %v4524_v14 = vadd.f32 %v2968_v10, %v1452_v35  ;;  %2025 = vmatprep.mubr.bf16.mxu1 %v4098_v38  ;;  %3339 = vmatprep.mubr.bf16.mxu0 %v4371_v59  ;;  %v4537_v59 = vcombine.low %v269_v16, %v4530_v31 }
 0x18c   : > { %v2969_v24 = vpop.f32.mrb[20].mxu1  ;;  %v2881_v13 = vpop.f32.mrb[20].mxu0  ;;  %v814_v41 = vshll.u32 %v4537_v59, 16 }
 0x18d   : > { %v2970_v62 = vpop.f32.mrb[21].mxu1  ;;  %v2882_v15 = vpop.f32.mrb[21].mxu0 }
 0x18e   : > { %v2971_v18 = vadd.f32 %v2970_v62, %v2969_v24  ;;  %v2972_v51 = vpop.f32.mrb[22].mxu1  ;;  %v4534_v21 = vadd.f32 %v2882_v15, %v2881_v13  ;;  %v2884_v33 = vpop.f32.mrb[22].mxu0  ;;  %v816_v29 = vrot.slane %v814_v41, 1  ;;  %v821_v24 = vrot.slane %v819_v55, 1  ;;  %v306_v13 = vld [vmem:[%s3990_s21 + $0xcc] sm:$0xe] }
 0x18f   : > { %v2973_v52 = vpop.f32.mrb[23].mxu1  ;;  %v2885_v38 = vpop.f32.mrb[23].mxu0 }
 0x190   : > { %v4541_v5 = vadd.f32 %v2971_v18, %v1457_v36  ;;  %v2974_v0 = vadd.f32 %v2973_v52, %v2972_v51  ;;  %v4543_v23 = vadd.f32 %v2885_v38, %v2884_v33  ;;  %v1473_v36 = vadd.f32 %v4500_v48, %v4510_v44 }
 0x191   : > { %2026 = vmatmul.mubr.bf16.gmra.mrb[128].mxu1 %v4076_v17  ;;  %3340 = vmatmul.mubr.bf16.gmra.mrb[128].mxu0 %v4381_v45  ;;  %v2596_v33 = vcombine.low %v306_v13, %v4530_v31  ;;  %v1476_v38 = vadd.f32 %v4504_v28, %v4510_v44 }
 0x192   : > { %v4547_v60 = vadd.f32 %v2974_v0, %v1460_v2  ;;  %2033 = vmatprep.mubr.bf16.mxu1 %v4987_v46  ;;  %3343 = vmatprep.mubr.bf16.mxu0 %v4391_v53  ;;  %v812_v53 = vshrl.u32 %v4537_v59, 16 }
 0x193   : > { %v827_v31 = vrot.slane %v2596_v33, 1 }
 0x194   : > { %v2975_v7 = vpop.f32.mrb[24].mxu1  ;;  %v2887_v50 = vpop.f32.mrb[24].mxu0  ;;  %v817_v10 = vor.u32 %v816_v29, %v812_v53 }
 0x195   : > { %v2976_v57 = vpop.f32.mrb[25].mxu1  ;;  %v2888_v43 = vpop.f32.mrb[25].mxu0 }
 0x196   : > { %v2977_v17 = vadd.f32 %v2976_v57, %v2975_v7  ;;  %v2978_v54 = vpop.f32.mrb[26].mxu1  ;;  %v4557_v45 = vadd.f32 %v2888_v43, %v2887_v50  ;;  %v2890_v9 = vpop.f32.mrb[26].mxu0  ;;  %v828_v7 = vrot.slane %v4552_v40, 1 }
 0x197   : > { %v2979_v47 = vpop.f32.mrb[27].mxu1  ;;  %v2891_v46 = vpop.f32.mrb[27].mxu0 }
 0x198   : > { %v4563_v56 = vadd.f32 %v2977_v17, %v1465_v19  ;;  %v2980_v8 = vadd.f32 %v2979_v47, %v2978_v54  ;;  %v4565_v63 = vadd.f32 %v2891_v46, %v2890_v9  ;;  %v1481_v19 = vadd.f32 %v4514_v12, %v4510_v44 }
 0x199   : > { %2034 = vmatmul.mubr.bf16.gmra.mrb[132].mxu1 %v4109_v49  ;;  %3344 = vmatmul.mubr.bf16.gmra.mrb[132].mxu0 %v4401_v1  ;;  %v829_v9 = vsel %vm708_vm1, %v827_v31, %v828_v7 }
 0x19a   : > { %v4569_v35 = vadd.f32 %v2980_v8, %v1468_v22  ;;  %2041 = vmatprep.mubr.bf16.mxu1 %v4464_v6  ;;  %3347 = vmatprep.mubr.bf16.mxu0 %v4412_v26  ;;  %v822_v26 = vsel %vm451_vm0, %v817_v10, %v821_v24  ;;  %v1489_v24 = vadd.f32 %v4534_v21, %v4510_v44 }
 0x19c   : > { %v2981_v16 = vpop.f32.mrb[28].mxu1  ;;  %v2893_v39 = vpop.f32.mrb[28].mxu0 }
 0x19d   : > { %v2982_v62 = vpop.f32.mrb[29].mxu1  ;;  %v2894_v15 = vpop.f32.mrb[29].mxu0 }
 0x19e   : > { %v2983_v18 = vadd.f32 %v2982_v62, %v2981_v16  ;;  %v2984_v49 = vpop.f32.mrb[30].mxu1  ;;  %v4576_v51 = vadd.f32 %v2894_v15, %v2893_v39  ;;  %v2896_v1 = vpop.f32.mrb[30].mxu0 }
 0x19f   : > { %v2985_v6 = vpop.f32.mrb[31].mxu1  ;;  %v2897_v52 = vpop.f32.mrb[31].mxu0 }
 0x1a0   : > { %v4582_v2 = vadd.f32 %v2983_v18, %v1473_v36  ;;  %v2986_v0 = vadd.f32 %v2985_v6, %v2984_v49  ;;  %v4584_v41 = vadd.f32 %v2897_v52, %v2896_v1 }
 0x1a1   : > { %2042 = vmatmul.mubr.bf16.gmra.mrb[136].mxu1 %v4414_v25  ;;  %3348 = vmatmul.mubr.bf16.gmra.mrb[136].mxu0 %v4331_v3 }
 0x1a2   : > { %v4588_v48 = vadd.f32 %v2986_v0, %v1476_v38  ;;  %2049 = vmatprep.mubr.bf16.mxu1 %v822_v26  ;;  %3351 = vmatprep.mubr.bf16.mxu0 %v4453_v42  ;;  %v1484_v42 = vadd.f32 %v4520_v20, %v4510_v44  ;;  %v1497_v26 = vadd.f32 %v4557_v45, %v4510_v44 }
 0x1a4   : > { %v2987_v50 = vpop.f32.mrb[32].mxu1  ;;  %v2899_v57 = vpop.f32.mrb[32].mxu0 }
 0x1a5   : > { %v2988_v28 = vpop.f32.mrb[33].mxu1  ;;  %v2900_v43 = vpop.f32.mrb[33].mxu0 }
 0x1a6   : > { %v2989_v17 = vadd.f32 %v2988_v28, %v2987_v50  ;;  %v2990_v54 = vpop.f32.mrb[34].mxu1  ;;  %v4594_v25 = vadd.f32 %v2900_v43, %v2899_v57  ;;  %v2902_v3 = vpop.f32.mrb[34].mxu0  ;;  %v1500_v57 = vadd.f32 %v4565_v63, %v4510_v44 }
 0x1a7   : > { %v2991_v47 = vpop.f32.mrb[35].mxu1  ;;  %v2903_v46 = vpop.f32.mrb[35].mxu0 }
 0x1a8   : > { %v4599_v40 = vadd.f32 %v2989_v17, %v1481_v19  ;;  %v2992_v53 = vadd.f32 %v2991_v47, %v2990_v54  ;;  %v2904_v29 = vadd.f32 %v2903_v46, %v2902_v3  ;;  %v1505_v47 = vadd.f32 %v4576_v51, %v4510_v44 }
 0x1a9   : > { %2050 = vmatmul.mubr.bf16.gmra.mrb[140].mxu1 %v4537_v59  ;;  %3352 = vmatmul.mubr.bf16.gmra.mrb[140].mxu0 %v829_v9  ;;  %v1492_v59 = vadd.f32 %v4543_v23, %v4510_v44 }
 0x1aa   : > { %v4602_v12 = vadd.f32 %v2992_v53, %v1484_v42 }
 0x1ac   : > { %v2993_v55 = vpop.f32.mrb[36].mxu1  ;;  %v2905_v22 = vpop.f32.mrb[36].mxu0 }
 0x1ad   : > { %v2994_v8 = vpop.f32.mrb[37].mxu1  ;;  %v2906_v10 = vpop.f32.mrb[37].mxu0 }
 0x1ae   : > { %v2995_v13 = vadd.f32 %v2994_v8, %v2993_v55  ;;  %v2996_v16 = vpop.f32.mrb[38].mxu1  ;;  %v4606_v39 = vadd.f32 %v2906_v10, %v2905_v22  ;;  %v2908_v20 = vpop.f32.mrb[38].mxu0  ;;  %v1508_v8 = vadd.f32 %v4584_v41, %v4510_v44  ;;  %v1516_v41 = vadd.f32 %v2904_v29, %v4510_v44 }
 0x1af   : > { %v2997_v62 = vpop.f32.mrb[39].mxu1  ;;  %v2909_v15 = vpop.f32.mrb[39].mxu0 }
 0x1b0   : > { %v4610_v36 = vadd.f32 %v2995_v13, %v1489_v24  ;;  %v2998_v18 = vadd.f32 %v2997_v62, %v2996_v16  ;;  %v2910_v49 = vadd.f32 %v2909_v15, %v2908_v20  ;;  %v1521_v29 = vadd.f32 %v4606_v39, %v4510_v44 }
 0x1b2   : > { %v4612_v1 = vadd.f32 %v2998_v18, %v1492_v59  ;;  %v1513_v59 = vadd.f32 %v4594_v25, %v4510_v44 }
 0x1b4   : > { %v2999_v33 = vpop.f32.mrb[40].mxu1  ;;  %v2911_v6 = vpop.f32.mrb[40].mxu0 }
 0x1b5   : > { %v3000_v52 = vpop.f32.mrb[41].mxu1  ;;  %v2912_v21 = vpop.f32.mrb[41].mxu0 }
 0x1b6   : > { %v3001_v38 = vadd.f32 %v3000_v52, %v2999_v33  ;;  %v3002_v0 = vpop.f32.mrb[42].mxu1  ;;  %v4616_v31 = vadd.f32 %v2912_v21, %v2911_v6  ;;  %v2914_v7 = vpop.f32.mrb[42].mxu0 }
 0x1b7   : > { %v3003_v50 = vpop.f32.mrb[43].mxu1  ;;  %v2915_v23 = vpop.f32.mrb[43].mxu0 }
 0x1b8   : > { %v4620_v28 = vadd.f32 %v3001_v38, %v1497_v26  ;;  %v3004_v43 = vadd.f32 %v3003_v50, %v3002_v0  ;;  %v4622_v19 = vadd.f32 %v2915_v23, %v2914_v7 }
 0x1ba   : > { %v4624_v17 = vadd.f32 %v3004_v43, %v1500_v57 }
 0x1bc   : > { %v3005_v54 = vpop.f32.mrb[44].mxu1  ;;  %v2917_v3 = vpop.f32.mrb[44].mxu0 }
 0x1bd   : > { %v3006_v45 = vpop.f32.mrb[45].mxu1  ;;  %v2918_v9 = vpop.f32.mrb[45].mxu0 }
 0x1be   : > { %v3007_v46 = vadd.f32 %v3006_v45, %v3005_v54  ;;  %v3008_v42 = vpop.f32.mrb[46].mxu1  ;;  %v4628_v53 = vadd.f32 %v2918_v9, %v2917_v3  ;;  %v2920_v55 = vpop.f32.mrb[46].mxu0 }
 0x1bf   : > { %v3009_v63 = vpop.f32.mrb[47].mxu1  ;;  %v2921_v22 = vpop.f32.mrb[47].mxu0 }
 0x1c0   : > { %v4632_v10 = vadd.f32 %v3007_v46, %v1505_v47  ;;  %v3010_v24 = vadd.f32 %v3009_v63, %v3008_v42  ;;  %v4634_v13 = vadd.f32 %v2921_v22, %v2920_v55 }
 0x1c2   : > { %v4636_v16 = vadd.f32 %v3010_v24, %v1508_v8 }
 0x1c4   : > { %v3011_v20 = vpop.f32.mrb[48].mxu1  ;;  %v3075_v62 = vpop.f32.mrb[48].mxu0 }
 0x1c5   : > { %v3012_v51 = vpop.f32.mrb[49].mxu1  ;;  %v3076_v15 = vpop.f32.mrb[49].mxu0 }
 0x1c6   : > { %v3013_v18 = vadd.f32 %v3012_v51, %v3011_v20  ;;  %v3077_v33 = vadd.f32 %v3076_v15, %v3075_v62  ;;  %v3014_v6 = vpop.f32.mrb[50].mxu1  ;;  %v3078_v52 = vpop.f32.mrb[50].mxu0 }
 0x1c7   : > { %v3015_v21 = vpop.f32.mrb[51].mxu1  ;;  %v3079_v26 = vpop.f32.mrb[51].mxu0 }
 0x1c8   : > { %v4641_v38 = vadd.f32 %v3013_v18, %v1513_v59  ;;  %v4644_v0 = vadd.f32 %v3077_v33, %v4518_v34  ;;  %v3016_v7 = vadd.f32 %v3015_v21, %v3014_v6  ;;  %v3080_v50 = vadd.f32 %v3079_v26, %v3078_v52 }
 0x1c9   : > { %v1524_v34 = vadd.f32 %v2910_v49, %v4510_v44  ;;  %v1529_v49 = vadd.f32 %v4616_v31, %v4510_v44 }
 0x1ca   : > { %v4646_v23 = vadd.f32 %v3016_v7, %v1516_v41  ;;  %v4649_v57 = vadd.f32 %v3080_v50, %v4524_v14 }
 0x1cc   : > { %v3017_v25 = vpop.f32.mrb[52].mxu1  ;;  %v3081_v43 = vpop.f32.mrb[52].mxu0 }
 0x1cd   : > { %v3018_v54 = vpop.f32.mrb[53].mxu1  ;;  %v3082_v3 = vpop.f32.mrb[53].mxu0 }
 0x1ce   : > { %v3019_v45 = vadd.f32 %v3018_v54, %v3017_v25  ;;  %v3083_v9 = vadd.f32 %v3082_v3, %v3081_v43  ;;  %v3020_v47 = vpop.f32.mrb[54].mxu1  ;;  %v3084_v46 = vpop.f32.mrb[54].mxu0 }
 0x1cf   : > { %v3021_v42 = vpop.f32.mrb[55].mxu1  ;;  %v3085_v55 = vpop.f32.mrb[55].mxu0 }
 0x1d0   : > { %v4654_v63 = vadd.f32 %v3019_v45, %v1521_v29  ;;  %v4657_v14 = vadd.f32 %v3083_v9, %v4541_v5  ;;  %v3022_v22 = vadd.f32 %v3021_v42, %v3020_v47  ;;  %v3086_v8 = vadd.f32 %v3085_v55, %v3084_v46 }
 0x1d1   : > { %v1532_v5 = vadd.f32 %v4622_v19, %v4510_v44  ;;  %v1537_v19 = vadd.f32 %v4628_v53, %v4510_v44 }
 0x1d2   : > { %v4659_v24 = vadd.f32 %v3022_v22, %v1524_v34  ;;  %v4662_v20 = vadd.f32 %v3086_v8, %v4547_v60 }
 0x1d4   : > { %v3023_v39 = vpop.f32.mrb[56].mxu1  ;;  %v3087_v62 = vpop.f32.mrb[56].mxu0 }
 0x1d5   : > { %v3024_v51 = vpop.f32.mrb[57].mxu1  ;;  %v3088_v15 = vpop.f32.mrb[57].mxu0 }
 0x1d6   : > { %v3025_v59 = vadd.f32 %v3024_v51, %v3023_v39  ;;  %v3089_v18 = vadd.f32 %v3088_v15, %v3087_v62  ;;  %v3026_v33 = vpop.f32.mrb[58].mxu1  ;;  %v3090_v6 = vpop.f32.mrb[58].mxu0 }
 0x1d7   : > { %v3027_v52 = vpop.f32.mrb[59].mxu1  ;;  %v3091_v41 = vpop.f32.mrb[59].mxu0 }
 0x1d8   : > { %v4668_v21 = vadd.f32 %v3025_v59, %v1529_v49  ;;  %v4671_v60 = vadd.f32 %v3089_v18, %v4563_v56  ;;  %v3028_v26 = vadd.f32 %v3027_v52, %v3026_v33  ;;  %v3092_v7 = vadd.f32 %v3091_v41, %v3090_v6 }
 0x1d9   : > { %v1540_v56 = vadd.f32 %v4634_v13, %v4510_v44  ;;  %v1545_v13 = vadd.f32 %v4459_v27, %v4510_v44 }
 0x1da   : > { %v4673_v50 = vadd.f32 %v3028_v26, %v1532_v5  ;;  %v4676_v31 = vadd.f32 %v3092_v7, %v4569_v35 }
 0x1dc   : > { %v3029_v25 = vpop.f32.mrb[60].mxu1  ;;  %v3093_v43 = vpop.f32.mrb[60].mxu0 }
 0x1dd   : > { %v3030_v54 = vpop.f32.mrb[61].mxu1  ;;  %v3094_v3 = vpop.f32.mrb[61].mxu0 }
 0x1de   : > { %v3031_v29 = vadd.f32 %v3030_v54, %v3029_v25  ;;  %v3095_v45 = vadd.f32 %v3094_v3, %v3093_v43  ;;  %v3032_v9 = vpop.f32.mrb[62].mxu1  ;;  %v3096_v47 = vpop.f32.mrb[62].mxu0 }
 0x1df   : > { %v3033_v46 = vpop.f32.mrb[63].mxu1  ;;  %v3097_v34 = vpop.f32.mrb[63].mxu0 }
 0x1e0   : > { %v4682_v42 = vadd.f32 %v3031_v29, %v1537_v19  ;;  %v4685_v35 = vadd.f32 %v3095_v45, %v4582_v2  ;;  %v3034_v55 = vadd.f32 %v3033_v46, %v3032_v9  ;;  %v3098_v22 = vadd.f32 %v3097_v34, %v3096_v47 }
 0x1e1   : > { %v1548_v2 = vadd.f32 %v4466_v58, %v4510_v44  ;;  %v1553_v58 = vadd.f32 %v4474_v11, %v4510_v44 }
 0x1e2   : > { %v4687_v8 = vadd.f32 %v3034_v55, %v1540_v56  ;;  %v4690_v53 = vadd.f32 %v3098_v22, %v4588_v48 }
 0x1e4   : > { %v3035_v39 = vpop.f32.mrb[64].mxu1  ;;  %v3099_v62 = vpop.f32.mrb[64].mxu0 }
 0x1e5   : > { %v3036_v51 = vpop.f32.mrb[65].mxu1  ;;  %v3100_v15 = vpop.f32.mrb[65].mxu0 }
 0x1e6   : > { %v3037_v49 = vadd.f32 %v3036_v51, %v3035_v39  ;;  %v3101_v59 = vadd.f32 %v3100_v15, %v3099_v62  ;;  %v3038_v18 = vpop.f32.mrb[66].mxu1  ;;  %v3102_v33 = vpop.f32.mrb[66].mxu0 }
 0x1e7   : > { %v3039_v6 = vpop.f32.mrb[67].mxu1  ;;  %v3103_v5 = vpop.f32.mrb[67].mxu0 }
 0x1e8   : > { %v4696_v52 = vadd.f32 %v3037_v49, %v1545_v13  ;;  %v4699_v48 = vadd.f32 %v3101_v59, %v4599_v40  ;;  %v3040_v41 = vadd.f32 %v3039_v6, %v3038_v18  ;;  %v3104_v26 = vadd.f32 %v3103_v5, %v3102_v33 }
 0x1e9   : > { %v1556_v40 = vadd.f32 %v4478_v4, %v4510_v44  ;;  %v1561_v4 = vadd.f32 %v4486_v30, %v4510_v44 }
 0x1ea   : > { %v4701_v7 = vadd.f32 %v3040_v41, %v1548_v2  ;;  %v4704_v27 = vadd.f32 %v3104_v26, %v4602_v12 }
 0x1ec   : > { %v3041_v25 = vpop.f32.mrb[68].mxu1  ;;  %v3105_v43 = vpop.f32.mrb[68].mxu0 }
 0x1ed   : > { %v3042_v54 = vpop.f32.mrb[69].mxu1  ;;  %v3106_v3 = vpop.f32.mrb[69].mxu0 }
 0x1ee   : > { %v3043_v19 = vadd.f32 %v3042_v54, %v3041_v25  ;;  %v3107_v29 = vadd.f32 %v3106_v3, %v3105_v43  ;;  %v3044_v45 = vpop.f32.mrb[70].mxu1  ;;  %v3108_v9 = vpop.f32.mrb[70].mxu0 }
 0x1ef   : > { %v3045_v47 = vpop.f32.mrb[71].mxu1  ;;  %v3109_v56 = vpop.f32.mrb[71].mxu0 }
 0x1f0   : > { %v4710_v46 = vadd.f32 %v3043_v19, %v1553_v58  ;;  %v4713_v12 = vadd.f32 %v3107_v29, %v4610_v36  ;;  %v3046_v34 = vadd.f32 %v3045_v47, %v3044_v45  ;;  %v3110_v55 = vadd.f32 %v3109_v56, %v3108_v9 }
 0x1f1   : > { %v1564_v36 = vadd.f32 %v4490_v61, %v4510_v44  ;;  %v1569_v61 = vadd.f32 %v4498_v37, %v4510_v44 }
 0x1f2   : > { %v4715_v22 = vadd.f32 %v3046_v34, %v1556_v40  ;;  %v4718_v11 = vadd.f32 %v3110_v55, %v4612_v1 }
 0x1f4   : > { %v3047_v39 = vpop.f32.mrb[72].mxu1  ;;  %v3111_v62 = vpop.f32.mrb[72].mxu0 }
 0x1f5   : > { %v3048_v51 = vpop.f32.mrb[73].mxu1  ;;  %v3112_v15 = vpop.f32.mrb[73].mxu0 }
 0x1f6   : > { %v3049_v13 = vadd.f32 %v3048_v51, %v3047_v39  ;;  %v3113_v49 = vadd.f32 %v3112_v15, %v3111_v62  ;;  %v3050_v59 = vpop.f32.mrb[74].mxu1  ;;  %v3114_v18 = vpop.f32.mrb[74].mxu0 }
 0x1f7   : > { %v3051_v33 = vpop.f32.mrb[75].mxu1  ;;  %v3115_v2 = vpop.f32.mrb[75].mxu0 }
 0x1f8   : > { %v4724_v6 = vadd.f32 %v3049_v13, %v1561_v4  ;;  %v4727_v1 = vadd.f32 %v3113_v49, %v4620_v28  ;;  %v3052_v5 = vadd.f32 %v3051_v33, %v3050_v59  ;;  %v3116_v41 = vadd.f32 %v3115_v2, %v3114_v18 }
 0x1f9   : > { %v1572_v28 = vadd.f32 %v4502_v32, %v4510_v44 }
 0x1fa   : > { %v4729_v26 = vadd.f32 %v3052_v5, %v1564_v36  ;;  %v4732_v30 = vadd.f32 %v3116_v41, %v4624_v17 }
 0x1fc   : > { %v3053_v25 = vpop.f32.mrb[76].mxu1  ;;  %v3117_v43 = vpop.f32.mrb[76].mxu0 }
 0x1fd   : > { %v3054_v54 = vpop.f32.mrb[77].mxu1  ;;  %v3118_v3 = vpop.f32.mrb[77].mxu0 }
 0x1fe   : > { %v3055_v58 = vadd.f32 %v3054_v54, %v3053_v25  ;;  %v3119_v19 = vadd.f32 %v3118_v3, %v3117_v43  ;;  %v3056_v29 = vpop.f32.mrb[78].mxu1  ;;  %v3120_v45 = vpop.f32.mrb[78].mxu0 }
 0x1ff   : > { %v3057_v9 = vpop.f32.mrb[79].mxu1  ;;  %v3121_v40 = vpop.f32.mrb[79].mxu0 }
 0x200   : > { %v4738_v47 = vadd.f32 %v3055_v58, %v1569_v61  ;;  %v4741_v17 = vadd.f32 %v3119_v19, %v4632_v10  ;;  %v3058_v56 = vadd.f32 %v3057_v9, %v3056_v29  ;;  %v3122_v34 = vadd.f32 %v3121_v40, %v3120_v45 }
 0x202   : > { %v4743_v55 = vadd.f32 %v3058_v56, %v1572_v28  ;;  %v4746_v37 = vadd.f32 %v3122_v34, %v4636_v16 }
 0x204   : > { %v3123_v39 = vpop.f32.mrb[80].mxu0  ;;  %v3187_v62 = vpop.f32.mrb[80].mxu1 }
 0x205   : > { %v3124_v51 = vpop.f32.mrb[81].mxu0  ;;  %v3188_v15 = vpop.f32.mrb[81].mxu1 }
 0x206   : > { %v3125_v4 = vadd.f32 %v3124_v51, %v3123_v39  ;;  %v3189_v32 = vadd.f32 %v3188_v15, %v3187_v62  ;;  %v3126_v44 = vpop.f32.mrb[82].mxu0  ;;  %v3190_v13 = vpop.f32.mrb[82].mxu1 }
 0x207   : > { %v3127_v49 = vpop.f32.mrb[83].mxu0  ;;  %v3191_v59 = vpop.f32.mrb[83].mxu1 }
 0x208   : > { %v4749_v10 = vadd.f32 %v3125_v4, %v4641_v38  ;;  %v3128_v18 = vadd.f32 %v3127_v49, %v3126_v44  ;;  %v3192_v36 = vadd.f32 %v3191_v59, %v3190_v13  ;;  %v4752_v33 = vadd.f32 %v3189_v32, %v4644_v0 }
 0x20a   : > { %v4755_v16 = vadd.f32 %v3128_v18, %v4646_v23  ;;  %v4758_v2 = vadd.f32 %v3192_v36, %v4649_v57 }
 0x20c   : > { %v3129_v5 = vpop.f32.mrb[84].mxu0  ;;  %v3193_v41 = vpop.f32.mrb[84].mxu1 }
 0x20d   : > { %v3130_v25 = vpop.f32.mrb[85].mxu0  ;;  %v3194_v43 = vpop.f32.mrb[85].mxu1 }
 0x20e   : > { %v3131_v54 = vadd.f32 %v3130_v25, %v3129_v5  ;;  %v3195_v3 = vadd.f32 %v3194_v43, %v3193_v41  ;;  %v3132_v61 = vpop.f32.mrb[86].mxu0  ;;  %v3196_v38 = vpop.f32.mrb[86].mxu1 }
 0x20f   : > { %v3133_v58 = vpop.f32.mrb[87].mxu0  ;;  %v3197_v19 = vpop.f32.mrb[87].mxu1 }
 0x210   : > { %v4761_v29 = vadd.f32 %v3131_v54, %v4654_v63  ;;  %v3134_v0 = vadd.f32 %v3133_v58, %v3132_v61  ;;  %v3198_v45 = vadd.f32 %v3197_v19, %v3196_v38  ;;  %v4764_v23 = vadd.f32 %v3195_v3, %v4657_v14 }
 0x212   : > { %v4767_v57 = vadd.f32 %v3134_v0, %v4659_v24  ;;  %v4770_v28 = vadd.f32 %v3198_v45, %v4662_v20 }
 0x214   : > { %v3135_v9 = vpop.f32.mrb[88].mxu0  ;;  %v3199_v40 = vpop.f32.mrb[88].mxu1 }
 0x215   : > { %v3136_v56 = vpop.f32.mrb[89].mxu0  ;;  %v3200_v34 = vpop.f32.mrb[89].mxu1 }
 0x216   : > { %v3137_v39 = vadd.f32 %v3136_v56, %v3135_v9  ;;  %v3201_v62 = vadd.f32 %v3200_v34, %v3199_v40  ;;  %v3138_v51 = vpop.f32.mrb[90].mxu0  ;;  %v3202_v63 = vpop.f32.mrb[90].mxu1 }
 0x217   : > { %v3139_v15 = vpop.f32.mrb[91].mxu0  ;;  %v3203_v4 = vpop.f32.mrb[91].mxu1 }
 0x218   : > { %v4773_v32 = vadd.f32 %v3137_v39, %v4668_v21  ;;  %v3140_v14 = vadd.f32 %v3139_v15, %v3138_v51  ;;  %v3204_v44 = vadd.f32 %v3203_v4, %v3202_v63  ;;  %v4776_v24 = vadd.f32 %v3201_v62, %v4671_v60 }
 0x21a   : > { %v4779_v20 = vadd.f32 %v3140_v14, %v4673_v50  ;;  %v4782_v13 = vadd.f32 %v3204_v44, %v4676_v31 }
 0x21c   : > { %v3141_v49 = vpop.f32.mrb[92].mxu0  ;;  %v3205_v59 = vpop.f32.mrb[92].mxu1 }
 0x21d   : > { %v3142_v18 = vpop.f32.mrb[93].mxu0  ;;  %v3206_v36 = vpop.f32.mrb[93].mxu1 }
 0x21e   : > { %v3143_v5 = vadd.f32 %v3142_v18, %v3141_v49  ;;  %v3207_v41 = vadd.f32 %v3206_v36, %v3205_v59  ;;  %v3144_v25 = vpop.f32.mrb[94].mxu0  ;;  %v3208_v21 = vpop.f32.mrb[94].mxu1 }
 0x21f   : > { %v3145_v43 = vpop.f32.mrb[95].mxu0  ;;  %v3209_v54 = vpop.f32.mrb[95].mxu1 }
 0x220   : > { %v4785_v3 = vadd.f32 %v3143_v5, %v4682_v42  ;;  %v3146_v60 = vadd.f32 %v3145_v43, %v3144_v25  ;;  %v3210_v61 = vadd.f32 %v3209_v54, %v3208_v21  ;;  %v4788_v50 = vadd.f32 %v3207_v41, %v4685_v35 }
 0x222   : > { %v4791_v31 = vadd.f32 %v3146_v60, %v4687_v8  ;;  %v4794_v38 = vadd.f32 %v3210_v61, %v4690_v53 }
 0x224   : > { %v3147_v58 = vpop.f32.mrb[96].mxu0  ;;  %v3211_v19 = vpop.f32.mrb[96].mxu1 }
 0x225   : > { %v3148_v0 = vpop.f32.mrb[97].mxu0  ;;  %v3212_v45 = vpop.f32.mrb[97].mxu1 }
 0x226   : > { %v3149_v9 = vadd.f32 %v3148_v0, %v3147_v58  ;;  %v3213_v40 = vadd.f32 %v3212_v45, %v3211_v19  ;;  %v3150_v56 = vpop.f32.mrb[98].mxu0  ;;  %v3214_v42 = vpop.f32.mrb[98].mxu1 }
 0x227   : > { %v3151_v34 = vpop.f32.mrb[99].mxu0  ;;  %v3215_v39 = vpop.f32.mrb[99].mxu1 }
 0x228   : > { %v4797_v62 = vadd.f32 %v3149_v9, %v4696_v52  ;;  %v3152_v35 = vadd.f32 %v3151_v34, %v3150_v56  ;;  %v3216_v51 = vadd.f32 %v3215_v39, %v3214_v42  ;;  %v4800_v8 = vadd.f32 %v3213_v40, %v4699_v48 }
 0x22a   : > { %v4803_v53 = vadd.f32 %v3152_v35, %v4701_v7  ;;  %v4806_v63 = vadd.f32 %v3216_v51, %v4704_v27 }
 0x22c   : > { %v3153_v15 = vpop.f32.mrb[100].mxu0  ;;  %v3217_v4 = vpop.f32.mrb[100].mxu1 }
 0x22d   : > { %v3154_v14 = vpop.f32.mrb[101].mxu0  ;;  %v3218_v44 = vpop.f32.mrb[101].mxu1 }
 0x22e   : > { %v3155_v49 = vadd.f32 %v3154_v14, %v3153_v15  ;;  %v3219_v59 = vadd.f32 %v3218_v44, %v3217_v4  ;;  %v3156_v18 = vpop.f32.mrb[102].mxu0  ;;  %v3220_v52 = vpop.f32.mrb[102].mxu1 }
 0x22f   : > { %v3157_v36 = vpop.f32.mrb[103].mxu0  ;;  %v3221_v5 = vpop.f32.mrb[103].mxu1 }
 0x230   : > { %v4809_v41 = vadd.f32 %v3155_v49, %v4710_v46  ;;  %v3158_v48 = vadd.f32 %v3157_v36, %v3156_v18  ;;  %v3222_v25 = vadd.f32 %v3221_v5, %v3220_v52  ;;  %v4812_v7 = vadd.f32 %v3219_v59, %v4713_v12 }
 0x232   : > { %v4815_v27 = vadd.f32 %v3158_v48, %v4715_v22  ;;  %v4818_v21 = vadd.f32 %v3222_v25, %v4718_v11 }
 0x234   : > { %v3159_v43 = vpop.f32.mrb[104].mxu0  ;;  %v3223_v54 = vpop.f32.mrb[104].mxu1 }
 0x235   : > { %v3160_v60 = vpop.f32.mrb[105].mxu0  ;;  %v3224_v61 = vpop.f32.mrb[105].mxu1 }
 0x236   : > { %v3161_v58 = vadd.f32 %v3160_v60, %v3159_v43  ;;  %v3225_v19 = vadd.f32 %v3224_v61, %v3223_v54  ;;  %v3162_v0 = vpop.f32.mrb[106].mxu0  ;;  %v3226_v46 = vpop.f32.mrb[106].mxu1 }
 0x237   : > { %v3163_v45 = vpop.f32.mrb[107].mxu0  ;;  %v3227_v9 = vpop.f32.mrb[107].mxu1 }
 0x238   : > { %v4821_v40 = vadd.f32 %v3161_v58, %v4724_v6  ;;  %v3164_v12 = vadd.f32 %v3163_v45, %v3162_v0  ;;  %v3228_v56 = vadd.f32 %v3227_v9, %v3226_v46  ;;  %v4824_v22 = vadd.f32 %v3225_v19, %v4727_v1 }
 0x23a   : > { %v4827_v11 = vadd.f32 %v3164_v12, %v4729_v26  ;;  %v4830_v42 = vadd.f32 %v3228_v56, %v4732_v30 }
 0x23c   : > { %v3165_v34 = vpop.f32.mrb[108].mxu0  ;;  %v3229_v39 = vpop.f32.mrb[108].mxu1 }
 0x23d   : > { %v3166_v35 = vpop.f32.mrb[109].mxu0  ;;  %v3230_v51 = vpop.f32.mrb[109].mxu1 }
 0x23e   : > { %v3167_v15 = vadd.f32 %v3166_v35, %v3165_v34  ;;  %v3231_v4 = vadd.f32 %v3230_v51, %v3229_v39  ;;  %v3168_v14 = vpop.f32.mrb[110].mxu0  ;;  %v3232_v6 = vpop.f32.mrb[110].mxu1 }
 0x23f   : > { %v3169_v44 = vpop.f32.mrb[111].mxu0  ;;  %v3233_v49 = vpop.f32.mrb[111].mxu1 }
 0x240   : > { %v4833_v1 = vadd.f32 %v3167_v15, %v4738_v47  ;;  %v3170_v59 = vadd.f32 %v3169_v44, %v3168_v14  ;;  %v3234_v26 = vadd.f32 %v3233_v49, %v3232_v6  ;;  %v4836_v18 = vadd.f32 %v3231_v4, %v4741_v17 }
 0x242   : > { %v4839_v30 = vadd.f32 %v3170_v59, %v4743_v55  ;;  %v4842_v52 = vadd.f32 %v3234_v26, %v4746_v37 }
 0x244   : > { %v3235_v36 = vpop.f32.mrb[112].mxu1  ;;  %v3325_v5 = vpop.f32.mrb[112].mxu0 }
 0x245   : > { %v2101_v48 = vadd.f32 %v3325_v5, %v4764_v23  ;;  %v3236_v25 = vpop.f32.mrb[113].mxu1  ;;  %v2092_v43 = vpop.f32.mrb[113].mxu0 }
 0x246   : > { %v3237_v54 = vadd.f32 %v3236_v25, %v3235_v36  ;;  %v2093_v47 = vadd.f32 %v2092_v43, %v4752_v33  ;;  %v3238_v60 = vpop.f32.mrb[114].mxu1  ;;  %v3326_v61 = vpop.f32.mrb[114].mxu0 }
 0x247   : > { %v2104_v17 = vadd.f32 %v3326_v61, %v4770_v28  ;;  %v3239_v58 = vpop.f32.mrb[115].mxu1  ;;  %v2095_v55 = vpop.f32.mrb[115].mxu0  ;;  %v2221_v46 = vmax.f32 %v2101_v48, 0.0 }
 0x248   : > { %v3240_v19 = vadd.f32 %v3239_v58, %v3238_v60  ;;  %v2096_v37 = vadd.f32 %v2095_v55, %v4758_v2  ;;  %v4850_v0 = vadd.f32 %v3237_v54, %v4749_v10  ;;  %v2219_v45 = vmax.f32 %v2093_v47, 0.0 }
 0x249   : > { %v2222_v23 = vmax.f32 %v2104_v17, 0.0 }
 0x24a   : > { %v2220_v9 = vmax.f32 %v2096_v37, 0.0  ;;  %v4853_v12 = vadd.f32 %v3240_v19, %v4755_v16 }
 0x24b   : > { %v2748_v33 = vpack.c.bf16 %v2222_v23, %v2221_v46 }
 0x24c   : > { %v2743_v56 = vpack.c.bf16 %v2220_v9, %v2219_v45  ;;  %v3241_v34 = vpop.f32.mrb[116].mxu1  ;;  %v3329_v39 = vpop.f32.mrb[116].mxu0 }
 0x24d   : > { %2820 = vst [vmem:[%s4855_s22 + $0x8] sm:$0xff] %v2748_v33   ;;  %v2117_v2 = vadd.f32 %v3329_v39, %v4788_v50  ;;  %v3242_v10 = vpop.f32.mrb[117].mxu1  ;;  %v2108_v28 = vpop.f32.mrb[117].mxu0 }
 0x24e   : > { %2744 = vst [vmem:[%s4855_s22] sm:$0xff] %v2743_v56   ;;  %v3243_v35 = vadd.f32 %v3242_v10, %v3241_v34  ;;  %v2109_v51 = vadd.f32 %v2108_v28, %v4776_v24  ;;  %v3244_v15 = vpop.f32.mrb[118].mxu1  ;;  %v3330_v16 = vpop.f32.mrb[118].mxu0 }
 0x24f   : > { %v2120_v4 = vadd.f32 %v3330_v16, %v4794_v38  ;;  %v3245_v14 = vpop.f32.mrb[119].mxu1  ;;  %v2111_v6 = vpop.f32.mrb[119].mxu0  ;;  %v2225_v50 = vmax.f32 %v2117_v2, 0.0 }
 0x250   : > { %v3246_v44 = vadd.f32 %v3245_v14, %v3244_v15  ;;  %v2112_v49 = vadd.f32 %v2111_v6, %v4782_v13  ;;  %v2004_v59 = vadd.f32 %v3243_v35, %v4761_v29  ;;  %v2223_v36 = vmax.f32 %v2109_v51, 0.0 }
 0x251   : > { %v2226_v26 = vmax.f32 %v2120_v4, 0.0 }
 0x252   : > { %v2224_v5 = vmax.f32 %v2112_v49, 0.0  ;;  %v2007_v48 = vadd.f32 %v3246_v44, %v4767_v57 }
 0x253   : > { %v2758_v24 = vpack.c.bf16 %v2226_v26, %v2225_v50 }
 0x254   : > { %v2753_v25 = vpack.c.bf16 %v2224_v5, %v2223_v36  ;;  %v3247_v43 = vpop.f32.mrb[120].mxu1  ;;  %v3333_v54 = vpop.f32.mrb[120].mxu0 }
 0x255   : > { %2822 = vst [vmem:[%s4855_s22 + $0x18] sm:$0xff] %v2758_v24   ;;  %v2133_v38 = vadd.f32 %v3333_v54, %v4812_v7  ;;  %v3248_v47 = vpop.f32.mrb[121].mxu1  ;;  %v2124_v60 = vpop.f32.mrb[121].mxu0 }
 0x256   : > { %2821 = vst [vmem:[%s4855_s22 + $0x10] sm:$0xff] %v2753_v25   ;;  %v3249_v61 = vadd.f32 %v3248_v47, %v3247_v43  ;;  %v2125_v13 = vadd.f32 %v2124_v60, %v4800_v8  ;;  %v3250_v29 = vpop.f32.mrb[122].mxu1  ;;  %v3334_v17 = vpop.f32.mrb[122].mxu0 }
 0x257   : > { %v2136_v58 = vadd.f32 %v3334_v17, %v4818_v21  ;;  %v3251_v55 = vpop.f32.mrb[123].mxu1  ;;  %v2127_v57 = vpop.f32.mrb[123].mxu0  ;;  %v2229_v7 = vmax.f32 %v2133_v38, 0.0 }
 0x258   : > { %v3252_v19 = vadd.f32 %v3251_v55, %v3250_v29  ;;  %v2128_v37 = vadd.f32 %v2127_v57, %v4806_v63  ;;  %v4872_v46 = vadd.f32 %v3249_v61, %v4773_v32  ;;  %v2227_v45 = vmax.f32 %v2125_v13, 0.0 }
 0x259   : > { %v2230_v23 = vmax.f32 %v2136_v58, 0.0 }
 0x25a   : > { %v2228_v9 = vmax.f32 %v2128_v37, 0.0  ;;  %v4875_v8 = vadd.f32 %v3252_v19, %v4779_v20 }
 0x25b   : > { %v2768_v33 = vpack.c.bf16 %v2230_v23, %v2229_v7 }
 0x25c   : > { %v2763_v56 = vpack.c.bf16 %v2228_v9, %v2227_v45  ;;  %v3253_v34 = vpop.f32.mrb[124].mxu1  ;;  %v3337_v21 = vpop.f32.mrb[124].mxu0 }
 0x25d   : > { %2824 = vst [vmem:[%s4855_s22 + $0x28] sm:$0xff] %v2768_v33   ;;  %v2149_v39 = vadd.f32 %v3337_v21, %v4836_v18  ;;  %v3254_v2 = vpop.f32.mrb[125].mxu1  ;;  %v2140_v10 = vpop.f32.mrb[125].mxu0 }
 0x25e   : > { %2823 = vst [vmem:[%s4855_s22 + $0x20] sm:$0xff] %v2763_v56   ;;  %v3255_v63 = vadd.f32 %v3254_v2, %v3253_v34  ;;  %v2141_v32 = vadd.f32 %v2140_v10, %v4824_v22  ;;  %v3256_v28 = vpop.f32.mrb[126].mxu1  ;;  %v3338_v35 = vpop.f32.mrb[126].mxu0 }
 0x25f   : > { %v2152_v51 = vadd.f32 %v3338_v35, %v4842_v52  ;;  %v3257_v20 = vpop.f32.mrb[127].mxu1  ;;  %v2143_v15 = vpop.f32.mrb[127].mxu0  ;;  %v2233_v18 = vmax.f32 %v2149_v39, 0.0 }
 0x260   : > { %v3258_v16 = vadd.f32 %v3257_v20, %v3256_v28  ;;  %v2144_v4 = vadd.f32 %v2143_v15, %v4830_v42  ;;  %v2020_v14 = vadd.f32 %v3255_v63, %v4785_v3  ;;  %v2231_v44 = vmax.f32 %v2141_v32, 0.0 }
 0x261   : > { %v2234_v6 = vmax.f32 %v2152_v51, 0.0 }
 0x262   : > { %v2232_v49 = vmax.f32 %v2144_v4, 0.0  ;;  %v2023_v50 = vadd.f32 %v3258_v16, %v4791_v31 }
 0x263   : > { %v2778_v22 = vpack.c.bf16 %v2234_v6, %v2233_v18 }
 0x264   : > { %v2773_v26 = vpack.c.bf16 %v2232_v49, %v2231_v44  ;;  %v3259_v36 = vpop.f32.mrb[128].mxu1  ;;  %v3341_v5 = vpop.f32.mrb[128].mxu0 }
 0x265   : > { %2826 = vst [vmem:[%s4855_s22 + $0x38] sm:$0xff] %v2778_v22   ;;  %v2165_v52 = vadd.f32 %v3341_v5, %v2004_v59  ;;  %v3260_v24 = vpop.f32.mrb[129].mxu1  ;;  %v2156_v25 = vpop.f32.mrb[129].mxu0 }
 0x266   : > { %2825 = vst [vmem:[%s4855_s22 + $0x30] sm:$0xff] %v2773_v26   ;;  %v3261_v43 = vadd.f32 %v3260_v24, %v3259_v36  ;;  %v2157_v42 = vadd.f32 %v2156_v25, %v4850_v0  ;;  %v3262_v54 = vpop.f32.mrb[130].mxu1  ;;  %v3342_v3 = vpop.f32.mrb[130].mxu0 }
 0x267   : > { %v2168_v38 = vadd.f32 %v3342_v3, %v2007_v48  ;;  %v3263_v47 = vpop.f32.mrb[131].mxu1  ;;  %v2159_v60 = vpop.f32.mrb[131].mxu0  ;;  %v2237_v29 = vmax.f32 %v2165_v52, 0.0 }
 0x268   : > { %v3264_v61 = vadd.f32 %v3263_v47, %v3262_v54  ;;  %v2160_v31 = vadd.f32 %v2159_v60, %v4853_v12  ;;  %v2028_v13 = vadd.f32 %v3261_v43, %v4797_v62  ;;  %v2235_v17 = vmax.f32 %v2157_v42, 0.0 }
 0x269   : > { %v2238_v59 = vmax.f32 %v2168_v38, 0.0 }
 0x26a   : > { %v2236_v58 = vmax.f32 %v2160_v31, 0.0  ;;  %v2031_v55 = vadd.f32 %v3264_v61, %v4803_v53 }
 0x26b   : > { %v2788_v57 = vpack.c.bf16 %v2238_v59, %v2237_v29 }
 0x26c   : > { %v2783_v0 = vpack.c.bf16 %v2236_v58, %v2235_v17  ;;  %v3265_v19 = vpop.f32.mrb[132].mxu1  ;;  %v3345_v37 = vpop.f32.mrb[132].mxu0 }
 0x26d   : > { %2828 = vst [vmem:[%s4855_s22 + $0x48] sm:$0xff] %v2788_v57   ;;  %v2181_v48 = vadd.f32 %v3345_v37, %v2020_v14  ;;  %v3266_v7 = vpop.f32.mrb[133].mxu1  ;;  %v2172_v23 = vpop.f32.mrb[133].mxu0 }
 0x26e   : > { %2827 = vst [vmem:[%s4855_s22 + $0x40] sm:$0xff] %v2783_v0   ;;  %v3267_v45 = vadd.f32 %v3266_v7, %v3265_v19  ;;  %v2173_v12 = vadd.f32 %v2172_v23, %v4872_v46  ;;  %v3268_v9 = vpop.f32.mrb[134].mxu1  ;;  %v3346_v62 = vpop.f32.mrb[134].mxu0 }
 0x26f   : > { %v2184_v33 = vadd.f32 %v3346_v62, %v2023_v50  ;;  %v3269_v56 = vpop.f32.mrb[135].mxu1  ;;  %v2175_v34 = vpop.f32.mrb[135].mxu0  ;;  %v2241_v2 = vmax.f32 %v2181_v48, 0.0 }
 0x270   : > { %v3270_v21 = vadd.f32 %v3269_v56, %v3268_v9  ;;  %v2176_v53 = vadd.f32 %v2175_v34, %v4875_v8  ;;  %v2036_v39 = vadd.f32 %v3267_v45, %v4809_v41  ;;  %v2239_v63 = vmax.f32 %v2173_v12, 0.0 }
 0x271   : > { %v2242_v10 = vmax.f32 %v2184_v33, 0.0 }
 0x272   : > { %v2240_v32 = vmax.f32 %v2176_v53, 0.0  ;;  %v2039_v28 = vadd.f32 %v3270_v21, %v4815_v27 }
 0x273   : > { %v2798_v35 = vpack.c.bf16 %v2242_v10, %v2241_v2 }
 0x274   : > { %v2793_v46 = vpack.c.bf16 %v2240_v32, %v2239_v63  ;;  %v3271_v51 = vpop.f32.mrb[136].mxu1  ;;  %v3349_v20 = vpop.f32.mrb[136].mxu0 }
 0x275   : > { %2830 = vst [vmem:[%s4855_s22 + $0x58] sm:$0xff] %v2798_v35   ;;  %v2197_v15 = vadd.f32 %v3349_v20, %v2036_v39  ;;  %v3272_v16 = vpop.f32.mrb[137].mxu1  ;;  %v2188_v4 = vpop.f32.mrb[137].mxu0 }
 0x276   : > { %2829 = vst [vmem:[%s4855_s22 + $0x50] sm:$0xff] %v2793_v46   ;;  %v3273_v14 = vadd.f32 %v3272_v16, %v3271_v51  ;;  %v2189_v18 = vadd.f32 %v2188_v4, %v2028_v13  ;;  %v3274_v8 = vpop.f32.mrb[138].mxu1  ;;  %v3350_v6 = vpop.f32.mrb[138].mxu0 }
 0x277   : > { %v2200_v41 = vadd.f32 %v3350_v6, %v2039_v28  ;;  %v3275_v44 = vpop.f32.mrb[139].mxu1  ;;  %v2191_v49 = vpop.f32.mrb[139].mxu0  ;;  %v2245_v26 = vmax.f32 %v2197_v15, 0.0 }
 0x278   : > { %v3276_v50 = vadd.f32 %v3275_v44, %v3274_v8  ;;  %v2192_v27 = vadd.f32 %v2191_v49, %v2031_v55  ;;  %v2044_v22 = vadd.f32 %v3273_v14, %v4821_v40  ;;  %v2243_v5 = vmax.f32 %v2189_v18, 0.0 }
 0x279   : > { %v2246_v36 = vmax.f32 %v2200_v41, 0.0 }
 0x27a   : > { %v2244_v52 = vmax.f32 %v2192_v27, 0.0  ;;  %v2047_v24 = vadd.f32 %v3276_v50, %v4827_v11 }
 0x27b   : > { %v2808_v25 = vpack.c.bf16 %v2246_v36, %v2245_v26 }
 0x27c   : > { %v2803_v43 = vpack.c.bf16 %v2244_v52, %v2243_v5  ;;  %v3277_v42 = vpop.f32.mrb[140].mxu1  ;;  %v3353_v54 = vpop.f32.mrb[140].mxu0 }
 0x27d   : > { %2832 = vst [vmem:[%s4855_s22 + $0x68] sm:$0xff] %v2808_v25   ;;  %v3278_v3 = vpop.f32.mrb[141].mxu1  ;;  %v2204_v38 = vpop.f32.mrb[141].mxu0 }
 0x27e   : > { %2831 = vst [vmem:[%s4855_s22 + $0x60] sm:$0xff] %v2803_v43   ;;  %v3279_v47 = vadd.f32 %v3278_v3, %v3277_v42  ;;  %v2205_v60 = vadd.f32 %v2204_v38, %v2044_v22  ;;  %v3280_v61 = vpop.f32.mrb[142].mxu1  ;;  %v3354_v40 = vpop.f32.mrb[142].mxu0 }
 0x27f   : > { %v3281_v31 = vpop.f32.mrb[143].mxu1  ;;  %v2207_v13 = vpop.f32.mrb[143].mxu0 }
 0x280   : > { %v2052_v29 = vadd.f32 %v3279_v47, %v4833_v1  ;;  %v3282_v11 = vadd.f32 %v3281_v31, %v3280_v61  ;;  %v2208_v59 = vadd.f32 %v2207_v13, %v2047_v24  ;;  %v2247_v58 = vmax.f32 %v2205_v60, 0.0 }
 0x282   : > { %v2213_v17 = vadd.f32 %v3353_v54, %v2052_v29  ;;  %v2055_v55 = vadd.f32 %v3282_v11, %v4839_v30  ;;  %v2248_v57 = vmax.f32 %v2208_v59, 0.0 }
 0x284   : > { %v2216_v0 = vadd.f32 %v3354_v40, %v2055_v55  ;;  %v2813_v19 = vpack.c.bf16 %v2248_v57, %v2247_v58  ;;  %v2249_v37 = vmax.f32 %v2213_v17, 0.0 }
 0x286   : > { %v2250_v48 = vmax.f32 %v2216_v0, 0.0  ;;  %2833 = vst [vmem:[%s4855_s22 + $0x70] sm:$0xff] %v2813_v19  }
 0x288   : > { %v2818_v1 = vpack.c.bf16 %v2250_v48, %v2249_v37 }
 0x28a   : > { %2834 = vst [vmem:[%s4855_s22 + $0x78] sm:$0xff] %v2818_v1  }
 0x28b   : > { %3690 = shalt.err (!%p3687_p2)
}
 0x28c   : > { %s3691_s28 = scalar_lea.hbm %s4911_s26, 2048  ;;  %s3695_s8 = scalar_lea.hbm %s4966_s3, 4096 }
 0x28d   : > { %p3692_p0 = scmp.ne.s32.totalorder %s4911_s26, %s3691_s28  ;;  %p3696_p6 = scmp.lt.u32.totalorder %s4911_s26, %s4966_s3 }
 0x28e   : > { %p3697_p7 = scmp.lt.u32.totalorder %s3695_s8, %s3691_s28  ;;  %p3699_p8 = scmp.lt.u32.totalorder %s3691_s28, %s4911_s26 }
 0x28f   : > { %p3693_p4 = pnand %p3692_p0, %p4988_p12 }
 0x290   : > { %p3698_p11 = por %p3697_p7, %p3696_p6 }
 0x291   : > { %p3694_p13 = pneg %p3693_p4 }
 0x292   : > { %p3700_p1 = por %p3699_p8, %p3698_p11 }
 0x294   : > { %p3701_p10 = pnand %p3700_p1, %p3694_p13 }
 0x296   : > { %3704 = shalt.err (!%p3701_p10)
}
 0x297   : > { %s3771_s22 = smov 64   ;;  %s3772_s24 = smov 4  }
 0x298   : > { %3384 = dma.vmem_to_hbm [thread:$0]  (%p4988_p12), %s4913_s11, 2048, %s4911_s26, %s2415_s10, %s3771_s22, %s3771_s22, %s3772_s24  }
 0x299 PF: > { %s2443_s18 = sand.u32 1, %s3743_s12   ;;  %p4989_p3 = scmp.ne.s32.totalorder %s4977_s23, 0 }
 0x29a   : > { %p4990_p5 = scmp.ge.s32.totalorder %s3763_s17, 2  ;;  %s2444_s5 = scalar_lea.sflag [#allocation4], %s2443_s18 }
 0x29c   : > { %p3398_p9 = pnand %p4990_p5, %p4989_p3 }
 0x29e   : > { %3738 = dma.done.wait (!%p3398_p9), %s2444_s5, 2048  }
 0x29f   : > { %3740 = vsyncadd (!%p3398_p9), %s2444_s5, 4294965248  ;;  %s20_s17 = sadd.s32 1, %s3763_s17   ;;  %s4991_s12 = smov %s3747_s13 }
 0x2a0   : > { %p17_p2 = scmp.ge.s32.totalorder %s20_s17, 4   ;;  %s4992_s13 = smov %s3751_s14 }
 0x2a1   : > { %s4993_s14 = smov %s3942_s6  ;;  %s4994_s15 = smov %s3759_s16 }
 0x2a2   : > { %s4995_s16 = smov %s4997_s25  ;;  %19 = sbr.rel (!%p17_p2) target bundleno = 7 (0x7), region = 87 }
 0x2a9   :  { %2449 = vsyncpa [#allocation3], 1 }
 0x2aa   :  { %2451 = vsyncpa [#allocation3 + $0x1], 1 }
 0x2ab   :  { %2452 = vsyncpa [#allocation6], 1 }
 0x2ac   :  { %2453 = vsyncpa [#allocation4], 1 }
 0x2ad   :  { %2455 = vsyncpa [#allocation4 + $0x1], 1 }

// kernel: up_forward.3
= control target key start
LH: loop header
LB: loop body
LE: loop exit
PB: predicated region body
PF: predicated region fallthrough
CT: control target
= control target key end

     0   :  { %8 = vsyncpa [#allocation3], 0  ;;  %s7372_s0 = inlined_call_operand.hbm [shape: bf16[2,8,8,8], index: 0, kind: input, shape index: {}]   ;;  %s7373_s1 = inlined_call_operand.hbm [shape: bf16[8,512], index: 1, kind: input, shape index: {}]   ;;  %s7374_s2 = inlined_call_operand.hbm [shape: f32[1,512], index: 2, kind: input, shape index: {}]   ;;  %s7375_s3 = inlined_call_operand.hbm [shape: bf16[2,18,18,128], index: 3, kind: output, shape index: {}]  }
   0x1   :  { %9 = vsyncpa [#allocation6], 0 }
   0x2   :  { %10 = vsyncpa [#allocation4], 0  ;;  %s4894_s12 = smov [#allocation5]   ;;  %s4895_s14 = smov [#allocation2]  }
   0x3   :  { %s29_s13 = sshll.u32 %s4894_s12, 4  ;;  %s16_s15 = sshll.u32 %s4895_s14, 4  ;;  %s30_s13 = int_to_ptr.vmem [resolvable:$true] %s29_s13  ;;  %s4922_s15 = int_to_ptr.vmem [resolvable:$true] %s16_s15 }
   0x4   :  { %s4800_s18 = scalar_lea.hbm %s7373_s1, 256 }
   0x5   :  { %p4801_p0 = scmp.ne.s32.totalorder %s7373_s1, %s4800_s18  ;;  %p4804_p1 = scmp.lt.u32.totalorder %s4800_s18, %s7373_s1 }
   0x7   :  { %p4806_p2 = pnand %p4804_p1, %p4801_p0 }
   0x9   :  { %4809 = shalt.err (!%p4806_p2)
}
   0xa   :  { %s4810_s23 = scalar_lea.vmem %s30_s13, 256  ;;  %p4815_p4 = scmp.lt.s32.totalorder %s30_s13, %s30_s13 }
   0xb   :  { %p4811_p3 = scmp.ne.s32.totalorder %s30_s13, %s4810_s23  ;;  %p4816_p5 = scmp.lt.s32.totalorder %s4810_s23, %s4810_s23 }
   0xd   :  { %p4817_p6 = por %p4816_p5, %p4815_p4 }
   0xf   :  { %p4818_p7 = pnand %p4817_p6, %p4811_p3 }
  0x11   :  { %4821 = shalt.err (!%p4818_p7)
}
  0x12   :  { %32 = dma.hbm_to_vmem [thread:$0]  %s7373_s1, 256, %s30_s13, [#allocation6]  }
  0x13   :  { %s4822_s28 = scalar_lea.hbm %s7372_s0, 1024 }
  0x14   :  { %p4823_p8 = scmp.ne.s32.totalorder %s7372_s0, %s4822_s28  ;;  %p4826_p9 = scmp.lt.u32.totalorder %s4822_s28, %s7372_s0 }
  0x16   :  { %p4828_p10 = pnand %p4826_p9, %p4823_p8 }
  0x18   :  { %4831 = shalt.err (!%p4828_p10)
}
  0x19   :  { %s4832_s6 = scalar_lea.vmem %s4922_s15, 1024  ;;  %p4837_p12 = scmp.lt.s32.totalorder %s4922_s15, %s4922_s15 }
  0x1a   :  { %p4833_p11 = scmp.ne.s32.totalorder %s4922_s15, %s4832_s6  ;;  %p4838_p13 = scmp.lt.s32.totalorder %s4832_s6, %s4832_s6 }
  0x1c   :  { %p4839_p0 = por %p4838_p13, %p4837_p12 }
  0x1e   :  { %p4840_p1 = pnand %p4839_p0, %p4833_p11 }
  0x20   :  { %4843 = shalt.err (!%p4840_p1)
}
  0x21   :  { %s4896_s1 = smov 64   ;;  %s4897_s7 = smov 4  }
  0x22   :  { %22 = dma.hbm_to_vmem [thread:$0]  %s7372_s0, 1024, %s4922_s15, [#allocation3], %s4896_s1, %s4896_s1, %s4897_s7  }
  0x23   :  { %s4898_s10 = smov [#allocation7]   ;;  %s4844_s14 = scalar_lea.hbm %s7374_s2, 64 }
  0x24   :  { %s39_s11 = sshll.u32 %s4898_s10, 4  ;;  %p4845_p2 = scmp.ne.s32.totalorder %s7374_s2, %s4844_s14  ;;  %s40_s11 = int_to_ptr.vmem [resolvable:$true] %s39_s11 }
  0x25   :  { %p4848_p3 = scmp.lt.u32.totalorder %s4844_s14, %s7374_s2 }
  0x27   :  { %p4850_p4 = pnand %p4848_p3, %p4845_p2 }
  0x29   :  { %4853 = shalt.err (!%p4850_p4)
}
  0x2a   :  { %s4854_s20 = scalar_lea.vmem %s40_s11, 64  ;;  %p4859_p6 = scmp.lt.s32.totalorder %s40_s11, %s40_s11 }
  0x2b   :  { %p4855_p5 = scmp.ne.s32.totalorder %s40_s11, %s4854_s20  ;;  %p4860_p7 = scmp.lt.s32.totalorder %s4854_s20, %s4854_s20 }
  0x2d   :  { %p4861_p8 = por %p4860_p7, %p4859_p6 }
  0x2f   :  { %p4862_p9 = pnand %p4861_p8, %p4855_p5 }
  0x31   :  { %4865 = shalt.err (!%p4862_p9)
}
  0x32   :  { %42 = dma.hbm_to_vmem [thread:$0]  %s7374_s2, 64, %s40_s11, [#allocation6]  }
  0x33   :  { %4888 = dma.done.wait [#allocation3], 1024  }
  0x34   :  { %4889 = vsyncadd [#allocation3], 4294966272 }
  0x35   :  { %4890 = dma.done.wait [#allocation6], 320  }
  0x36   :  { %4891 = vsyncadd [#allocation6], 4294966976  ;;  %v4899_v0 = vmov 0   ;;  %v69_v1 = vld [vmem:[#allocation5] sm:$0xff]  ;;  %vm168_vm0 = vcmask 1043456   ;;  %v70_v2 = vld [vmem:[#allocation5 + $0x8] sm:$0xff]  ;;  %v73_v17 = vlaneseq }
  0x37   :  { %213 = vmatprep.mubr.bf16.mxu0 %v4899_v0  ;;  %1945 = vst [vmem:[#allocation8] sm:$0xf] %v4899_v0  ;;  %1946 = vst [vmem:[#allocation8 + $0x4] sm:$0xf] %v4899_v0  ;;  %326 = vmatprep.mubr.bf16.mxu1 %v4899_v0  ;;  %v4759_v3 = vcombine.high %v69_v1, %v69_v1  ;;  %v4761_v4 = vcombine.high %v70_v2, %v70_v2  ;;  %v4792_v9 = vld [vmem:[#allocation2] sm:$0xff]   ;;  %vm143_vm1 = vcmask 64512  }
  0x38   :  { %1947 = vst [vmem:[#allocation8 + $0x8] sm:$0x1] %v4899_v0  ;;  %1948 = vst [vmem:[#allocation8 + $0xc] sm:$0xf] %v4899_v0  ;;  %v4758_v5 = vcombine.low %v69_v1, %v69_v1  ;;  %v4760_v6 = vcombine.low %v70_v2, %v70_v2  ;;  %v4793_v10 = vld [vmem:[#allocation2 + $0x8] sm:$0xff]   ;;  %v4794_v11 = vld [vmem:[#allocation2 + $0x10] sm:$0xff]  }
  0x39   :  { %1949 = vst [vmem:[#allocation8 + $0x10] sm:$0xf] %v4899_v0  ;;  %1950 = vst [vmem:[#allocation8 + $0x14] sm:$0x1] %v4899_v0  ;;  %4762 = vmatprep.subr.msk.bf16.mxu0 %vm168_vm0, %v4759_v3  ;;  %4771 = vmatprep.subr.msk.bf16.mxu1 %vm168_vm0, %v4761_v4  ;;  %v4795_v12 = vld [vmem:[#allocation2 + $0x18] sm:$0xff]   ;;  %v4796_v13 = vld [vmem:[#allocation2 + $0x20] sm:$0xff]  }
  0x3a   :  { %1951 = vst [vmem:[#allocation8 + $0x18] sm:$0xf] %v4899_v0  ;;  %1952 = vst [vmem:[#allocation8 + $0x1c] sm:$0xf] %v4899_v0  ;;  %v170_v7 = vsel %vm168_vm0, %v4758_v5, 0  ;;  %v176_v8 = vsel %vm168_vm0, %v4760_v6, 0 }
  0x3b   :  { %1953 = vst [vmem:[#allocation8 + $0x20] sm:$0x1] %v4899_v0  ;;  %1954 = vst [vmem:[#allocation8 + $0x24] sm:$0xf] %v4899_v0  ;;  %182 = vmatpush1.bf16.msra.mxu0 %v170_v7  ;;  %295 = vmatpush1.bf16.msra.mxu1 %v176_v8  ;;  %v4797_v14 = vld [vmem:[#allocation2 + $0x28] sm:$0xff]   ;;  %v4798_v15 = vld [vmem:[#allocation2 + $0x30] sm:$0xff]  }
  0x3c   :  { %1955 = vst [vmem:[#allocation8 + $0x28] sm:$0xf] %v4899_v0  ;;  %1956 = vst [vmem:[#allocation8 + $0x2c] sm:$0x1] %v4899_v0  ;;  %v4799_v16 = vld [vmem:[#allocation2 + $0x38] sm:$0xff]   ;;  %v74_v18 = vshrl.u32 %v73_v17, 7 }
  0x3d   :  { %1957 = vst [vmem:[#allocation8 + $0x30] sm:$0xf] %v4899_v0  ;;  %1958 = vst [vmem:[#allocation8 + $0x34] sm:$0xf] %v4899_v0  ;;  %v71_v21 = vld [vmem:[#allocation7] sm:$0xf] }
  0x3e   :  { %1959 = vst [vmem:[#allocation8 + $0x38] sm:$0x1] %v4899_v0  ;;  %1960 = vst [vmem:[#allocation8 + $0x3c] sm:$0xf] %v4899_v0  ;;  %4763 = vmatmul.mubr.msk.bf16.vlgmr.msra.gmra.mrb[0].mxu0 %vm143_vm1, %v4792_v9  ;;  %4772 = vmatmul.mubr.msk.bf16.vlgmr.msra.gmra.mrb[0].mxu1 %vm143_vm1, %v4792_v9  ;;  %v75_v19 = vsub.s32 0, %v74_v18  ;;  %v83_v20 = vsub.s32 2, %v74_v18 }
  0x3f   :  { %1961 = vst [vmem:[#allocation8 + $0x40] sm:$0xf] %v4899_v0  ;;  %1962 = vst [vmem:[#allocation8 + $0x44] sm:$0x1] %v4899_v0  ;;  %223 = vmatprep.mubr.bf16.mxu0 %v4899_v0  ;;  %336 = vmatprep.mubr.bf16.mxu1 %v4899_v0  ;;  %v79_v22 = vsub.s32 1, %v74_v18  ;;  %v87_v23 = vsub.s32 3, %v74_v18 }
  0x40   :  { %1963 = vst [vmem:[#allocation8 + $0x48] sm:$0xf] %v4899_v0  ;;  %1964 = vst [vmem:[#allocation8 + $0x4c] sm:$0xf] %v4899_v0  ;;  %v4900_v24 = vmov 1935823168   ;;  %v5112_v26 = vrot.slane %v71_v21, %v75_v19  ;;  %v5114_v27 = vrot.slane %v71_v21, %v83_v20 }
  0x41   :  { %1965 = vst [vmem:[#allocation8 + $0x50] sm:$0x1] %v4899_v0  ;;  %1966 = vst [vmem:[#allocation8 + $0x54] sm:$0xf] %v4899_v0  ;;  %v2072_v25 = vunpack.c.l.s4 %v4900_v24  ;;  %v5116_v30 = vrot.slane %v71_v21, %v79_v22  ;;  %v5118_v31 = vrot.slane %v71_v21, %v87_v23  ;;  %vm439_vm2 = vsmask.f32 256 }
  0x42   :  { %1967 = vst [vmem:[#allocation8 + $0x58] sm:$0xf] %v4899_v0  ;;  %1968 = vst [vmem:[#allocation8 + $0x5c] sm:$0x1] %v4899_v0  ;;  %vm444_vm3 = vsmask.f32 770 }
  0x43   :  { %1969 = vst [vmem:[#allocation8 + $0x60] sm:$0xf] %v4899_v0  ;;  %1970 = vst [vmem:[#allocation8 + $0x64] sm:$0xf] %v4899_v0  ;;  %v2073_v36 = vunpack.c.0.s8 %v2072_v25  ;;  %vm2209_vm4 = vsmask.f32 7938 }
  0x44   :  { %1971 = vst [vmem:[#allocation8 + $0x68] sm:$0x1] %v4899_v0  ;;  %1972 = vst [vmem:[#allocation8 + $0x6c] sm:$0xf] %v4899_v0  ;;  %vm2165_vm5 = vsmask.f32 4368 }
  0x45   :  { %1973 = vst [vmem:[#allocation8 + $0x70] sm:$0xf] %v4899_v0  ;;  %1974 = vst [vmem:[#allocation8 + $0x74] sm:$0x1] %v4899_v0  ;;  %v5132_v50 = vsub.s32 %v2073_v36, %v74_v18  ;;  %vm2215_vm6 = vcmask 1040384   ;;  %s4901_s2 = smov [#allocation8]  }
  0x46   :  { %1975 = vst [vmem:[#allocation8 + $0x78] sm:$0xf] %v4899_v0  ;;  %1976 = vst [vmem:[#allocation8 + $0x7c] sm:$0xf] %v4899_v0  ;;  %4764 = vmatmul.mubr.msk.bf16.gmra.mrb[4].mxu0 %vm143_vm1, %v4793_v10  ;;  %4773 = vmatmul.mubr.msk.bf16.gmra.mrb[4].mxu1 %vm143_vm1, %v4793_v10  ;;  %s4737_s21 = sshll.u32 %s4901_s2, 4  ;;  %s4738_s21 = int_to_ptr.vmem [resolvable:$true] %s4737_s21 }
  0x47   :  { %1977 = vst [vmem:[#allocation8 + $0x80] sm:$0x1] %v4899_v0  ;;  %1978 = vst [vmem:[#allocation8 + $0x84] sm:$0xf] %v4899_v0  ;;  %233 = vmatprep.mubr.bf16.mxu0 %v4899_v0  ;;  %346 = vmatprep.mubr.bf16.mxu1 %v4899_v0  ;;  %s4866_s22 = scalar_lea.vmem %s4738_s21, 6912  ;;  %p4871_p11 = scmp.lt.s32.totalorder %s4738_s21, %s4738_s21 }
  0x48   :  { %1979 = vst [vmem:[#allocation8 + $0x88] sm:$0xf] %v4899_v0  ;;  %1980 = vst [vmem:[#allocation8 + $0x8c] sm:$0x1] %v4899_v0  ;;  %p4867_p10 = scmp.ne.s32.totalorder %s4738_s21, %s4866_s22  ;;  %p4872_p12 = scmp.lt.s32.totalorder %s4866_s22, %s4866_s22 }
  0x49   :  { %1981 = vst [vmem:[#allocation8 + $0x90] sm:$0xf] %v4899_v0  ;;  %1982 = vst [vmem:[#allocation8 + $0x94] sm:$0xf] %v4899_v0 }
  0x4a   :  { %1983 = vst [vmem:[#allocation8 + $0x98] sm:$0x1] %v4899_v0  ;;  %1984 = vst [vmem:[#allocation8 + $0x9c] sm:$0xf] %v4899_v0  ;;  %p4873_p13 = por %p4872_p12, %p4871_p11 }
  0x4b   :  { %1985 = vst [vmem:[#allocation8 + $0xa0] sm:$0xf] %v4899_v0  ;;  %1986 = vst [vmem:[#allocation8 + $0xa4] sm:$0x1] %v4899_v0 }
  0x4c   :  { %1987 = vst [vmem:[#allocation8 + $0xa8] sm:$0xf] %v4899_v0  ;;  %1988 = vst [vmem:[#allocation8 + $0xac] sm:$0xf] %v4899_v0  ;;  %p4874_p0 = pnand %p4873_p13, %p4867_p10 }
  0x4d   :  { %1989 = vst [vmem:[#allocation8 + $0xb0] sm:$0x1] %v4899_v0  ;;  %1990 = vst [vmem:[#allocation8 + $0xb4] sm:$0xf] %v4899_v0 }
  0x4e   :  { %1991 = vst [vmem:[#allocation8 + $0xb8] sm:$0xf] %v4899_v0  ;;  %1992 = vst [vmem:[#allocation8 + $0xbc] sm:$0x1] %v4899_v0  ;;  %4765 = vmatmul.mubr.msk.bf16.gmra.mrb[8].mxu0 %vm143_vm1, %v4794_v11  ;;  %4774 = vmatmul.mubr.msk.bf16.gmra.mrb[8].mxu1 %vm143_vm1, %v4794_v11 }
  0x4f   :  { %1993 = vst [vmem:[#allocation8 + $0xc0] sm:$0xf] %v4899_v0  ;;  %1994 = vst [vmem:[#allocation8 + $0xc4] sm:$0xf] %v4899_v0  ;;  %243 = vmatprep.mubr.bf16.mxu0 %v4899_v0  ;;  %356 = vmatprep.mubr.bf16.mxu1 %v4899_v0 }
  0x50   :  { %1995 = vst [vmem:[#allocation8 + $0xc8] sm:$0x1] %v4899_v0  ;;  %1996 = vst [vmem:[#allocation8 + $0xcc] sm:$0xf] %v4899_v0 }
  0x51   :  { %1997 = vst [vmem:[#allocation8 + $0xd0] sm:$0xf] %v4899_v0  ;;  %1998 = vst [vmem:[#allocation8 + $0xd4] sm:$0x1] %v4899_v0 }
  0x52   :  { %1999 = vst [vmem:[#allocation8 + $0xd8] sm:$0xf] %v4899_v0  ;;  %2000 = vst [vmem:[#allocation8 + $0xdc] sm:$0xf] %v4899_v0 }
  0x53   :  { %2001 = vst [vmem:[#allocation8 + $0xe0] sm:$0x1] %v4899_v0  ;;  %2002 = vst [vmem:[#allocation8 + $0xe4] sm:$0xf] %v4899_v0 }
  0x54   :  { %2003 = vst [vmem:[#allocation8 + $0xe8] sm:$0xf] %v4899_v0  ;;  %2004 = vst [vmem:[#allocation8 + $0xec] sm:$0x1] %v4899_v0 }
  0x55   :  { %2005 = vst [vmem:[#allocation8 + $0xf0] sm:$0xf] %v4899_v0  ;;  %2006 = vst [vmem:[#allocation8 + $0xf4] sm:$0xf] %v4899_v0 }
  0x56   :  { %2007 = vst [vmem:[#allocation8 + $0xf8] sm:$0x1] %v4899_v0  ;;  %2008 = vst [vmem:[#allocation8 + $0xfc] sm:$0xf] %v4899_v0  ;;  %4766 = vmatmul.mubr.msk.bf16.gmra.mrb[12].mxu0 %vm143_vm1, %v4795_v12  ;;  %4775 = vmatmul.mubr.msk.bf16.gmra.mrb[12].mxu1 %vm143_vm1, %v4795_v12 }
  0x57   :  { %2009 = vst [vmem:[#allocation8 + $0x100] sm:$0xf] %v4899_v0  ;;  %2010 = vst [vmem:[#allocation8 + $0x104] sm:$0x1] %v4899_v0  ;;  %253 = vmatprep.mubr.bf16.mxu0 %v4899_v0  ;;  %366 = vmatprep.mubr.bf16.mxu1 %v4899_v0 }
  0x58   :  { %2011 = vst [vmem:[#allocation8 + $0x108] sm:$0xf] %v4899_v0  ;;  %2012 = vst [vmem:[#allocation8 + $0x10c] sm:$0xf] %v4899_v0 }
  0x59   :  { %2013 = vst [vmem:[#allocation8 + $0x110] sm:$0x1] %v4899_v0  ;;  %2014 = vst [vmem:[#allocation8 + $0x114] sm:$0xf] %v4899_v0 }
  0x5a   :  { %2015 = vst [vmem:[#allocation8 + $0x118] sm:$0xf] %v4899_v0  ;;  %2016 = vst [vmem:[#allocation8 + $0x11c] sm:$0x1] %v4899_v0 }
  0x5b   :  { %2017 = vst [vmem:[#allocation8 + $0x120] sm:$0xf] %v4899_v0  ;;  %2018 = vst [vmem:[#allocation8 + $0x124] sm:$0xf] %v4899_v0 }
  0x5c   :  { %2019 = vst [vmem:[#allocation8 + $0x128] sm:$0x1] %v4899_v0  ;;  %2020 = vst [vmem:[#allocation8 + $0x12c] sm:$0xf] %v4899_v0 }
  0x5d   :  { %2021 = vst [vmem:[#allocation8 + $0x130] sm:$0xf] %v4899_v0  ;;  %2022 = vst [vmem:[#allocation8 + $0x134] sm:$0x1] %v4899_v0 }
  0x5e   :  { %2023 = vst [vmem:[#allocation8 + $0x138] sm:$0xf] %v4899_v0  ;;  %2024 = vst [vmem:[#allocation8 + $0x13c] sm:$0xf] %v4899_v0  ;;  %4767 = vmatmul.mubr.msk.bf16.gmra.mrb[16].mxu0 %vm143_vm1, %v4796_v13  ;;  %4776 = vmatmul.mubr.msk.bf16.gmra.mrb[16].mxu1 %vm143_vm1, %v4796_v13 }
  0x5f   :  { %2025 = vst [vmem:[#allocation8 + $0x140] sm:$0x1] %v4899_v0  ;;  %2026 = vst [vmem:[#allocation8 + $0x144] sm:$0xf] %v4899_v0  ;;  %263 = vmatprep.mubr.bf16.mxu0 %v4899_v0  ;;  %376 = vmatprep.mubr.bf16.mxu1 %v4899_v0 }
  0x60   :  { %2027 = vst [vmem:[#allocation8 + $0x148] sm:$0xf] %v4899_v0  ;;  %2028 = vst [vmem:[#allocation8 + $0x14c] sm:$0x1] %v4899_v0 }
  0x61   :  { %2029 = vst [vmem:[#allocation8 + $0x150] sm:$0xf] %v4899_v0  ;;  %2030 = vst [vmem:[#allocation8 + $0x154] sm:$0xf] %v4899_v0 }
  0x62   :  { %2031 = vst [vmem:[#allocation8 + $0x158] sm:$0x1] %v4899_v0  ;;  %2032 = vst [vmem:[#allocation8 + $0x15c] sm:$0xf] %v4899_v0 }
  0x63   :  { %2033 = vst [vmem:[#allocation8 + $0x160] sm:$0xf] %v4899_v0  ;;  %2034 = vst [vmem:[#allocation8 + $0x164] sm:$0x1] %v4899_v0 }
  0x64   :  { %2035 = vst [vmem:[#allocation8 + $0x168] sm:$0xf] %v4899_v0  ;;  %2036 = vst [vmem:[#allocation8 + $0x16c] sm:$0xf] %v4899_v0 }
  0x65   :  { %2037 = vst [vmem:[#allocation8 + $0x170] sm:$0x1] %v4899_v0  ;;  %2038 = vst [vmem:[#allocation8 + $0x174] sm:$0xf] %v4899_v0 }
  0x66   :  { %2039 = vst [vmem:[#allocation8 + $0x178] sm:$0xf] %v4899_v0  ;;  %2040 = vst [vmem:[#allocation8 + $0x17c] sm:$0x1] %v4899_v0  ;;  %4768 = vmatmul.mubr.msk.bf16.gmra.mrb[20].mxu0 %vm143_vm1, %v4797_v14  ;;  %4777 = vmatmul.mubr.msk.bf16.gmra.mrb[20].mxu1 %vm143_vm1, %v4797_v14 }
  0x67   :  { %2041 = vst [vmem:[#allocation8 + $0x180] sm:$0xf] %v4899_v0  ;;  %2042 = vst [vmem:[#allocation8 + $0x184] sm:$0xf] %v4899_v0  ;;  %273 = vmatprep.mubr.bf16.mxu0 %v4899_v0  ;;  %386 = vmatprep.mubr.bf16.mxu1 %v4899_v0 }
  0x68   :  { %2043 = vst [vmem:[#allocation8 + $0x188] sm:$0x1] %v4899_v0  ;;  %2044 = vst [vmem:[#allocation8 + $0x18c] sm:$0xf] %v4899_v0 }
  0x69   :  { %2045 = vst [vmem:[#allocation8 + $0x190] sm:$0xf] %v4899_v0  ;;  %2046 = vst [vmem:[#allocation8 + $0x194] sm:$0x1] %v4899_v0 }
  0x6a   :  { %2047 = vst [vmem:[#allocation8 + $0x198] sm:$0xf] %v4899_v0  ;;  %2048 = vst [vmem:[#allocation8 + $0x19c] sm:$0xf] %v4899_v0 }
  0x6b   :  { %2049 = vst [vmem:[#allocation8 + $0x1a0] sm:$0x1] %v4899_v0  ;;  %2050 = vst [vmem:[#allocation8 + $0x1a4] sm:$0xf] %v4899_v0 }
  0x6c   :  { %2051 = vst [vmem:[#allocation8 + $0x1a8] sm:$0xf] %v4899_v0  ;;  %2052 = vst [vmem:[#allocation8 + $0x1ac] sm:$0x1] %v4899_v0 }
  0x6d   :  { %vm5342_vm7 = vmand %vm168_vm0, %vm2209_vm4 }
  0x6e   :  { %4769 = vmatmul.mubr.msk.bf16.gmra.mrb[24].mxu0 %vm143_vm1, %v4798_v15  ;;  %4778 = vmatmul.mubr.msk.bf16.gmra.mrb[24].mxu1 %vm143_vm1, %v4798_v15  ;;  %vm5353_vm8 = vmor %vm439_vm2, %vm2165_vm5 }
  0x6f   :  { %283 = vmatprep.mubr.bf16.mxu0 %v4899_v0  ;;  %396 = vmatprep.mubr.bf16.mxu1 %v4899_v0  ;;  %vm5363_vm9 = vmand %vm2215_vm6, %vm439_vm2 }
  0x76   :  { %4770 = vmatmul.mubr.msk.bf16.gmra.mrb[28].mxu0 %vm143_vm1, %v4799_v16  ;;  %4779 = vmatmul.mubr.msk.bf16.gmra.mrb[28].mxu1 %vm143_vm1, %v4799_v16 }
 0x111   :  { %v215_v28 = vpop.f32.mrb[0].mxu0  ;;  %v328_v29 = vpop.f32.mrb[0].mxu1 }
 0x112   :  { %v217_v32 = vpop.f32.mrb[1].mxu0  ;;  %v330_v33 = vpop.f32.mrb[1].mxu1  ;;  %v216_v37 = vadd.f32 %v215_v28, %v5112_v26  ;;  %v329_v38 = vadd.f32 %v328_v29, %v5114_v27 }
 0x113   :  { %v219_v34 = vpop.f32.mrb[2].mxu0  ;;  %v332_v35 = vpop.f32.mrb[2].mxu1  ;;  %v218_v43 = vadd.f32 %v217_v32, %v5116_v30  ;;  %v331_v44 = vadd.f32 %v330_v33, %v5118_v31 }
 0x114   :  { %v220_v39 = vadd.f32 %v219_v34, %v5112_v26  ;;  %v333_v40 = vadd.f32 %v332_v35, %v5114_v27  ;;  %v221_v41 = vpop.f32.mrb[3].mxu0  ;;  %v334_v42 = vpop.f32.mrb[3].mxu1 }
 0x115   :  { %v222_v45 = vadd.f32 %v221_v41, %v5116_v30  ;;  %v335_v46 = vadd.f32 %v334_v42, %v5118_v31 }
 0x116   :  { %v407_v47 = vpack.c.bf16 %v220_v39, %v216_v37  ;;  %v5128_v48 = vpack.c.bf16 %v333_v40, %v329_v38 }
 0x117   :  { %v5130_v49 = vpack.c.bf16 %v222_v45, %v218_v43  ;;  %v5134_v51 = vpack.c.bf16 %v335_v46, %v331_v44 }
 0x118   :  { %v5137_v52 = vsel %vm439_vm2, %v407_v47, 0  ;;  %v452_v53 = vshrl.u32 %v407_v47, 16  ;;  %v461_v54 = vrot.slane %v407_v47, 1  ;;  %v485_v55 = vrot.slane %v407_v47, 2 }
 0x119   :  { %v509_v56 = vrot.slane %v407_v47, 3  ;;  %v533_v57 = vrot.slane %v407_v47, 4  ;;  %v557_v58 = vrot.slane %v407_v47, 5  ;;  %v581_v59 = vrot.slane %v407_v47, 6  ;;  %v5139_v60 = vpop.f32.mrb[4].mxu0  ;;  %v5141_v61 = vpop.f32.mrb[4].mxu1 }
 0x11a   :  { %v5144_v62 = vsel %vm439_vm2, %v452_v53, 0  ;;  %v5147_v63 = vsel %vm439_vm2, %v461_v54, 0  ;;  %v476_v0 = vshrl.u32 %v461_v54, 16  ;;  %v5150_v1 = vsel %vm439_vm2, %v485_v55, 0  ;;  %v5152_v2 = vpop.f32.mrb[5].mxu0  ;;  %v5154_v3 = vpop.f32.mrb[5].mxu1 }
 0x11b   :  { %v500_v4 = vshrl.u32 %v485_v55, 16  ;;  %v5157_v5 = vsel %vm439_vm2, %v509_v56, 0  ;;  %v524_v6 = vshrl.u32 %v509_v56, 16  ;;  %v5160_v7 = vsel %vm439_vm2, %v533_v57, 0  ;;  %v5162_v8 = vpop.f32.mrb[6].mxu0  ;;  %v5164_v9 = vpop.f32.mrb[6].mxu1 }
 0x11c   :  { %v5167_v10 = vsel %vm439_vm2, %v476_v0, 0  ;;  %v548_v11 = vshrl.u32 %v533_v57, 16  ;;  %v5170_v12 = vsel %vm439_vm2, %v557_v58, 0  ;;  %v572_v13 = vshrl.u32 %v557_v58, 16  ;;  %v5172_v14 = vpop.f32.mrb[7].mxu0  ;;  %v5174_v15 = vpop.f32.mrb[7].mxu1 }
 0x11d   :  { %v502_v16 = vsel %vm439_vm2, %v500_v4, 0  ;;  %v5178_v17 = vsel %vm439_vm2, %v524_v6, 0  ;;  %v5181_v18 = vsel %vm439_vm2, %v581_v59, 0  ;;  %v596_v19 = vshrl.u32 %v581_v59, 16 }
 0x11e   :  { %v5184_v20 = vsel %vm439_vm2, %v548_v11, 0  ;;  %v5187_v21 = vsel %vm439_vm2, %v572_v13, 0  ;;  %v605_v22 = vrot.slane %v407_v47, 7  ;;  %v5191_v23 = vsel %vm439_vm2, %v5128_v48, 0 }
 0x11f   :  { %v5194_v24 = vsel %vm439_vm2, %v596_v19, 0  ;;  %v457_v25 = vshrl.u32 %v5128_v48, 16  ;;  %v468_v28 = vrot.slane %v5128_v48, 1  ;;  %v492_v29 = vrot.slane %v5128_v48, 2 }
 0x120   :  { %v5200_v32 = vsel %vm439_vm2, %v605_v22, 0  ;;  %v620_v33 = vshrl.u32 %v605_v22, 16  ;;  %v516_v34 = vrot.slane %v5128_v48, 3  ;;  %v540_v35 = vrot.slane %v5128_v48, 4 }
 0x121   :  { %v5205_v36 = vsel %vm439_vm2, %v457_v25, 0  ;;  %v5208_v37 = vsel %vm439_vm2, %v468_v28, 0  ;;  %v481_v38 = vshrl.u32 %v468_v28, 16  ;;  %v5211_v39 = vsel %vm439_vm2, %v492_v29, 0  ;;  %v5213_v40 = vpop.f32.mrb[8].mxu0  ;;  %v5215_v41 = vpop.f32.mrb[8].mxu1 }
 0x122   :  { %v622_v42 = vsel %vm439_vm2, %v620_v33, 0  ;;  %v505_v43 = vshrl.u32 %v492_v29, 16  ;;  %v5219_v44 = vsel %vm439_vm2, %v516_v34, 0  ;;  %v529_v45 = vshrl.u32 %v516_v34, 16  ;;  %v5221_v46 = vpop.f32.mrb[9].mxu0  ;;  %v5223_v47 = vpop.f32.mrb[9].mxu1 }
 0x123   :  { %7376 = vst [vmem:[#allocation12_spill] sm:$0xff] %v5221_v46  ;;  %7377 = vst [vmem:[#allocation13_spill] sm:$0xff] %v5223_v47  ;;  %v5226_v53 = vsel %vm439_vm2, %v481_v38, 0  ;;  %v5229_v54 = vsel %vm439_vm2, %v540_v35, 0  ;;  %v553_v55 = vshrl.u32 %v540_v35, 16  ;;  %v564_v56 = vrot.slane %v5128_v48, 5 }
 0x124   :  { %v5232_v57 = vpop.f32.mrb[10].mxu0  ;;  %v5234_v58 = vpop.f32.mrb[10].mxu1  ;;  %v5237_v59 = vsel %vm439_vm2, %v505_v43, 0  ;;  %v5240_v0 = vsel %vm439_vm2, %v529_v45, 0  ;;  %v588_v4 = vrot.slane %v5128_v48, 6  ;;  %v612_v6 = vrot.slane %v5128_v48, 7 }
 0x125   :  { %7378 = vst [vmem:[#allocation14_spill] sm:$0xff] %v5232_v57  ;;  %7379 = vst [vmem:[#allocation15_spill] sm:$0xff] %v5234_v58  ;;  %v5244_v11 = vpop.f32.mrb[11].mxu0  ;;  %v5246_v13 = vpop.f32.mrb[11].mxu1  ;;  %v5249_v19 = vsel %vm439_vm2, %v553_v55, 0  ;;  %v5252_v22 = vsel %vm439_vm2, %v564_v56, 0  ;;  %v455_v43 = vsel %vm444_vm3, %v5130_v49, %v5144_v62 }
 0x126   :  { %7380 = vst [vmem:[#allocation16_spill] sm:$0xff] %v5244_v11  ;;  %7381 = vst [vmem:[#allocation17_spill] sm:$0xff] %v5246_v13  ;;  %v577_v25 = vshrl.u32 %v564_v56, 16  ;;  %v442_v28 = vshll.u32 %v5130_v49, 16  ;;  %v5256_v29 = vsel %vm439_vm2, %v588_v4, 0  ;;  %v601_v33 = vshrl.u32 %v588_v4, 16 }
 0x127   :  { %v5259_v34 = vsel %vm439_vm2, %v612_v6, 0  ;;  %v625_v48 = vshrl.u32 %v612_v6, 16  ;;  %v463_v45 = vrot.slane %v5130_v49, 1  ;;  %v487_v4 = vrot.slane %v5130_v49, 2 }
 0x128   :  { %v5262_v35 = vsel %vm439_vm2, %v577_v25, 0  ;;  %v445_v38 = vsel %vm444_vm3, %v442_v28, %v5137_v52  ;;  %v5271_v55 = vsel %vm439_vm2, %v601_v33, 0  ;;  %v511_v6 = vrot.slane %v5130_v49, 3 }
 0x129   :  { %v5274_v56 = vsel %vm439_vm2, %v625_v48, 0  ;;  %v465_v25 = vshll.u32 %v463_v45, 16  ;;  %v479_v52 = vsel %vm444_vm3, %v463_v45, %v5167_v10  ;;  %v535_v28 = vrot.slane %v5130_v49, 4 }
 0x12a   :  { %v559_v62 = vrot.slane %v5130_v49, 5  ;;  %v489_v13 = vshll.u32 %v487_v4, 16  ;;  %v503_v11 = vsel %vm444_vm3, %v487_v4, %v502_v16  ;;  %v513_v33 = vshll.u32 %v511_v6, 16 }
 0x12b   :  { %v527_v48 = vsel %vm444_vm3, %v511_v6, %v5178_v17  ;;  %v467_v58 = vsel %vm444_vm3, %v465_v25, %v5147_v63  ;;  %v537_v57 = vshll.u32 %v535_v28, 16  ;;  %v551_v47 = vsel %vm444_vm3, %v535_v28, %v5184_v20 }
 0x12c   :  { %v561_v46 = vshll.u32 %v559_v62, 16  ;;  %v491_v10 = vsel %vm444_vm3, %v489_v13, %v5150_v1  ;;  %v515_v45 = vsel %vm444_vm3, %v513_v33, %v5157_v5  ;;  %v575_v16 = vsel %vm444_vm3, %v559_v62, %v5187_v21 }
 0x12d   :  { %v583_v4 = vrot.slane %v5130_v49, 6  ;;  %v539_v63 = vsel %vm444_vm3, %v537_v57, %v5160_v7  ;;  %v607_v20 = vrot.slane %v5130_v49, 7  ;;  %v2069_v6 = vcombine.low %v445_v38, %v467_v58 }
 0x12e   :  { %v563_v17 = vsel %vm444_vm3, %v561_v46, %v5170_v12  ;;  %v2070_v5 = vcombine.low %v455_v43, %v479_v52  ;;  %v2093_v13 = vcombine.low %v491_v10, %v515_v45  ;;  %v2094_v33 = vcombine.low %v503_v11, %v527_v48 }
 0x12f   :  { %v585_v25 = vshll.u32 %v583_v4, 16  ;;  %v599_v1 = vsel %vm444_vm3, %v583_v4, %v5194_v24  ;;  %v609_v21 = vshll.u32 %v607_v20, 16  ;;  %v623_v28 = vsel %vm444_vm3, %v607_v20, %v622_v42 }
 0x130   :  { %v2077_v62 = vrot.slane %v2069_v6, %v5132_v50  ;;  %v2084_v49 = vrot.slane %v2070_v5, %v5132_v50  ;;  %v2101_v12 = vrot.slane %v2093_v13, %v5132_v50  ;;  %v2243_v46 = vcombine.low %v539_v63, %v563_v17 }
 0x131   :  { %v587_v7 = vsel %vm444_vm3, %v585_v25, %v5181_v18  ;;  %v611_v24 = vsel %vm444_vm3, %v609_v21, %v5200_v32  ;;  %v2108_v57 = vrot.slane %v2094_v33, %v5132_v50  ;;  %v2244_v58 = vcombine.low %v551_v47, %v575_v16  ;;  %v5338_v33 = vpop.f32.mrb[12].mxu1 }
 0x132   :  { %v2268_v38 = vcombine.low %v599_v1, %v623_v28  ;;  %v2085_v42 = vcombine.low %v2077_v62, %v2084_v49  ;;  %v2251_v43 = vrot.slane %v2243_v46, %v5132_v50  ;;  %v2267_v11 = vcombine.low %v587_v7, %v611_v24  ;;  %v5336_v62 = vpop.f32.mrb[12].mxu0 }
 0x133   :  { %v448_v52 = vshll.u32 %v5134_v51, 16  ;;  %v2109_v48 = vcombine.low %v2101_v12, %v2108_v57  ;;  %v2258_v18 = vrot.slane %v2244_v58, %v5132_v50  ;;  %v5319_v45 = vsel %vm444_vm3, %v5134_v51, %v5205_v36  ;;  %v2211_v58 = vld [vmem:[#allocation8 + $0xc] sm:$0xf] }
 0x134   :  { %v2282_v10 = vrot.slane %v2268_v38, %v5132_v50  ;;  %v2092_v32 = vrot.slane %v2085_v42, %v5132_v50  ;;  %v2275_v47 = vrot.slane %v2267_v11, %v5132_v50  ;;  %v470_v4 = vrot.slane %v5134_v51, 1 }
 0x135   :  { %v5325_v16 = vsel %vm444_vm3, %v448_v52, %v5191_v23  ;;  %v2116_v63 = vrot.slane %v2109_v48, %v5132_v50  ;;  %v2259_v17 = vcombine.low %v2251_v43, %v2258_v18  ;;  %v494_v20 = vrot.slane %v5134_v51, 2  ;;  %v2217_v48 = vld [vmem:[#allocation8 + $0x14] sm:$0x1] }
 0x136   :  { %v518_v6 = vrot.slane %v5134_v51, 3  ;;  %v2168_v25 = vshrl.u32 %v2092_v32, 16  ;;  %v2171_v36 = vshll.u32 %v2092_v32, 16  ;;  %v2283_v1 = vcombine.low %v2275_v47, %v2282_v10 }
 0x137   :  { %v472_v5 = vshll.u32 %v470_v4, 16  ;;  %v2176_v13 = vshrl.u32 %v2116_v63, 16  ;;  %v2179_v21 = vshll.u32 %v2116_v63, 16  ;;  %v2266_v28 = vrot.slane %v2259_v17, %v5132_v50 }
 0x138   :  { %v5334_v23 = vsel %vm444_vm3, %v470_v4, %v5226_v53  ;;  %v2170_v49 = vrot.slane %v2168_v25, 7  ;;  %v2290_v12 = vrot.slane %v2283_v1, %v5132_v50  ;;  %v496_v24 = vshll.u32 %v494_v20, 16 }
 0x139   :  { %v5349_v46 = vsel %vm444_vm3, %v472_v5, %v5208_v37  ;;  %v2178_v57 = vrot.slane %v2176_v13, 7  ;;  %v2340_v38 = vshrl.u32 %v2266_v28, 16  ;;  %v2343_v42 = vshll.u32 %v2266_v28, 16  ;;  %v2384_v28 = vld [vmem:[#allocation8 + $0x2c] sm:$0x1] }
 0x13a   :  { %v5359_v43 = vsel %vm444_vm3, %v494_v20, %v5237_v59  ;;  %v2173_v11 = vor.u32 %v2171_v36, %v2170_v49  ;;  %v2174_v52 = vrot.slane %v2170_v49, 4  ;;  %v2348_v18 = vshrl.u32 %v2290_v12, 16  ;;  %v2380_v20 = vld [vmem:[#allocation8 + $0x24] sm:$0xf]  ;;  %v5379_v49 = vpop.f32.mrb[13].mxu1 }
 0x13b   :  { %v2351_v10 = vshll.u32 %v2290_v12, 16  ;;  %v2181_v32 = vor.u32 %v2179_v21, %v2178_v57  ;;  %v2183_v47 = vrot.slane %v2178_v57, 4  ;;  %v2342_v4 = vrot.slane %v2340_v38, 7 }
 0x13c   :  { %v498_v63 = vsel %vm444_vm3, %v496_v24, %v5211_v39  ;;  %v2212_v59 = vsel %vm5342_vm7, %v2173_v11, %v2211_v58  ;;  %v2350_v17 = vrot.slane %v2348_v18, 7  ;;  %v520_v25 = vshll.u32 %v518_v6, 16  ;;  %v5377_v39 = vpop.f32.mrb[13].mxu0 }
 0x13d   :  { %v532_v36 = vsel %vm444_vm3, %v518_v6, %v5240_v0  ;;  %v2182_v1 = vsel %vm5353_vm8, %v2174_v52, %v2181_v32  ;;  %2213 = vst [vmem:[#allocation8 + $0xc] sm:$0xf] %v2212_v59  ;;  %v2218_v5 = vsel %vm5363_vm9, %v2183_v47, %v2217_v48  ;;  %v2345_v13 = vor.u32 %v2343_v42, %v2342_v4  ;;  %v5384_v57 = vpop.f32.mrb[14].mxu0 }
 0x13e   :  { %v2346_v21 = vrot.slane %v2342_v4, 4  ;;  %2214 = vst [vmem:[#allocation8 + $0x10] sm:$0xf] %v2182_v1  ;;  %2219 = vst [vmem:[#allocation8 + $0x14] sm:$0x1] %v2218_v5  ;;  %v2353_v12 = vor.u32 %v2351_v10, %v2350_v17  ;;  %v2355_v24 = vrot.slane %v2350_v17, 4  ;;  %v522_v0 = vsel %vm444_vm3, %v520_v25, %v5219_v44 }
 0x13f   :  { %v542_v6 = vrot.slane %v5134_v51, 4  ;;  %7388 = vst [vmem:[#allocation18_spill] sm:$0xff] %v5384_v57  ;;  %v2381_v58 = vsel %vm5342_vm7, %v2345_v13, %v2380_v20  ;;  %v566_v38 = vrot.slane %v5134_v51, 5  ;;  %v590_v42 = vrot.slane %v5134_v51, 6 }
 0x140   :  { %v614_v11 = vrot.slane %v5134_v51, 7  ;;  %v2354_v52 = vsel %vm5353_vm8, %v2346_v21, %v2353_v12  ;;  %2382 = vst [vmem:[#allocation8 + $0x24] sm:$0xf] %v2381_v58  ;;  %v2385_v44 = vsel %vm5363_vm9, %v2355_v24, %v2384_v28  ;;  %v3413_v25 = vcombine.low %v5319_v45, %v5334_v23 }
 0x141   :  { %v544_v48 = vshll.u32 %v542_v6, 16  ;;  %v556_v18 = vsel %vm444_vm3, %v542_v6, %v5249_v19  ;;  %2383 = vst [vmem:[#allocation8 + $0x28] sm:$0xf] %v2354_v52  ;;  %2386 = vst [vmem:[#allocation8 + $0x2c] sm:$0x1] %v2385_v44  ;;  %v568_v10 = vshll.u32 %v566_v38, 16  ;;  %v580_v32 = vsel %vm444_vm3, %v566_v38, %v5262_v35 }
 0x142   :  { %v592_v47 = vshll.u32 %v590_v42, 16  ;;  %v604_v51 = vsel %vm444_vm3, %v590_v42, %v5271_v55  ;;  %v616_v59 = vshll.u32 %v614_v11, 16  ;;  %v628_v17 = vsel %vm444_vm3, %v614_v11, %v5274_v56  ;;  %v5441_v38 = vpop.f32.mrb[14].mxu1 }
 0x143   :  { %v546_v4 = vsel %vm444_vm3, %v544_v48, %v5229_v54  ;;  %v3412_v19 = vcombine.low %v5325_v16, %v5349_v46  ;;  %v570_v20 = vsel %vm444_vm3, %v568_v10, %v5252_v22  ;;  %v3436_v55 = vcombine.low %v498_v63, %v522_v0  ;;  %7389 = vst [vmem:[#allocation19_spill] sm:$0xff] %v5441_v38 }
 0x144   :  { %v594_v35 = vsel %vm444_vm3, %v592_v47, %v5256_v29  ;;  %v618_v54 = vsel %vm444_vm3, %v616_v59, %v5259_v34  ;;  %v3437_v56 = vcombine.low %v5359_v43, %v532_v36  ;;  %v3579_v5 = vcombine.low %v546_v4, %v570_v20  ;;  %v3549_v59 = vld [vmem:[#allocation8 + $0x18] sm:$0xf] }
 0x145   :  { %v3420_v1 = vrot.slane %v3412_v19, %v5132_v50  ;;  %v3427_v16 = vrot.slane %v3413_v25, %v5132_v50  ;;  %v3444_v46 = vrot.slane %v3436_v55, %v5132_v50  ;;  %v3580_v22 = vcombine.low %v556_v18, %v580_v32  ;;  %v3553_v55 = vld [vmem:[#allocation8 + $0x20] sm:$0x1] }
 0x146   :  { %v3603_v13 = vcombine.low %v594_v35, %v618_v54  ;;  %v3451_v29 = vrot.slane %v3437_v56, %v5132_v50  ;;  %v3587_v21 = vrot.slane %v3579_v5, %v5132_v50  ;;  %v3604_v45 = vcombine.low %v604_v51, %v628_v17 }
 0x147   :  { %v226_v23 = vadd.f32 %v5139_v60, %v5112_v26  ;;  %v3428_v34 = vcombine.low %v3420_v1, %v3427_v16  ;;  %v3594_v63 = vrot.slane %v3580_v22, %v5132_v50  ;;  %v339_v36 = vadd.f32 %v5141_v61, %v5114_v27 }
 0x148   :  { %v3611_v43 = vrot.slane %v3603_v13, %v5132_v50  ;;  %v3452_v28 = vcombine.low %v3444_v46, %v3451_v29  ;;  %v3618_v12 = vrot.slane %v3604_v45, %v5132_v50  ;;  %v5430_v24 = vadd.f32 %v5152_v2, %v5116_v30  ;;  %v3716_v46 = vld [vmem:[#allocation8 + $0x30] sm:$0xf]  ;;  %v3720_v45 = vld [vmem:[#allocation8 + $0x38] sm:$0x1] }
 0x149   :  { %v5434_v0 = vadd.f32 %v5154_v3, %v5118_v31  ;;  %v3435_v60 = vrot.slane %v3428_v34, %v5132_v50  ;;  %v3595_v6 = vcombine.low %v3587_v21, %v3594_v63  ;;  %v230_v58 = vadd.f32 %v5162_v8, %v5112_v26  ;;  %v5472_v34 = vpop.f32.mrb[15].mxu0 }
 0x14a   :  { %v343_v61 = vadd.f32 %v5164_v9, %v5114_v27  ;;  %v3459_v42 = vrot.slane %v3452_v28, %v5132_v50  ;;  %v3619_v11 = vcombine.low %v3611_v43, %v3618_v12  ;;  %v5446_v2 = vadd.f32 %v5172_v14, %v5116_v30  ;;  %7390 = vst [vmem:[#allocation20_spill] sm:$0xff] %v5472_v34 }
 0x14b   :  { %v5450_v3 = vadd.f32 %v5174_v15, %v5118_v31  ;;  %v3509_v52 = vshrl.u32 %v3435_v60, 16  ;;  %v3512_v44 = vshll.u32 %v3435_v60, 16  ;;  %v3602_v8 = vrot.slane %v3595_v6, %v5132_v50 }
 0x14c   :  { %v5453_v48 = vpack.c.bf16 %v230_v58, %v226_v23  ;;  %v3517_v9 = vshrl.u32 %v3459_v42, 16  ;;  %v3520_v18 = vshll.u32 %v3459_v42, 16  ;;  %v3626_v10 = vrot.slane %v3619_v11, %v5132_v50 }
 0x14d   :  { %v5456_v32 = vpack.c.bf16 %v343_v61, %v339_v36  ;;  %v3511_v47 = vrot.slane %v3509_v52, 7  ;;  %v3676_v51 = vshrl.u32 %v3602_v8, 16  ;;  %v3679_v14 = vshll.u32 %v3602_v8, 16 }
 0x14e   :  { %v5460_v4 = vsel %vm439_vm2, %v5453_v48, 0  ;;  %v3519_v15 = vrot.slane %v3517_v9, 7  ;;  %v3684_v17 = vshrl.u32 %v3626_v10, 16  ;;  %v3687_v19 = vshll.u32 %v3626_v10, 16 }
 0x14f   :  { %v640_v20 = vshrl.u32 %v5453_v48, 16  ;;  %v3514_v35 = vor.u32 %v3512_v44, %v3511_v47  ;;  %v3515_v25 = vrot.slane %v3511_v47, 4  ;;  %v3678_v54 = vrot.slane %v3676_v51, 7 }
 0x150   :  { %v649_v1 = vrot.slane %v5453_v48, 1  ;;  %v3522_v56 = vor.u32 %v3520_v18, %v3519_v15  ;;  %v3524_v5 = vrot.slane %v3519_v15, 4  ;;  %v3686_v16 = vrot.slane %v3684_v17, 7 }
 0x151   :  { %v5465_v22 = vsel %vm439_vm2, %v640_v20, 0  ;;  %v3550_v13 = vsel %vm5342_vm7, %v3514_v35, %v3549_v59  ;;  %v3681_v29 = vor.u32 %v3679_v14, %v3678_v54  ;;  %v3682_v21 = vrot.slane %v3678_v54, 4 }
 0x152   :  { %v5470_v23 = vsel %vm439_vm2, %v649_v1, 0  ;;  %v3523_v63 = vsel %vm5353_vm8, %v3515_v25, %v3522_v56  ;;  %3551 = vst [vmem:[#allocation8 + $0x18] sm:$0xf] %v3550_v13  ;;  %v3554_v43 = vsel %vm5363_vm9, %v3524_v5, %v3553_v55  ;;  %v3689_v36 = vor.u32 %v3687_v19, %v3686_v16 }
 0x153   :  { %v3691_v28 = vrot.slane %v3686_v16, 4  ;;  %3552 = vst [vmem:[#allocation8 + $0x1c] sm:$0xf] %v3523_v63  ;;  %3555 = vst [vmem:[#allocation8 + $0x20] sm:$0x1] %v3554_v43  ;;  %v3717_v12 = vsel %vm5342_vm7, %v3681_v29, %v3716_v46  ;;  %v664_v60 = vshrl.u32 %v649_v1, 16 }
 0x154   :  { %v673_v6 = vrot.slane %v5453_v48, 2  ;;  %v697_v58 = vrot.slane %v5453_v48, 3  ;;  %v3690_v61 = vsel %vm5353_vm8, %v3682_v21, %v3689_v36  ;;  %3718 = vst [vmem:[#allocation8 + $0x30] sm:$0xf] %v3717_v12  ;;  %v721_v11 = vrot.slane %v5453_v48, 4 }
 0x155   :  { %v3721_v42 = vsel %vm5363_vm9, %v3691_v28, %v3720_v45  ;;  %v745_v52 = vrot.slane %v5453_v48, 5  ;;  %3719 = vst [vmem:[#allocation8 + $0x34] sm:$0xf] %v3690_v61  ;;  %v5489_v44 = vsel %vm439_vm2, %v664_v60, 0  ;;  %v769_v17 = vrot.slane %v5453_v48, 6 }
 0x156   :  { %3722 = vst [vmem:[#allocation8 + $0x38] sm:$0x1] %v3721_v42  ;;  %v5492_v8 = vsel %vm439_vm2, %v673_v6, 0  ;;  %v688_v9 = vshrl.u32 %v673_v6, 16  ;;  %v5495_v18 = vsel %vm439_vm2, %v697_v58, 0  ;;  %v712_v10 = vshrl.u32 %v697_v58, 16 }
 0x157   :  { %v5498_v47 = vsel %vm439_vm2, %v721_v11, 0  ;;  %v736_v51 = vshrl.u32 %v721_v11, 16  ;;  %v5501_v14 = vsel %vm439_vm2, %v745_v52, 0  ;;  %v760_v59 = vshrl.u32 %v745_v52, 16 }
 0x158   :  { %v690_v15 = vsel %vm439_vm2, %v688_v9, 0  ;;  %v793_v19 = vrot.slane %v5453_v48, 7  ;;  %v714_v20 = vsel %vm439_vm2, %v712_v10, 0  ;;  %v5510_v25 = vsel %vm439_vm2, %v5456_v32, 0  ;;  %v5522_v48 = vpop.f32.mrb[15].mxu1 }
 0x159   :  { %v738_v35 = vsel %vm439_vm2, %v736_v51, 0  ;;  %v645_v55 = vshrl.u32 %v5456_v32, 16  ;;  %v5514_v54 = vsel %vm439_vm2, %v760_v59, 0  ;;  %v5517_v1 = vsel %vm439_vm2, %v769_v17, 0  ;;  %7391 = vst [vmem:[#allocation21_spill] sm:$0xff] %v5522_v48 }
 0x15a   :  { %v784_v56 = vshrl.u32 %v769_v17, 16  ;;  %v5520_v5 = vsel %vm439_vm2, %v793_v19, 0  ;;  %v808_v16 = vshrl.u32 %v793_v19, 16  ;;  %v656_v13 = vrot.slane %v5456_v32, 1 }
 0x15b   :  { %v5525_v46 = vsel %vm439_vm2, %v645_v55, 0  ;;  %v680_v29 = vrot.slane %v5456_v32, 2  ;;  %v704_v45 = vrot.slane %v5456_v32, 3  ;;  %v728_v63 = vrot.slane %v5456_v32, 4 }
 0x15c   :  { %v786_v21 = vsel %vm439_vm2, %v784_v56, 0  ;;  %v752_v43 = vrot.slane %v5456_v32, 5  ;;  %v810_v36 = vsel %vm439_vm2, %v808_v16, 0  ;;  %v5535_v28 = vsel %vm439_vm2, %v656_v13, 0 }
 0x15d   :  { %v669_v12 = vshrl.u32 %v656_v13, 16  ;;  %v5538_v60 = vsel %vm439_vm2, %v680_v29, 0  ;;  %v693_v6 = vshrl.u32 %v680_v29, 16  ;;  %v5541_v58 = vsel %vm439_vm2, %v704_v45, 0 }
 0x15e   :  { %v717_v61 = vshrl.u32 %v704_v45, 16  ;;  %v5544_v42 = vsel %vm439_vm2, %v728_v63, 0  ;;  %v741_v52 = vshrl.u32 %v728_v63, 16  ;;  %v5550_v9 = vsel %vm439_vm2, %v752_v43, 0 }
 0x15f   :  { %v5547_v11 = vsel %vm439_vm2, %v669_v12, 0  ;;  %v765_v10 = vshrl.u32 %v752_v43, 16  ;;  %v5553_v51 = vsel %vm439_vm2, %v693_v6, 0  ;;  %v776_v17 = vrot.slane %v5456_v32, 6 }
 0x160   :  { %v5556_v59 = vsel %vm439_vm2, %v717_v61, 0  ;;  %v800_v19 = vrot.slane %v5456_v32, 7  ;;  %v5561_v55 = vsel %vm439_vm2, %v741_v52, 0  ;;  %v412_v16 = vpack.c.bf16 %v5446_v2, %v5430_v24 }
 0x161   :  { %v5564_v56 = vsel %vm439_vm2, %v765_v10, 0  ;;  %v5570_v13 = vpack.c.bf16 %v5450_v3, %v5434_v0  ;;  %v5573_v29 = vsel %vm439_vm2, %v776_v17, 0  ;;  %v789_v45 = vshrl.u32 %v776_v17, 16 }
 0x162   :  { %v5576_v63 = vsel %vm439_vm2, %v800_v19, 0  ;;  %v813_v32 = vshrl.u32 %v800_v19, 16  ;;  %v631_v43 = vshll.u32 %v412_v16, 16  ;;  %v643_v12 = vsel %vm444_vm3, %v412_v16, %v5465_v22 }
 0x163   :  { %v651_v6 = vrot.slane %v412_v16, 1  ;;  %v675_v61 = vrot.slane %v412_v16, 2  ;;  %v5581_v24 = vsel %vm439_vm2, %v789_v45, 0  ;;  %v699_v2 = vrot.slane %v412_v16, 3 }
 0x164   :  { %v5584_v0 = vsel %vm439_vm2, %v813_v32, 0  ;;  %v723_v3 = vrot.slane %v412_v16, 4  ;;  %v633_v52 = vsel %vm444_vm3, %v631_v43, %v5460_v4  ;;  %v747_v4 = vrot.slane %v412_v16, 5 }
 0x165   :  { %v653_v10 = vshll.u32 %v651_v6, 16  ;;  %v667_v17 = vsel %vm444_vm3, %v651_v6, %v5489_v44  ;;  %v677_v19 = vshll.u32 %v675_v61, 16  ;;  %v691_v22 = vsel %vm444_vm3, %v675_v61, %v690_v15 }
 0x166   :  { %v701_v48 = vshll.u32 %v699_v2, 16  ;;  %v715_v34 = vsel %vm444_vm3, %v699_v2, %v714_v20  ;;  %v725_v45 = vshll.u32 %v723_v3, 16  ;;  %v739_v57 = vsel %vm444_vm3, %v723_v3, %v738_v35 }
 0x167   :  { %v655_v32 = vsel %vm444_vm3, %v653_v10, %v5470_v23  ;;  %v679_v38 = vsel %vm444_vm3, %v677_v19, %v5492_v8  ;;  %v771_v15 = vrot.slane %v412_v16, 6  ;;  %v795_v6 = vrot.slane %v412_v16, 7 }
 0x168   :  { %v703_v43 = vsel %vm444_vm3, %v701_v48, %v5495_v18  ;;  %v727_v44 = vsel %vm444_vm3, %v725_v45, %v5498_v47  ;;  %v749_v61 = vshll.u32 %v747_v4, 16  ;;  %v763_v20 = vsel %vm444_vm3, %v747_v4, %v5514_v54 }
 0x169   :  { %v2410_v2 = vcombine.low %v633_v52, %v655_v32  ;;  %v2411_v23 = vcombine.low %v643_v12, %v667_v17  ;;  %v773_v10 = vshll.u32 %v771_v15, 16  ;;  %v787_v8 = vsel %vm444_vm3, %v771_v15, %v786_v21 }
 0x16a   :  { %v797_v19 = vshll.u32 %v795_v6, 16  ;;  %v811_v35 = vsel %vm444_vm3, %v795_v6, %v810_v36  ;;  %v751_v18 = vsel %vm444_vm3, %v749_v61, %v5501_v14  ;;  %v2434_v16 = vcombine.low %v679_v38, %v703_v43 }
 0x16b   :  { %v2418_v48 = vrot.slane %v2410_v2, %v5132_v50  ;;  %v2425_v47 = vrot.slane %v2411_v23, %v5132_v50  ;;  %v775_v3 = vsel %vm444_vm3, %v773_v10, %v5517_v1  ;;  %v2435_v12 = vcombine.low %v691_v22, %v715_v34 }
 0x16c   :  { %v799_v54 = vsel %vm444_vm3, %v797_v19, %v5520_v5  ;;  %v2577_v52 = vcombine.low %v727_v44, %v751_v18  ;;  %v2442_v17 = vrot.slane %v2434_v16, %v5132_v50  ;;  %v2578_v36 = vcombine.low %v739_v57, %v763_v20  ;;  %v2547_v16 = vld [vmem:[#allocation8 + $0x3c] sm:$0xf] }
 0x16d   :  { %v2426_v21 = vcombine.low %v2418_v48, %v2425_v47  ;;  %v2601_v45 = vcombine.low %v775_v3, %v799_v54  ;;  %v2449_v14 = vrot.slane %v2435_v12, %v5132_v50  ;;  %v2602_v4 = vcombine.low %v787_v8, %v811_v35  ;;  %v5645_v12 = vpop.f32.mrb[16].mxu0 }
 0x16e   :  { %v2585_v32 = vrot.slane %v2577_v52, %v5132_v50  ;;  %v636_v38 = vshll.u32 %v5570_v13, 16  ;;  %v2592_v1 = vrot.slane %v2578_v36, %v5132_v50  ;;  %v5623_v34 = vsel %vm444_vm3, %v5570_v13, %v5525_v46 }
 0x16f   :  { %v2433_v43 = vrot.slane %v2426_v21, %v5132_v50  ;;  %v2609_v5 = vrot.slane %v2601_v45, %v5132_v50  ;;  %v2450_v57 = vcombine.low %v2442_v17, %v2449_v14  ;;  %v2616_v22 = vrot.slane %v2602_v4, %v5132_v50  ;;  %v2551_v4 = vld [vmem:[#allocation8 + $0x44] sm:$0x1] }
 0x170   :  { %v5628_v44 = vsel %vm444_vm3, %v636_v38, %v5510_v25  ;;  %v658_v15 = vrot.slane %v5570_v13, 1  ;;  %v2593_v20 = vcombine.low %v2585_v32, %v2592_v1  ;;  %v682_v2 = vrot.slane %v5570_v13, 2 }
 0x171   :  { %v2507_v6 = vshrl.u32 %v2433_v43, 16  ;;  %v2510_v61 = vshll.u32 %v2433_v43, 16  ;;  %v2457_v23 = vrot.slane %v2450_v57, %v5132_v50  ;;  %v2617_v10 = vcombine.low %v2609_v5, %v2616_v22  ;;  %v2714_v22 = vld [vmem:[#allocation8 + $0x54] sm:$0xf] }
 0x172   :  { %v660_v8 = vshll.u32 %v658_v15, 16  ;;  %v5635_v46 = vsel %vm444_vm3, %v658_v15, %v5547_v11  ;;  %v2600_v35 = vrot.slane %v2593_v20, %v5132_v50  ;;  %v684_v25 = vshll.u32 %v682_v2, 16  ;;  %v2718_v20 = vld [vmem:[#allocation8 + $0x5c] sm:$0x1] }
 0x173   :  { %v2509_v19 = vrot.slane %v2507_v6, 7  ;;  %v5640_v18 = vsel %vm444_vm3, %v682_v2, %v5553_v51  ;;  %v2515_v48 = vshrl.u32 %v2457_v23, 16  ;;  %v2518_v47 = vshll.u32 %v2457_v23, 16  ;;  %v5654_v6 = vpop.f32.mrb[16].mxu1 }
 0x174   :  { %v2624_v3 = vrot.slane %v2617_v10, %v5132_v50  ;;  %v662_v54 = vsel %vm444_vm3, %v660_v8, %v5535_v28  ;;  %v2674_v21 = vshrl.u32 %v2600_v35, 16  ;;  %v2677_v17 = vshll.u32 %v2600_v35, 16  ;;  %7392 = vst [vmem:[#allocation22_spill] sm:$0xff] %v5654_v6  ;;  %v5658_v10 = vpop.f32.mrb[17].mxu0 }
 0x175   :  { %v2512_v11 = vor.u32 %v2510_v61, %v2509_v19  ;;  %v2513_v52 = vrot.slane %v2509_v19, 4  ;;  %v2517_v36 = vrot.slane %v2515_v48, 7  ;;  %v686_v51 = vsel %vm444_vm3, %v684_v25, %v5538_v60  ;;  %7393 = vst [vmem:[#allocation23_spill] sm:$0xff] %v5658_v10  ;;  %v5664_v48 = vpop.f32.mrb[17].mxu1 }
 0x176   :  { %v2682_v45 = vshrl.u32 %v2624_v3, 16  ;;  %v2685_v14 = vshll.u32 %v2624_v3, 16  ;;  %v2676_v38 = vrot.slane %v2674_v21, 7  ;;  %v706_v43 = vrot.slane %v5570_v13, 3  ;;  %7394 = vst [vmem:[#allocation24_spill] sm:$0xff] %v5664_v48 }
 0x177   :  { %v2548_v32 = vsel %vm5342_vm7, %v2512_v11, %v2547_v16  ;;  %v730_v28 = vrot.slane %v5570_v13, 4  ;;  %v2520_v1 = vor.u32 %v2518_v47, %v2517_v36  ;;  %v2522_v5 = vrot.slane %v2517_v36, 4  ;;  %v5672_v11 = vpop.f32.mrb[18].mxu0 }
 0x178   :  { %2549 = vst [vmem:[#allocation8 + $0x3c] sm:$0xf] %v2548_v32  ;;  %v2684_v57 = vrot.slane %v2682_v45, 7  ;;  %v754_v15 = vrot.slane %v5570_v13, 5  ;;  %v2679_v61 = vor.u32 %v2677_v17, %v2676_v38  ;;  %v2680_v60 = vrot.slane %v2676_v38, 4  ;;  %7395 = vst [vmem:[#allocation25_spill] sm:$0xff] %v5672_v11 }
 0x179   :  { %v708_v2 = vshll.u32 %v706_v43, 16  ;;  %v720_v23 = vsel %vm444_vm3, %v706_v43, %v5556_v59  ;;  %v2521_v8 = vsel %vm5353_vm8, %v2513_v52, %v2520_v1  ;;  %v2552_v19 = vsel %vm5363_vm9, %v2522_v5, %v2551_v4 }
 0x17a   :  { %v2687_v35 = vor.u32 %v2685_v14, %v2684_v57  ;;  %v2689_v25 = vrot.slane %v2684_v57, 4  ;;  %2550 = vst [vmem:[#allocation8 + $0x40] sm:$0xf] %v2521_v8  ;;  %2553 = vst [vmem:[#allocation8 + $0x44] sm:$0x1] %v2552_v19  ;;  %v2715_v47 = vsel %vm5342_vm7, %v2679_v61, %v2714_v22  ;;  %v732_v16 = vshll.u32 %v730_v28, 16 }
 0x17b   :  { %v710_v59 = vsel %vm444_vm3, %v708_v2, %v5541_v58  ;;  %v744_v3 = vsel %vm444_vm3, %v730_v28, %v5561_v55  ;;  %2716 = vst [vmem:[#allocation8 + $0x54] sm:$0xf] %v2715_v47  ;;  %v756_v17 = vshll.u32 %v754_v15, 16  ;;  %v768_v36 = vsel %vm444_vm3, %v754_v15, %v5564_v56  ;;  %v7397_v19 = vld [vmem:[#allocation12_spill] sm:$0xff] }
 0x17c   :  { %v2688_v52 = vsel %vm5353_vm8, %v2680_v60, %v2687_v35  ;;  %v2719_v21 = vsel %vm5363_vm9, %v2689_v25, %v2718_v20  ;;  %v734_v58 = vsel %vm444_vm3, %v732_v16, %v5544_v42  ;;  %v778_v55 = vrot.slane %v5570_v13, 6 }
 0x17d   :  { %2717 = vst [vmem:[#allocation8 + $0x58] sm:$0xf] %v2688_v52  ;;  %2720 = vst [vmem:[#allocation8 + $0x5c] sm:$0x1] %v2719_v21  ;;  %v802_v45 = vrot.slane %v5570_v13, 7  ;;  %v3746_v14 = vcombine.low %v5628_v44, %v662_v54  ;;  %v758_v32 = vsel %vm444_vm3, %v756_v17, %v5550_v9  ;;  %v3747_v4 = vcombine.low %v5623_v34, %v5635_v46 }
 0x17e   :  { %v3770_v38 = vcombine.low %v686_v51, %v710_v59  ;;  %v3771_v56 = vcombine.low %v5640_v18, %v720_v23  ;;  %v780_v43 = vshll.u32 %v778_v55, 16  ;;  %v792_v28 = vsel %vm444_vm3, %v778_v55, %v5581_v24  ;;  %v5714_v23 = vpop.f32.mrb[18].mxu1 }
 0x17f   :  { %v804_v42 = vshll.u32 %v802_v45, 16  ;;  %v816_v1 = vsel %vm444_vm3, %v802_v45, %v5584_v0  ;;  %v3754_v13 = vrot.slane %v3746_v14, %v5132_v50  ;;  %v3761_v44 = vrot.slane %v3747_v4, %v5132_v50  ;;  %7396 = vst [vmem:[#allocation26_spill] sm:$0xff] %v5714_v23  ;;  %v7401_v4 = vld [vmem:[#allocation16_spill] sm:$0xff] }
 0x180   :  { %v3778_v9 = vrot.slane %v3770_v38, %v5132_v50  ;;  %v3785_v54 = vrot.slane %v3771_v56, %v5132_v50  ;;  %v782_v34 = vsel %vm444_vm3, %v780_v43, %v5573_v29  ;;  %v3913_v18 = vcombine.low %v734_v58, %v758_v32  ;;  %v7400_v58 = vld [vmem:[#allocation15_spill] sm:$0xff]  ;;  %v7402_v56 = vld [vmem:[#allocation17_spill] sm:$0xff] }
 0x181   :  { %v806_v46 = vsel %vm444_vm3, %v804_v42, %v5576_v63  ;;  %v3914_v24 = vcombine.low %v744_v3, %v768_v36  ;;  %v3762_v51 = vcombine.low %v3754_v13, %v3761_v44  ;;  %v3938_v0 = vcombine.low %v792_v28, %v816_v1  ;;  %v3883_v32 = vld [vmem:[#allocation8 + $0x48] sm:$0xf]  ;;  %v3887_v28 = vld [vmem:[#allocation8 + $0x50] sm:$0x1] }
 0x182   :  { %v3786_v5 = vcombine.low %v3778_v9, %v3785_v54  ;;  %v3937_v57 = vcombine.low %v782_v34, %v806_v46  ;;  %v3921_v22 = vrot.slane %v3913_v18, %v5132_v50  ;;  %v236_v61 = vadd.f32 %v5213_v40, %v5112_v26  ;;  %v7398_v40 = vld [vmem:[#allocation13_spill] sm:$0xff] }
 0x183   :  { %v3928_v15 = vrot.slane %v3914_v24, %v5132_v50  ;;  %v5708_v60 = vadd.f32 %v5215_v41, %v5114_v27  ;;  %v3769_v29 = vrot.slane %v3762_v51, %v5132_v50  ;;  %v3952_v2 = vrot.slane %v3938_v0, %v5132_v50  ;;  %v7399_v41 = vld [vmem:[#allocation14_spill] sm:$0xff] }
 0x184   :  { %v3793_v63 = vrot.slane %v3786_v5, %v5132_v50  ;;  %v3945_v20 = vrot.slane %v3937_v57, %v5132_v50  ;;  %v5718_v35 = vadd.f32 %v7397_v19, %v5116_v30  ;;  %v5722_v25 = vadd.f32 %v7398_v40, %v5118_v31  ;;  %v4054_v19 = vld [vmem:[#allocation8 + $0x68] sm:$0x1] }
 0x185   :  { %v3929_v8 = vcombine.low %v3921_v22, %v3928_v15  ;;  %v240_v47 = vadd.f32 %v7399_v41, %v5112_v26  ;;  %v3843_v59 = vshrl.u32 %v3769_v29, 16  ;;  %v3846_v16 = vshll.u32 %v3769_v29, 16  ;;  %v4050_v15 = vld [vmem:[#allocation8 + $0x60] sm:$0xf] }
 0x186   :  { %v3851_v3 = vshrl.u32 %v3793_v63, 16  ;;  %v3854_v52 = vshll.u32 %v3793_v63, 16  ;;  %v3953_v17 = vcombine.low %v3945_v20, %v3952_v2  ;;  %v353_v55 = vadd.f32 %v7400_v58, %v5114_v27 }
 0x187   :  { %v3936_v21 = vrot.slane %v3929_v8, %v5132_v50  ;;  %v5727_v36 = vpack.c.bf16 %v240_v47, %v236_v61  ;;  %v3845_v45 = vrot.slane %v3843_v59, 7  ;;  %v242_v38 = vadd.f32 %v7401_v4, %v5116_v30  ;;  %v5753_v8 = vpop.f32.mrb[19].mxu0 }
 0x188   :  { %v3853_v14 = vrot.slane %v3851_v3, 7  ;;  %v5735_v43 = vadd.f32 %v7402_v56, %v5118_v31  ;;  %v3960_v42 = vrot.slane %v3953_v17, %v5132_v50  ;;  %7403 = vst [vmem:[#allocation12_spill] sm:$0xff] %v5753_v8 }
 0x189   :  { %v4010_v1 = vshrl.u32 %v3936_v21, 16  ;;  %v4013_v13 = vshll.u32 %v3936_v21, 16  ;;  %v5740_v44 = vsel %vm439_vm2, %v5727_v36, 0  ;;  %v3848_v9 = vor.u32 %v3846_v16, %v3845_v45 }
 0x18a   :  { %v3849_v54 = vrot.slane %v3845_v45, 4  ;;  %v3856_v34 = vor.u32 %v3854_v52, %v3853_v14  ;;  %v3858_v46 = vrot.slane %v3853_v14, 4  ;;  %v4018_v24 = vshrl.u32 %v3960_v42, 16 }
 0x18b   :  { %v4012_v18 = vrot.slane %v4010_v1, 7  ;;  %v4021_v51 = vshll.u32 %v3960_v42, 16  ;;  %v828_v5 = vshrl.u32 %v5727_v36, 16  ;;  %v3884_v0 = vsel %vm5342_vm7, %v3848_v9, %v3883_v32 }
 0x18c   :  { %v3857_v57 = vsel %vm5353_vm8, %v3849_v54, %v3856_v34  ;;  %v3888_v22 = vsel %vm5363_vm9, %v3858_v46, %v3887_v28  ;;  %v837_v61 = vrot.slane %v5727_v36, 1  ;;  %3885 = vst [vmem:[#allocation8 + $0x48] sm:$0xf] %v3884_v0  ;;  %v4020_v20 = vrot.slane %v4018_v24, 7  ;;  %v5795_v0 = vpop.f32.mrb[19].mxu1 }
 0x18d   :  { %3886 = vst [vmem:[#allocation8 + $0x4c] sm:$0xf] %v3857_v57  ;;  %3889 = vst [vmem:[#allocation8 + $0x50] sm:$0x1] %v3888_v22  ;;  %v4015_v29 = vor.u32 %v4013_v13, %v4012_v18  ;;  %v4016_v63 = vrot.slane %v4012_v18, 4  ;;  %v5751_v2 = vsel %vm439_vm2, %v828_v5, 0  ;;  %v417_v46 = vpack.c.bf16 %v353_v55, %v5708_v60 }
 0x18e   :  { %v5756_v40 = vsel %vm439_vm2, %v837_v61, 0  ;;  %v852_v41 = vshrl.u32 %v837_v61, 16  ;;  %v861_v47 = vrot.slane %v5727_v36, 2  ;;  %v885_v59 = vrot.slane %v5727_v36, 3  ;;  %7404 = vst [vmem:[#allocation13_spill] sm:$0xff] %v5795_v0 }
 0x18f   :  { %v4023_v16 = vor.u32 %v4021_v51, %v4020_v20  ;;  %v4025_v3 = vrot.slane %v4020_v20, 4  ;;  %v4051_v52 = vsel %vm5342_vm7, %v4015_v29, %v4050_v15  ;;  %v909_v21 = vrot.slane %v5727_v36, 4 }
 0x190   :  { %4052 = vst [vmem:[#allocation8 + $0x60] sm:$0xf] %v4051_v52  ;;  %v5764_v17 = vsel %vm439_vm2, %v852_v41, 0  ;;  %v5767_v58 = vsel %vm439_vm2, %v861_v47, 0  ;;  %v876_v45 = vshrl.u32 %v861_v47, 16  ;;  %v5770_v14 = vsel %vm439_vm2, %v885_v59, 0 }
 0x191   :  { %v4024_v32 = vsel %vm5353_vm8, %v4016_v63, %v4023_v16  ;;  %v4055_v4 = vsel %vm5363_vm9, %v4025_v3, %v4054_v19  ;;  %v900_v56 = vshrl.u32 %v885_v59, 16  ;;  %v5777_v28 = vsel %vm439_vm2, %v909_v21, 0 }
 0x192   :  { %4053 = vst [vmem:[#allocation8 + $0x64] sm:$0xf] %v4024_v32  ;;  %4056 = vst [vmem:[#allocation8 + $0x68] sm:$0x1] %v4055_v4  ;;  %v878_v42 = vsel %vm439_vm2, %v876_v45, 0  ;;  %v924_v1 = vshrl.u32 %v909_v21, 16  ;;  %v5786_v18 = vpack.c.bf16 %v242_v38, %v5718_v35 }
 0x193   :  { %v933_v13 = vrot.slane %v5727_v36, 5  ;;  %v957_v9 = vrot.slane %v5727_v36, 6  ;;  %v902_v54 = vsel %vm439_vm2, %v900_v56, 0  ;;  %v981_v34 = vrot.slane %v5727_v36, 7 }
 0x194   :  { %v926_v24 = vsel %vm439_vm2, %v924_v1, 0  ;;  %v5801_v60 = vsel %vm439_vm2, %v417_v46, 0  ;;  %v833_v55 = vshrl.u32 %v417_v46, 16  ;;  %v844_v38 = vrot.slane %v417_v46, 1 }
 0x195   :  { %v5790_v51 = vsel %vm439_vm2, %v933_v13, 0  ;;  %v948_v5 = vshrl.u32 %v933_v13, 16  ;;  %v5793_v57 = vsel %vm439_vm2, %v957_v9, 0  ;;  %v972_v22 = vshrl.u32 %v957_v9, 16 }
 0x196   :  { %v5798_v15 = vsel %vm439_vm2, %v981_v34, 0  ;;  %v996_v36 = vshrl.u32 %v981_v34, 16  ;;  %v868_v61 = vrot.slane %v417_v46, 2  ;;  %v892_v20 = vrot.slane %v417_v46, 3 }
 0x197   :  { %v950_v35 = vsel %vm439_vm2, %v948_v5, 0  ;;  %v974_v29 = vsel %vm439_vm2, %v972_v22, 0  ;;  %v916_v19 = vrot.slane %v417_v46, 4  ;;  %v5807_v41 = vsel %vm439_vm2, %v833_v55, 0 }
 0x198   :  { %v998_v63 = vsel %vm439_vm2, %v996_v36, 0  ;;  %v5810_v47 = vsel %vm439_vm2, %v844_v38, 0  ;;  %v857_v59 = vshrl.u32 %v844_v38, 16  ;;  %v5813_v16 = vsel %vm439_vm2, %v868_v61, 0 }
 0x199   :  { %v881_v3 = vshrl.u32 %v868_v61, 16  ;;  %v5816_v52 = vsel %vm439_vm2, %v892_v20, 0  ;;  %v905_v21 = vshrl.u32 %v892_v20, 16  ;;  %v5819_v45 = vsel %vm439_vm2, %v916_v19, 0 }
 0x19a   :  { %v5822_v32 = vsel %vm439_vm2, %v857_v59, 0  ;;  %v929_v4 = vshrl.u32 %v916_v19, 16  ;;  %v940_v56 = vrot.slane %v417_v46, 5  ;;  %v964_v1 = vrot.slane %v417_v46, 6 }
 0x19b   :  { %v5825_v13 = vsel %vm439_vm2, %v881_v3, 0  ;;  %v5828_v9 = vsel %vm439_vm2, %v905_v21, 0  ;;  %v988_v34 = vrot.slane %v417_v46, 7  ;;  %v819_v5 = vshll.u32 %v5786_v18, 16 }
 0x19c   :  { %v5832_v22 = vsel %vm439_vm2, %v929_v4, 0  ;;  %v5835_v36 = vsel %vm439_vm2, %v940_v56, 0  ;;  %v953_v55 = vshrl.u32 %v940_v56, 16  ;;  %v5838_v38 = vsel %vm439_vm2, %v964_v1, 0 }
 0x19d   :  { %v977_v61 = vshrl.u32 %v964_v1, 16  ;;  %v5841_v20 = vsel %vm439_vm2, %v988_v34, 0  ;;  %v1001_v19 = vshrl.u32 %v988_v34, 16  ;;  %v821_v46 = vsel %vm444_vm3, %v819_v5, %v5740_v44 }
 0x19e   :  { %v5846_v59 = vsel %vm439_vm2, %v953_v55, 0  ;;  %v831_v3 = vsel %vm444_vm3, %v5786_v18, %v5751_v2  ;;  %v839_v21 = vrot.slane %v5786_v18, 1  ;;  %v863_v4 = vrot.slane %v5786_v18, 2 }
 0x19f   :  { %v5854_v56 = vsel %vm439_vm2, %v977_v61, 0  ;;  %v5857_v1 = vsel %vm439_vm2, %v1001_v19, 0  ;;  %v887_v34 = vrot.slane %v5786_v18, 3  ;;  %v911_v44 = vrot.slane %v5786_v18, 4 }
 0x1a0   :  { %v841_v5 = vshll.u32 %v839_v21, 16  ;;  %v855_v55 = vsel %vm444_vm3, %v839_v21, %v5764_v17  ;;  %v865_v0 = vshll.u32 %v863_v4, 16  ;;  %v879_v2 = vsel %vm444_vm3, %v863_v4, %v878_v42 }
 0x1a1   :  { %v889_v8 = vshll.u32 %v887_v34, 16  ;;  %v903_v23 = vsel %vm444_vm3, %v887_v34, %v902_v54  ;;  %v913_v11 = vshll.u32 %v911_v44, 16  ;;  %v927_v61 = vsel %vm444_vm3, %v911_v44, %v926_v24 }
 0x1a2   :  { %v843_v19 = vsel %vm444_vm3, %v841_v5, %v5756_v40  ;;  %v867_v48 = vsel %vm444_vm3, %v865_v0, %v5767_v58  ;;  %v935_v10 = vrot.slane %v5786_v18, 5  ;;  %v959_v6 = vrot.slane %v5786_v18, 6 }
 0x1a3   :  { %v891_v17 = vsel %vm444_vm3, %v889_v8, %v5770_v14  ;;  %v915_v42 = vsel %vm444_vm3, %v913_v11, %v5777_v28  ;;  %v983_v54 = vrot.slane %v5786_v18, 7  ;;  %v2744_v21 = vcombine.low %v821_v46, %v843_v19 }
 0x1a4   :  { %v937_v24 = vshll.u32 %v935_v10, 16  ;;  %v951_v4 = vsel %vm444_vm3, %v935_v10, %v950_v35  ;;  %v961_v40 = vshll.u32 %v959_v6, 16  ;;  %v975_v34 = vsel %vm444_vm3, %v959_v6, %v974_v29 }
 0x1a5   :  { %v985_v58 = vshll.u32 %v983_v54, 16  ;;  %v999_v0 = vsel %vm444_vm3, %v983_v54, %v998_v63  ;;  %v2745_v44 = vcombine.low %v831_v3, %v855_v55  ;;  %v2752_v5 = vrot.slane %v2744_v21, %v5132_v50 }
 0x1a6   :  { %v939_v8 = vsel %vm444_vm3, %v937_v24, %v5790_v51  ;;  %v963_v11 = vsel %vm444_vm3, %v961_v40, %v5793_v57  ;;  %v2768_v14 = vcombine.low %v867_v48, %v891_v17  ;;  %v2769_v28 = vcombine.low %v879_v2, %v903_v23 }
 0x1a7   :  { %v987_v10 = vsel %vm444_vm3, %v985_v58, %v5798_v15  ;;  %v2759_v18 = vrot.slane %v2745_v44, %v5132_v50  ;;  %v2911_v6 = vcombine.low %v915_v42, %v939_v8  ;;  %v2912_v35 = vcombine.low %v927_v61, %v951_v4  ;;  %v5920_v8 = vpop.f32.mrb[20].mxu1 }
 0x1a8   :  { %v2776_v29 = vrot.slane %v2768_v14, %v5132_v50  ;;  %v2783_v63 = vrot.slane %v2769_v28, %v5132_v50  ;;  %v2935_v46 = vcombine.low %v963_v11, %v987_v10  ;;  %v2936_v3 = vcombine.low %v975_v34, %v999_v0 }
 0x1a9   :  { %v2760_v55 = vcombine.low %v2752_v5, %v2759_v18  ;;  %v2919_v51 = vrot.slane %v2911_v6, %v5132_v50  ;;  %v2926_v57 = vrot.slane %v2912_v35, %v5132_v50  ;;  %v5894_v48 = vpack.c.bf16 %v5735_v43, %v5722_v25  ;;  %v5918_v5 = vpop.f32.mrb[20].mxu0  ;;  %v2881_v6 = vld [vmem:[#allocation8 + $0x6c] sm:$0xf] }
 0x1aa   :  { %v2784_v23 = vcombine.low %v2776_v29, %v2783_v63  ;;  %v2943_v15 = vrot.slane %v2935_v46, %v5132_v50  ;;  %v2950_v2 = vrot.slane %v2936_v3, %v5132_v50  ;;  %v5900_v61 = vadd.f32 %v5336_v62, %v5112_v26  ;;  %v2885_v3 = vld [vmem:[#allocation8 + $0x74] sm:$0x1] }
 0x1ab   :  { %v2767_v19 = vrot.slane %v2760_v55, %v5132_v50  ;;  %v2927_v17 = vcombine.low %v2919_v51, %v2926_v57  ;;  %v824_v42 = vshll.u32 %v5894_v48, 16  ;;  %v5907_v54 = vsel %vm444_vm3, %v5894_v48, %v5807_v41 }
 0x1ac   :  { %v2791_v25 = vrot.slane %v2784_v23, %v5132_v50  ;;  %v2951_v43 = vcombine.low %v2943_v15, %v2950_v2  ;;  %v846_v21 = vrot.slane %v5894_v48, 1  ;;  %v870_v24 = vrot.slane %v5894_v48, 2  ;;  %v3048_v2 = vld [vmem:[#allocation8 + $0x84] sm:$0xf] }
 0x1ad   :  { %v2841_v4 = vshrl.u32 %v2767_v19, 16  ;;  %v2844_v62 = vshll.u32 %v2767_v19, 16  ;;  %v2934_v40 = vrot.slane %v2927_v17, %v5132_v50  ;;  %v5915_v34 = vsel %vm444_vm3, %v824_v42, %v5801_v60 }
 0x1ae   :  { %v2849_v58 = vshrl.u32 %v2791_v25, 16  ;;  %v2852_v0 = vshll.u32 %v2791_v25, 16  ;;  %v2958_v41 = vrot.slane %v2951_v43, %v5132_v50  ;;  %v848_v44 = vshll.u32 %v846_v21, 16  ;;  %v3052_v25 = vld [vmem:[#allocation8 + $0x8c] sm:$0x1] }
 0x1af   :  { %v2843_v11 = vrot.slane %v2841_v4, 7  ;;  %v3008_v14 = vshrl.u32 %v2934_v40, 16  ;;  %v3011_v28 = vshll.u32 %v2934_v40, 16  ;;  %v5924_v10 = vsel %vm444_vm3, %v846_v21, %v5822_v32  ;;  %v5938_v40 = vpop.f32.mrb[21].mxu0 }
 0x1b0   :  { %v2851_v18 = vrot.slane %v2849_v58, 7  ;;  %v3016_v60 = vshrl.u32 %v2958_v41, 16  ;;  %v3019_v35 = vshll.u32 %v2958_v41, 16  ;;  %v850_v29 = vsel %vm444_vm3, %v848_v44, %v5810_v47  ;;  %v5947_v41 = vpop.f32.mrb[22].mxu0 }
 0x1b1   :  { %v2846_v63 = vor.u32 %v2844_v62, %v2843_v11  ;;  %v2847_v46 = vrot.slane %v2843_v11, 4  ;;  %v3010_v55 = vrot.slane %v3008_v14, 7  ;;  %v872_v51 = vshll.u32 %v870_v24, 16 }
 0x1b2   :  { %v2854_v57 = vor.u32 %v2852_v0, %v2851_v18  ;;  %v2856_v23 = vrot.slane %v2851_v18, 4  ;;  %v3018_v15 = vrot.slane %v3016_v60, 7  ;;  %v884_v32 = vsel %vm444_vm3, %v870_v24, %v5825_v13  ;;  %v5940_v13 = vpop.f32.mrb[21].mxu1 }
 0x1b3   :  { %v2882_v19 = vsel %vm5342_vm7, %v2846_v63, %v2881_v6  ;;  %v3013_v17 = vor.u32 %v3011_v28, %v3010_v55  ;;  %v3014_v42 = vrot.slane %v3010_v55, 4  ;;  %v874_v47 = vsel %vm444_vm3, %v872_v51, %v5813_v16 }
 0x1b4   :  { %v2855_v43 = vsel %vm5353_vm8, %v2847_v46, %v2854_v57  ;;  %2883 = vst [vmem:[#allocation8 + $0x6c] sm:$0xf] %v2882_v19  ;;  %v2886_v21 = vsel %vm5363_vm9, %v2856_v23, %v2885_v3  ;;  %v3021_v4 = vor.u32 %v3019_v35, %v3018_v15  ;;  %v3023_v62 = vrot.slane %v3018_v15, 4 }
 0x1b5   :  { %2884 = vst [vmem:[#allocation8 + $0x70] sm:$0xf] %v2855_v43  ;;  %2887 = vst [vmem:[#allocation8 + $0x74] sm:$0x1] %v2886_v21  ;;  %v3049_v24 = vsel %vm5342_vm7, %v3013_v17, %v3048_v2  ;;  %v894_v16 = vrot.slane %v5894_v48, 3  ;;  %v918_v58 = vrot.slane %v5894_v48, 4  ;;  %v4080_v23 = vcombine.low %v5915_v34, %v850_v29 }
 0x1b6   :  { %v942_v0 = vrot.slane %v5894_v48, 5  ;;  %v3022_v44 = vsel %vm5353_vm8, %v3014_v42, %v3021_v4  ;;  %3050 = vst [vmem:[#allocation8 + $0x84] sm:$0xf] %v3049_v24  ;;  %v3053_v11 = vsel %vm5363_vm9, %v3023_v62, %v3052_v25  ;;  %v966_v14 = vrot.slane %v5894_v48, 6  ;;  %v7405_v24 = vld [vmem:[#allocation18_spill] sm:$0xff] }
 0x1b7   :  { %v990_v28 = vrot.slane %v5894_v48, 7  ;;  %3051 = vst [vmem:[#allocation8 + $0x88] sm:$0xf] %v3022_v44  ;;  %3054 = vst [vmem:[#allocation8 + $0x8c] sm:$0x1] %v3053_v11  ;;  %v896_v18 = vshll.u32 %v894_v16, 16  ;;  %v908_v6 = vsel %vm444_vm3, %v894_v16, %v5828_v9  ;;  %v932_v35 = vsel %vm444_vm3, %v918_v58, %v5832_v22 }
 0x1b8   :  { %v920_v60 = vshll.u32 %v918_v58, 16  ;;  %v944_v63 = vshll.u32 %v942_v0, 16  ;;  %v956_v46 = vsel %vm444_vm3, %v942_v0, %v5846_v59  ;;  %v968_v3 = vshll.u32 %v966_v14, 16  ;;  %v7406_v58 = vld [vmem:[#allocation19_spill] sm:$0xff]  ;;  %v6001_v0 = vpop.f32.mrb[22].mxu1 }
 0x1b9   :  { %v980_v55 = vsel %vm444_vm3, %v966_v14, %v5854_v56  ;;  %v898_v48 = vsel %vm444_vm3, %v896_v18, %v5816_v52  ;;  %v992_v57 = vshll.u32 %v990_v28, 16  ;;  %v1004_v9 = vsel %vm444_vm3, %v990_v28, %v5857_v1  ;;  %7407 = vst [vmem:[#allocation14_spill] sm:$0xff] %v6001_v0 }
 0x1ba   :  { %v922_v51 = vsel %vm444_vm3, %v920_v60, %v5819_v45  ;;  %v946_v22 = vsel %vm444_vm3, %v944_v63, %v5835_v36  ;;  %v970_v59 = vsel %vm444_vm3, %v968_v3, %v5838_v38  ;;  %v4081_v56 = vcombine.low %v5907_v54, %v5924_v10 }
 0x1bb   :  { %v994_v52 = vsel %vm444_vm3, %v992_v57, %v5841_v20  ;;  %v4104_v15 = vcombine.low %v874_v47, %v898_v48  ;;  %v4105_v45 = vcombine.low %v884_v32, %v908_v6  ;;  %v4247_v2 = vcombine.low %v922_v51, %v946_v22 }
 0x1bc   :  { %v4088_v19 = vrot.slane %v4080_v23, %v5132_v50  ;;  %v4095_v1 = vrot.slane %v4081_v56, %v5132_v50  ;;  %v4248_v17 = vcombine.low %v932_v35, %v956_v46  ;;  %v4271_v36 = vcombine.low %v970_v59, %v994_v52  ;;  %v4217_v59 = vld [vmem:[#allocation8 + $0x78] sm:$0xf] }
 0x1bd   :  { %v4112_v42 = vrot.slane %v4104_v15, %v5132_v50  ;;  %v4119_v38 = vrot.slane %v4105_v45, %v5132_v50  ;;  %v4255_v34 = vrot.slane %v4247_v2, %v5132_v50  ;;  %v4272_v29 = vcombine.low %v980_v55, %v1004_v9  ;;  %v4221_v45 = vld [vmem:[#allocation8 + $0x80] sm:$0x1] }
 0x1be   :  { %v4096_v54 = vcombine.low %v4088_v19, %v4095_v1  ;;  %v4262_v10 = vrot.slane %v4248_v17, %v5132_v50  ;;  %v4279_v20 = vrot.slane %v4271_v36, %v5132_v50  ;;  %v359_v32 = vadd.f32 %v5338_v33, %v5114_v27 }
 0x1bf   :  { %v4120_v25 = vcombine.low %v4112_v42, %v4119_v38  ;;  %v4286_v47 = vrot.slane %v4272_v29, %v5132_v50  ;;  %v5990_v43 = vadd.f32 %v5377_v39, %v5116_v30  ;;  %v5994_v21 = vadd.f32 %v5379_v49, %v5118_v31  ;;  %v7408_v39 = vld [vmem:[#allocation20_spill] sm:$0xff]  ;;  %v7409_v49 = vld [vmem:[#allocation21_spill] sm:$0xff] }
 0x1c0   :  { %v4103_v4 = vrot.slane %v4096_v54, %v5132_v50  ;;  %v4263_v62 = vcombine.low %v4255_v34, %v4262_v10  ;;  %v250_v16 = vadd.f32 %v7405_v24, %v5112_v26  ;;  %v363_v33 = vadd.f32 %v7406_v58, %v5114_v27  ;;  %v4384_v42 = vld [vmem:[#allocation8 + $0x90] sm:$0xf]  ;;  %v4388_v10 = vld [vmem:[#allocation8 + $0x98] sm:$0x1] }
 0x1c1   :  { %v4127_v44 = vrot.slane %v4120_v25, %v5132_v50  ;;  %v4287_v11 = vcombine.low %v4279_v20, %v4286_v47  ;;  %v6006_v14 = vadd.f32 %v7408_v39, %v5116_v30  ;;  %v6010_v28 = vadd.f32 %v7409_v49, %v5118_v31 }
 0x1c2   :  { %v4177_v18 = vshrl.u32 %v4103_v4, 16  ;;  %v4180_v6 = vshll.u32 %v4103_v4, 16  ;;  %v4270_v60 = vrot.slane %v4263_v62, %v5132_v50  ;;  %v6014_v35 = vpack.c.bf16 %v250_v16, %v5900_v61 }
 0x1c3   :  { %v4185_v63 = vshrl.u32 %v4127_v44, 16  ;;  %v4188_v46 = vshll.u32 %v4127_v44, 16  ;;  %v4294_v3 = vrot.slane %v4287_v11, %v5132_v50  ;;  %v6017_v55 = vpack.c.bf16 %v363_v33, %v359_v32  ;;  %v6033_v32 = vpop.f32.mrb[23].mxu0 }
 0x1c4   :  { %v4179_v48 = vrot.slane %v4177_v18, 7  ;;  %v4344_v51 = vshrl.u32 %v4270_v60, 16  ;;  %v4347_v57 = vshll.u32 %v4270_v60, 16  ;;  %v6021_v9 = vsel %vm439_vm2, %v6014_v35, 0  ;;  %7410 = vst [vmem:[#allocation15_spill] sm:$0xff] %v6033_v32 }
 0x1c5   :  { %v4187_v22 = vrot.slane %v4185_v63, 7  ;;  %v4352_v23 = vshrl.u32 %v4294_v3, 16  ;;  %v4355_v56 = vshll.u32 %v4294_v3, 16  ;;  %v1016_v61 = vshrl.u32 %v6014_v35, 16 }
 0x1c6   :  { %v4182_v52 = vor.u32 %v4180_v6, %v4179_v48  ;;  %v4183_v15 = vrot.slane %v4179_v48, 4  ;;  %v4346_v2 = vrot.slane %v4344_v51, 7  ;;  %v1025_v19 = vrot.slane %v6014_v35, 1 }
 0x1c7   :  { %v4190_v1 = vor.u32 %v4188_v46, %v4187_v22  ;;  %v4192_v17 = vrot.slane %v4187_v22, 4  ;;  %v4354_v36 = vrot.slane %v4352_v23, 7  ;;  %v6026_v38 = vsel %vm439_vm2, %v1016_v61, 0 }
 0x1c8   :  { %v4218_v34 = vsel %vm5342_vm7, %v4182_v52, %v4217_v59  ;;  %v4349_v29 = vor.u32 %v4347_v57, %v4346_v2  ;;  %v4350_v54 = vrot.slane %v4346_v2, 4  ;;  %v6031_v20 = vsel %vm439_vm2, %v1025_v19, 0 }
 0x1c9   :  { %v4191_v25 = vsel %vm5353_vm8, %v4183_v15, %v4190_v1  ;;  %4219 = vst [vmem:[#allocation8 + $0x78] sm:$0xf] %v4218_v34  ;;  %v4222_v47 = vsel %vm5363_vm9, %v4192_v17, %v4221_v45  ;;  %v4357_v4 = vor.u32 %v4355_v56, %v4354_v36  ;;  %v4359_v62 = vrot.slane %v4354_v36, 4 }
 0x1ca   :  { %4220 = vst [vmem:[#allocation8 + $0x7c] sm:$0xf] %v4191_v25  ;;  %4223 = vst [vmem:[#allocation8 + $0x80] sm:$0x1] %v4222_v47  ;;  %v4385_v24 = vsel %vm5342_vm7, %v4349_v29, %v4384_v42  ;;  %v1040_v16 = vshrl.u32 %v1025_v19, 16  ;;  %v1049_v58 = vrot.slane %v6014_v35, 2 }
 0x1cb   :  { %v1073_v33 = vrot.slane %v6014_v35, 3  ;;  %v4358_v44 = vsel %vm5353_vm8, %v4350_v54, %v4357_v4  ;;  %4386 = vst [vmem:[#allocation8 + $0x90] sm:$0xf] %v4385_v24  ;;  %v4389_v11 = vsel %vm5363_vm9, %v4359_v62, %v4388_v10  ;;  %v1097_v39 = vrot.slane %v6014_v35, 4 }
 0x1cc   :  { %v1121_v49 = vrot.slane %v6014_v35, 5  ;;  %4387 = vst [vmem:[#allocation8 + $0x94] sm:$0xf] %v4358_v44  ;;  %4390 = vst [vmem:[#allocation8 + $0x98] sm:$0x1] %v4389_v11  ;;  %v6050_v18 = vsel %vm439_vm2, %v1040_v16, 0 }
 0x1cd   :  { %v6053_v6 = vsel %vm439_vm2, %v1049_v58, 0  ;;  %v1064_v60 = vshrl.u32 %v1049_v58, 16  ;;  %v6056_v63 = vsel %vm439_vm2, %v1073_v33, 0  ;;  %v1088_v46 = vshrl.u32 %v1073_v33, 16 }
 0x1ce   :  { %v6059_v3 = vsel %vm439_vm2, %v1097_v39, 0  ;;  %v1112_v48 = vshrl.u32 %v1097_v39, 16  ;;  %v6062_v51 = vsel %vm439_vm2, %v1121_v49, 0  ;;  %v1136_v22 = vshrl.u32 %v1121_v49, 16 }
 0x1cf   :  { %v1066_v57 = vsel %vm439_vm2, %v1064_v60, 0  ;;  %v1145_v59 = vrot.slane %v6014_v35, 6  ;;  %v1169_v23 = vrot.slane %v6014_v35, 7  ;;  %v1090_v56 = vsel %vm439_vm2, %v1088_v46, 0  ;;  %v6083_v35 = vpop.f32.mrb[23].mxu1 }
 0x1d0   :  { %v1114_v61 = vsel %vm439_vm2, %v1112_v48, 0  ;;  %v6071_v52 = vsel %vm439_vm2, %v6017_v55, 0  ;;  %v1021_v15 = vshrl.u32 %v6017_v55, 16  ;;  %v6075_v45 = vsel %vm439_vm2, %v1136_v22, 0  ;;  %7411 = vst [vmem:[#allocation16_spill] sm:$0xff] %v6083_v35 }
 0x1d1   :  { %v6078_v2 = vsel %vm439_vm2, %v1145_v59, 0  ;;  %v1160_v19 = vshrl.u32 %v1145_v59, 16  ;;  %v6081_v1 = vsel %vm439_vm2, %v1169_v23, 0  ;;  %v1184_v17 = vshrl.u32 %v1169_v23, 16 }
 0x1d2   :  { %v6086_v36 = vsel %vm439_vm2, %v1021_v15, 0  ;;  %v1032_v42 = vrot.slane %v6017_v55, 1  ;;  %v1056_v34 = vrot.slane %v6017_v55, 2  ;;  %v1080_v54 = vrot.slane %v6017_v55, 3 }
 0x1d3   :  { %v1162_v29 = vsel %vm439_vm2, %v1160_v19, 0  ;;  %v1104_v10 = vrot.slane %v6017_v55, 4  ;;  %v1128_v25 = vrot.slane %v6017_v55, 5  ;;  %v1186_v47 = vsel %vm439_vm2, %v1184_v17, 0 }
 0x1d4   :  { %v6096_v4 = vsel %vm439_vm2, %v1032_v42, 0  ;;  %v1045_v62 = vshrl.u32 %v1032_v42, 16  ;;  %v6099_v24 = vsel %vm439_vm2, %v1056_v34, 0  ;;  %v1069_v16 = vshrl.u32 %v1056_v34, 16 }
 0x1d5   :  { %v6102_v58 = vsel %vm439_vm2, %v1080_v54, 0  ;;  %v1093_v33 = vshrl.u32 %v1080_v54, 16  ;;  %v6105_v44 = vsel %vm439_vm2, %v1104_v10, 0  ;;  %v1117_v39 = vshrl.u32 %v1104_v10, 16 }
 0x1d6   :  { %v6108_v11 = vsel %vm439_vm2, %v1045_v62, 0  ;;  %v6111_v49 = vsel %vm439_vm2, %v1128_v25, 0  ;;  %v1141_v60 = vshrl.u32 %v1128_v25, 16  ;;  %v6114_v46 = vsel %vm439_vm2, %v1069_v16, 0 }
 0x1d7   :  { %v6117_v48 = vsel %vm439_vm2, %v1093_v33, 0  ;;  %v1152_v22 = vrot.slane %v6017_v55, 6  ;;  %v1176_v59 = vrot.slane %v6017_v55, 7  ;;  %v6122_v23 = vsel %vm439_vm2, %v1117_v39, 0 }
 0x1d8   :  { %v6125_v15 = vsel %vm439_vm2, %v1141_v60, 0  ;;  %v420_v19 = vpack.c.bf16 %v6006_v14, %v5990_v43  ;;  %v6131_v17 = vpack.c.bf16 %v6010_v28, %v5994_v21 }
 0x1d9   :  { %v6134_v42 = vsel %vm439_vm2, %v1152_v22, 0  ;;  %v1165_v34 = vshrl.u32 %v1152_v22, 16  ;;  %v6137_v54 = vsel %vm439_vm2, %v1176_v59, 0  ;;  %v1189_v55 = vshrl.u32 %v1176_v59, 16 }
 0x1da   :  { %v1007_v10 = vshll.u32 %v420_v19, 16  ;;  %v1019_v25 = vsel %vm444_vm3, %v420_v19, %v6026_v38  ;;  %v1027_v62 = vrot.slane %v420_v19, 1  ;;  %v1051_v16 = vrot.slane %v420_v19, 2 }
 0x1db   :  { %v6142_v43 = vsel %vm439_vm2, %v1165_v34, 0  ;;  %v6145_v21 = vsel %vm439_vm2, %v1189_v55, 0  ;;  %v1075_v14 = vrot.slane %v420_v19, 3  ;;  %v1099_v28 = vrot.slane %v420_v19, 4 }
 0x1dc   :  { %v1009_v33 = vsel %vm444_vm3, %v1007_v10, %v6021_v9  ;;  %v1029_v39 = vshll.u32 %v1027_v62, 16  ;;  %v1043_v60 = vsel %vm444_vm3, %v1027_v62, %v6050_v18  ;;  %v1053_v22 = vshll.u32 %v1051_v16, 16 }
 0x1dd   :  { %v1067_v38 = vsel %vm444_vm3, %v1051_v16, %v1066_v57  ;;  %v1077_v59 = vshll.u32 %v1075_v14, 16  ;;  %v1091_v35 = vsel %vm444_vm3, %v1075_v14, %v1090_v56  ;;  %v1101_v34 = vshll.u32 %v1099_v28, 16 }
 0x1de   :  { %v1031_v55 = vsel %vm444_vm3, %v1029_v39, %v6031_v20  ;;  %v1055_v32 = vsel %vm444_vm3, %v1053_v22, %v6053_v6  ;;  %v1115_v0 = vsel %vm444_vm3, %v1099_v28, %v1114_v61  ;;  %v1123_v9 = vrot.slane %v420_v19, 5 }
 0x1df   :  { %v1079_v10 = vsel %vm444_vm3, %v1077_v59, %v6056_v63  ;;  %v1103_v18 = vsel %vm444_vm3, %v1101_v34, %v6059_v3  ;;  %v1147_v57 = vrot.slane %v420_v19, 6  ;;  %v1171_v62 = vrot.slane %v420_v19, 7 }
 0x1e0   :  { %v1125_v16 = vshll.u32 %v1123_v9, 16  ;;  %v1139_v56 = vsel %vm444_vm3, %v1123_v9, %v6075_v45  ;;  %v3078_v14 = vcombine.low %v1009_v33, %v1031_v55  ;;  %v3079_v20 = vcombine.low %v1019_v25, %v1043_v60 }
 0x1e1   :  { %v1149_v39 = vshll.u32 %v1147_v57, 16  ;;  %v1163_v6 = vsel %vm444_vm3, %v1147_v57, %v1162_v29  ;;  %v1173_v22 = vshll.u32 %v1171_v62, 16  ;;  %v1187_v61 = vsel %vm444_vm3, %v1171_v62, %v1186_v47 }
 0x1e2   :  { %v1127_v63 = vsel %vm444_vm3, %v1125_v16, %v6062_v51  ;;  %v3086_v28 = vrot.slane %v3078_v14, %v5132_v50  ;;  %v3093_v3 = vrot.slane %v3079_v20, %v5132_v50  ;;  %v3102_v19 = vcombine.low %v1055_v32, %v1079_v10 }
 0x1e3   :  { %v1151_v59 = vsel %vm444_vm3, %v1149_v39, %v6078_v2  ;;  %v1175_v45 = vsel %vm444_vm3, %v1173_v22, %v6081_v1  ;;  %v3103_v25 = vcombine.low %v1067_v38, %v1091_v35  ;;  %v3245_v33 = vcombine.low %v1103_v18, %v1127_v63 }
 0x1e4   :  { %v3094_v29 = vcombine.low %v3086_v28, %v3093_v3  ;;  %v3110_v60 = vrot.slane %v3102_v19, %v5132_v50  ;;  %v3246_v47 = vcombine.low %v1115_v0, %v1139_v56  ;;  %v3269_v34 = vcombine.low %v1151_v59, %v1175_v45  ;;  %v3215_v19 = vld [vmem:[#allocation8 + $0x9c] sm:$0xf] }
 0x1e5   :  { %v3117_v51 = vrot.slane %v3103_v25, %v5132_v50  ;;  %v3253_v55 = vrot.slane %v3245_v33, %v5132_v50  ;;  %v3270_v9 = vcombine.low %v1163_v6, %v1187_v61  ;;  %v1012_v32 = vshll.u32 %v6131_v17, 16  ;;  %v6206_v25 = vpop.f32.mrb[24].mxu0 }
 0x1e6   :  { %v3101_v10 = vrot.slane %v3094_v29, %v5132_v50  ;;  %v3260_v2 = vrot.slane %v3246_v47, %v5132_v50  ;;  %v3277_v1 = vrot.slane %v3269_v34, %v5132_v50  ;;  %v6184_v35 = vsel %vm444_vm3, %v6131_v17, %v6086_v36  ;;  %7412 = vst [vmem:[#allocation17_spill] sm:$0xff] %v6206_v25 }
 0x1e7   :  { %v3118_v0 = vcombine.low %v3110_v60, %v3117_v51  ;;  %v3284_v38 = vrot.slane %v3270_v9, %v5132_v50  ;;  %v6189_v18 = vsel %vm444_vm3, %v1012_v32, %v6071_v52  ;;  %v1034_v57 = vrot.slane %v6131_v17, 1  ;;  %v3219_v9 = vld [vmem:[#allocation8 + $0xa4] sm:$0x1] }
 0x1e8   :  { %v3175_v62 = vshrl.u32 %v3101_v10, 16  ;;  %v3178_v16 = vshll.u32 %v3101_v10, 16  ;;  %v3261_v56 = vcombine.low %v3253_v55, %v3260_v2  ;;  %v1058_v14 = vrot.slane %v6131_v17, 2 }
 0x1e9   :  { %v3125_v20 = vrot.slane %v3118_v0, %v5132_v50  ;;  %v3285_v39 = vcombine.low %v3277_v1, %v3284_v38  ;;  %v1036_v6 = vshll.u32 %v1034_v57, 16  ;;  %v6196_v36 = vsel %vm444_vm3, %v1034_v57, %v6108_v11  ;;  %v3382_v38 = vld [vmem:[#allocation8 + $0xb4] sm:$0xf] }
 0x1ea   :  { %v3177_v22 = vrot.slane %v3175_v62, 7  ;;  %v3268_v61 = vrot.slane %v3261_v56, %v5132_v50  ;;  %v1060_v52 = vshll.u32 %v1058_v14, 16  ;;  %v6201_v63 = vsel %vm444_vm3, %v1058_v14, %v6114_v46  ;;  %v6215_v62 = vpop.f32.mrb[24].mxu1  ;;  %v3386_v56 = vld [vmem:[#allocation8 + $0xbc] sm:$0x1] }
 0x1eb   :  { %v3183_v28 = vshrl.u32 %v3125_v20, 16  ;;  %v3186_v3 = vshll.u32 %v3125_v20, 16  ;;  %v3292_v59 = vrot.slane %v3285_v39, %v5132_v50  ;;  %v1038_v45 = vsel %vm444_vm3, %v1036_v6, %v6096_v4  ;;  %7413 = vst [vmem:[#allocation18_spill] sm:$0xff] %v6215_v62  ;;  %v6219_v39 = vpop.f32.mrb[25].mxu0 }
 0x1ec   :  { %v3180_v11 = vor.u32 %v3178_v16, %v3177_v22  ;;  %v3181_v33 = vrot.slane %v3177_v22, 4  ;;  %v3342_v29 = vshrl.u32 %v3268_v61, 16  ;;  %v3345_v60 = vshll.u32 %v3268_v61, 16  ;;  %7414 = vst [vmem:[#allocation19_spill] sm:$0xff] %v6219_v39 }
 0x1ed   :  { %v3185_v47 = vrot.slane %v3183_v28, 7  ;;  %v3350_v34 = vshrl.u32 %v3292_v59, 16  ;;  %v3353_v51 = vshll.u32 %v3292_v59, 16  ;;  %v1062_v46 = vsel %vm444_vm3, %v1060_v52, %v6099_v24  ;;  %v6225_v28 = vpop.f32.mrb[25].mxu1 }
 0x1ee   :  { %v3216_v55 = vsel %vm5342_vm7, %v3180_v11, %v3215_v19  ;;  %v3344_v32 = vrot.slane %v3342_v29, 7  ;;  %v1082_v10 = vrot.slane %v6131_v17, 3  ;;  %v1106_v4 = vrot.slane %v6131_v17, 4  ;;  %7415 = vst [vmem:[#allocation20_spill] sm:$0xff] %v6225_v28  ;;  %v6233_v11 = vpop.f32.mrb[26].mxu0 }
 0x1ef   :  { %v3188_v2 = vor.u32 %v3186_v3, %v3185_v47  ;;  %v3190_v1 = vrot.slane %v3185_v47, 4  ;;  %3217 = vst [vmem:[#allocation8 + $0x9c] sm:$0xf] %v3216_v55  ;;  %v3352_v0 = vrot.slane %v3350_v34, 7  ;;  %v1130_v57 = vrot.slane %v6131_v17, 5  ;;  %7416 = vst [vmem:[#allocation21_spill] sm:$0xff] %v6233_v11 }
 0x1f0   :  { %v3347_v16 = vor.u32 %v3345_v60, %v3344_v32  ;;  %v3348_v24 = vrot.slane %v3344_v32, 4  ;;  %v1084_v14 = vshll.u32 %v1082_v10, 16  ;;  %v1096_v20 = vsel %vm444_vm3, %v1082_v10, %v6117_v48 }
 0x1f1   :  { %v3189_v6 = vsel %vm5353_vm8, %v3181_v33, %v3188_v2  ;;  %v3220_v22 = vsel %vm5363_vm9, %v3190_v1, %v3219_v9  ;;  %v3355_v61 = vor.u32 %v3353_v51, %v3352_v0  ;;  %v3357_v52 = vrot.slane %v3352_v0, 4 }
 0x1f2   :  { %3218 = vst [vmem:[#allocation8 + $0xa0] sm:$0xf] %v3189_v6  ;;  %3221 = vst [vmem:[#allocation8 + $0xa4] sm:$0x1] %v3220_v22  ;;  %v3383_v3 = vsel %vm5342_vm7, %v3347_v16, %v3382_v38  ;;  %v1086_v48 = vsel %vm444_vm3, %v1084_v14, %v6102_v58  ;;  %v1108_v19 = vshll.u32 %v1106_v4, 16  ;;  %v1120_v59 = vsel %vm444_vm3, %v1106_v4, %v6122_v23  ;;  %v6275_v6 = vpop.f32.mrb[26].mxu1 }
 0x1f3   :  { %v3356_v33 = vsel %vm5353_vm8, %v3348_v24, %v3355_v61  ;;  %3384 = vst [vmem:[#allocation8 + $0xb4] sm:$0xf] %v3383_v3  ;;  %v3387_v29 = vsel %vm5363_vm9, %v3357_v52, %v3386_v56  ;;  %v1132_v60 = vshll.u32 %v1130_v57, 16  ;;  %v1144_v47 = vsel %vm444_vm3, %v1130_v57, %v6125_v15  ;;  %v7417_v24 = vld [vmem:[#allocation22_spill] sm:$0xff]  ;;  %v7419_v61 = vld [vmem:[#allocation23_spill] sm:$0xff] }
 0x1f4   :  { %3385 = vst [vmem:[#allocation8 + $0xb8] sm:$0xf] %v3356_v33  ;;  %3388 = vst [vmem:[#allocation8 + $0xbc] sm:$0x1] %v3387_v29  ;;  %v1110_v58 = vsel %vm444_vm3, %v1108_v19, %v6105_v44  ;;  %v1154_v23 = vrot.slane %v6131_v17, 6  ;;  %v1178_v34 = vrot.slane %v6131_v17, 7  ;;  %v4414_v51 = vcombine.low %v6189_v18, %v1038_v45 }
 0x1f5   :  { %v1134_v55 = vsel %vm444_vm3, %v1132_v60, %v6111_v49  ;;  %v4415_v9 = vcombine.low %v6184_v35, %v6196_v36  ;;  %v4438_v32 = vcombine.low %v1062_v46, %v1086_v48  ;;  %v4439_v15 = vcombine.low %v6201_v63, %v1096_v20  ;;  %7418 = vst [vmem:[#allocation22_spill] sm:$0xff] %v6275_v6  ;;  %v7421_v48 = vld [vmem:[#allocation25_spill] sm:$0xff] }
 0x1f6   :  { %v1156_v10 = vshll.u32 %v1154_v23, 16  ;;  %v1168_v4 = vsel %vm444_vm3, %v1154_v23, %v6142_v43  ;;  %v1180_v44 = vshll.u32 %v1178_v34, 16  ;;  %v1192_v2 = vsel %vm444_vm3, %v1178_v34, %v6145_v21  ;;  %v7422_v34 = vld [vmem:[#allocation26_spill] sm:$0xff] }
 0x1f7   :  { %v4422_v17 = vrot.slane %v4414_v51, %v5132_v50  ;;  %v4429_v18 = vrot.slane %v4415_v9, %v5132_v50  ;;  %v4446_v49 = vrot.slane %v4438_v32, %v5132_v50  ;;  %v4453_v45 = vrot.slane %v4439_v15, %v5132_v50  ;;  %v4551_v32 = vld [vmem:[#allocation8 + $0xa8] sm:$0xf]  ;;  %v7423_v15 = vld [vmem:[#allocation12_spill] sm:$0xff] }
 0x1f8   :  { %v1158_v35 = vsel %vm444_vm3, %v1156_v10, %v6134_v42  ;;  %v1182_v36 = vsel %vm444_vm3, %v1180_v44, %v6137_v54  ;;  %v4581_v63 = vcombine.low %v1110_v58, %v1134_v55  ;;  %v4582_v43 = vcombine.low %v1120_v59, %v1144_v47 }
 0x1f9   :  { %v4430_v46 = vcombine.low %v4422_v17, %v4429_v18  ;;  %v4454_v1 = vcombine.low %v4446_v49, %v4453_v45  ;;  %v4605_v0 = vcombine.low %v1158_v35, %v1182_v36  ;;  %v4606_v21 = vcombine.low %v1168_v4, %v1192_v2  ;;  %v7424_v4 = vld [vmem:[#allocation13_spill] sm:$0xff]  ;;  %v4555_v2 = vld [vmem:[#allocation8 + $0xb0] sm:$0x1] }
 0x1fa   :  { %v4589_v38 = vrot.slane %v4581_v63, %v5132_v50  ;;  %v4596_v57 = vrot.slane %v4582_v43, %v5132_v50  ;;  %v256_v16 = vadd.f32 %v5645_v12, %v5112_v26  ;;  %v6269_v56 = vadd.f32 %v7417_v24, %v5114_v27  ;;  %v7420_v12 = vld [vmem:[#allocation24_spill] sm:$0xff]  ;;  %v4718_v24 = vld [vmem:[#allocation8 + $0xc0] sm:$0xf] }
 0x1fb   :  { %v4437_v42 = vrot.slane %v4430_v46, %v5132_v50  ;;  %v4461_v54 = vrot.slane %v4454_v1, %v5132_v50  ;;  %v4613_v14 = vrot.slane %v4605_v0, %v5132_v50  ;;  %v4620_v20 = vrot.slane %v4606_v21, %v5132_v50 }
 0x1fc   :  { %v4597_v22 = vcombine.low %v4589_v38, %v4596_v57  ;;  %v6279_v52 = vadd.f32 %v7419_v61, %v5116_v30  ;;  %v6283_v3 = vadd.f32 %v7420_v12, %v5118_v31  ;;  %v260_v19 = vadd.f32 %v7421_v48, %v5112_v26  ;;  %v6314_v61 = vpop.f32.mrb[27].mxu0  ;;  %v4722_v12 = vld [vmem:[#allocation8 + $0xc8] sm:$0x1] }
 0x1fd   :  { %v4511_v59 = vshrl.u32 %v4437_v42, 16  ;;  %v4514_v33 = vshll.u32 %v4437_v42, 16  ;;  %v4519_v29 = vshrl.u32 %v4461_v54, 16  ;;  %v4522_v60 = vshll.u32 %v4461_v54, 16  ;;  %7425 = vst [vmem:[#allocation23_spill] sm:$0xff] %v6314_v61 }
 0x1fe   :  { %v4604_v47 = vrot.slane %v4597_v22, %v5132_v50  ;;  %v4621_v58 = vcombine.low %v4613_v14, %v4620_v20  ;;  %v6288_v23 = vpack.c.bf16 %v260_v19, %v256_v16  ;;  %v373_v51 = vadd.f32 %v7422_v34, %v5114_v27 }
 0x1ff   :  { %v4513_v55 = vrot.slane %v4511_v59, 7  ;;  %v4521_v9 = vrot.slane %v4519_v29, 7  ;;  %v262_v10 = vadd.f32 %v7423_v15, %v5116_v30  ;;  %v6296_v44 = vadd.f32 %v7424_v4, %v5118_v31 }
 0x200   :  { %v4628_v17 = vrot.slane %v4621_v58, %v5132_v50  ;;  %v4678_v18 = vshrl.u32 %v4604_v47, 16  ;;  %v4681_v49 = vshll.u32 %v4604_v47, 16  ;;  %v6301_v45 = vsel %vm439_vm2, %v6288_v23, 0 }
 0x201   :  { %v4516_v35 = vor.u32 %v4514_v33, %v4513_v55  ;;  %v4517_v36 = vrot.slane %v4513_v55, 4  ;;  %v4524_v63 = vor.u32 %v4522_v60, %v4521_v9  ;;  %v4526_v43 = vrot.slane %v4521_v9, 4 }
 0x202   :  { %v4680_v46 = vrot.slane %v4678_v18, 7  ;;  %v4686_v1 = vshrl.u32 %v4628_v17, 16  ;;  %v4689_v0 = vshll.u32 %v4628_v17, 16  ;;  %v1204_v21 = vshrl.u32 %v6288_v23, 16 }
 0x203   :  { %v4525_v38 = vsel %vm5353_vm8, %v4517_v36, %v4524_v63  ;;  %v4552_v57 = vsel %vm5342_vm7, %v4516_v35, %v4551_v32  ;;  %v4556_v16 = vsel %vm5363_vm9, %v4526_v43, %v4555_v2  ;;  %v1213_v42 = vrot.slane %v6288_v23, 1 }
 0x204   :  { %4553 = vst [vmem:[#allocation8 + $0xa8] sm:$0xf] %v4552_v57  ;;  %4554 = vst [vmem:[#allocation8 + $0xac] sm:$0xf] %v4525_v38  ;;  %v4683_v54 = vor.u32 %v4681_v49, %v4680_v46  ;;  %v4684_v14 = vrot.slane %v4680_v46, 4  ;;  %v4688_v20 = vrot.slane %v4686_v1, 7  ;;  %v425_v46 = vpack.c.bf16 %v373_v51, %v6269_v56 }
 0x205   :  { %4557 = vst [vmem:[#allocation8 + $0xb0] sm:$0x1] %v4556_v16  ;;  %v6312_v22 = vsel %vm439_vm2, %v1204_v21, 0  ;;  %v6317_v48 = vsel %vm439_vm2, %v1213_v42, 0  ;;  %v1228_v19 = vshrl.u32 %v1213_v42, 16  ;;  %v1237_v59 = vrot.slane %v6288_v23, 2 }
 0x206   :  { %v1261_v33 = vrot.slane %v6288_v23, 3  ;;  %v4691_v29 = vor.u32 %v4689_v0, %v4688_v20  ;;  %v4693_v60 = vrot.slane %v4688_v20, 4  ;;  %v4719_v47 = vsel %vm5342_vm7, %v4683_v54, %v4718_v24  ;;  %v6356_v16 = vpop.f32.mrb[27].mxu1 }
 0x207   :  { %v1285_v58 = vrot.slane %v6288_v23, 4  ;;  %4720 = vst [vmem:[#allocation8 + $0xc0] sm:$0xf] %v4719_v47  ;;  %v6325_v34 = vsel %vm439_vm2, %v1228_v19, 0  ;;  %v6328_v55 = vsel %vm439_vm2, %v1237_v59, 0  ;;  %v1252_v9 = vshrl.u32 %v1237_v59, 16 }
 0x208   :  { %v6331_v32 = vsel %vm439_vm2, %v1261_v33, 0  ;;  %v4692_v15 = vsel %vm5353_vm8, %v4684_v14, %v4691_v29  ;;  %v4723_v4 = vsel %vm5363_vm9, %v4693_v60, %v4722_v12  ;;  %v1276_v2 = vshrl.u32 %v1261_v33, 16  ;;  %7426 = vst [vmem:[#allocation24_spill] sm:$0xff] %v6356_v16 }
 0x209   :  { %v6338_v17 = vsel %vm439_vm2, %v1285_v58, 0  ;;  %4721 = vst [vmem:[#allocation8 + $0xc4] sm:$0xf] %v4692_v15  ;;  %4724 = vst [vmem:[#allocation8 + $0xc8] sm:$0x1] %v4723_v4  ;;  %v1254_v18 = vsel %vm439_vm2, %v1252_v9, 0  ;;  %v6347_v1 = vpack.c.bf16 %v262_v10, %v6279_v52 }
 0x20a   :  { %v1300_v49 = vshrl.u32 %v1285_v58, 16  ;;  %v1309_v35 = vrot.slane %v6288_v23, 5  ;;  %v1333_v36 = vrot.slane %v6288_v23, 6  ;;  %v1278_v63 = vsel %vm439_vm2, %v1276_v2, 0 }
 0x20b   :  { %v1357_v43 = vrot.slane %v6288_v23, 7  ;;  %v6362_v56 = vsel %vm439_vm2, %v425_v46, 0  ;;  %v1209_v51 = vshrl.u32 %v425_v46, 16  ;;  %v1220_v10 = vrot.slane %v425_v46, 1 }
 0x20c   :  { %v1302_v0 = vsel %vm439_vm2, %v1300_v49, 0  ;;  %v6351_v21 = vsel %vm439_vm2, %v1309_v35, 0  ;;  %v1324_v38 = vshrl.u32 %v1309_v35, 16  ;;  %v6354_v57 = vsel %vm439_vm2, %v1333_v36, 0 }
 0x20d   :  { %v1348_v24 = vshrl.u32 %v1333_v36, 16  ;;  %v6359_v42 = vsel %vm439_vm2, %v1357_v43, 0  ;;  %v1372_v23 = vshrl.u32 %v1357_v43, 16  ;;  %v1244_v54 = vrot.slane %v425_v46, 2 }
 0x20e   :  { %v1326_v52 = vsel %vm439_vm2, %v1324_v38, 0  ;;  %v1268_v12 = vrot.slane %v425_v46, 3  ;;  %v1292_v19 = vrot.slane %v425_v46, 4  ;;  %v6368_v59 = vsel %vm439_vm2, %v1209_v51, 0 }
 0x20f   :  { %v1350_v14 = vsel %vm439_vm2, %v1348_v24, 0  ;;  %v1374_v20 = vsel %vm439_vm2, %v1372_v23, 0  ;;  %v6371_v33 = vsel %vm439_vm2, %v1220_v10, 0  ;;  %v1233_v29 = vshrl.u32 %v1220_v10, 16 }
 0x210   :  { %v6374_v60 = vsel %vm439_vm2, %v1244_v54, 0  ;;  %v1257_v47 = vshrl.u32 %v1244_v54, 16  ;;  %v6377_v58 = vsel %vm439_vm2, %v1268_v12, 0  ;;  %v1281_v9 = vshrl.u32 %v1268_v12, 16 }
 0x211   :  { %v6380_v15 = vsel %vm439_vm2, %v1292_v19, 0  ;;  %v6383_v4 = vsel %vm439_vm2, %v1233_v29, 0  ;;  %v1305_v2 = vshrl.u32 %v1292_v19, 16  ;;  %v1316_v49 = vrot.slane %v425_v46, 5 }
 0x212   :  { %v1340_v35 = vrot.slane %v425_v46, 6  ;;  %v6386_v36 = vsel %vm439_vm2, %v1257_v47, 0  ;;  %v6389_v43 = vsel %vm439_vm2, %v1281_v9, 0  ;;  %v1364_v38 = vrot.slane %v425_v46, 7 }
 0x213   :  { %v1195_v24 = vshll.u32 %v6347_v1, 16  ;;  %v6393_v23 = vsel %vm439_vm2, %v1305_v2, 0  ;;  %v6396_v51 = vsel %vm439_vm2, %v1316_v49, 0  ;;  %v1329_v10 = vshrl.u32 %v1316_v49, 16 }
 0x214   :  { %v6399_v54 = vsel %vm439_vm2, %v1340_v35, 0  ;;  %v1353_v12 = vshrl.u32 %v1340_v35, 16  ;;  %v6402_v19 = vsel %vm439_vm2, %v1364_v38, 0  ;;  %v1377_v29 = vshrl.u32 %v1364_v38, 16 }
 0x215   :  { %v1197_v46 = vsel %vm444_vm3, %v1195_v24, %v6301_v45  ;;  %v6407_v47 = vsel %vm439_vm2, %v1329_v10, 0  ;;  %v1207_v9 = vsel %vm444_vm3, %v6347_v1, %v6312_v22  ;;  %v1215_v2 = vrot.slane %v6347_v1, 1 }
 0x216   :  { %v1239_v49 = vrot.slane %v6347_v1, 2  ;;  %v6415_v35 = vsel %vm439_vm2, %v1353_v12, 0  ;;  %v6418_v16 = vsel %vm439_vm2, %v1377_v29, 0  ;;  %v1263_v38 = vrot.slane %v6347_v1, 3 }
 0x217   :  { %v1287_v45 = vrot.slane %v6347_v1, 4  ;;  %v1217_v24 = vshll.u32 %v1215_v2, 16  ;;  %v1231_v10 = vsel %vm444_vm3, %v1215_v2, %v6325_v34  ;;  %v1311_v62 = vrot.slane %v6347_v1, 5 }
 0x218   :  { %v1241_v61 = vshll.u32 %v1239_v49, 16  ;;  %v1255_v22 = vsel %vm444_vm3, %v1239_v49, %v1254_v18  ;;  %v1265_v6 = vshll.u32 %v1263_v38, 16  ;;  %v1279_v11 = vsel %vm444_vm3, %v1263_v38, %v1278_v63 }
 0x219   :  { %v1289_v28 = vshll.u32 %v1287_v45, 16  ;;  %v1303_v12 = vsel %vm444_vm3, %v1287_v45, %v1302_v0  ;;  %v1219_v29 = vsel %vm444_vm3, %v1217_v24, %v6317_v48  ;;  %v1335_v25 = vrot.slane %v6347_v1, 6 }
 0x21a   :  { %v1243_v39 = vsel %vm444_vm3, %v1241_v61, %v6328_v55  ;;  %v1267_v34 = vsel %vm444_vm3, %v1265_v6, %v6331_v32  ;;  %v1359_v63 = vrot.slane %v6347_v1, 7  ;;  %v2117_v2 = vcombine.low %v1197_v46, %v1219_v29 }
 0x21b   :  { %v1291_v18 = vsel %vm444_vm3, %v1289_v28, %v6338_v17  ;;  %v1313_v0 = vshll.u32 %v1311_v62, 16  ;;  %v1327_v49 = vsel %vm444_vm3, %v1311_v62, %v1326_v52  ;;  %v1337_v48 = vshll.u32 %v1335_v25, 16 }
 0x21c   :  { %v1351_v38 = vsel %vm444_vm3, %v1335_v25, %v1350_v14  ;;  %v1361_v61 = vshll.u32 %v1359_v63, 16  ;;  %v1375_v55 = vsel %vm444_vm3, %v1359_v63, %v1374_v20  ;;  %v2118_v45 = vcombine.low %v1207_v9, %v1231_v10 }
 0x21d   :  { %v2125_v24 = vrot.slane %v2117_v2, %v5132_v50  ;;  %v1315_v6 = vsel %vm444_vm3, %v1313_v0, %v6351_v21  ;;  %v1339_v28 = vsel %vm444_vm3, %v1337_v48, %v6354_v57  ;;  %v2141_v32 = vcombine.low %v1243_v39, %v1267_v34 }
 0x21e   :  { %v2142_v17 = vcombine.low %v1255_v22, %v1279_v11  ;;  %v1363_v62 = vsel %vm444_vm3, %v1361_v61, %v6359_v42  ;;  %v2132_v1 = vrot.slane %v2118_v45, %v5132_v50  ;;  %v2291_v25 = vcombine.low %v1291_v18, %v1315_v6  ;;  %v6481_v6 = vpop.f32.mrb[28].mxu1 }
 0x21f   :  { %v2292_v52 = vcombine.low %v1303_v12, %v1327_v49  ;;  %v2149_v14 = vrot.slane %v2141_v32, %v5132_v50  ;;  %v2315_v46 = vcombine.low %v1339_v28, %v1363_v62  ;;  %v2316_v9 = vcombine.low %v1351_v38, %v1375_v55 }
 0x220   :  { %v2156_v20 = vrot.slane %v2142_v17, %v5132_v50  ;;  %v2133_v10 = vcombine.low %v2125_v24, %v2132_v1  ;;  %v2299_v21 = vrot.slane %v2291_v25, %v5132_v50  ;;  %v6455_v39 = vpack.c.bf16 %v6296_v44, %v6283_v3  ;;  %v6479_v24 = vpop.f32.mrb[28].mxu0  ;;  %v2220_v25 = vld [vmem:[#allocation8 + $0xe4] sm:$0xf] }
 0x221   :  { %v2306_v57 = vrot.slane %v2292_v52, %v5132_v50  ;;  %v2323_v42 = vrot.slane %v2315_v46, %v5132_v50  ;;  %v2330_v22 = vrot.slane %v2316_v9, %v5132_v50  ;;  %v6461_v12 = vadd.f32 %v5918_v5, %v5112_v26  ;;  %v2224_v9 = vld [vmem:[#allocation8 + $0xec] sm:$0x1] }
 0x222   :  { %v2157_v11 = vcombine.low %v2149_v14, %v2156_v20  ;;  %v2140_v29 = vrot.slane %v2133_v10, %v5132_v50  ;;  %v1200_v18 = vshll.u32 %v6455_v39, 16  ;;  %v6468_v63 = vsel %vm444_vm3, %v6455_v39, %v6368_v59 }
 0x223   :  { %v2307_v34 = vcombine.low %v2299_v21, %v2306_v57  ;;  %v2331_v44 = vcombine.low %v2323_v42, %v2330_v22  ;;  %v1222_v2 = vrot.slane %v6455_v39, 1  ;;  %v1246_v0 = vrot.slane %v6455_v39, 2  ;;  %v2387_v22 = vld [vmem:[#allocation8 + $0xfc] sm:$0xf] }
 0x224   :  { %v2164_v3 = vrot.slane %v2157_v11, %v5132_v50  ;;  %v2185_v49 = vshrl.u32 %v2140_v29, 16  ;;  %v2188_v5 = vshll.u32 %v2140_v29, 16  ;;  %v6476_v38 = vsel %vm444_vm3, %v1200_v18, %v6362_v56 }
 0x225   :  { %v2314_v48 = vrot.slane %v2307_v34, %v5132_v50  ;;  %v2338_v59 = vrot.slane %v2331_v44, %v5132_v50  ;;  %v1224_v45 = vshll.u32 %v1222_v2, 16  ;;  %v6485_v62 = vsel %vm444_vm3, %v1222_v2, %v6383_v4 }
 0x226   :  { %v2193_v61 = vshrl.u32 %v2164_v3, 16  ;;  %v2196_v55 = vshll.u32 %v2164_v3, 16  ;;  %v2187_v28 = vrot.slane %v2185_v49, 7  ;;  %v1248_v21 = vshll.u32 %v1246_v0, 16  ;;  %v2391_v3 = vld [vmem:[#allocation8 + $0x104] sm:$0x1] }
 0x227   :  { %v2357_v32 = vshrl.u32 %v2314_v48, 16  ;;  %v2360_v17 = vshll.u32 %v2314_v48, 16  ;;  %v2365_v56 = vshrl.u32 %v2338_v59, 16  ;;  %v2368_v52 = vshll.u32 %v2338_v59, 16  ;;  %v6499_v48 = vpop.f32.mrb[29].mxu0 }
 0x228   :  { %v2195_v1 = vrot.slane %v2193_v61, 7  ;;  %v1226_v14 = vsel %vm444_vm3, %v1224_v45, %v6371_v33  ;;  %v2190_v20 = vor.u32 %v2188_v5, %v2187_v28  ;;  %v2191_v46 = vrot.slane %v2187_v28, 4  ;;  %v6508_v59 = vpop.f32.mrb[30].mxu0 }
 0x229   :  { %v2359_v10 = vrot.slane %v2357_v32, 7  ;;  %v2367_v42 = vrot.slane %v2365_v56, 7  ;;  %v1260_v4 = vsel %vm444_vm3, %v1246_v0, %v6386_v36  ;;  %v1250_v33 = vsel %vm444_vm3, %v1248_v21, %v6374_v60  ;;  %v6501_v36 = vpop.f32.mrb[29].mxu1 }
 0x22a   :  { %v2198_v57 = vor.u32 %v2196_v55, %v2195_v1  ;;  %v2200_v11 = vrot.slane %v2195_v1, 4  ;;  %v2221_v29 = vsel %vm5342_vm7, %v2190_v20, %v2220_v25  ;;  %v1270_v60 = vrot.slane %v6455_v39, 3 }
 0x22b   :  { %v2362_v34 = vor.u32 %v2360_v17, %v2359_v10  ;;  %v2363_v18 = vrot.slane %v2359_v10, 4  ;;  %2222 = vst [vmem:[#allocation8 + $0xe4] sm:$0xf] %v2221_v29  ;;  %v2370_v49 = vor.u32 %v2368_v52, %v2367_v42  ;;  %v2372_v5 = vrot.slane %v2367_v42, 4 }
 0x22c   :  { %v2199_v44 = vsel %vm5353_vm8, %v2191_v46, %v2198_v57  ;;  %v2225_v2 = vsel %vm5363_vm9, %v2200_v11, %v2224_v9  ;;  %v1294_v61 = vrot.slane %v6455_v39, 4  ;;  %v1318_v55 = vrot.slane %v6455_v39, 5 }
 0x22d   :  { %2223 = vst [vmem:[#allocation8 + $0xe8] sm:$0xf] %v2199_v44  ;;  %2226 = vst [vmem:[#allocation8 + $0xec] sm:$0x1] %v2225_v2  ;;  %v2388_v0 = vsel %vm5342_vm7, %v2362_v34, %v2387_v22  ;;  %v2371_v45 = vsel %vm5353_vm8, %v2363_v18, %v2370_v49  ;;  %v2392_v28 = vsel %vm5363_vm9, %v2372_v5, %v2391_v3  ;;  %v1342_v32 = vrot.slane %v6455_v39, 6 }
 0x22e   :  { %2389 = vst [vmem:[#allocation8 + $0xfc] sm:$0xf] %v2388_v0  ;;  %v1366_v17 = vrot.slane %v6455_v39, 7  ;;  %2390 = vst [vmem:[#allocation8 + $0x100] sm:$0xf] %v2371_v45  ;;  %v1272_v1 = vshll.u32 %v1270_v60, 16  ;;  %v1284_v25 = vsel %vm444_vm3, %v1270_v60, %v6389_v43  ;;  %v1308_v52 = vsel %vm444_vm3, %v1294_v61, %v6393_v23 }
 0x22f   :  { %2393 = vst [vmem:[#allocation8 + $0x104] sm:$0x1] %v2392_v28  ;;  %v1296_v56 = vshll.u32 %v1294_v61, 16  ;;  %v1320_v20 = vshll.u32 %v1318_v55, 16  ;;  %v1332_v46 = vsel %vm444_vm3, %v1318_v55, %v6407_v47  ;;  %v1344_v9 = vshll.u32 %v1342_v32, 16  ;;  %v7427_v60 = vld [vmem:[#allocation14_spill] sm:$0xff] }
 0x230   :  { %v1356_v10 = vsel %vm444_vm3, %v1342_v32, %v6415_v35  ;;  %v1274_v39 = vsel %vm444_vm3, %v1272_v1, %v6377_v58  ;;  %v1368_v57 = vshll.u32 %v1366_v17, 16  ;;  %v1380_v43 = vsel %vm444_vm3, %v1366_v17, %v6418_v16  ;;  %v6562_v61 = vpop.f32.mrb[30].mxu1 }
 0x231   :  { %v1298_v21 = vsel %vm444_vm3, %v1296_v56, %v6380_v15  ;;  %v1322_v23 = vsel %vm444_vm3, %v1320_v20, %v6396_v51  ;;  %v1346_v47 = vsel %vm444_vm3, %v1344_v9, %v6399_v54  ;;  %v3460_v11 = vcombine.low %v6476_v38, %v1226_v14  ;;  %7428 = vst [vmem:[#allocation25_spill] sm:$0xff] %v6562_v61 }
 0x232   :  { %v3461_v35 = vcombine.low %v6468_v63, %v6485_v62  ;;  %v1370_v58 = vsel %vm444_vm3, %v1368_v57, %v6402_v19  ;;  %v3484_v42 = vcombine.low %v1250_v33, %v1274_v39  ;;  %v3485_v15 = vcombine.low %v1260_v4, %v1284_v25 }
 0x233   :  { %v3627_v22 = vcombine.low %v1298_v21, %v1322_v23  ;;  %v3468_v29 = vrot.slane %v3460_v11, %v5132_v50  ;;  %v3628_v34 = vcombine.low %v1308_v52, %v1332_v46  ;;  %v3651_v51 = vcombine.low %v1346_v47, %v1370_v58  ;;  %v3560_v58 = vld [vmem:[#allocation8 + $0xf8] sm:$0x1] }
 0x234   :  { %v3475_v16 = vrot.slane %v3461_v35, %v5132_v50  ;;  %v3492_v18 = vrot.slane %v3484_v42, %v5132_v50  ;;  %v3499_v54 = vrot.slane %v3485_v15, %v5132_v50  ;;  %v3652_v14 = vcombine.low %v1356_v10, %v1380_v43  ;;  %v3556_v43 = vld [vmem:[#allocation8 + $0xf0] sm:$0xf] }
 0x235   :  { %v3635_v38 = vrot.slane %v3627_v22, %v5132_v50  ;;  %v3642_v62 = vrot.slane %v3628_v34, %v5132_v50  ;;  %v3659_v19 = vrot.slane %v3651_v51, %v5132_v50  ;;  %v379_v4 = vadd.f32 %v5920_v8, %v5114_v27  ;;  %v3723_v34 = vld [vmem:[#allocation8 + $0x108] sm:$0xf] }
 0x236   :  { %v3476_v63 = vcombine.low %v3468_v29, %v3475_v16  ;;  %v3500_v3 = vcombine.low %v3492_v18, %v3499_v54  ;;  %v3666_v33 = vrot.slane %v3652_v14, %v5132_v50  ;;  %v6551_v44 = vadd.f32 %v5938_v40, %v5116_v30  ;;  %v7429_v40 = vld [vmem:[#allocation15_spill] sm:$0xff]  ;;  %v3727_v14 = vld [vmem:[#allocation8 + $0x110] sm:$0x1] }
 0x237   :  { %v6555_v2 = vadd.f32 %v5940_v13, %v5118_v31  ;;  %v3643_v5 = vcombine.low %v3635_v38, %v3642_v62  ;;  %v270_v0 = vadd.f32 %v5947_v41, %v5112_v26  ;;  %v383_v8 = vadd.f32 %v7427_v60, %v5114_v27  ;;  %v7430_v13 = vld [vmem:[#allocation16_spill] sm:$0xff]  ;;  %v6594_v62 = vpop.f32.mrb[31].mxu0 }
 0x238   :  { %v3483_v49 = vrot.slane %v3476_v63, %v5132_v50  ;;  %v3507_v55 = vrot.slane %v3500_v3, %v5132_v50  ;;  %v3667_v45 = vcombine.low %v3659_v19, %v3666_v33  ;;  %v6567_v28 = vadd.f32 %v7429_v40, %v5116_v30  ;;  %7431 = vst [vmem:[#allocation26_spill] sm:$0xff] %v6594_v62 }
 0x239   :  { %v6571_v32 = vadd.f32 %v7430_v13, %v5118_v31  ;;  %v3650_v41 = vrot.slane %v3643_v5, %v5132_v50  ;;  %v6575_v25 = vpack.c.bf16 %v270_v0, %v6461_v12  ;;  %v6578_v46 = vpack.c.bf16 %v383_v8, %v379_v4 }
 0x23a   :  { %v3526_v17 = vshrl.u32 %v3483_v49, 16  ;;  %v3529_v1 = vshll.u32 %v3483_v49, 16  ;;  %v3534_v56 = vshrl.u32 %v3507_v55, 16  ;;  %v3537_v52 = vshll.u32 %v3507_v55, 16 }
 0x23b   :  { %v3674_v20 = vrot.slane %v3667_v45, %v5132_v50  ;;  %v3693_v10 = vshrl.u32 %v3650_v41, 16  ;;  %v3696_v39 = vshll.u32 %v3650_v41, 16  ;;  %v6582_v21 = vsel %vm439_vm2, %v6575_v25, 0 }
 0x23c   :  { %v3528_v9 = vrot.slane %v3526_v17, 7  ;;  %v3536_v57 = vrot.slane %v3534_v56, 7  ;;  %v1392_v12 = vshrl.u32 %v6575_v25, 16  ;;  %v1401_v15 = vrot.slane %v6575_v25, 1 }
 0x23d   :  { %v3701_v23 = vshrl.u32 %v3674_v20, 16  ;;  %v3704_v47 = vshll.u32 %v3674_v20, 16  ;;  %v3695_v42 = vrot.slane %v3693_v10, 7  ;;  %v1425_v0 = vrot.slane %v6575_v25, 2 }
 0x23e   :  { %v3531_v11 = vor.u32 %v3529_v1, %v3528_v9  ;;  %v3532_v35 = vrot.slane %v3528_v9, 4  ;;  %v3539_v22 = vor.u32 %v3537_v52, %v3536_v57  ;;  %v3541_v29 = vrot.slane %v3536_v57, 4 }
 0x23f   :  { %v3703_v16 = vrot.slane %v3701_v23, 7  ;;  %v6587_v51 = vsel %vm439_vm2, %v1392_v12, 0  ;;  %v3698_v54 = vor.u32 %v3696_v39, %v3695_v42  ;;  %v3699_v38 = vrot.slane %v3695_v42, 4 }
 0x240   :  { %v3557_v18 = vsel %vm5342_vm7, %v3531_v11, %v3556_v43  ;;  %v6592_v63 = vsel %vm439_vm2, %v1401_v15, 0  ;;  %v3540_v19 = vsel %vm5353_vm8, %v3532_v35, %v3539_v22  ;;  %v3561_v4 = vsel %vm5363_vm9, %v3541_v29, %v3560_v58 }
 0x241   :  { %3558 = vst [vmem:[#allocation8 + $0xf0] sm:$0xf] %v3557_v18  ;;  %v3706_v3 = vor.u32 %v3704_v47, %v3703_v16  ;;  %v3708_v33 = vrot.slane %v3703_v16, 4  ;;  %3559 = vst [vmem:[#allocation8 + $0xf4] sm:$0xf] %v3540_v19  ;;  %v3724_v49 = vsel %vm5342_vm7, %v3698_v54, %v3723_v34  ;;  %v1416_v5 = vshrl.u32 %v1401_v15, 16 }
 0x242   :  { %3562 = vst [vmem:[#allocation8 + $0xf8] sm:$0x1] %v3561_v4  ;;  %v1449_v60 = vrot.slane %v6575_v25, 3  ;;  %3725 = vst [vmem:[#allocation8 + $0x108] sm:$0xf] %v3724_v49  ;;  %v1473_v45 = vrot.slane %v6575_v25, 4 }
 0x243   :  { %v3707_v8 = vsel %vm5353_vm8, %v3699_v38, %v3706_v3  ;;  %v3728_v55 = vsel %vm5363_vm9, %v3708_v33, %v3727_v14  ;;  %v1497_v40 = vrot.slane %v6575_v25, 5  ;;  %v6611_v13 = vsel %vm439_vm2, %v1416_v5, 0 }
 0x244   :  { %3726 = vst [vmem:[#allocation8 + $0x10c] sm:$0xf] %v3707_v8  ;;  %3729 = vst [vmem:[#allocation8 + $0x110] sm:$0x1] %v3728_v55  ;;  %v6614_v17 = vsel %vm439_vm2, %v1425_v0, 0  ;;  %v1440_v1 = vshrl.u32 %v1425_v0, 16 }
 0x245   :  { %v6617_v41 = vsel %vm439_vm2, %v1449_v60, 0  ;;  %v1464_v56 = vshrl.u32 %v1449_v60, 16  ;;  %v6620_v52 = vsel %vm439_vm2, %v1473_v45, 0  ;;  %v1488_v20 = vshrl.u32 %v1473_v45, 16 }
 0x246   :  { %v6623_v9 = vsel %vm439_vm2, %v1497_v40, 0  ;;  %v1442_v10 = vsel %vm439_vm2, %v1440_v1, 0  ;;  %v1512_v39 = vshrl.u32 %v1497_v40, 16  ;;  %v1521_v57 = vrot.slane %v6575_v25, 6 }
 0x247   :  { %v1545_v43 = vrot.slane %v6575_v25, 7  ;;  %v1466_v23 = vsel %vm439_vm2, %v1464_v56, 0  ;;  %v1490_v47 = vsel %vm439_vm2, %v1488_v20, 0  ;;  %v6632_v12 = vsel %vm439_vm2, %v6578_v46, 0  ;;  %v6644_v25 = vpop.f32.mrb[31].mxu1 }
 0x248   :  { %v1397_v11 = vshrl.u32 %v6578_v46, 16  ;;  %v6636_v35 = vsel %vm439_vm2, %v1512_v39, 0  ;;  %v6639_v58 = vsel %vm439_vm2, %v1521_v57, 0  ;;  %v1536_v42 = vshrl.u32 %v1521_v57, 16  ;;  %7432 = vst [vmem:[#allocation12_spill] sm:$0xff] %v6644_v25 }
 0x249   :  { %v6642_v15 = vsel %vm439_vm2, %v1545_v43, 0  ;;  %v1560_v22 = vshrl.u32 %v1545_v43, 16  ;;  %v1408_v16 = vrot.slane %v6578_v46, 1  ;;  %v1432_v34 = vrot.slane %v6578_v46, 2 }
 0x24a   :  { %v6647_v29 = vsel %vm439_vm2, %v1397_v11, 0  ;;  %v1538_v18 = vsel %vm439_vm2, %v1536_v42, 0  ;;  %v1456_v54 = vrot.slane %v6578_v46, 3  ;;  %v1480_v38 = vrot.slane %v6578_v46, 4 }
 0x24b   :  { %v1504_v14 = vrot.slane %v6578_v46, 5  ;;  %v1562_v19 = vsel %vm439_vm2, %v1560_v22, 0  ;;  %v6657_v4 = vsel %vm439_vm2, %v1408_v16, 0  ;;  %v1421_v3 = vshrl.u32 %v1408_v16, 16 }
 0x24c   :  { %v6660_v33 = vsel %vm439_vm2, %v1432_v34, 0  ;;  %v1445_v49 = vshrl.u32 %v1432_v34, 16  ;;  %v6663_v5 = vsel %vm439_vm2, %v1456_v54, 0  ;;  %v1469_v0 = vshrl.u32 %v1456_v54, 16 }
 0x24d   :  { %v6666_v60 = vsel %vm439_vm2, %v1480_v38, 0  ;;  %v6669_v8 = vsel %vm439_vm2, %v1421_v3, 0  ;;  %v1493_v55 = vshrl.u32 %v1480_v38, 16  ;;  %v6672_v45 = vsel %vm439_vm2, %v1504_v14, 0 }
 0x24e   :  { %v1517_v40 = vshrl.u32 %v1504_v14, 16  ;;  %v6675_v1 = vsel %vm439_vm2, %v1445_v49, 0  ;;  %v6678_v56 = vsel %vm439_vm2, %v1469_v0, 0  ;;  %v1528_v20 = vrot.slane %v6578_v46, 6 }
 0x24f   :  { %v1552_v39 = vrot.slane %v6578_v46, 7  ;;  %v6683_v57 = vsel %vm439_vm2, %v1493_v55, 0  ;;  %v428_v11 = vpack.c.bf16 %v6567_v28, %v6551_v44  ;;  %v6692_v42 = vpack.c.bf16 %v6571_v32, %v6555_v2 }
 0x250   :  { %v6686_v43 = vsel %vm439_vm2, %v1517_v40, 0  ;;  %v6695_v22 = vsel %vm439_vm2, %v1528_v20, 0  ;;  %v1541_v16 = vshrl.u32 %v1528_v20, 16 }
 0x251   :  { %v6698_v34 = vsel %vm439_vm2, %v1552_v39, 0  ;;  %v1565_v46 = vshrl.u32 %v1552_v39, 16  ;;  %v1383_v54 = vshll.u32 %v428_v11, 16  ;;  %v1395_v38 = vsel %vm444_vm3, %v428_v11, %v6587_v51 }
 0x252   :  { %v1403_v14 = vrot.slane %v428_v11, 1  ;;  %v1427_v3 = vrot.slane %v428_v11, 2  ;;  %v6703_v44 = vsel %vm439_vm2, %v1541_v16, 0  ;;  %v1451_v28 = vrot.slane %v428_v11, 3 }
 0x253   :  { %v6706_v2 = vsel %vm439_vm2, %v1565_v46, 0  ;;  %v1475_v32 = vrot.slane %v428_v11, 4  ;;  %v1385_v49 = vsel %vm444_vm3, %v1383_v54, %v6582_v21  ;;  %v1499_v21 = vrot.slane %v428_v11, 5 }
 0x254   :  { %v1405_v0 = vshll.u32 %v1403_v14, 16  ;;  %v1419_v55 = vsel %vm444_vm3, %v1403_v14, %v6611_v13  ;;  %v1429_v40 = vshll.u32 %v1427_v3, 16  ;;  %v1443_v51 = vsel %vm444_vm3, %v1427_v3, %v1442_v10 }
 0x255   :  { %v1453_v20 = vshll.u32 %v1451_v28, 16  ;;  %v1467_v39 = vsel %vm444_vm3, %v1451_v28, %v1466_v23  ;;  %v1477_v16 = vshll.u32 %v1475_v32, 16  ;;  %v1491_v62 = vsel %vm444_vm3, %v1475_v32, %v1490_v47 }
 0x256   :  { %v1407_v46 = vsel %vm444_vm3, %v1405_v0, %v6592_v63  ;;  %v1431_v25 = vsel %vm444_vm3, %v1429_v40, %v6614_v17  ;;  %v1523_v10 = vrot.slane %v428_v11, 6  ;;  %v1547_v14 = vrot.slane %v428_v11, 7 }
 0x257   :  { %v1455_v54 = vsel %vm444_vm3, %v1453_v20, %v6617_v41  ;;  %v1479_v13 = vsel %vm444_vm3, %v1477_v16, %v6620_v52  ;;  %v1501_v3 = vshll.u32 %v1499_v21, 16  ;;  %v1515_v23 = vsel %vm444_vm3, %v1499_v21, %v6636_v35 }
 0x258   :  { %v2458_v28 = vcombine.low %v1385_v49, %v1407_v46  ;;  %v2459_v63 = vcombine.low %v1395_v38, %v1419_v55  ;;  %v1525_v0 = vshll.u32 %v1523_v10, 16  ;;  %v1539_v17 = vsel %vm444_vm3, %v1523_v10, %v1538_v18 }
 0x259   :  { %v1549_v40 = vshll.u32 %v1547_v14, 16  ;;  %v1563_v47 = vsel %vm444_vm3, %v1547_v14, %v1562_v19  ;;  %v1503_v41 = vsel %vm444_vm3, %v1501_v3, %v6623_v9  ;;  %v2482_v11 = vcombine.low %v1431_v25, %v1455_v54 }
 0x25a   :  { %v2466_v32 = vrot.slane %v2458_v28, %v5132_v50  ;;  %v2473_v52 = vrot.slane %v2459_v63, %v5132_v50  ;;  %v1527_v20 = vsel %vm444_vm3, %v1525_v0, %v6639_v58  ;;  %v2483_v38 = vcombine.low %v1443_v51, %v1467_v39 }
 0x25b   :  { %v1551_v35 = vsel %vm444_vm3, %v1549_v40, %v6642_v15  ;;  %v2625_v49 = vcombine.low %v1479_v13, %v1503_v41  ;;  %v2490_v55 = vrot.slane %v2482_v11, %v5132_v50  ;;  %v2626_v19 = vcombine.low %v1491_v62, %v1515_v23  ;;  %v2554_v11 = vld [vmem:[#allocation8 + $0x114] sm:$0xf] }
 0x25c   :  { %v2474_v18 = vcombine.low %v2466_v32, %v2473_v52  ;;  %v2649_v16 = vcombine.low %v1527_v20, %v1551_v35  ;;  %v2497_v9 = vrot.slane %v2483_v38, %v5132_v50  ;;  %v2650_v21 = vcombine.low %v1539_v17, %v1563_v47 }
 0x25d   :  { %v2633_v46 = vrot.slane %v2625_v49, %v5132_v50  ;;  %v1388_v25 = vshll.u32 %v6692_v42, 16  ;;  %v2640_v58 = vrot.slane %v2626_v19, %v5132_v50  ;;  %v6745_v51 = vsel %vm444_vm3, %v6692_v42, %v6647_v29 }
 0x25e   :  { %v2481_v54 = vrot.slane %v2474_v18, %v5132_v50  ;;  %v2657_v15 = vrot.slane %v2649_v16, %v5132_v50  ;;  %v2498_v62 = vcombine.low %v2490_v55, %v2497_v9  ;;  %v2664_v39 = vrot.slane %v2650_v21, %v5132_v50 }
 0x25f   :  { %v6750_v13 = vsel %vm444_vm3, %v1388_v25, %v6632_v12  ;;  %v1410_v10 = vrot.slane %v6692_v42, 1  ;;  %v2641_v23 = vcombine.low %v2633_v46, %v2640_v58  ;;  %v1434_v28 = vrot.slane %v6692_v42, 2  ;;  %v2558_v46 = vld [vmem:[#allocation8 + $0x11c] sm:$0x1] }
 0x260   :  { %v2524_v14 = vshrl.u32 %v2481_v54, 16  ;;  %v2527_v3 = vshll.u32 %v2481_v54, 16  ;;  %v2505_v63 = vrot.slane %v2498_v62, %v5132_v50  ;;  %v2665_v0 = vcombine.low %v2657_v15, %v2664_v39  ;;  %v2721_v62 = vld [vmem:[#allocation8 + $0x12c] sm:$0xf] }
 0x261   :  { %v1412_v17 = vshll.u32 %v1410_v10, 16  ;;  %v6757_v29 = vsel %vm444_vm3, %v1410_v10, %v6669_v8  ;;  %v2648_v47 = vrot.slane %v2641_v23, %v5132_v50  ;;  %v1436_v12 = vshll.u32 %v1434_v28, 16 }
 0x262   :  { %v2526_v40 = vrot.slane %v2524_v14, 7  ;;  %v6762_v41 = vsel %vm444_vm3, %v1434_v28, %v6675_v1  ;;  %v2532_v32 = vshrl.u32 %v2505_v63, 16  ;;  %v2535_v52 = vshll.u32 %v2505_v63, 16 }
 0x263   :  { %v2672_v20 = vrot.slane %v2665_v0, %v5132_v50  ;;  %v1414_v35 = vsel %vm444_vm3, %v1412_v17, %v6657_v4  ;;  %v2691_v8 = vshrl.u32 %v2648_v47, 16  ;;  %v2694_v18 = vshll.u32 %v2648_v47, 16 }
 0x264   :  { %v2529_v38 = vor.u32 %v2527_v3, %v2526_v40  ;;  %v2530_v49 = vrot.slane %v2526_v40, 4  ;;  %v2534_v55 = vrot.slane %v2532_v32, 7  ;;  %v1438_v9 = vsel %vm444_vm3, %v1436_v12, %v6660_v33  ;;  %v2725_v3 = vld [vmem:[#allocation8 + $0x134] sm:$0x1] }
 0x265   :  { %v2699_v19 = vshrl.u32 %v2672_v20, 16  ;;  %v2702_v16 = vshll.u32 %v2672_v20, 16  ;;  %v2693_v21 = vrot.slane %v2691_v8, 7  ;;  %v1458_v25 = vrot.slane %v6692_v42, 3 }
 0x266   :  { %v2555_v1 = vsel %vm5342_vm7, %v2529_v38, %v2554_v11  ;;  %v1482_v54 = vrot.slane %v6692_v42, 4  ;;  %v2537_v4 = vor.u32 %v2535_v52, %v2534_v55  ;;  %v2539_v58 = vrot.slane %v2534_v55, 4 }
 0x267   :  { %2556 = vst [vmem:[#allocation8 + $0x114] sm:$0xf] %v2555_v1  ;;  %v2701_v15 = vrot.slane %v2699_v19, 7  ;;  %v1506_v39 = vrot.slane %v6692_v42, 5  ;;  %v2696_v10 = vor.u32 %v2694_v18, %v2693_v21  ;;  %v2697_v14 = vrot.slane %v2693_v21, 4 }
 0x268   :  { %v1460_v33 = vshll.u32 %v1458_v25, 16  ;;  %v1472_v23 = vsel %vm444_vm3, %v1458_v25, %v6678_v56  ;;  %v2538_v28 = vsel %vm5353_vm8, %v2530_v49, %v2537_v4  ;;  %v2559_v63 = vsel %vm5363_vm9, %v2539_v58, %v2558_v46  ;;  %v7433_v4 = vld [vmem:[#allocation17_spill] sm:$0xff] }
 0x269   :  { %v2704_v0 = vor.u32 %v2702_v16, %v2701_v15  ;;  %v2706_v17 = vrot.slane %v2701_v15, 4  ;;  %2557 = vst [vmem:[#allocation8 + $0x118] sm:$0xf] %v2538_v28  ;;  %2560 = vst [vmem:[#allocation8 + $0x11c] sm:$0x1] %v2559_v63  ;;  %v2722_v40 = vsel %vm5342_vm7, %v2696_v10, %v2721_v62  ;;  %v1484_v12 = vshll.u32 %v1482_v54, 16 }
 0x26a   :  { %v1462_v47 = vsel %vm444_vm3, %v1460_v33, %v6663_v5  ;;  %v1496_v56 = vsel %vm444_vm3, %v1482_v54, %v6683_v57  ;;  %2723 = vst [vmem:[#allocation8 + $0x12c] sm:$0xf] %v2722_v40  ;;  %v1508_v11 = vshll.u32 %v1506_v39, 16  ;;  %v1520_v20 = vsel %vm444_vm3, %v1506_v39, %v6686_v43  ;;  %v7434_v15 = vld [vmem:[#allocation18_spill] sm:$0xff]  ;;  %v7437_v63 = vld [vmem:[#allocation21_spill] sm:$0xff] }
 0x26b   :  { %v2705_v32 = vsel %vm5353_vm8, %v2697_v14, %v2704_v0  ;;  %v2726_v52 = vsel %vm5363_vm9, %v2706_v17, %v2725_v3  ;;  %v1486_v5 = vsel %vm444_vm3, %v1484_v12, %v6666_v60  ;;  %v1530_v38 = vrot.slane %v6692_v42, 6  ;;  %v7435_v3 = vld [vmem:[#allocation19_spill] sm:$0xff] }
 0x26c   :  { %2724 = vst [vmem:[#allocation8 + $0x130] sm:$0xf] %v2705_v32  ;;  %2727 = vst [vmem:[#allocation8 + $0x134] sm:$0x1] %v2726_v52  ;;  %v1554_v57 = vrot.slane %v6692_v42, 7  ;;  %v3794_v49 = vcombine.low %v6750_v13, %v1414_v35  ;;  %v1510_v8 = vsel %vm444_vm3, %v1508_v11, %v6672_v45  ;;  %v3795_v18 = vcombine.low %v6745_v51, %v6757_v29  ;;  %v7438_v11 = vld [vmem:[#allocation22_spill] sm:$0xff] }
 0x26d   :  { %v3818_v55 = vcombine.low %v1438_v9, %v1462_v47  ;;  %v3819_v43 = vcombine.low %v6762_v41, %v1472_v23  ;;  %v1532_v19 = vshll.u32 %v1530_v38, 16  ;;  %v1544_v16 = vsel %vm444_vm3, %v1530_v38, %v6703_v44  ;;  %v7436_v23 = vld [vmem:[#allocation20_spill] sm:$0xff] }
 0x26e   :  { %v1556_v60 = vshll.u32 %v1554_v57, 16  ;;  %v1568_v1 = vsel %vm444_vm3, %v1554_v57, %v6706_v2  ;;  %v3802_v42 = vrot.slane %v3794_v49, %v5132_v50  ;;  %v3809_v13 = vrot.slane %v3795_v18, %v5132_v50  ;;  %v3890_v57 = vld [vmem:[#allocation8 + $0x120] sm:$0xf]  ;;  %v7439_v49 = vld [vmem:[#allocation23_spill] sm:$0xff]  ;;  %v7440_v18 = vld [vmem:[#allocation24_spill] sm:$0xff] }
 0x26f   :  { %v3826_v45 = vrot.slane %v3818_v55, %v5132_v50  ;;  %v3833_v35 = vrot.slane %v3819_v43, %v5132_v50  ;;  %v1534_v51 = vsel %vm444_vm3, %v1532_v19, %v6695_v22  ;;  %v3961_v41 = vcombine.low %v1486_v5, %v1510_v8  ;;  %v3894_v43 = vld [vmem:[#allocation8 + $0x128] sm:$0x1] }
 0x270   :  { %v1558_v29 = vsel %vm444_vm3, %v1556_v60, %v6698_v34  ;;  %v3962_v44 = vcombine.low %v1496_v56, %v1520_v20  ;;  %v3810_v9 = vcombine.low %v3802_v42, %v3809_v13  ;;  %v3986_v2 = vcombine.low %v1544_v16, %v1568_v1 }
 0x271   :  { %v3834_v46 = vcombine.low %v3826_v45, %v3833_v35  ;;  %v3985_v21 = vcombine.low %v1534_v51, %v1558_v29  ;;  %v3969_v25 = vrot.slane %v3961_v41, %v5132_v50  ;;  %v276_v58 = vadd.f32 %v7433_v4, %v5112_v26 }
 0x272   :  { %v3976_v54 = vrot.slane %v3962_v44, %v5132_v50  ;;  %v6820_v62 = vadd.f32 %v7434_v15, %v5114_v27  ;;  %v3817_v22 = vrot.slane %v3810_v9, %v5132_v50  ;;  %v4000_v10 = vrot.slane %v3986_v2, %v5132_v50  ;;  %v4057_v2 = vld [vmem:[#allocation8 + $0x138] sm:$0xf] }
 0x273   :  { %v3841_v34 = vrot.slane %v3834_v46, %v5132_v50  ;;  %v3993_v39 = vrot.slane %v3985_v21, %v5132_v50  ;;  %v6828_v33 = vadd.f32 %v7435_v3, %v5116_v30  ;;  %v6832_v28 = vadd.f32 %v7436_v23, %v5118_v31 }
 0x274   :  { %v3977_v14 = vcombine.low %v3969_v25, %v3976_v54  ;;  %v280_v0 = vadd.f32 %v7437_v63, %v5112_v26  ;;  %v3860_v17 = vshrl.u32 %v3817_v22, 16  ;;  %v3863_v40 = vshll.u32 %v3817_v22, 16  ;;  %v4061_v22 = vld [vmem:[#allocation8 + $0x140] sm:$0x1] }
 0x275   :  { %v3868_v47 = vshrl.u32 %v3841_v34, 16  ;;  %v3871_v12 = vshll.u32 %v3841_v34, 16  ;;  %v4001_v32 = vcombine.low %v3993_v39, %v4000_v10  ;;  %v393_v20 = vadd.f32 %v7438_v11, %v5114_v27 }
 0x276   :  { %v3984_v56 = vrot.slane %v3977_v14, %v5132_v50  ;;  %v6837_v52 = vpack.c.bf16 %v280_v0, %v276_v58  ;;  %v3862_v5 = vrot.slane %v3860_v17, 7  ;;  %v282_v8 = vadd.f32 %v7439_v49, %v5116_v30 }
 0x277   :  { %v3870_v38 = vrot.slane %v3868_v47, 7  ;;  %v6845_v55 = vadd.f32 %v7440_v18, %v5118_v31  ;;  %v4008_v19 = vrot.slane %v4001_v32, %v5132_v50 }
 0x278   :  { %v4027_v16 = vshrl.u32 %v3984_v56, 16  ;;  %v4030_v60 = vshll.u32 %v3984_v56, 16  ;;  %v6850_v1 = vsel %vm439_vm2, %v6837_v52, 0  ;;  %v3865_v42 = vor.u32 %v3863_v40, %v3862_v5 }
 0x279   :  { %v3866_v13 = vrot.slane %v3862_v5, 4  ;;  %v3873_v45 = vor.u32 %v3871_v12, %v3870_v38  ;;  %v3875_v35 = vrot.slane %v3870_v38, 4  ;;  %v4035_v29 = vshrl.u32 %v4008_v19, 16 }
 0x27a   :  { %v4029_v51 = vrot.slane %v4027_v16, 7  ;;  %v4038_v41 = vshll.u32 %v4008_v19, 16  ;;  %v1580_v44 = vshrl.u32 %v6837_v52, 16  ;;  %v3891_v46 = vsel %vm5342_vm7, %v3865_v42, %v3890_v57 }
 0x27b   :  { %v3874_v9 = vsel %vm5353_vm8, %v3866_v13, %v3873_v45  ;;  %v3895_v21 = vsel %vm5363_vm9, %v3875_v35, %v3894_v43  ;;  %v1589_v25 = vrot.slane %v6837_v52, 1  ;;  %3892 = vst [vmem:[#allocation8 + $0x120] sm:$0xf] %v3891_v46  ;;  %v4037_v58 = vrot.slane %v4035_v29, 7 }
 0x27c   :  { %3893 = vst [vmem:[#allocation8 + $0x124] sm:$0xf] %v3874_v9  ;;  %3896 = vst [vmem:[#allocation8 + $0x128] sm:$0x1] %v3895_v21  ;;  %v4032_v54 = vor.u32 %v4030_v60, %v4029_v51  ;;  %v4033_v4 = vrot.slane %v4029_v51, 4  ;;  %v6861_v15 = vsel %vm439_vm2, %v1580_v44, 0  ;;  %v433_v16 = vpack.c.bf16 %v393_v20, %v6820_v62 }
 0x27d   :  { %v6864_v34 = vsel %vm439_vm2, %v1589_v25, 0  ;;  %v1604_v39 = vshrl.u32 %v1589_v25, 16  ;;  %v1613_v10 = vrot.slane %v6837_v52, 2  ;;  %v1637_v14 = vrot.slane %v6837_v52, 3 }
 0x27e   :  { %v4040_v3 = vor.u32 %v4038_v41, %v4037_v58  ;;  %v4042_v23 = vrot.slane %v4037_v58, 4  ;;  %v4058_v63 = vsel %vm5342_vm7, %v4032_v54, %v4057_v2  ;;  %v1661_v0 = vrot.slane %v6837_v52, 4 }
 0x27f   :  { %4059 = vst [vmem:[#allocation8 + $0x138] sm:$0xf] %v4058_v63  ;;  %v6872_v17 = vsel %vm439_vm2, %v1604_v39, 0  ;;  %v6875_v40 = vsel %vm439_vm2, %v1613_v10, 0  ;;  %v1628_v47 = vshrl.u32 %v1613_v10, 16  ;;  %v6878_v12 = vsel %vm439_vm2, %v1637_v14, 0 }
 0x280   :  { %v4041_v56 = vsel %vm5353_vm8, %v4033_v4, %v4040_v3  ;;  %v4062_v32 = vsel %vm5363_vm9, %v4042_v23, %v4061_v22  ;;  %v1652_v11 = vshrl.u32 %v1637_v14, 16  ;;  %v6885_v5 = vsel %vm439_vm2, %v1661_v0, 0 }
 0x281   :  { %4060 = vst [vmem:[#allocation8 + $0x13c] sm:$0xf] %v4041_v56  ;;  %4063 = vst [vmem:[#allocation8 + $0x140] sm:$0x1] %v4062_v32  ;;  %v1630_v38 = vsel %vm439_vm2, %v1628_v47, 0  ;;  %v1676_v57 = vshrl.u32 %v1661_v0, 16  ;;  %v6894_v60 = vpack.c.bf16 %v282_v8, %v6828_v33 }
 0x282   :  { %v1685_v49 = vrot.slane %v6837_v52, 5  ;;  %v1709_v18 = vrot.slane %v6837_v52, 6  ;;  %v1654_v43 = vsel %vm439_vm2, %v1652_v11, 0  ;;  %v1733_v19 = vrot.slane %v6837_v52, 7 }
 0x283   :  { %v1678_v42 = vsel %vm439_vm2, %v1676_v57, 0  ;;  %v6907_v52 = vsel %vm439_vm2, %v433_v16, 0  ;;  %v1585_v33 = vshrl.u32 %v433_v16, 16  ;;  %v1596_v20 = vrot.slane %v433_v16, 1 }
 0x284   :  { %v6898_v13 = vsel %vm439_vm2, %v1685_v49, 0  ;;  %v1700_v45 = vshrl.u32 %v1685_v49, 16  ;;  %v6901_v35 = vsel %vm439_vm2, %v1709_v18, 0  ;;  %v1724_v51 = vshrl.u32 %v1709_v18, 16 }
 0x285   :  { %v6904_v29 = vsel %vm439_vm2, %v1733_v19, 0  ;;  %v1748_v41 = vshrl.u32 %v1733_v19, 16  ;;  %v1620_v8 = vrot.slane %v433_v16, 2  ;;  %v1644_v46 = vrot.slane %v433_v16, 3 }
 0x286   :  { %v1702_v62 = vsel %vm439_vm2, %v1700_v45, 0  ;;  %v1726_v44 = vsel %vm439_vm2, %v1724_v51, 0  ;;  %v1668_v21 = vrot.slane %v433_v16, 4  ;;  %v6913_v2 = vsel %vm439_vm2, %v1585_v33, 0 }
 0x287   :  { %v1750_v9 = vsel %vm439_vm2, %v1748_v41, 0  ;;  %v6916_v25 = vsel %vm439_vm2, %v1596_v20, 0  ;;  %v1609_v54 = vshrl.u32 %v1596_v20, 16  ;;  %v6919_v4 = vsel %vm439_vm2, %v1620_v8, 0 }
 0x288   :  { %v1633_v58 = vshrl.u32 %v1620_v8, 16  ;;  %v6922_v22 = vsel %vm439_vm2, %v1644_v46, 0  ;;  %v1657_v39 = vshrl.u32 %v1644_v46, 16  ;;  %v6925_v10 = vsel %vm439_vm2, %v1668_v21, 0 }
 0x289   :  { %v6928_v14 = vsel %vm439_vm2, %v1609_v54, 0  ;;  %v1681_v3 = vshrl.u32 %v1668_v21, 16  ;;  %v1692_v23 = vrot.slane %v433_v16, 5  ;;  %v1716_v63 = vrot.slane %v433_v16, 6 }
 0x28a   :  { %v6931_v0 = vsel %vm439_vm2, %v1633_v58, 0  ;;  %v6934_v47 = vsel %vm439_vm2, %v1657_v39, 0  ;;  %v1740_v56 = vrot.slane %v433_v16, 7  ;;  %v1571_v32 = vshll.u32 %v6894_v60, 16 }
 0x28b   :  { %v6938_v11 = vsel %vm439_vm2, %v1681_v3, 0  ;;  %v6941_v57 = vsel %vm439_vm2, %v1692_v23, 0  ;;  %v1705_v49 = vshrl.u32 %v1692_v23, 16  ;;  %v6944_v18 = vsel %vm439_vm2, %v1716_v63, 0 }
 0x28c   :  { %v1729_v19 = vshrl.u32 %v1716_v63, 16  ;;  %v6947_v45 = vsel %vm439_vm2, %v1740_v56, 0  ;;  %v1753_v51 = vshrl.u32 %v1740_v56, 16  ;;  %v1573_v16 = vsel %vm444_vm3, %v1571_v32, %v6850_v1 }
 0x28d   :  { %v6952_v41 = vsel %vm439_vm2, %v1705_v49, 0  ;;  %v1583_v33 = vsel %vm444_vm3, %v6894_v60, %v6861_v15  ;;  %v1591_v20 = vrot.slane %v6894_v60, 1  ;;  %v1615_v8 = vrot.slane %v6894_v60, 2 }
 0x28e   :  { %v6960_v46 = vsel %vm439_vm2, %v1729_v19, 0  ;;  %v6963_v21 = vsel %vm439_vm2, %v1753_v51, 0  ;;  %v1639_v54 = vrot.slane %v6894_v60, 3  ;;  %v1663_v1 = vrot.slane %v6894_v60, 4 }
 0x28f   :  { %v1593_v58 = vshll.u32 %v1591_v20, 16  ;;  %v1607_v39 = vsel %vm444_vm3, %v1591_v20, %v6872_v17  ;;  %v1617_v3 = vshll.u32 %v1615_v8, 16  ;;  %v1631_v15 = vsel %vm444_vm3, %v1615_v8, %v1630_v38 }
 0x290   :  { %v1641_v23 = vshll.u32 %v1639_v54, 16  ;;  %v1655_v63 = vsel %vm444_vm3, %v1639_v54, %v1654_v43  ;;  %v1665_v56 = vshll.u32 %v1663_v1, 16  ;;  %v1679_v32 = vsel %vm444_vm3, %v1663_v1, %v1678_v42 }
 0x291   :  { %v1595_v49 = vsel %vm444_vm3, %v1593_v58, %v6864_v34  ;;  %v1619_v19 = vsel %vm444_vm3, %v1617_v3, %v6875_v40  ;;  %v1687_v51 = vrot.slane %v6894_v60, 5  ;;  %v1711_v61 = vrot.slane %v6894_v60, 6 }
 0x292   :  { %v1643_v17 = vsel %vm444_vm3, %v1641_v23, %v6878_v12  ;;  %v1667_v38 = vsel %vm444_vm3, %v1665_v56, %v6885_v5  ;;  %v1735_v43 = vrot.slane %v6894_v60, 7  ;;  %v2792_v20 = vcombine.low %v1573_v16, %v1595_v49 }
 0x293   :  { %v1689_v42 = vshll.u32 %v1687_v51, 16  ;;  %v1703_v8 = vsel %vm444_vm3, %v1687_v51, %v1702_v62  ;;  %v1713_v34 = vshll.u32 %v1711_v61, 16  ;;  %v1727_v54 = vsel %vm444_vm3, %v1711_v61, %v1726_v44 }
 0x294   :  { %v1737_v40 = vshll.u32 %v1735_v43, 16  ;;  %v1751_v1 = vsel %vm444_vm3, %v1735_v43, %v1750_v9  ;;  %v2793_v58 = vcombine.low %v1583_v33, %v1607_v39  ;;  %v2800_v3 = vrot.slane %v2792_v20, %v5132_v50 }
 0x295   :  { %v1691_v12 = vsel %vm444_vm3, %v1689_v42, %v6898_v13  ;;  %v1715_v5 = vsel %vm444_vm3, %v1713_v34, %v6901_v35  ;;  %v2816_v60 = vcombine.low %v1619_v19, %v1643_v17  ;;  %v2817_v16 = vcombine.low %v1631_v15, %v1655_v63 }
 0x296   :  { %v1739_v62 = vsel %vm444_vm3, %v1737_v40, %v6904_v29  ;;  %v2807_v23 = vrot.slane %v2793_v58, %v5132_v50  ;;  %v2959_v61 = vcombine.low %v1667_v38, %v1691_v12  ;;  %v2960_v44 = vcombine.low %v1679_v32, %v1703_v8 }
 0x297   :  { %v2824_v9 = vrot.slane %v2816_v60, %v5132_v50  ;;  %v2831_v33 = vrot.slane %v2817_v16, %v5132_v50  ;;  %v2983_v39 = vcombine.low %v1715_v5, %v1739_v62  ;;  %v2984_v56 = vcombine.low %v1727_v54, %v1751_v1  ;;  %v2888_v62 = vld [vmem:[#allocation8 + $0x144] sm:$0xf] }
 0x298   :  { %v2808_v49 = vcombine.low %v2800_v3, %v2807_v23  ;;  %v2967_v13 = vrot.slane %v2959_v61, %v5132_v50  ;;  %v2974_v35 = vrot.slane %v2960_v44, %v5132_v50  ;;  %v7000_v15 = vpack.c.bf16 %v6845_v55, %v6832_v28 }
 0x299   :  { %v2832_v29 = vcombine.low %v2824_v9, %v2831_v33  ;;  %v2991_v63 = vrot.slane %v2983_v39, %v5132_v50  ;;  %v2998_v32 = vrot.slane %v2984_v56, %v5132_v50  ;;  %v7006_v19 = vadd.f32 %v6479_v24, %v5112_v26  ;;  %v2892_v33 = vld [vmem:[#allocation8 + $0x14c] sm:$0x1] }
 0x29a   :  { %v2815_v51 = vrot.slane %v2808_v49, %v5132_v50  ;;  %v2975_v17 = vcombine.low %v2967_v13, %v2974_v35  ;;  %v1576_v38 = vshll.u32 %v7000_v15, 16  ;;  %v7013_v43 = vsel %vm444_vm3, %v7000_v15, %v6913_v2 }
 0x29b   :  { %v2839_v28 = vrot.slane %v2832_v29, %v5132_v50  ;;  %v2999_v55 = vcombine.low %v2991_v63, %v2998_v32  ;;  %v1598_v20 = vrot.slane %v7000_v15, 1  ;;  %v1622_v42 = vrot.slane %v7000_v15, 2  ;;  %v3055_v29 = vld [vmem:[#allocation8 + $0x15c] sm:$0xf] }
 0x29c   :  { %v2858_v8 = vshrl.u32 %v2815_v51, 16  ;;  %v2861_v24 = vshll.u32 %v2815_v51, 16  ;;  %v2982_v34 = vrot.slane %v2975_v17, %v5132_v50  ;;  %v7021_v54 = vsel %vm444_vm3, %v1576_v38, %v6907_v52  ;;  %v3059_v17 = vld [vmem:[#allocation8 + $0x164] sm:$0x1] }
 0x29d   :  { %v2866_v40 = vshrl.u32 %v2839_v28, 16  ;;  %v2869_v1 = vshll.u32 %v2839_v28, 16  ;;  %v3006_v2 = vrot.slane %v2999_v55, %v5132_v50  ;;  %v1600_v58 = vshll.u32 %v1598_v20, 16 }
 0x29e   :  { %v2860_v3 = vrot.slane %v2858_v8, 7  ;;  %v3025_v12 = vshrl.u32 %v2982_v34, 16  ;;  %v3028_v5 = vshll.u32 %v2982_v34, 16  ;;  %v1612_v60 = vsel %vm444_vm3, %v1598_v20, %v6928_v14 }
 0x29f   :  { %v2868_v16 = vrot.slane %v2866_v40, 7  ;;  %v3033_v23 = vshrl.u32 %v3006_v2, 16  ;;  %v3036_v61 = vshll.u32 %v3006_v2, 16  ;;  %v1602_v44 = vsel %vm444_vm3, %v1600_v58, %v6916_v25 }
 0x2a0   :  { %v2863_v52 = vor.u32 %v2861_v24, %v2860_v3  ;;  %v2864_v9 = vrot.slane %v2860_v3, 4  ;;  %v3027_v39 = vrot.slane %v3025_v12, 7  ;;  %v1624_v56 = vshll.u32 %v1622_v42, 16 }
 0x2a1   :  { %v2871_v49 = vor.u32 %v2869_v1, %v2868_v16  ;;  %v2873_v13 = vrot.slane %v2868_v16, 4  ;;  %v3035_v35 = vrot.slane %v3033_v23, 7  ;;  %v1636_v63 = vsel %vm444_vm3, %v1622_v42, %v6931_v0 }
 0x2a2   :  { %v2889_v14 = vsel %vm5342_vm7, %v2863_v52, %v2888_v62  ;;  %v3030_v32 = vor.u32 %v3028_v5, %v3027_v39  ;;  %v3031_v51 = vrot.slane %v3027_v39, 4  ;;  %v1626_v25 = vsel %vm444_vm3, %v1624_v56, %v6919_v4 }
 0x2a3   :  { %v2872_v38 = vsel %vm5353_vm8, %v2864_v9, %v2871_v49  ;;  %2890 = vst [vmem:[#allocation8 + $0x144] sm:$0xf] %v2889_v14  ;;  %v2893_v28 = vsel %vm5363_vm9, %v2873_v13, %v2892_v33  ;;  %v3038_v55 = vor.u32 %v3036_v61, %v3035_v35  ;;  %v3040_v20 = vrot.slane %v3035_v35, 4 }
 0x2a4   :  { %2891 = vst [vmem:[#allocation8 + $0x148] sm:$0xf] %v2872_v38  ;;  %2894 = vst [vmem:[#allocation8 + $0x14c] sm:$0x1] %v2893_v28  ;;  %v3056_v0 = vsel %vm5342_vm7, %v3030_v32, %v3055_v29  ;;  %v1646_v42 = vrot.slane %v7000_v15, 3  ;;  %v1670_v8 = vrot.slane %v7000_v15, 4  ;;  %v4128_v9 = vcombine.low %v7021_v54, %v1602_v44 }
 0x2a5   :  { %v1694_v4 = vrot.slane %v7000_v15, 5  ;;  %v3039_v24 = vsel %vm5353_vm8, %v3031_v51, %v3038_v55  ;;  %3057 = vst [vmem:[#allocation8 + $0x15c] sm:$0xf] %v3056_v0  ;;  %v3060_v34 = vsel %vm5363_vm9, %v3040_v20, %v3059_v17  ;;  %v1718_v40 = vrot.slane %v7000_v15, 6  ;;  %v7441_v38 = vld [vmem:[#allocation25_spill] sm:$0xff]  ;;  %v7442_v20 = vld [vmem:[#allocation26_spill] sm:$0xff] }
 0x2a6   :  { %v1742_v1 = vrot.slane %v7000_v15, 7  ;;  %3058 = vst [vmem:[#allocation8 + $0x160] sm:$0xf] %v3039_v24  ;;  %3061 = vst [vmem:[#allocation8 + $0x164] sm:$0x1] %v3060_v34  ;;  %v1648_v2 = vshll.u32 %v1646_v42, 16  ;;  %v1660_v58 = vsel %vm444_vm3, %v1646_v42, %v6934_v47  ;;  %v1684_v12 = vsel %vm444_vm3, %v1670_v8, %v6938_v11 }
 0x2a7   :  { %v1672_v3 = vshll.u32 %v1670_v8, 16  ;;  %v1696_v5 = vshll.u32 %v1694_v4, 16  ;;  %v1708_v16 = vsel %vm444_vm3, %v1694_v4, %v6952_v41  ;;  %v1720_v62 = vshll.u32 %v1718_v40, 16  ;;  %v7443_v0 = vld [vmem:[#allocation12_spill] sm:$0xff] }
 0x2a8   :  { %v1732_v23 = vsel %vm444_vm3, %v1718_v40, %v6960_v46  ;;  %v1650_v15 = vsel %vm444_vm3, %v1648_v2, %v6922_v22  ;;  %v1744_v52 = vshll.u32 %v1742_v1, 16  ;;  %v1756_v47 = vsel %vm444_vm3, %v1742_v1, %v6963_v21 }
 0x2a9   :  { %v1674_v61 = vsel %vm444_vm3, %v1672_v3, %v6925_v10  ;;  %v1698_v11 = vsel %vm444_vm3, %v1696_v5, %v6941_v57  ;;  %v1722_v41 = vsel %vm444_vm3, %v1720_v62, %v6944_v18  ;;  %v4129_v46 = vcombine.low %v7013_v43, %v1612_v60  ;;  %v4228_v62 = vld [vmem:[#allocation8 + $0x158] sm:$0x1] }
 0x2aa   :  { %v1746_v22 = vsel %vm444_vm3, %v1744_v52, %v6947_v45  ;;  %v4152_v33 = vcombine.low %v1626_v25, %v1650_v15  ;;  %v4153_v39 = vcombine.low %v1636_v63, %v1660_v58  ;;  %v4295_v10 = vcombine.low %v1674_v61, %v1698_v11  ;;  %v4224_v58 = vld [vmem:[#allocation8 + $0x150] sm:$0xf]  ;;  %v4391_v11 = vld [vmem:[#allocation8 + $0x168] sm:$0xf] }
 0x2ab   :  { %v4136_v56 = vrot.slane %v4128_v9, %v5132_v50  ;;  %v4143_v21 = vrot.slane %v4129_v46, %v5132_v50  ;;  %v4296_v49 = vcombine.low %v1684_v12, %v1708_v16  ;;  %v4319_v13 = vcombine.low %v1722_v41, %v1746_v22 }
 0x2ac   :  { %v4160_v57 = vrot.slane %v4152_v33, %v5132_v50  ;;  %v4167_v18 = vrot.slane %v4153_v39, %v5132_v50  ;;  %v4303_v54 = vrot.slane %v4295_v10, %v5132_v50  ;;  %v4320_v44 = vcombine.low %v1732_v23, %v1756_v47  ;;  %v4395_v33 = vld [vmem:[#allocation8 + $0x170] sm:$0x1] }
 0x2ad   :  { %v4144_v43 = vcombine.low %v4136_v56, %v4143_v21  ;;  %v4310_v60 = vrot.slane %v4296_v49, %v5132_v50  ;;  %v4327_v45 = vrot.slane %v4319_v13, %v5132_v50  ;;  %v399_v35 = vadd.f32 %v6481_v6, %v5114_v27 }
 0x2ae   :  { %v4168_v29 = vcombine.low %v4160_v57, %v4167_v18  ;;  %v4334_v63 = vrot.slane %v4320_v44, %v5132_v50  ;;  %v7083_v14 = vadd.f32 %v6499_v48, %v5116_v30  ;;  %v7087_v32 = vadd.f32 %v6501_v36, %v5118_v31 }
 0x2af   :  { %v4151_v51 = vrot.slane %v4144_v43, %v5132_v50  ;;  %v4311_v17 = vcombine.low %v4303_v54, %v4310_v60  ;;  %v290_v25 = vadd.f32 %v6508_v59, %v5112_v26  ;;  %v403_v6 = vadd.f32 %v7441_v38, %v5114_v27 }
 0x2b0   :  { %v4175_v28 = vrot.slane %v4168_v29, %v5132_v50  ;;  %v4335_v55 = vcombine.low %v4327_v45, %v4334_v63  ;;  %v7097_v48 = vadd.f32 %v7442_v20, %v5116_v30  ;;  %v7101_v36 = vadd.f32 %v7443_v0, %v5118_v31 }
 0x2b1   :  { %v4194_v42 = vshrl.u32 %v4151_v51, 16  ;;  %v4197_v8 = vshll.u32 %v4151_v51, 16  ;;  %v4318_v4 = vrot.slane %v4311_v17, %v5132_v50  ;;  %v7105_v26 = vpack.c.bf16 %v290_v25, %v7006_v19 }
 0x2b2   :  { %v4202_v59 = vshrl.u32 %v4175_v28, 16  ;;  %v4205_v27 = vshll.u32 %v4175_v28, 16  ;;  %v4342_v24 = vrot.slane %v4335_v55, %v5132_v50  ;;  %v7108_v34 = vpack.c.bf16 %v403_v6, %v399_v35 }
 0x2b3   :  { %v4196_v40 = vrot.slane %v4194_v42, 7  ;;  %v4361_v30 = vshrl.u32 %v4318_v4, 16  ;;  %v4364_v1 = vshll.u32 %v4318_v4, 16  ;;  %v7112_v31 = vsel %vm439_vm2, %v7105_v26, 0 }
 0x2b4   :  { %v4204_v2 = vrot.slane %v4202_v59, 7  ;;  %v4369_v3 = vshrl.u32 %v4342_v24, 16  ;;  %v4372_v12 = vshll.u32 %v4342_v24, 16  ;;  %v1768_v19 = vshrl.u32 %v7105_v26, 16 }
 0x2b5   :  { %v4199_v5 = vor.u32 %v4197_v8, %v4196_v40  ;;  %v4200_v16 = vrot.slane %v4196_v40, 4  ;;  %v4363_v23 = vrot.slane %v4361_v30, 7  ;;  %v1777_v15 = vrot.slane %v7105_v26, 1 }
 0x2b6   :  { %v4207_v61 = vor.u32 %v4205_v27, %v4204_v2  ;;  %v4209_v52 = vrot.slane %v4204_v2, 4  ;;  %v4371_v47 = vrot.slane %v4369_v3, 7  ;;  %v7117_v41 = vsel %vm439_vm2, %v1768_v19, 0 }
 0x2b7   :  { %v4225_v9 = vsel %vm5342_vm7, %v4199_v5, %v4224_v58  ;;  %v4366_v46 = vor.u32 %v4364_v1, %v4363_v23  ;;  %v4367_v22 = vrot.slane %v4363_v23, 4  ;;  %v7122_v39 = vsel %vm439_vm2, %v1777_v15, 0 }
 0x2b8   :  { %v4208_v10 = vsel %vm5353_vm8, %v4200_v16, %v4207_v61  ;;  %4226 = vst [vmem:[#allocation8 + $0x150] sm:$0xf] %v4225_v9  ;;  %v4229_v56 = vsel %vm5363_vm9, %v4209_v52, %v4228_v62  ;;  %v4374_v21 = vor.u32 %v4372_v12, %v4371_v47  ;;  %v4376_v49 = vrot.slane %v4371_v47, 4 }
 0x2b9   :  { %4227 = vst [vmem:[#allocation8 + $0x154] sm:$0xf] %v4208_v10  ;;  %4230 = vst [vmem:[#allocation8 + $0x158] sm:$0x1] %v4229_v56  ;;  %v4392_v13 = vsel %vm5342_vm7, %v4366_v46, %v4391_v11  ;;  %v1792_v57 = vshrl.u32 %v1777_v15, 16  ;;  %v1801_v18 = vrot.slane %v7105_v26, 2 }
 0x2ba   :  { %v1825_v54 = vrot.slane %v7105_v26, 3  ;;  %v4375_v44 = vsel %vm5353_vm8, %v4367_v22, %v4374_v21  ;;  %4393 = vst [vmem:[#allocation8 + $0x168] sm:$0xf] %v4392_v13  ;;  %v4396_v43 = vsel %vm5363_vm9, %v4376_v49, %v4395_v33  ;;  %v1849_v60 = vrot.slane %v7105_v26, 4 }
 0x2bb   :  { %v1873_v45 = vrot.slane %v7105_v26, 5  ;;  %4394 = vst [vmem:[#allocation8 + $0x16c] sm:$0xf] %v4375_v44  ;;  %4397 = vst [vmem:[#allocation8 + $0x170] sm:$0x1] %v4396_v43  ;;  %v7139_v35 = vsel %vm439_vm2, %v1792_v57, 0 }
 0x2bc   :  { %v7142_v29 = vsel %vm439_vm2, %v1801_v18, 0  ;;  %v1816_v63 = vshrl.u32 %v1801_v18, 16  ;;  %v7145_v51 = vsel %vm439_vm2, %v1825_v54, 0  ;;  %v1840_v17 = vshrl.u32 %v1825_v54, 16 }
 0x2bd   :  { %v7148_v25 = vsel %vm439_vm2, %v1849_v60, 0  ;;  %v1864_v38 = vshrl.u32 %v1849_v60, 16  ;;  %v7151_v6 = vsel %vm439_vm2, %v1873_v45, 0  ;;  %v1888_v55 = vshrl.u32 %v1873_v45, 16 }
 0x2be   :  { %v1818_v28 = vsel %vm439_vm2, %v1816_v63, 0  ;;  %v1897_v20 = vrot.slane %v7105_v26, 6  ;;  %v1921_v0 = vrot.slane %v7105_v26, 7  ;;  %v1842_v42 = vsel %vm439_vm2, %v1840_v17, 0 }
 0x2bf   :  { %v1866_v8 = vsel %vm439_vm2, %v1864_v38, 0  ;;  %v7160_v4 = vsel %vm439_vm2, %v7108_v34, 0  ;;  %v1773_v59 = vshrl.u32 %v7108_v34, 16  ;;  %v1890_v27 = vsel %vm439_vm2, %v1888_v55, 0 }
 0x2c0   :  { %v7165_v24 = vsel %vm439_vm2, %v1897_v20, 0  ;;  %v1912_v40 = vshrl.u32 %v1897_v20, 16  ;;  %v7168_v30 = vsel %vm439_vm2, %v1921_v0, 0  ;;  %v1936_v26 = vshrl.u32 %v1921_v0, 16 }
 0x2c1   :  { %v7171_v1 = vsel %vm439_vm2, %v1773_v59, 0  ;;  %v1784_v2 = vrot.slane %v7108_v34, 1  ;;  %v1808_v58 = vrot.slane %v7108_v34, 2  ;;  %v1832_v12 = vrot.slane %v7108_v34, 3 }
 0x2c2   :  { %v1914_v3 = vsel %vm439_vm2, %v1912_v40, 0  ;;  %v1856_v19 = vrot.slane %v7108_v34, 4  ;;  %v1880_v5 = vrot.slane %v7108_v34, 5  ;;  %v1938_v16 = vsel %vm439_vm2, %v1936_v26, 0 }
 0x2c3   :  { %v7181_v62 = vsel %vm439_vm2, %v1784_v2, 0  ;;  %v1797_v23 = vshrl.u32 %v1784_v2, 16  ;;  %v7184_v15 = vsel %vm439_vm2, %v1808_v58, 0  ;;  %v1821_v61 = vshrl.u32 %v1808_v58, 16 }
 0x2c4   :  { %v7187_v52 = vsel %vm439_vm2, %v1832_v12, 0  ;;  %v1845_v47 = vshrl.u32 %v1832_v12, 16  ;;  %v7190_v11 = vsel %vm439_vm2, %v1856_v19, 0  ;;  %v1869_v46 = vshrl.u32 %v1856_v19, 16 }
 0x2c5   :  { %v7193_v9 = vsel %vm439_vm2, %v1797_v23, 0  ;;  %v7196_v22 = vsel %vm439_vm2, %v1880_v5, 0  ;;  %v1893_v33 = vshrl.u32 %v1880_v5, 16  ;;  %v7199_v10 = vsel %vm439_vm2, %v1821_v61, 0 }
 0x2c6   :  { %v7202_v56 = vsel %vm439_vm2, %v1845_v47, 0  ;;  %v1904_v21 = vrot.slane %v7108_v34, 6  ;;  %v1928_v49 = vrot.slane %v7108_v34, 7  ;;  %v7207_v13 = vsel %vm439_vm2, %v1869_v46, 0 }
 0x2c7   :  { %v7210_v57 = vsel %vm439_vm2, %v1893_v33, 0  ;;  %v436_v18 = vpack.c.bf16 %v7097_v48, %v7083_v14  ;;  %v7216_v54 = vpack.c.bf16 %v7101_v36, %v7087_v32 }
 0x2c8   :  { %v7219_v44 = vsel %vm439_vm2, %v1904_v21, 0  ;;  %v1917_v43 = vshrl.u32 %v1904_v21, 16  ;;  %v7222_v60 = vsel %vm439_vm2, %v1928_v49, 0  ;;  %v1941_v34 = vshrl.u32 %v1928_v49, 16 }
 0x2c9   :  { %v1759_v45 = vshll.u32 %v436_v18, 16  ;;  %v1771_v63 = vsel %vm444_vm3, %v436_v18, %v7117_v41  ;;  %v1779_v17 = vrot.slane %v436_v18, 1  ;;  %v1803_v38 = vrot.slane %v436_v18, 2 }
 0x2ca   :  { %v7227_v14 = vsel %vm439_vm2, %v1917_v43, 0  ;;  %v7230_v32 = vsel %vm439_vm2, %v1941_v34, 0  ;;  %v1827_v48 = vrot.slane %v436_v18, 3  ;;  %v1851_v36 = vrot.slane %v436_v18, 4 }
 0x2cb   :  { %v1761_v55 = vsel %vm444_vm3, %v1759_v45, %v7112_v31  ;;  %v1781_v20 = vshll.u32 %v1779_v17, 16  ;;  %v1795_v0 = vsel %vm444_vm3, %v1779_v17, %v7139_v35  ;;  %v1805_v59 = vshll.u32 %v1803_v38, 16 }
 0x2cc   :  { %v1819_v41 = vsel %vm444_vm3, %v1803_v38, %v1818_v28  ;;  %v1829_v40 = vshll.u32 %v1827_v48, 16  ;;  %v1843_v26 = vsel %vm444_vm3, %v1827_v48, %v1842_v42  ;;  %v1853_v2 = vshll.u32 %v1851_v36, 16 }
 0x2cd   :  { %v1783_v58 = vsel %vm444_vm3, %v1781_v20, %v7122_v39  ;;  %v1807_v12 = vsel %vm444_vm3, %v1805_v59, %v7142_v29  ;;  %v1867_v19 = vsel %vm444_vm3, %v1851_v36, %v1866_v8  ;;  %v1875_v31 = vrot.slane %v436_v18, 5 }
 0x2ce   :  { %v1831_v5 = vsel %vm444_vm3, %v1829_v40, %v7145_v51  ;;  %v1855_v35 = vsel %vm444_vm3, %v1853_v2, %v7148_v25  ;;  %v1899_v28 = vrot.slane %v436_v18, 6  ;;  %v1923_v23 = vrot.slane %v436_v18, 7 }
 0x2cf   :  { %v1877_v61 = vshll.u32 %v1875_v31, 16  ;;  %v1891_v42 = vsel %vm444_vm3, %v1875_v31, %v1890_v27  ;;  %v3126_v47 = vcombine.low %v1761_v55, %v1783_v58  ;;  %v3127_v46 = vcombine.low %v1771_v63, %v1795_v0 }
 0x2d0   :  { %v1901_v39 = vshll.u32 %v1899_v28, 16  ;;  %v1915_v33 = vsel %vm444_vm3, %v1899_v28, %v1914_v3  ;;  %v1925_v29 = vshll.u32 %v1923_v23, 16  ;;  %v1939_v8 = vsel %vm444_vm3, %v1923_v23, %v1938_v16 }
 0x2d1   :  { %v1879_v21 = vsel %vm444_vm3, %v1877_v61, %v7151_v6  ;;  %v3134_v51 = vrot.slane %v3126_v47, %v5132_v50  ;;  %v3141_v25 = vrot.slane %v3127_v46, %v5132_v50  ;;  %v3150_v49 = vcombine.low %v1807_v12, %v1831_v5 }
 0x2d2   :  { %v1903_v18 = vsel %vm444_vm3, %v1901_v39, %v7165_v24  ;;  %v1927_v27 = vsel %vm444_vm3, %v1925_v29, %v7168_v30  ;;  %v3151_v43 = vcombine.low %v1819_v41, %v1843_v26  ;;  %v3293_v34 = vcombine.low %v1855_v35, %v1879_v21 }
 0x2d3   :  { %v3142_v3 = vcombine.low %v3134_v51, %v3141_v25  ;;  %v3158_v45 = vrot.slane %v3150_v49, %v5132_v50  ;;  %v3294_v16 = vcombine.low %v1867_v19, %v1891_v42  ;;  %v3317_v63 = vcombine.low %v1903_v18, %v1927_v27  ;;  %v3222_v42 = vld [vmem:[#allocation8 + $0x174] sm:$0xf]  ;;  %v3226_v49 = vld [vmem:[#allocation8 + $0x17c] sm:$0x1] }
 0x2d4   :  { %v3165_v6 = vrot.slane %v3151_v43, %v5132_v50  ;;  %v3301_v17 = vrot.slane %v3293_v34, %v5132_v50  ;;  %v3318_v38 = vcombine.low %v1915_v33, %v1939_v8  ;;  %v1764_v48 = vshll.u32 %v7216_v54, 16 }
 0x2d5   :  { %v3149_v36 = vrot.slane %v3142_v3, %v5132_v50  ;;  %v3308_v24 = vrot.slane %v3294_v16, %v5132_v50  ;;  %v3325_v30 = vrot.slane %v3317_v63, %v5132_v50  ;;  %v7268_v55 = vsel %vm444_vm3, %v7216_v54, %v7171_v1 }
 0x2d6   :  { %v3166_v20 = vcombine.low %v3158_v45, %v3165_v6  ;;  %v3332_v0 = vrot.slane %v3318_v38, %v5132_v50  ;;  %v7273_v59 = vsel %vm444_vm3, %v1764_v48, %v7160_v4  ;;  %v1786_v41 = vrot.slane %v7216_v54, 1  ;;  %v3389_v45 = vld [vmem:[#allocation8 + $0x18c] sm:$0xf] }
 0x2d7   :  { %v3192_v40 = vshrl.u32 %v3149_v36, 16  ;;  %v3195_v26 = vshll.u32 %v3149_v36, 16  ;;  %v3309_v2 = vcombine.low %v3301_v17, %v3308_v24  ;;  %v1810_v58 = vrot.slane %v7216_v54, 2  ;;  %v3393_v17 = vld [vmem:[#allocation8 + $0x194] sm:$0x1] }
 0x2d8   :  { %v3173_v12 = vrot.slane %v3166_v20, %v5132_v50  ;;  %v3333_v19 = vcombine.low %v3325_v30, %v3332_v0  ;;  %v1788_v31 = vshll.u32 %v1786_v41, 16  ;;  %v7280_v1 = vsel %vm444_vm3, %v1786_v41, %v7193_v9 }
 0x2d9   :  { %v3194_v5 = vrot.slane %v3192_v40, 7  ;;  %v3316_v35 = vrot.slane %v3309_v2, %v5132_v50  ;;  %v1812_v4 = vshll.u32 %v1810_v58, 16  ;;  %v7285_v28 = vsel %vm444_vm3, %v1810_v58, %v7199_v10 }
 0x2da   :  { %v3200_v23 = vshrl.u32 %v3173_v12, 16  ;;  %v3203_v61 = vshll.u32 %v3173_v12, 16  ;;  %v3340_v47 = vrot.slane %v3333_v19, %v5132_v50  ;;  %v1790_v46 = vsel %vm444_vm3, %v1788_v31, %v7181_v62 }
 0x2db   :  { %v3197_v39 = vor.u32 %v3195_v26, %v3194_v5  ;;  %v3198_v33 = vrot.slane %v3194_v5, 4  ;;  %v3359_v9 = vshrl.u32 %v3316_v35, 16  ;;  %v3362_v29 = vshll.u32 %v3316_v35, 16 }
 0x2dc   :  { %v3202_v8 = vrot.slane %v3200_v23, 7  ;;  %v3367_v21 = vshrl.u32 %v3340_v47, 16  ;;  %v3370_v51 = vshll.u32 %v3340_v47, 16  ;;  %v1814_v25 = vsel %vm444_vm3, %v1812_v4, %v7184_v15 }
 0x2dd   :  { %v3223_v10 = vsel %vm5342_vm7, %v3197_v39, %v3222_v42  ;;  %v3361_v18 = vrot.slane %v3359_v9, 7  ;;  %v1834_v27 = vrot.slane %v7216_v54, 3  ;;  %v1858_v43 = vrot.slane %v7216_v54, 4 }
 0x2de   :  { %v3205_v62 = vor.u32 %v3203_v61, %v3202_v8  ;;  %v3207_v34 = vrot.slane %v3202_v8, 4  ;;  %3224 = vst [vmem:[#allocation8 + $0x174] sm:$0xf] %v3223_v10  ;;  %v3369_v3 = vrot.slane %v3367_v21, 7  ;;  %v1882_v16 = vrot.slane %v7216_v54, 5 }
 0x2df   :  { %v3364_v63 = vor.u32 %v3362_v29, %v3361_v18  ;;  %v3365_v6 = vrot.slane %v3361_v18, 4  ;;  %v1836_v15 = vshll.u32 %v1834_v27, 16  ;;  %v1848_v38 = vsel %vm444_vm3, %v1834_v27, %v7202_v56 }
 0x2e0   :  { %v3206_v48 = vsel %vm5353_vm8, %v3198_v33, %v3205_v62  ;;  %v3227_v36 = vsel %vm5363_vm9, %v3207_v34, %v3226_v49  ;;  %v3372_v24 = vor.u32 %v3370_v51, %v3369_v3  ;;  %v3374_v30 = vrot.slane %v3369_v3, 4  ;;  %v4558_v34 = vld [vmem:[#allocation8 + $0x180] sm:$0xf]  ;;  %v4562_v3 = vld [vmem:[#allocation8 + $0x188] sm:$0x1] }
 0x2e1   :  { %3225 = vst [vmem:[#allocation8 + $0x178] sm:$0xf] %v3206_v48  ;;  %3228 = vst [vmem:[#allocation8 + $0x17c] sm:$0x1] %v3227_v36  ;;  %v3390_v20 = vsel %vm5342_vm7, %v3364_v63, %v3389_v45  ;;  %v1838_v0 = vsel %vm444_vm3, %v1836_v15, %v7187_v52  ;;  %v1860_v41 = vshll.u32 %v1858_v43, 16  ;;  %v1872_v56 = vsel %vm444_vm3, %v1858_v43, %v7207_v13 }
 0x2e2   :  { %v3373_v40 = vsel %vm5353_vm8, %v3365_v6, %v3372_v24  ;;  %3391 = vst [vmem:[#allocation8 + $0x18c] sm:$0xf] %v3390_v20  ;;  %v3394_v26 = vsel %vm5363_vm9, %v3374_v30, %v3393_v17  ;;  %v1884_v2 = vshll.u32 %v1882_v16, 16  ;;  %v1896_v58 = vsel %vm444_vm3, %v1882_v16, %v7210_v57 }
 0x2e3   :  { %3392 = vst [vmem:[#allocation8 + $0x190] sm:$0xf] %v3373_v40  ;;  %3395 = vst [vmem:[#allocation8 + $0x194] sm:$0x1] %v3394_v26  ;;  %v1862_v52 = vsel %vm444_vm3, %v1860_v41, %v7190_v11  ;;  %v1906_v12 = vrot.slane %v7216_v54, 6  ;;  %v1930_v13 = vrot.slane %v7216_v54, 7  ;;  %v4462_v19 = vcombine.low %v7273_v59, %v1790_v46 }
 0x2e4   :  { %v1886_v31 = vsel %vm444_vm3, %v1884_v2, %v7196_v22  ;;  %v4463_v5 = vcombine.low %v7268_v55, %v7280_v1  ;;  %v4486_v35 = vcombine.low %v1814_v25, %v1838_v0  ;;  %v4487_v57 = vcombine.low %v7285_v28, %v1848_v38  ;;  %v4725_v0 = vld [vmem:[#allocation8 + $0x198] sm:$0xf]  ;;  %v4729_v26 = vld [vmem:[#allocation8 + $0x1a0] sm:$0x1] }
 0x2e5   :  { %v1908_v4 = vshll.u32 %v1906_v12, 16  ;;  %v1920_v23 = vsel %vm444_vm3, %v1906_v12, %v7227_v14  ;;  %v1932_v11 = vshll.u32 %v1930_v13, 16  ;;  %v1944_v61 = vsel %vm444_vm3, %v1930_v13, %v7230_v32 }
 0x2e6   :  { %v4470_v54 = vrot.slane %v4462_v19, %v5132_v50  ;;  %v4477_v59 = vrot.slane %v4463_v5, %v5132_v50  ;;  %v4494_v22 = vrot.slane %v4486_v35, %v5132_v50  ;;  %v4501_v42 = vrot.slane %v4487_v57, %v5132_v50 }
 0x2e7   :  { %v1910_v55 = vsel %vm444_vm3, %v1908_v4, %v7219_v44  ;;  %v1934_v1 = vsel %vm444_vm3, %v1932_v11, %v7222_v60  ;;  %v4629_v28 = vcombine.low %v1862_v52, %v1886_v31  ;;  %v4630_v14 = vcombine.low %v1872_v56, %v1896_v58 }
 0x2e8   :  { %v4478_v47 = vcombine.low %v4470_v54, %v4477_v59  ;;  %v4502_v46 = vcombine.low %v4494_v22, %v4501_v42  ;;  %v4653_v39 = vcombine.low %v1910_v55, %v1934_v1  ;;  %v4654_v32 = vcombine.low %v1920_v23, %v1944_v61 }
 0x2e9   :  { %v4637_v33 = vrot.slane %v4629_v28, %v5132_v50  ;;  %v4644_v9 = vrot.slane %v4630_v14, %v5132_v50 }
 0x2ea   :  { %v4485_v29 = vrot.slane %v4478_v47, %v5132_v50  ;;  %v4509_v8 = vrot.slane %v4502_v46, %v5132_v50  ;;  %v4661_v21 = vrot.slane %v4653_v39, %v5132_v50  ;;  %v4668_v44 = vrot.slane %v4654_v32, %v5132_v50 }
 0x2eb   :  { %v4645_v51 = vcombine.low %v4637_v33, %v4644_v9 }
 0x2ec   :  { %v4528_v60 = vshrl.u32 %v4485_v29, 16  ;;  %v4536_v25 = vshrl.u32 %v4509_v8, 16  ;;  %v4669_v49 = vcombine.low %v4661_v21, %v4668_v44  ;;  %v4531_v27 = vshll.u32 %v4485_v29, 16 }
 0x2ed   :  { %v4652_v10 = vrot.slane %v4645_v51, %v5132_v50  ;;  %v4539_v62 = vshll.u32 %v4509_v8, 16 }
 0x2ee   :  { %v4530_v18 = vrot.slane %v4528_v60, 7  ;;  %v4538_v43 = vrot.slane %v4536_v25, 7  ;;  %v4676_v45 = vrot.slane %v4669_v49, %v5132_v50 }
 0x2ef   :  { %v4695_v16 = vshrl.u32 %v4652_v10, 16  ;;  %v4698_v48 = vshll.u32 %v4652_v10, 16 }
 0x2f0   :  { %v4533_v63 = vor.u32 %v4531_v27, %v4530_v18  ;;  %v4534_v6 = vrot.slane %v4530_v18, 4  ;;  %v4541_v17 = vor.u32 %v4539_v62, %v4538_v43  ;;  %v4543_v15 = vrot.slane %v4538_v43, 4 }
 0x2f1   :  { %v4697_v38 = vrot.slane %v4695_v16, 7  ;;  %v4703_v36 = vshrl.u32 %v4676_v45, 16  ;;  %v4706_v40 = vshll.u32 %v4676_v45, 16 }
 0x2f2   :  { %v4542_v24 = vsel %vm5353_vm8, %v4534_v6, %v4541_v17  ;;  %v4559_v30 = vsel %vm5342_vm7, %v4533_v63, %v4558_v34  ;;  %v4563_v20 = vsel %vm5363_vm9, %v4543_v15, %v4562_v3 }
 0x2f3   :  { %4560 = vst [vmem:[#allocation8 + $0x180] sm:$0xf] %v4559_v30  ;;  %4561 = vst [vmem:[#allocation8 + $0x184] sm:$0xf] %v4542_v24  ;;  %v4700_v50 = vor.u32 %v4698_v48, %v4697_v38  ;;  %v4701_v41 = vrot.slane %v4697_v38, 4  ;;  %v4705_v56 = vrot.slane %v4703_v36, 7 }
 0x2f4   :  { %4564 = vst [vmem:[#allocation8 + $0x188] sm:$0x1] %v4563_v20 }
 0x2f5   :  { %v4708_v2 = vor.u32 %v4706_v40, %v4705_v56  ;;  %v4710_v58 = vrot.slane %v4705_v56, 4  ;;  %v4726_v52 = vsel %vm5342_vm7, %v4700_v50, %v4725_v0 }
 0x2f6   :  { %4727 = vst [vmem:[#allocation8 + $0x198] sm:$0xf] %v4726_v52 }
 0x2f7   :  { %v4709_v12 = vsel %vm5353_vm8, %v4701_v41, %v4708_v2  ;;  %v4730_v13 = vsel %vm5363_vm9, %v4710_v58, %v4729_v26 }
 0x2f8   :  { %4728 = vst [vmem:[#allocation8 + $0x19c] sm:$0xf] %v4709_v12  ;;  %4731 = vst [vmem:[#allocation8 + $0x1a0] sm:$0x1] %v4730_v13 }
 0x2f9   :  { %4877 = shalt.err (!%p4874_p0)
}
 0x2fa   :  { %s4878_s25 = scalar_lea.hbm %s7375_s3, 6912 }
 0x2fb   :  { %p4879_p1 = scmp.ne.s32.totalorder %s7375_s3, %s4878_s25  ;;  %p4882_p2 = scmp.lt.u32.totalorder %s4878_s25, %s7375_s3 }
 0x2fd   :  { %p4884_p3 = pnand %p4882_p2, %p4879_p1 }
 0x2ff   :  { %4887 = shalt.err (!%p4884_p3)
}
 0x300   :  { %4743 = dma.vmem_to_hbm [thread:$0]  %s4738_s21, 6912, %s7375_s3, [#allocation4], %s4896_s1, %s4896_s1, %s4897_s7  }
 0x301   :  { %4892 = dma.done.wait [#allocation4], 6912  }
 0x302   :  { %4893 = vsyncadd [#allocation4], 4294960384 }
 0x303   :  { %4747 = vsyncpa [#allocation3], 1 }
 0x304   :  { %4748 = vsyncpa [#allocation6], 1 }
 0x305   :  { %4749 = vsyncpa [#allocation4], 1 }

// kernel: up_forward.4
= control target key start
LH: loop header
LB: loop body
LE: loop exit
PB: predicated region body
PF: predicated region fallthrough
CT: control target
= control target key end

     0   :  { %s10889_s0 = inlined_call_operand.hbm [shape: bf16[2,18,18,4], index: 0, kind: input, shape index: {}]   ;;  %s10890_s1 = inlined_call_operand.hbm [shape: bf16[2,18,18,128], index: 1, kind: input, shape index: {}]   ;;  %s10891_s2 = inlined_call_operand.hbm [shape: bf16[36,128], index: 2, kind: input, shape index: {}]   ;;  %s10892_s3 = inlined_call_operand.hbm [shape: bf16[1152,128], index: 3, kind: input, shape index: {}]   ;;  %s10893_s4 = inlined_call_operand.hbm [shape: f32[1,128], index: 4, kind: input, shape index: {}]   ;;  %s10894_s5 = inlined_call_operand.hbm [shape: bf16[2,18,18,128], index: 5, kind: output, shape index: {}]  }
   0x1   :  { %11037 = sst [smem:[#allocation112_spill]] %s10889_s0 }
   0x2   :  { %11038 = sst [smem:[#allocation113_spill]] %s10891_s2 }
   0x3   :  { %11039 = sst [smem:[#allocation114_spill]] %s10892_s3 }
   0x4   :  { %10 = vsyncpa [#allocation3], 0 }
   0x5   :  { %12 = vsyncpa [#allocation3 + $0x1], 0 }
   0x6   :  { %13 = vsyncpa [#allocation6], 0 }
   0x7   :  { %15 = vsyncpa [#allocation6 + $0x1], 0 }
   0x8   :  { %16 = vsyncpa [#allocation9], 0 }
   0x9   :  { %17 = vsyncpa [#allocation4], 0 }
   0xa   :  { %19 = vsyncpa [#allocation4 + $0x1], 0  ;;  %s8289_s18 = smov 0   ;;  %s8291_s19 = smov 0  }
   0xb   :  { %s8293_s20 = smov 0   ;;  %s8295_s21 = smov 0  }
   0xc   :  { %s8297_s22 = smov 0   ;;  %s8299_s23 = smov 0  }
   0xd LB: > { %s8320_s24 = sadd.s32 4294967295, %s8246_s23   ;;  %s5936_s25 = sadd.s32 4294967294, %s8246_s23   ;;  %s8246_s23 = sphi %s8299_s23, %s25_s23   ;;  %s8242_s22 = sphi %s8297_s22, %s11356_s22   ;;  %s8238_s21 = sphi %s8295_s21, %s11355_s21   ;;  %s8234_s20 = sphi %s8293_s20, %s11354_s20   ;;  %s8230_s19 = sphi %s8291_s19, %s11353_s19   ;;  %s8226_s18 = sphi %s8289_s18, %s11352_s18  }
   0xe   : > { %p57_p0 = scmp.ne.s32.totalorder %s8230_s19, %s8226_s18  ;;  %p10895_p1 = scmp.eq.s32.totalorder %s8320_s24, 0 }
   0xf   : > { %p176_p3 = scmp.eq.s32.totalorder %s5936_s25, 1  ;;  %p5937_p5 = scmp.ge.s32.totalorder %s8246_s23, 1 }
  0x10   : > { %p8329_p4 = por %p10895_p1, %p57_p0  ;;  %p183_p7 = scmp.lt.s32.totalorder %s8246_s23, 3 }
  0x11   : > { %p8334_p6 = por %p176_p3, %p57_p0  ;;  %s8248_s29 = smov [#allocation7]  }
  0x12   : > { %s11040_s26 = scalar_select %p8329_p4, 1, 0 }
  0x13   : > { %s11041_s27 = scalar_select %p8334_p6, 1, 0 }
  0x14   : > { %p8339_p8 = pnand %p5937_p5, %p183_p7  ;;  %s195_s30 = sshll.u32 %s8248_s29, 4  ;;  %s8343_s30 = int_to_ptr.vmem [resolvable:$true] %s195_s30 }
  0x15   : > { %11042 = sst [smem:[#allocation17_spill]] %s11041_s27  ;;  %s8249_s7 = smov [#allocation8]  }
  0x16   : > { %s11043_s28 = scalar_select %p8339_p8, 1, 0 }
  0x17   : > { %p7774_p9 = pneg %p8339_p8  ;;  %s208_s8 = sshll.u32 %s8249_s7, 4  ;;  %s8354_s8 = int_to_ptr.vmem [resolvable:$true] %s208_s8 }
  0x18   : > { %s8250_s9 = smov [#allocation10]   ;;  %s11045_s2 = sld [smem:[#allocation113_spill]] }
  0x19   : > { %p8350_p11 = pnand %p7774_p9, %p10895_p1  ;;  %s8356_s10 = sshll.u32 %s8250_s9, 4  ;;  %s223_s10 = int_to_ptr.vmem [resolvable:$true] %s8356_s10 }
  0x1b   : > { %p8366_p13 = pneg %p8350_p11 }
  0x1e   : > { %s8008_s13 = scalar_lea.hbm %s11045_s2, 320 }
  0x1f   : > { %p8009_p12 = scmp.ne.s32.totalorder %s11045_s2, %s8008_s13  ;;  %p8015_p5 = scmp.lt.u32.totalorder %s8008_s13, %s11045_s2 }
  0x21   : > { %p8011_p0 = pnand %p8366_p13, %p8009_p12 }
  0x23   : > { %p8012_p3 = pneg %p8011_p0 }
  0x25   : > { %p8017_p7 = pnand %p8015_p5, %p8012_p3 }
  0x27   : > { %8020 = shalt.err (!%p8017_p7)
}
  0x28   : > { %s8021_s29 = scalar_lea.vmem %s8343_s30, 320  ;;  %p8029_p2 = scmp.lt.s32.totalorder %s8343_s30, %s8343_s30 }
  0x29   : > { %p8022_p9 = scmp.ne.s32.totalorder %s8343_s30, %s8021_s29  ;;  %p8030_p6 = scmp.lt.s32.totalorder %s8021_s29, %s8021_s29 }
  0x2b   : > { %p8024_p10 = pnand %p8022_p9, %p8366_p13  ;;  %p8031_p12 = por %p8030_p6, %p8029_p2 }
  0x2d   : > { %p8025_p1 = pneg %p8024_p10 }
  0x2f   : > { %p8032_p0 = pnand %p8031_p12, %p8025_p1 }
  0x31   : > { %8035 = shalt.err (!%p8032_p0)
}
  0x32   : > { %s10899_s7 = smov 64   ;;  %s10901_s9 = smov 4  }
  0x33   : > { %7777 = dma.hbm_to_vmem [thread:$0]  (!%p8350_p11), %s11045_s2, 320, %s8343_s30, [#allocation6], %s10899_s7, %s10899_s7, %s10901_s9  }
  0x34   : > { %s11047_s3 = sld [smem:[#allocation114_spill]] }
  0x3a   : > { %s8036_s15 = scalar_lea.hbm %s11047_s3, 9216 }
  0x3b   : > { %p8037_p1 = scmp.ne.s32.totalorder %s11047_s3, %s8036_s15  ;;  %p8043_p10 = scmp.lt.u32.totalorder %s8036_s15, %s11047_s3 }
  0x3d   : > { %p8039_p2 = pnand %p8037_p1, %p8366_p13 }
  0x3f   : > { %p8040_p6 = pneg %p8039_p2 }
  0x41   : > { %p8045_p3 = pnand %p8043_p10, %p8040_p6 }
  0x43   : > { %8048 = shalt.err (!%p8045_p3)
}
  0x44   : > { %s8049_s30 = scalar_lea.vmem %s8354_s8, 9216  ;;  %p8057_p12 = scmp.lt.s32.totalorder %s8354_s8, %s8354_s8 }
  0x45   : > { %p8050_p5 = scmp.ne.s32.totalorder %s8354_s8, %s8049_s30  ;;  %p8058_p0 = scmp.lt.s32.totalorder %s8049_s30, %s8049_s30 }
  0x47   : > { %p8052_p7 = pnand %p8050_p5, %p8366_p13  ;;  %p8059_p1 = por %p8058_p0, %p8057_p12 }
  0x49   : > { %p8053_p9 = pneg %p8052_p7 }
  0x4b   : > { %p8060_p2 = pnand %p8059_p1, %p8053_p9 }
  0x4d   : > { %8063 = shalt.err (!%p8060_p2)
}
  0x4e   : > { %7780 = dma.hbm_to_vmem [thread:$0]  (!%p8350_p11), %s11047_s3, 9216, %s8354_s8, [#allocation9], %s10899_s7, %s10899_s7, %s10901_s9  }
  0x4f   : > { %s8064_s14 = scalar_lea.hbm %s10893_s4, 16 }
  0x50   : > { %p8065_p6 = scmp.ne.s32.totalorder %s10893_s4, %s8064_s14  ;;  %p8071_p5 = scmp.lt.u32.totalorder %s8064_s14, %s10893_s4 }
  0x52   : > { %p8067_p10 = pnand %p8065_p6, %p8366_p13 }
  0x54   : > { %p8068_p3 = pneg %p8067_p10 }
  0x56   : > { %p8073_p7 = pnand %p8071_p5, %p8068_p3 }
  0x58   : > { %8076 = shalt.err (!%p8073_p7)
}
  0x59   : > { %s8077_s30 = scalar_lea.vmem %s223_s10, 16  ;;  %s8084_s8 = scalar_lea.vmem %s223_s10, 32 }
  0x5a   : > { %p8078_p9 = scmp.ne.s32.totalorder %s223_s10, %s8077_s30  ;;  %p8085_p1 = scmp.lt.s32.totalorder %s223_s10, %s223_s10 }
  0x5b   : > { %p8086_p2 = scmp.lt.s32.totalorder %s8084_s8, %s8077_s30 }
  0x5c   : > { %p8080_p12 = pnand %p8078_p9, %p8366_p13 }
  0x5d   : > { %p8087_p4 = por %p8086_p2, %p8085_p1 }
  0x5e   : > { %p8081_p0 = pneg %p8080_p12 }
  0x60   : > { %p8088_p8 = pnand %p8087_p4, %p8081_p0 }
  0x62   : > { %8091 = shalt.err (!%p8088_p8)
}
  0x63   : > { %7783 = dma.hbm_to_vmem [thread:$0]  (!%p8350_p11), %s10893_s4, 16, %s223_s10, [#allocation9]  }
  0x64   : > { %s44_s16 = sadd.s32 1, %s8234_s20  ;;  %s37_s12 = sadd.s32 1, %s8242_s22 }
  0x65   : > { %p51_p4 = scmp.ne.s32.totalorder %s8234_s20, %s8230_s19  ;;  %p39_p8 = scmp.ge.s32.totalorder %s37_s12, 2 }
  0x66   : > { %p52_p13 = scmp.eq.s32.totalorder %s8246_s23, 0  ;;  %p11048_p6 = scmp.eq.s32.totalorder %s8320_s24, 1 }
  0x67   : > { %p7798_p3 = scmp.lt.s32.totalorder %s8246_s23, 2  ;;  %s11358_s12 = smov (%p39_p8, %s37_s12), 0 }
  0x68   : > { %p8442_p10 = por %p11048_p6, %p51_p4  ;;  %p53_p5 = por %p52_p13, %p51_p4 }
  0x69   : > { %s233_s13 = sand.u32 1, %s8234_s20   ;;  %s41_s10 = ssub.s32 %s8242_s22, %s11358_s12 }
  0x6a   : > { %p42_p11 = scmp.eq.s32.totalorder %s41_s10, 0  ;;  %s8452_s14 = smul.u32 216, %s233_s13 }
  0x6b   : > { %s10903_s15 = smul.u32 3456, %s8242_s22  ;;  %p8455_p7 = pnand %p7798_p3, %p53_p5 }
  0x6c   : > { %s8460_s25 = scalar_select %p42_p11, %s8234_s20, %s44_s16  }
  0x6d   : > { %s11051_s0 = sld [smem:[#allocation112_spill]]  ;;  %s237_s27 = scalar_lea.vmem [#allocation2], %s8452_s14 }
  0x6e   : > { %s244_s11 = sshll.u32 %s237_s27, 4  ;;  %s254_s10 = sand.u32 1, %s8246_s23   ;;  %s8470_s11 = int_to_ptr.vmem [resolvable:$true] %s244_s11 }
  0x6f   : > { %s8473_s7 = scalar_lea.sflag [#allocation3], %s233_s13  ;;  %p8094_p12 = pneg %p8455_p7 }
  0x73   : > { %s8467_s8 = scalar_lea.hbm %s11051_s0, %s10903_s15  ;;  %s8097_s30 = scalar_lea.hbm %s11051_s0, 6912 }
  0x74   : > { %s8092_s9 = scalar_lea.hbm %s8467_s8, 3456  ;;  %p8098_p2 = scmp.lt.u32.totalorder %s8467_s8, %s11051_s0 }
  0x75   : > { %p8093_p9 = scmp.ne.s32.totalorder %s8467_s8, %s8092_s9  ;;  %p8099_p4 = scmp.lt.u32.totalorder %s8097_s30, %s8092_s9 }
  0x76   : > { %p8101_p13 = scmp.lt.u32.totalorder %s8092_s9, %s8467_s8 }
  0x77   : > { %p8095_p0 = pnand %p8094_p12, %p8093_p9  ;;  %p8100_p8 = por %p8099_p4, %p8098_p2 }
  0x79   : > { %p8096_p1 = pneg %p8095_p0  ;;  %p8102_p6 = por %p8101_p13, %p8100_p8 }
  0x7b   : > { %p8103_p3 = pnand %p8102_p6, %p8096_p1 }
  0x7d   : > { %8106 = shalt.err (!%p8103_p3)
}
  0x7e   : > { %s8107_s13 = scalar_lea.vmem %s8470_s11, 3456  ;;  %s8253_s27 = smov [#allocation2]  }
  0x7f   : > { %p8108_p5 = scmp.ne.s32.totalorder %s8470_s11, %s8107_s13  ;;  %s8112_s16 = sshll.u32 %s8253_s27, 4  ;;  %s8113_s16 = int_to_ptr.vmem [resolvable:$false] %s8112_s16 }
  0x80   : > { %s8114_s2 = scalar_lea.vmem %s8113_s16, 6912  ;;  %p8115_p0 = scmp.lt.s32.totalorder %s8470_s11, %s8113_s16 }
  0x81   : > { %p8110_p11 = pnand %p8108_p5, %p8094_p12  ;;  %p8116_p2 = scmp.lt.s32.totalorder %s8114_s2, %s8107_s13 }
  0x83   : > { %p8111_p9 = pneg %p8110_p11  ;;  %p8117_p4 = por %p8116_p2, %p8115_p0 }
  0x85   : > { %p8118_p8 = pnand %p8117_p4, %p8111_p9 }
  0x87   : > { %8121 = shalt.err (!%p8118_p8)
}
  0x88   : > { %s11052_s9 = smov 4   ;;  %s11053_s15 = smov 64  }
  0x89   : > { %7787 = dma.hbm_to_vmem [thread:$0]  (!%p8455_p7), %s8467_s8, 3456, %s8470_s11, %s8473_s7, %s11053_s15, %s11053_s15, %s11052_s9  }
  0x8a   : > { %s11054_s29 = smul.u32 3456, %s8242_s22  ;;  %s258_s16 = scalar_lea.vmem [#allocation5], %s8452_s14 }
  0x8b   : > { %s265_s2 = sshll.u32 %s258_s16, 4  ;;  %s8516_s0 = scalar_lea.sflag [#allocation6], %s254_s10  ;;  %s8512_s2 = int_to_ptr.vmem [resolvable:$true] %s265_s2 }
  0x8c   : > { %s8509_s13 = scalar_lea.hbm %s10890_s1, %s11054_s29  ;;  %s8127_s11 = scalar_lea.hbm %s10890_s1, 6912 }
  0x8d   : > { %s8122_s3 = scalar_lea.hbm %s8509_s13, 3456  ;;  %p8128_p3 = scmp.lt.u32.totalorder %s8509_s13, %s10890_s1 }
  0x8e   : > { %p8123_p1 = scmp.ne.s32.totalorder %s8509_s13, %s8122_s3  ;;  %p8129_p5 = scmp.lt.u32.totalorder %s8127_s11, %s8122_s3 }
  0x8f   : > { %p8131_p9 = scmp.lt.u32.totalorder %s8122_s3, %s8509_s13 }
  0x90   : > { %p8125_p13 = pnand %p8123_p1, %p8094_p12  ;;  %p8130_p11 = por %p8129_p5, %p8128_p3 }
  0x92   : > { %p8126_p6 = pneg %p8125_p13  ;;  %p8132_p0 = por %p8131_p9, %p8130_p11 }
  0x94   : > { %p8133_p2 = pnand %p8132_p0, %p8126_p6 }
  0x96   : > { %8136 = shalt.err (!%p8133_p2)
}
  0x97   : > { %s8137_s14 = scalar_lea.vmem %s8512_s2, 3456  ;;  %s8254_s10 = smov [#allocation5]  }
  0x98   : > { %p8138_p4 = scmp.ne.s32.totalorder %s8512_s2, %s8137_s14  ;;  %s8142_s27 = sshll.u32 %s8254_s10, 4  ;;  %s8143_s27 = int_to_ptr.vmem [resolvable:$false] %s8142_s27 }
  0x99   : > { %s8144_s16 = scalar_lea.vmem %s8143_s27, 6912  ;;  %p8145_p13 = scmp.lt.s32.totalorder %s8512_s2, %s8143_s27 }
  0x9a   : > { %p8140_p8 = pnand %p8138_p4, %p8094_p12  ;;  %p8146_p3 = scmp.lt.s32.totalorder %s8144_s16, %s8137_s14 }
  0x9c   : > { %p8141_p1 = pneg %p8140_p8  ;;  %p8147_p5 = por %p8146_p3, %p8145_p13 }
  0x9e   : > { %p8148_p11 = pnand %p8147_p5, %p8141_p1 }
  0xa0   : > { %8151 = shalt.err (!%p8148_p11)
}
  0xa1   : > { %7790 = dma.hbm_to_vmem [thread:$0]  (!%p8455_p7), %s8509_s13, 3456, %s8512_s2, %s8516_s0, %s11053_s15, %s11053_s15, %s11052_s9  }
  0xa2   : > { %p11055_p12 = scmp.ne.s32.totalorder %s11043_s28, 0 }
  0xa4   : > { %277 = sbr.rel (%p11055_p12) target bundleno = 1054 (0x41e), region = 40 }
  0xab   : > { %s8548_s3 = sand.u32 1, %s8230_s19   ;;  %p11056_p6 = scmp.ne.s32.totalorder %s11040_s26, 0 }
  0xac   : > { %s8551_s7 = smul.u32 216, %s8548_s3  ;;  %s280_s17 = scalar_lea.sflag [#allocation3], %s8548_s3 }
  0xae   : > { %s8555_s8 = scalar_lea.vmem [#allocation2], %s8551_s7 }
  0xaf   : > { %8205 = dma.done.wait (%p11056_p6), %s280_s17, 3456  }
  0xb0   : > { %8207 = vsyncadd (%p11056_p6), %s280_s17, 4294963840  ;;  %s288_s0 = sand.u32 1, %s8320_s24   ;;  %s8563_s9 = scalar_lea.vmem [#allocation5], %s8551_s7 }
  0xb1   : > { %s289_s28 = scalar_lea.sflag [#allocation6], %s288_s0 }
  0xb2   : > { %8209 = dma.done.wait (%p11056_p6), %s289_s28, 3456  }
  0xb3   : > { %8211 = vsyncadd (%p11056_p6), %s289_s28, 4294963840  ;;  %p11057_p7 = scmp.eq.s32.totalorder %s8320_s24, 0 }
  0xb5   : > { %8213 = dma.done.wait (%p11057_p7), [#allocation6], 320   ;;  %p11058_p9 = pmov %p11057_p7 }
  0xb6   : > { %p11059_p0 = pmov %p11057_p7 }
  0xb7   : > { %8215 = vsyncadd (%p11058_p9), [#allocation6], 4294966976 }
  0xb8   : > { %8217 = dma.done.wait (%p11059_p0), [#allocation9], 9232   ;;  %p11060_p2 = pmov %p11059_p0 }
  0xb9   : > { %vm963_vm0 = vcmask 1041408   ;;  %vm914_vm1 = vcmask 31744   ;;  %vm474_vm2 = vsmask.f32 3328  ;;  %vm475_vm3 = vsmask.f32 7440 }
  0xba   : > { %8219 = vsyncadd (%p11060_p2), [#allocation9], 4294958064  ;;  %v473_v0 = vld [vmem:[#allocation7] sm:$0x3]  ;;  %v8579_v2 = vld [vmem:[%s8555_s8 + $0x4] sm:$0xf] }
  0xbb   : > { %v401_v1 = vld [vmem:[%s8555_s8] sm:$0xf]  ;;  %7742 = vmatprep.subr.msk.bf16.mxu0 %vm963_vm0, %v473_v0  ;;  %v1257_v3 = vsel %vm963_vm0, %v473_v0, 0  ;;  %v491_v6 = vshrl.u32 %v8579_v2, 16  ;;  %v403_v7 = vld [vmem:[%s8555_s8 + $0xc] sm:$0xf]  ;;  %vm8613_vm4 = vmor %vm474_vm2, %vm475_vm3 }
  0xbc   : > { %v478_v4 = vshrl.u32 %v401_v1, 16  ;;  %v481_v5 = vshll.u32 %v401_v1, 16  ;;  %7102 = vmatpush3.bf16.msra.mxu0 %v1257_v3  ;;  %v5981_v8 = vcombine.low %v401_v1, %v8579_v2  ;;  %v10905_v9 = vrot.slane %v8579_v2, 5  ;;  %v8588_v10 = vld [vmem:[%s8555_s8 + $0x10] sm:$0xf]  ;;  %v7863_v27 = vld [vmem:[#allocation8 + $0x40] sm:$0xff]  }
  0xbd   : > { %v502_v11 = vshrl.u32 %v403_v7, 16  ;;  %v505_v12 = vshll.u32 %v403_v7, 16  ;;  %v515_v15 = vshrl.u32 %v8588_v10, 16  ;;  %v8592_v16 = vcombine.low %v403_v7, %v8588_v10  ;;  %v8601_v21 = vld [vmem:[%s8555_s8 + $0x8] sm:$0x1]  ;;  %s10225_s24 = scalar_lea.vmem [#allocation11], %s8551_s7 }
  0xbe   : > { %v480_v13 = vrot.slane %v478_v4, 4  ;;  %v483_v14 = vrot.slane %v481_v5, 5  ;;  %7103 = vmatprep.mubr.msk.bf16.mxu0 %vm914_vm1, %v5981_v8  ;;  %v8597_v17 = vrot.slane %v10905_v9, 4  ;;  %v10904_v20 = vrot.slane %v8588_v10, 5  ;;  %v405_v31 = vld [vmem:[%s8555_s8 + $0x18] sm:$0xf] }
  0xbf   : > { %v504_v18 = vrot.slane %v502_v11, 4  ;;  %v507_v19 = vrot.slane %v505_v12, 5  ;;  %7104 = vmatmul.mubr.msk.bf16.vlgmr.msra.gmra.mrb[0].mxu0 %vm914_vm1, %v8592_v16  ;;  %v7861_v22 = vld [vmem:[#allocation7] ss:$0 sps:$4 sm:$0xcc]   ;;  %v487_v24 = vshll.u32 %v8579_v2, 16 }
  0xc0   : > { %v484_v23 = vor.u32 %v483_v14, %v480_v13  ;;  %v493_v25 = vrot.slane %v491_v6, 4  ;;  %v497_v26 = vshll.u32 %v8601_v21, 16  ;;  %v8609_v28 = vrot.slane %v10904_v20, 4  ;;  %v8620_v32 = vld [vmem:[%s8555_s8 + $0x1c] sm:$0xf]  ;;  %s7755_s26 = smul.u32 3456, %s8238_s21 }
  0xc1   : > { %v508_v33 = vor.u32 %v507_v19, %v504_v18  ;;  %v913_v34 = vrot.slane %v7861_v22, 2  ;;  %v489_v36 = vrot.slane %v487_v24, 5  ;;  %v526_v38 = vshrl.u32 %v405_v31, 16  ;;  %v8631_v45 = vld [vmem:[%s8555_s8 + $0x14] sm:$0x1]  ;;  %s5796_s15 = sshll.u32 %s10225_s24, 4  ;;  %s10834_s15 = int_to_ptr.vmem [resolvable:$true] %s5796_s15 }
  0xc2   : > { %v485_v35 = vrot.slane %v484_v23, 4  ;;  %v499_v37 = vrot.slane %v497_v26, 5  ;;  %v529_v39 = vshll.u32 %v405_v31, 16  ;;  %v539_v40 = vshrl.u32 %v8620_v32, 16  ;;  %v407_v47 = vld [vmem:[%s8555_s8 + $0x24] sm:$0xf]  ;;  %s10832_s11 = scalar_lea.hbm %s10894_s5, %s7755_s26 }
  0xc3   : > { %v8624_v41 = vcombine.low %v405_v31, %v8620_v32  ;;  %7741 = vmatprep.subr.msk.bf16.mxu1 %vm963_vm0, %v913_v34  ;;  %v965_v42 = vsel %vm963_vm0, %v913_v34, 0  ;;  %v494_v44 = vor.u32 %v493_v25, %v489_v36  ;;  %v509_v46 = vrot.slane %v508_v33, 4  ;;  %v8638_v52 = vld [vmem:[%s8555_s8 + $0x28] sm:$0xf]  ;;  %v1567_v0 = vld [vmem:[#allocation7 + $0x4] sm:$0x3] }
  0xc4   : > { %v490_v43 = vsel %vm8613_vm4, %v485_v35, %v489_v36  ;;  %7068 = vmatpush3.bf16.msra.mxu1 %v965_v42  ;;  %v528_v48 = vrot.slane %v526_v38, 4  ;;  %v531_v49 = vrot.slane %v529_v39, 5  ;;  %v511_v50 = vshll.u32 %v8588_v10, 16  ;;  %v8649_v1 = vld [vmem:[%s8555_s8 + $0x20] sm:$0x1]  ;;  %7743 = vmatprep.subr.msk.bf16.mxu0 %vm963_vm0, %v1567_v0  ;;  %s5783_s21 = scalar_lea.sflag [#allocation4], %s8548_s3 }
  0xc5   : > { %7107 = vmatprep.mubr.msk.bf16.mxu0 %vm914_vm1, %v8624_v41  ;;  %v517_v51 = vrot.slane %v515_v15, 4  ;;  %v495_v53 = vrot.slane %v494_v44, 4  ;;  %6595 = vmatprep.subr.bf16.mxu1 %v7863_v27  ;;  %v521_v54 = vshll.u32 %v8631_v45, 16  ;;  %v550_v56 = vshrl.u32 %v407_v47, 16  ;;  %v409_v8 = vld [vmem:[%s8555_s8 + $0x30] sm:$0xf] }
  0xc6   : > { %v513_v57 = vrot.slane %v511_v50, 5  ;;  %v553_v58 = vshll.u32 %v407_v47, 16  ;;  %v563_v59 = vshrl.u32 %v8638_v52, 16  ;;  %v8644_v60 = vcombine.low %v407_v47, %v8638_v52  ;;  %v8658_v11 = vld [vmem:[%s8555_s8 + $0x34] sm:$0xf]  ;;  %v7867_v44 = vld [vmem:[#allocation8 + $0x48] sm:$0xff]  }
  0xc7   : > { %v500_v61 = vsel %vm8613_vm4, %v495_v53, %v499_v37  ;;  %v523_v62 = vrot.slane %v521_v54, 5  ;;  %v552_v63 = vrot.slane %v550_v56, 4  ;;  %v532_v3 = vor.u32 %v531_v49, %v528_v48  ;;  %v8669_v27 = vld [vmem:[%s8555_s8 + $0x2c] sm:$0x1]  ;;  %v411_v33 = vld [vmem:[%s8555_s8 + $0x3c] sm:$0xf] }
  0xc8   : > { %v5948_v4 = vcombine.low %v490_v43, %v500_v61  ;;  %v514_v5 = vsel %vm8613_vm4, %v509_v46, %v513_v57  ;;  %v518_v6 = vor.u32 %v517_v51, %v513_v57  ;;  %v555_v7 = vrot.slane %v553_v58, 5  ;;  %7108 = vmatmul.mubr.msk.bf16.gmra.mrb[4].mxu0 %vm914_vm1, %v8644_v60  ;;  %v7865_v35 = vld [vmem:[#allocation8] sm:$0xff]   ;;  %v413_v58 = vld [vmem:[%s8555_s8 + $0x48] sm:$0xf]  ;;  %s8152_s29 = scalar_lea.vmem %s10834_s15, 3456  ;;  %s8256_s30 = smov [#allocation11]  }
  0xc9   : > { %v1665_v12 = vsel %vm963_vm0, %v1567_v0, 0  ;;  %v533_v13 = vrot.slane %v532_v3, 4  ;;  %v535_v14 = vshll.u32 %v8620_v32, 16  ;;  %v541_v15 = vrot.slane %v539_v40, 4  ;;  %v8675_v39 = vld [vmem:[%s8555_s8 + $0x40] sm:$0xf]  ;;  %p8153_p4 = scmp.ne.s32.totalorder %s10834_s15, %s8152_s29 }
  0xca   : > { %7069 = vmatprep.mubr.msk.bf16.mxu1 %vm914_vm1, %v5948_v4  ;;  %v519_v18 = vrot.slane %v518_v6, 4  ;;  %7136 = vmatpush3.bf16.msra.mxu0 %v1665_v12  ;;  %v545_v19 = vshll.u32 %v8649_v1, 16  ;;  %v574_v22 = vshrl.u32 %v409_v8, 16  ;;  %v577_v23 = vshll.u32 %v409_v8, 16  ;;  %v8686_v51 = vld [vmem:[%s8555_s8 + $0x38] sm:$0x1] }
  0xcb   : > { %v537_v24 = vrot.slane %v535_v14, 5  ;;  %v587_v25 = vshrl.u32 %v8658_v11, 16  ;;  %v8666_v26 = vcombine.low %v409_v8, %v8658_v11  ;;  %v556_v31 = vor.u32 %v555_v7, %v552_v63  ;;  %v7869_v63 = vld [vmem:[#allocation8 + $0x8] sm:$0xff]   ;;  %v8696_v3 = vld [vmem:[%s8555_s8 + $0x4c] sm:$0xf]  ;;  %p8154_p8 = pnand %p8153_p4, %p8442_p10  ;;  %s8156_s14 = sshll.u32 %s8256_s30, 4  ;;  %s8157_s14 = int_to_ptr.vmem [resolvable:$false] %s8156_s14 }
  0xcc   : > { %v524_v34 = vsel %vm8613_vm4, %v519_v18, %v523_v62  ;;  %v547_v36 = vrot.slane %v545_v19, 5  ;;  %v576_v37 = vrot.slane %v574_v22, 4  ;;  %v579_v38 = vrot.slane %v577_v23, 5  ;;  %v7871_v8 = vld [vmem:[#allocation8 + $0x50] sm:$0xff]   ;;  %v8788_v20 = vld [vmem:[%s8555_s8 + $0x7c] sm:$0xf]  ;;  %p8159_p13 = scmp.lt.s32.totalorder %s10834_s15, %s8157_s14 }
  0xcd   : > { %v8677_v40 = vcombine.low %v514_v5, %v524_v34  ;;  %v538_v42 = vsel %vm8613_vm4, %v533_v13, %v537_v24  ;;  %v542_v43 = vor.u32 %v541_v15, %v537_v24  ;;  %7111 = vmatprep.mubr.msk.bf16.mxu0 %vm914_vm1, %v8666_v26  ;;  %v557_v46 = vrot.slane %v556_v31, 4  ;;  %v7873_v18 = vld [vmem:[#allocation8 + $0x10] sm:$0xff]   ;;  %v8801_v30 = vld [vmem:[%s8555_s8 + $0x74] sm:$0x1]  ;;  %p8155_p1 = pneg %p8154_p8  ;;  %s8158_s10 = scalar_lea.vmem %s8157_s14, 6912 }
  0xce   : > { %v559_v47 = vshll.u32 %v8638_v52, 16  ;;  %v565_v48 = vrot.slane %v563_v59, 4  ;;  %v569_v49 = vshll.u32 %v8669_v27, 16  ;;  %v598_v50 = vshrl.u32 %v411_v33, 16  ;;  %v8709_v31 = vld [vmem:[%s8555_s8 + $0x44] sm:$0x1]  ;;  %p8160_p3 = scmp.lt.s32.totalorder %s8158_s10, %s8152_s29 }
  0xcf   : > { %11063 = vst [vmem:[#allocation18_spill] sm:$0xff] %v8677_v40  ;;  %7070 = vmatmul.mubr.msk.bf16.vlgmr.msra.gmra.mrb[0].mxu1 %vm914_vm1, %v8677_v40  ;;  %v543_v53 = vrot.slane %v542_v43, 4  ;;  %v601_v54 = vshll.u32 %v411_v33, 16  ;;  %v611_v56 = vshrl.u32 %v8675_v39, 16  ;;  %v8692_v57 = vcombine.low %v411_v33, %v8675_v39  ;;  %v7875_v33 = vld [vmem:[#allocation8 + $0x58] sm:$0xff]  }
  0xd0   : > { %6596 = vmatpush3.bf16.msra.mxu1 %v7865_v35  ;;  %v561_v61 = vrot.slane %v559_v47, 5  ;;  %v571_v59 = vrot.slane %v569_v49, 5  ;;  %v600_v62 = vrot.slane %v598_v50, 4  ;;  %v580_v0 = vor.u32 %v579_v38, %v576_v37  ;;  %v415_v37 = vld [vmem:[%s8555_s8 + $0x54] sm:$0xf]  ;;  %p8161_p5 = por %p8160_p3, %p8159_p13 }
  0xd1   : > { %v548_v4 = vsel %vm8613_vm4, %v543_v53, %v547_v36  ;;  %6597 = vmatprep.subr.bf16.mxu1 %v7867_v44  ;;  %v603_v5 = vrot.slane %v601_v54, 5  ;;  %7112 = vmatmul.mubr.msk.bf16.gmra.mrb[8].mxu0 %vm914_vm1, %v8692_v57  ;;  %v583_v6 = vshll.u32 %v8658_v11, 16  ;;  %v589_v7 = vrot.slane %v587_v25, 4 }
  0xd2   : > { %v8703_v12 = vcombine.low %v538_v42, %v548_v4  ;;  %v562_v13 = vsel %vm8613_vm4, %v557_v46, %v561_v61  ;;  %v566_v14 = vor.u32 %v565_v48, %v561_v61  ;;  %v581_v15 = vrot.slane %v580_v0, 4  ;;  %v8721_v46 = vld [vmem:[%s8555_s8 + $0x58] sm:$0xf]  ;;  %p8162_p11 = pnand %p8161_p5, %p8155_p1 }
  0xd3   : > { %v585_v19 = vrot.slane %v583_v6, 5  ;;  %v593_v22 = vshll.u32 %v8686_v51, 16  ;;  %v622_v23 = vshrl.u32 %v413_v58, 16  ;;  %v625_v24 = vshll.u32 %v413_v58, 16 }
  0xd4   : > { %11064 = vst [vmem:[#allocation19_spill] sm:$0xff] %v8703_v12  ;;  %7073 = vmatprep.mubr.msk.bf16.mxu1 %vm914_vm1, %v8703_v12  ;;  %v567_v25 = vrot.slane %v566_v14, 4  ;;  %6598 = vmatpush3.bf16.msra.mxu1 %v7869_v63  ;;  %v635_v34 = vshrl.u32 %v8696_v3, 16  ;;  %v8715_v35 = vcombine.low %v413_v58, %v8696_v3  ;;  %v604_v36 = vor.u32 %v603_v5, %v600_v62  ;;  %v8732_v62 = vld [vmem:[%s8555_s8 + $0x50] sm:$0x1]  ;;  %v7879_v14 = vld [vmem:[#allocation8 + $0x60] sm:$0xff]  }
  0xd5   : > { %v586_v38 = vsel %vm8613_vm4, %v581_v15, %v585_v19  ;;  %v590_v42 = vor.u32 %v589_v7, %v585_v19  ;;  %v595_v43 = vrot.slane %v593_v22, 5  ;;  %v624_v44 = vrot.slane %v622_v23, 4  ;;  %6599 = vmatprep.subr.bf16.mxu1 %v7871_v8  ;;  %v7877_v63 = vld [vmem:[#allocation8 + $0x18] sm:$0xff]   ;;  %v8748_v23 = vld [vmem:[%s8555_s8 + $0x64] sm:$0xf] }
  0xd6   : > { %11065 = vst [vmem:[#allocation20_spill] sm:$0xff] %v8715_v35  ;;  %v572_v47 = vsel %vm8613_vm4, %v567_v25, %v571_v59  ;;  %v627_v48 = vrot.slane %v625_v24, 5  ;;  %7115 = vmatprep.mubr.msk.bf16.mxu0 %vm914_vm1, %v8715_v35  ;;  %v605_v49 = vrot.slane %v604_v36, 4  ;;  %v607_v50 = vshll.u32 %v8675_v39, 16  ;;  %v7881_v24 = vld [vmem:[#allocation8 + $0x20] sm:$0xff]  }
  0xd7   : > { %v8728_v53 = vcombine.low %v562_v13, %v572_v47  ;;  %v591_v54 = vrot.slane %v590_v42, 4  ;;  %v613_v58 = vrot.slane %v611_v56, 4  ;;  %v617_v61 = vshll.u32 %v8709_v31, 16  ;;  %v417_v13 = vld [vmem:[%s8555_s8 + $0x60] sm:$0xf] }
  0xd8   : > { %v609_v0 = vrot.slane %v607_v50, 5  ;;  %v646_v4 = vshrl.u32 %v415_v37, 16  ;;  %v649_v59 = vshll.u32 %v415_v37, 16  ;;  %v659_v5 = vshrl.u32 %v8721_v46, 16  ;;  %6600 = vmatpush3.bf16.msra.mxu1 %v7873_v18  ;;  %v8840_v12 = vld [vmem:[%s8555_s8 + $0x94] sm:$0xf] }
  0xd9   : > { %11066 = vst [vmem:[#allocation21_spill] sm:$0xff] %v8728_v53  ;;  %7074 = vmatmul.mubr.msk.bf16.gmra.mrb[4].mxu1 %vm914_vm1, %v8728_v53  ;;  %v596_v6 = vsel %vm8613_vm4, %v591_v54, %v595_v43  ;;  %v619_v7 = vrot.slane %v617_v61, 5  ;;  %v8740_v56 = vcombine.low %v415_v37, %v8721_v46  ;;  %v628_v8 = vor.u32 %v627_v48, %v624_v44  ;;  %v8761_v54 = vld [vmem:[%s8555_s8 + $0x5c] sm:$0x1]  ;;  %v457_v35 = vld [vmem:[%s8555_s8 + $0x18] sm:$0xe] }
  0xda   : > { %6601 = vmatprep.subr.bf16.mxu1 %v7875_v33  ;;  %v8743_v15 = vcombine.low %v586_v38, %v596_v6  ;;  %v610_v19 = vsel %vm8613_vm4, %v605_v49, %v609_v0  ;;  %v614_v18 = vor.u32 %v613_v58, %v609_v0  ;;  %v648_v22 = vrot.slane %v646_v4, 4  ;;  %v7883_v38 = vld [vmem:[#allocation8 + $0x68] sm:$0xff]   ;;  %v419_v58 = vld [vmem:[%s8555_s8 + $0x6c] sm:$0xf]  ;;  %v8767_v6 = vld [vmem:[%s8555_s8 + $0x70] sm:$0xf] }
  0xdb   : > { %11067 = vst [vmem:[#allocation22_spill] sm:$0xff] %v8740_v56  ;;  %v651_v25 = vrot.slane %v649_v59, 5  ;;  %7116 = vmatmul.mubr.msk.bf16.gmra.mrb[12].mxu0 %vm914_vm1, %v8740_v56  ;;  %v629_v36 = vrot.slane %v628_v8, 4  ;;  %v631_v33 = vshll.u32 %v8696_v3, 16  ;;  %v637_v37 = vrot.slane %v635_v34, 4 }
  0xdc   : > { %11068 = vst [vmem:[#allocation23_spill] sm:$0xff] %v8743_v15  ;;  %7077 = vmatprep.mubr.msk.bf16.mxu1 %vm914_vm1, %v8743_v15  ;;  %v615_v42 = vrot.slane %v614_v18, 4  ;;  %v641_v43 = vshll.u32 %v8732_v62, 16  ;;  %v670_v44 = vshrl.u32 %v417_v13, 16  ;;  %v673_v47 = vshll.u32 %v417_v13, 16  ;;  %6602 = vmatpush3.bf16.msra.mxu1 %v7877_v63  ;;  %v7885_v18 = vld [vmem:[#allocation8 + $0x28] sm:$0xff]  }
  0xdd   : > { %v633_v48 = vrot.slane %v631_v33, 5  ;;  %v683_v49 = vshrl.u32 %v8748_v23, 16  ;;  %v8758_v50 = vcombine.low %v417_v13, %v8748_v23  ;;  %v652_v34 = vor.u32 %v651_v25, %v648_v22  ;;  %6603 = vmatprep.subr.bf16.mxu1 %v7879_v14 }
  0xde   : > { %v620_v61 = vsel %vm8613_vm4, %v615_v42, %v619_v7  ;;  %v643_v0 = vrot.slane %v641_v43, 5  ;;  %v672_v4 = vrot.slane %v670_v44, 4  ;;  %v675_v59 = vrot.slane %v673_v47, 5  ;;  %v8778_v42 = vld [vmem:[%s8555_s8 + $0x68] sm:$0x1] }
  0xdf   : > { %11069 = vst [vmem:[#allocation24_spill] sm:$0xff] %v8758_v50  ;;  %v8769_v63 = vcombine.low %v610_v19, %v620_v61  ;;  %v634_v8 = vsel %vm8613_vm4, %v629_v36, %v633_v48  ;;  %v638_v13 = vor.u32 %v637_v37, %v633_v48  ;;  %7119 = vmatprep.mubr.msk.bf16.mxu0 %vm914_vm1, %v8758_v50  ;;  %v653_v14 = vrot.slane %v652_v34, 4  ;;  %v421_v44 = vld [vmem:[%s8555_s8 + $0x78] sm:$0xf] }
  0xe0   : > { %v655_v22 = vshll.u32 %v8721_v46, 16  ;;  %v661_v7 = vrot.slane %v659_v5, 4  ;;  %v665_v25 = vshll.u32 %v8761_v54, 16  ;;  %v694_v33 = vshrl.u32 %v419_v58, 16  ;;  %6604 = vmatpush3.bf16.msra.mxu1 %v7881_v24  ;;  %v7887_v5 = vld [vmem:[#allocation8 + $0x70] sm:$0xff]  }
  0xe1   : > { %11070 = vst [vmem:[#allocation25_spill] sm:$0xff] %v8769_v63  ;;  %7078 = vmatmul.mubr.msk.bf16.gmra.mrb[8].mxu1 %vm914_vm1, %v8769_v63  ;;  %v639_v19 = vrot.slane %v638_v13, 4  ;;  %v697_v36 = vshll.u32 %v419_v58, 16  ;;  %v707_v37 = vshrl.u32 %v8767_v6, 16  ;;  %v8784_v43 = vcombine.low %v419_v58, %v8767_v6  ;;  %6605 = vmatprep.subr.bf16.mxu1 %v7883_v38  ;;  %v8813_v63 = vld [vmem:[%s8555_s8 + $0x88] sm:$0xf] }
  0xe2   : > { %v657_v47 = vrot.slane %v655_v22, 5  ;;  %v667_v48 = vrot.slane %v665_v25, 5  ;;  %v696_v34 = vrot.slane %v694_v33, 4  ;;  %v676_v61 = vor.u32 %v675_v59, %v672_v4  ;;  %v7889_v59 = vld [vmem:[#allocation8 + $0x30] sm:$0xff]   ;;  %v7890_v25 = vld [vmem:[#allocation8 + $0x78] sm:$0xff]  }
  0xe3   : > { %11071 = vst [vmem:[#allocation26_spill] sm:$0xff] %v8784_v43  ;;  %v644_v24 = vsel %vm8613_vm4, %v639_v19, %v643_v0  ;;  %v699_v13 = vrot.slane %v697_v36, 5  ;;  %7120 = vmatmul.mubr.msk.bf16.gmra.mrb[16].mxu0 %vm914_vm1, %v8784_v43  ;;  %v679_v58 = vshll.u32 %v8748_v23, 16  ;;  %v685_v55 = vrot.slane %v683_v49, 4 }
  0xe4   : > { %v8795_v9 = vcombine.low %v634_v8, %v644_v24  ;;  %v658_v38 = vsel %vm8613_vm4, %v653_v14, %v657_v47  ;;  %v662_v22 = vor.u32 %v661_v7, %v657_v47  ;;  %v677_v4 = vrot.slane %v676_v61, 4  ;;  %6606 = vmatpush3.bf16.msra.mxu1 %v7885_v18  ;;  %v423_v7 = vld [vmem:[%s8555_s8 + $0x84] sm:$0xf] }
  0xe5   : > { %v681_v0 = vrot.slane %v679_v58, 5  ;;  %v689_v33 = vshll.u32 %v8778_v42, 16  ;;  %v718_v19 = vshrl.u32 %v421_v44, 16  ;;  %v721_v36 = vshll.u32 %v421_v44, 16  ;;  %6607 = vmatprep.subr.bf16.mxu1 %v7887_v5 }
  0xe6   : > { %11072 = vst [vmem:[#allocation27_spill] sm:$0xff] %v8795_v9  ;;  %7081 = vmatprep.mubr.msk.bf16.mxu1 %vm914_vm1, %v8795_v9  ;;  %v663_v49 = vrot.slane %v662_v22, 4  ;;  %v731_v8 = vshrl.u32 %v8788_v20, 16  ;;  %v8807_v14 = vcombine.low %v421_v44, %v8788_v20  ;;  %v700_v18 = vor.u32 %v699_v13, %v696_v34  ;;  %v7891_v13 = vld [vmem:[#allocation8 + $0x38] sm:$0xff]  }
  0xe7   : > { %v682_v47 = vsel %vm8613_vm4, %v677_v4, %v681_v0  ;;  %v686_v61 = vor.u32 %v685_v55, %v681_v0  ;;  %v691_v24 = vrot.slane %v689_v33, 5  ;;  %v720_v58 = vrot.slane %v718_v19, 4  ;;  %v8824_v33 = vld [vmem:[%s8555_s8 + $0x80] sm:$0x1] }
  0xe8   : > { %11073 = vst [vmem:[#allocation28_spill] sm:$0xff] %v8807_v14  ;;  %v668_v5 = vsel %vm8613_vm4, %v663_v49, %v667_v48  ;;  %v723_v22 = vrot.slane %v721_v36, 5  ;;  %7123 = vmatprep.mubr.msk.bf16.mxu0 %vm914_vm1, %v8807_v14  ;;  %v701_v44 = vrot.slane %v700_v18, 4  ;;  %v703_v34 = vshll.u32 %v8767_v6, 16  ;;  %6608 = vmatpush3.bf16.msra.mxu1 %v7889_v59  ;;  %v7894_v48 = vld [vmem:[#allocation8 + $0xc0] sm:$0xff]  }
  0xe9   : > { %v8820_v9 = vcombine.low %v658_v38, %v668_v5  ;;  %v687_v55 = vrot.slane %v686_v61, 4  ;;  %v709_v4 = vrot.slane %v707_v37, 4  ;;  %v713_v0 = vshll.u32 %v8801_v30, 16  ;;  %6609 = vmatprep.subr.bf16.mxu1 %v7890_v25  ;;  %v425_v5 = vld [vmem:[%s8555_s8 + $0x90] sm:$0xf] }
  0xea   : > { %v705_v19 = vrot.slane %v703_v34, 5  ;;  %v742_v36 = vshrl.u32 %v423_v7, 16  ;;  %v745_v49 = vshll.u32 %v423_v7, 16  ;;  %v755_v18 = vshrl.u32 %v8813_v63, 16 }
  0xeb   : > { %11074 = vst [vmem:[#allocation29_spill] sm:$0xff] %v8820_v9  ;;  %7082 = vmatmul.mubr.msk.bf16.gmra.mrb[12].mxu1 %vm914_vm1, %v8820_v9  ;;  %v692_v38 = vsel %vm8613_vm4, %v687_v55, %v691_v24  ;;  %v715_v59 = vrot.slane %v713_v0, 5  ;;  %v8832_v37 = vcombine.low %v423_v7, %v8813_v63  ;;  %v724_v61 = vor.u32 %v723_v22, %v720_v58 }
  0xec   : > { %v8835_v25 = vcombine.low %v682_v47, %v692_v38  ;;  %v706_v34 = vsel %vm8613_vm4, %v701_v44, %v705_v19  ;;  %v710_v15 = vor.u32 %v709_v4, %v705_v19  ;;  %v744_v53 = vrot.slane %v742_v36, 4  ;;  %6610 = vmatpush3.bf16.msra.mxu1 %v7891_v13  ;;  %v8853_v19 = vld [vmem:[%s8555_s8 + $0x8c] sm:$0x1] }
  0xed   : > { %11075 = vst [vmem:[#allocation30_spill] sm:$0xff] %v8832_v37  ;;  %v747_v9 = vrot.slane %v745_v49, 5  ;;  %7124 = vmatmul.mubr.msk.bf16.gmra.mrb[20].mxu0 %vm914_vm1, %v8832_v37  ;;  %v725_v7 = vrot.slane %v724_v61, 4  ;;  %v727_v24 = vshll.u32 %v8788_v20, 16  ;;  %v733_v58 = vrot.slane %v731_v8, 4  ;;  %6707 = vmatprep.subr.bf16.mxu1 %v7894_v48 }
  0xee   : > { %11076 = vst [vmem:[#allocation31_spill] sm:$0xff] %v8835_v25  ;;  %7085 = vmatprep.mubr.msk.bf16.mxu1 %vm914_vm1, %v8835_v25  ;;  %v711_v47 = vrot.slane %v710_v15, 4  ;;  %v737_v22 = vshll.u32 %v8824_v33, 16  ;;  %v766_v44 = vshrl.u32 %v425_v5, 16  ;;  %v769_v55 = vshll.u32 %v425_v5, 16 }
  0xef   : > { %v729_v13 = vrot.slane %v727_v24, 5  ;;  %v779_v4 = vshrl.u32 %v8840_v12, 16  ;;  %v8850_v0 = vcombine.low %v425_v5, %v8840_v12  ;;  %v748_v36 = vor.u32 %v747_v9, %v744_v53  ;;  %v427_v8 = vld [vmem:[%s8555_s8 + $0x9c] sm:$0xf]  ;;  %v8859_v61 = vld [vmem:[%s8555_s8 + $0xa0] sm:$0xf] }
  0xf0   : > { %v716_v48 = vsel %vm8613_vm4, %v711_v47, %v715_v59  ;;  %v739_v15 = vrot.slane %v737_v22, 5  ;;  %v768_v49 = vrot.slane %v766_v44, 4  ;;  %v771_v38 = vrot.slane %v769_v55, 5  ;;  %v8870_v22 = vld [vmem:[%s8555_s8 + $0x98] sm:$0x1] }
  0xf1   : > { %11077 = vst [vmem:[#allocation32_spill] sm:$0xff] %v8850_v0  ;;  %v8861_v24 = vcombine.low %v706_v34, %v716_v48  ;;  %v730_v5 = vsel %vm8613_vm4, %v725_v7, %v729_v13  ;;  %v734_v25 = vor.u32 %v733_v58, %v729_v13  ;;  %7127 = vmatprep.mubr.msk.bf16.mxu0 %vm914_vm1, %v8850_v0  ;;  %v749_v9 = vrot.slane %v748_v36, 4  ;;  %v429_v44 = vld [vmem:[%s8555_s8 + $0xa8] sm:$0xf]  ;;  %v8880_v13 = vld [vmem:[%s8555_s8 + $0xac] sm:$0xf] }
  0xf2   : > { %v751_v53 = vshll.u32 %v8813_v63, 16  ;;  %v757_v40 = vrot.slane %v755_v18, 4  ;;  %v761_v59 = vshll.u32 %v8853_v19, 16  ;;  %v790_v47 = vshrl.u32 %v427_v8, 16 }
  0xf3   : > { %11078 = vst [vmem:[#allocation33_spill] sm:$0xff] %v8861_v24  ;;  %vm1452_vm5 = vcmask 1042432   ;;  %vm1453_vm6 = vcmask 1046532   ;;  %7086 = vmatmul.mubr.msk.bf16.gmra.mrb[16].mxu1 %vm914_vm1, %v8861_v24  ;;  %v735_v34 = vrot.slane %v734_v25, 4  ;;  %v793_v7 = vshll.u32 %v427_v8, 16 }
  0xf4   : > { %v803_v58 = vshrl.u32 %v8859_v61, 16  ;;  %v8877_v55 = vcombine.low %v427_v8, %v8859_v61  ;;  %v753_v18 = vrot.slane %v751_v53, 5  ;;  %v763_v36 = vrot.slane %v761_v59, 5  ;;  %vm8929_vm7 = vmor %vm1452_vm5, %vm1453_vm6 }
  0xf5   : > { %v792_v48 = vrot.slane %v790_v47, 4  ;;  %v772_v0 = vor.u32 %v771_v38, %v768_v49  ;;  %v740_v37 = vsel %vm8613_vm4, %v735_v34, %v739_v15  ;;  %v795_v14 = vrot.slane %v793_v7, 5 }
  0xf6   : > { %11079 = vst [vmem:[#allocation34_spill] sm:$0xff] %v8877_v55  ;;  %7128 = vmatmul.mubr.msk.bf16.gmra.mrb[24].mxu0 %vm914_vm1, %v8877_v55  ;;  %v775_v25 = vshll.u32 %v8840_v12, 16  ;;  %v781_v24 = vrot.slane %v779_v4, 4  ;;  %v8887_v43 = vcombine.low %v730_v5, %v740_v37  ;;  %v754_v8 = vsel %vm8613_vm4, %v749_v9, %v753_v18  ;;  %v8899_v5 = vld [vmem:[%s8555_s8 + $0xa4] sm:$0x1] }
  0xf7   : > { %v758_v53 = vor.u32 %v757_v40, %v753_v18  ;;  %v773_v59 = vrot.slane %v772_v0, 4  ;;  %v785_v15 = vshll.u32 %v8870_v22, 16  ;;  %v814_v38 = vshrl.u32 %v429_v44, 16  ;;  %v8905_v55 = vld [vmem:[%s8555_s8 + $0xb8] sm:$0xf] }
  0xf8   : > { %11080 = vst [vmem:[#allocation35_spill] sm:$0xff] %v8887_v43  ;;  %v777_v49 = vrot.slane %v775_v25, 5  ;;  %v817_v47 = vshll.u32 %v429_v44, 16  ;;  %7089 = vmatprep.mubr.msk.bf16.mxu1 %vm914_vm1, %v8887_v43  ;;  %v827_v4 = vshrl.u32 %v8880_v13, 16  ;;  %v8896_v37 = vcombine.low %v429_v44, %v8880_v13  ;;  %v431_v25 = vld [vmem:[%s8555_s8 + $0xb4] sm:$0xf] }
  0xf9   : > { %v759_v34 = vrot.slane %v758_v53, 4  ;;  %v796_v40 = vor.u32 %v795_v14, %v792_v48  ;;  %v787_v7 = vrot.slane %v785_v15, 5  ;;  %v816_v18 = vrot.slane %v814_v38, 4  ;;  %v8916_v15 = vld [vmem:[%s8555_s8 + $0xb0] sm:$0x1] }
  0xfa   : > { %11081 = vst [vmem:[#allocation36_spill] sm:$0xff] %v8896_v37  ;;  %v778_v0 = vsel %vm8613_vm4, %v773_v59, %v777_v49  ;;  %v782_v9 = vor.u32 %v781_v24, %v777_v49  ;;  %v819_v43 = vrot.slane %v817_v47, 5  ;;  %7131 = vmatprep.mubr.msk.bf16.mxu0 %vm914_vm1, %v8896_v37  ;;  %v799_v14 = vshll.u32 %v8859_v61, 16  ;;  %v455_v38 = vld [vmem:[%s8555_s8] sm:$0xe] }
  0xfb   : > { %v764_v53 = vsel %vm8613_vm4, %v759_v34, %v763_v36  ;;  %v797_v44 = vrot.slane %v796_v40, 4  ;;  %v805_v24 = vrot.slane %v803_v58, 4  ;;  %v809_v49 = vshll.u32 %v8899_v5, 16 }
  0xfc   : > { %v8912_v48 = vcombine.low %v754_v8, %v764_v53  ;;  %v783_v59 = vrot.slane %v782_v9, 4  ;;  %v801_v50 = vrot.slane %v799_v14, 5  ;;  %v838_v56 = vshrl.u32 %v431_v25, 16  ;;  %v8934_v53 = vld [vmem:[%s8555_s8 + $0xbc] sm:$0x1] }
  0xfd   : > { %v841_v36 = vshll.u32 %v431_v25, 16  ;;  %v851_v47 = vshrl.u32 %v8905_v55, 16  ;;  %v811_v34 = vrot.slane %v809_v49, 5  ;;  %v8925_v40 = vcombine.low %v431_v25, %v8905_v55 }
  0xfe   : > { %11082 = vst [vmem:[#allocation37_spill] sm:$0xff] %v8912_v48  ;;  %7090 = vmatmul.mubr.msk.bf16.gmra.mrb[20].mxu1 %vm914_vm1, %v8912_v48  ;;  %v788_v8 = vsel %vm8613_vm4, %v783_v59, %v787_v7  ;;  %v820_v58 = vor.u32 %v819_v43, %v816_v18  ;;  %v11084_v9 = vmov 0  ;;  %v802_v48 = vsel %vm8613_vm4, %v797_v44, %v801_v50 }
  0xff   : > { %11083 = vst [vmem:[#allocation38_spill] sm:$0xff] %v8925_v40  ;;  %v11085_v9 = vsel %vm8929_vm7, 4294967295, %v11084_v9  ;;  %v8936_v14 = vcombine.low %v778_v0, %v788_v8  ;;  %v806_v37 = vor.u32 %v805_v24, %v801_v50  ;;  %v840_v7 = vrot.slane %v838_v56, 4  ;;  %7132 = vmatmul.mubr.msk.bf16.gmra.mrb[28].mxu0 %vm914_vm1, %v8925_v40 }
 0x100   : > { %11086 = vst [vmem:[#allocation39_spill] sm:$0xff] %v11085_v9  ;;  %v843_v59 = vrot.slane %v841_v36, 5  ;;  %v821_v43 = vrot.slane %v820_v58, 4  ;;  %v823_v18 = vshll.u32 %v8880_v13, 16  ;;  %v829_v25 = vrot.slane %v827_v4, 4  ;;  %v11169_v9 = vld [vmem:[#allocation33_spill] sm:$0xff] }
 0x101   : > { %11087 = vst [vmem:[#allocation40_spill] sm:$0xff] %v8936_v14  ;;  %7093 = vmatprep.mubr.msk.bf16.mxu1 %vm914_vm1, %v8936_v14  ;;  %v807_v0 = vrot.slane %v806_v37, 4  ;;  %v833_v49 = vshll.u32 %v8916_v15, 16  ;;  %v6013_v8 = vrot.slane %v455_v38, 9  ;;  %v11088_v50 = vrot.slane %v8601_v21, 5 }
 0x102   : > { %v825_v44 = vrot.slane %v823_v18, 5  ;;  %v844_v24 = vor.u32 %v843_v59, %v840_v7  ;;  %v847_v36 = vshll.u32 %v8905_v55, 16  ;;  %v853_v58 = vrot.slane %v851_v47, 4  ;;  %v456_v4 = vld [vmem:[%s8555_s8 + $0xc] sm:$0xe] }
 0x103   : > { %v1461_v56 = vsel %vm8929_vm7, %v8597_v17, %v11088_v50  ;;  %v812_v37 = vsel %vm8613_vm4, %v807_v0, %v811_v34  ;;  %v835_v14 = vrot.slane %v833_v49, 5  ;;  %v11089_v38 = vrot.slane %v8579_v2, 5  ;;  %v8966_v18 = vld [vmem:[%s8563_s9 + $0x8] ss:$0 sps:$4 sm:$0x11]  }
 0x104   : > { %v857_v40 = vshll.u32 %v8934_v53, 16  ;;  %v8961_v17 = vcombine.low %v802_v48, %v812_v37  ;;  %v826_v47 = vsel %vm8613_vm4, %v821_v43, %v825_v44  ;;  %v830_v7 = vor.u32 %v829_v25, %v825_v44  ;;  %v3162_v50 = vld [vmem:[%s8563_s9] sm:$0xf]  ;;  %v8979_v44 = vld [vmem:[%s8563_s9 + $0x4] sm:$0xf] }
 0x105   : > { %v1458_v21 = vsel %vm8929_vm7, %v6013_v8, %v11089_v38  ;;  %v845_v34 = vrot.slane %v844_v24, 4  ;;  %v849_v0 = vrot.slane %v847_v36, 5  ;;  %v6014_v49 = vrot.slane %v456_v4, 9 }
 0x106   : > { %v6029_v59 = vcombine.low %v1458_v21, %v1461_v56  ;;  %v859_v2 = vrot.slane %v857_v40, 5  ;;  %7094 = vmatmul.mubr.msk.bf16.gmra.mrb[24].mxu1 %vm914_vm1, %v8961_v17  ;;  %v831_v8 = vrot.slane %v830_v7, 4  ;;  %v11090_v48 = vrot.slane %v8631_v45, 5 }
 0x107   : > { %v6015_v25 = vrot.slane %v457_v35, 9  ;;  %v1471_v56 = vrot.slane %v8620_v32, 5  ;;  %vm3378_vm8 = vsmask.f32 7424  ;;  %v850_v40 = vsel %vm8613_vm4, %v845_v34, %v849_v0  ;;  %v3164_v34 = vld [vmem:[%s8563_s9 + $0xc] sm:$0xf] }
 0x108   : > { %7137 = vmatprep.mubr.msk.bf16.mxu0 %vm914_vm1, %v6029_v59  ;;  %v1468_v43 = vsel %vm8929_vm7, %v8609_v28, %v11090_v48  ;;  %v854_v24 = vor.u32 %v853_v58, %v849_v0  ;;  %v11091_v36 = vrot.slane %v8588_v10, 5  ;;  %v1474_v4 = vrot.slane %v8649_v1, 5  ;;  %v458_v28 = vld [vmem:[%s8555_s8 + $0x24] sm:$0xe]  ;;  %v459_v58 = vld [vmem:[%s8555_s8 + $0x30] sm:$0xe] }
 0x109   : > { %v7896_v35 = vld [vmem:[#allocation7 + $0x4] ss:$0 sps:$4 sm:$0xcc]   ;;  %v836_v32 = vsel %vm8613_vm4, %v831_v8, %v835_v14  ;;  %v1472_v38 = vsel %vm8929_vm7, %v6015_v25, %v1471_v56  ;;  %v1473_v21 = vrot.slane %v1471_v56, 4  ;;  %v8999_v59 = vcombine.low %v3162_v50, %v8979_v44  ;;  %v9004_v0 = vld [vmem:[%s8563_s9 + $0x10] sm:$0xf] }
 0x10a   : > { %v1465_v45 = vsel %vm8929_vm7, %v6014_v49, %v11091_v36  ;;  %v8996_v7 = vcombine.low %v826_v47, %v836_v32  ;;  %v855_v10 = vrot.slane %v854_v24, 4  ;;  %v3387_v1 = vshll.u32 %v8966_v18, 16  ;;  %v9013_v48 = vld [vmem:[%s8563_s9 + $0x14] ss:$0 sps:$4 sm:$0x11]  }
 0x10b   : > { %v8991_v37 = vcombine.low %v1465_v45, %v1468_v43  ;;  %v1475_v14 = vsel %vm8929_vm7, %v1473_v21, %v1474_v4  ;;  %v6016_v49 = vrot.slane %v458_v28, 9  ;;  %v1478_v8 = vrot.slane %v8638_v52, 5 }
 0x10c   : > { %v1481_v47 = vrot.slane %v8669_v27, 5  ;;  %7097 = vmatprep.mubr.msk.bf16.mxu1 %vm914_vm1, %v8996_v7  ;;  %v860_v50 = vsel %vm8613_vm4, %v855_v10, %v859_v2  ;;  %v9019_v43 = vcombine.low %v1472_v38, %v1475_v14  ;;  %v3380_v25 = vshrl.u32 %v8999_v59, 16  ;;  %v460_v10 = vld [vmem:[%s8555_s8 + $0x3c] sm:$0xe]  ;;  %v461_v14 = vld [vmem:[%s8555_s8 + $0x48] sm:$0xe] }
 0x10d   : > { %7138 = vmatmul.mubr.msk.bf16.vlgmr.msra.gmra.mrb[0].mxu0 %vm914_vm1, %v8991_v37  ;;  %v3382_v56 = vshll.u32 %v8999_v59, 16  ;;  %v9023_v24 = vcombine.low %v850_v40, %v860_v50  ;;  %v3389_v52 = vrot.slane %v3387_v1, 1  ;;  %v1479_v27 = vsel %vm8929_vm7, %v6016_v49, %v1478_v8  ;;  %v9051_v50 = vld [vmem:[%s8563_s9 + $0x1c] sm:$0xf] }
 0x10e   : > { %11092 = vst [vmem:[#allocation41_spill] sm:$0xff] %v9019_v43  ;;  %v1480_v36 = vrot.slane %v1478_v8, 4  ;;  %7141 = vmatprep.mubr.msk.bf16.mxu0 %vm914_vm1, %v9019_v43  ;;  %v1869_v2 = vrot.slane %v7896_v35, 2  ;;  %v6017_v4 = vrot.slane %v459_v58, 9  ;;  %v1485_v28 = vrot.slane %v8658_v11, 5 }
 0x10f   : > { %v3384_v45 = vrot.slane %v3382_v56, 1  ;;  %7098 = vmatmul.mubr.msk.bf16.gmra.mrb[28].mxu1 %vm914_vm1, %v9023_v24  ;;  %v1488_v32 = vrot.slane %v8686_v51, 5  ;;  %v9036_v38 = vcombine.low %v3164_v34, %v9004_v0  ;;  %v3399_v21 = vshll.u32 %v9013_v48, 16  ;;  %v3166_v51 = vld [vmem:[%s8563_s9 + $0x18] sm:$0xf] }
 0x110   : > { %v1482_v40 = vsel %vm8929_vm7, %v1480_v36, %v1481_v47  ;;  %7744 = vmatprep.subr.msk.bf16.mxu0 %vm963_vm0, %v1869_v2  ;;  %v1874_v11 = vsel %vm963_vm0, %v1869_v2, 0  ;;  %v1486_v58 = vsel %vm8929_vm7, %v6017_v4, %v1485_v28  ;;  %v1487_v49 = vrot.slane %v1485_v28, 4  ;;  %v7895_v2 = vld [vmem:[#allocation8 + $0x80] sm:$0xff]  }
 0x111   : > { %v3385_v1 = vor.u32 %v3384_v45, %v3380_v25  ;;  %v9040_v35 = vcombine.low %v1479_v27, %v1482_v40  ;;  %7170 = vmatpush3.bf16.msra.mxu0 %v1874_v11  ;;  %v3392_v34 = vshrl.u32 %v9036_v38, 16  ;;  %v3394_v8 = vshll.u32 %v9036_v38, 16  ;;  %v9057_v45 = vld [vmem:[%s8563_s9 + $0x20] ss:$0 sps:$4 sm:$0x11]  }
 0x112   : > { %v3401_v47 = vrot.slane %v3399_v21, 1  ;;  %v6018_v56 = vrot.slane %v460_v10, 9  ;;  %v1492_v27 = vrot.slane %v8675_v39, 5  ;;  %v1495_v36 = vrot.slane %v8709_v31, 5  ;;  %v463_v11 = vld [vmem:[%s8555_s8 + $0x60] sm:$0xe] }
 0x113   : > { %11093 = vst [vmem:[#allocation42_spill] sm:$0xff] %v9040_v35  ;;  %v3390_v25 = vsel %vm3378_vm8, %v3385_v1, %v3389_v52  ;;  %v1489_v4 = vsel %vm8929_vm7, %v1487_v49, %v1488_v32  ;;  %v3396_v28 = vrot.slane %v3394_v8, 1  ;;  %v6019_v40 = vrot.slane %v461_v14, 9  ;;  %v462_v1 = vld [vmem:[%s8555_s8 + $0x54] sm:$0xe] }
 0x114   : > { %4366 = vmatprep.mubr.bf16.mxu1 %v3390_v25  ;;  %v1499_v52 = vrot.slane %v8696_v3, 5  ;;  %v9064_v21 = vcombine.low %v1486_v58, %v1489_v4  ;;  %v1493_v39 = vsel %vm8929_vm7, %v6018_v56, %v1492_v27  ;;  %v1494_v31 = vrot.slane %v1492_v27, 4  ;;  %v7901_v3 = vld [vmem:[#allocation8 + $0xc8] sm:$0xff]   ;;  %v9084_v56 = vld [vmem:[%s8563_s9 + $0x28] sm:$0xf] }
 0x115   : > { %7142 = vmatmul.mubr.msk.bf16.gmra.mrb[4].mxu0 %vm914_vm1, %v9040_v35  ;;  %v1502_v10 = vrot.slane %v8732_v62, 5  ;;  %v3397_v25 = vor.u32 %v3396_v28, %v3392_v34  ;;  %v9074_v14 = vcombine.low %v3166_v51, %v9051_v50  ;;  %v3411_v62 = vshll.u32 %v9057_v45, 16  ;;  %v3168_v34 = vld [vmem:[%s8563_s9 + $0x24] sm:$0xf] }
 0x116   : > { %11094 = vst [vmem:[#allocation43_spill] sm:$0xff] %v9064_v21  ;;  %v1500_v32 = vsel %vm8929_vm7, %v6019_v40, %v1499_v52  ;;  %v1501_v49 = vrot.slane %v1499_v52, 4  ;;  %7145 = vmatprep.mubr.msk.bf16.mxu0 %vm914_vm1, %v9064_v21  ;;  %v1496_v58 = vsel %vm8929_vm7, %v1494_v31, %v1495_v36  ;;  %v1506_v8 = vrot.slane %v8721_v46, 5  ;;  %v7902_v52 = vld [vmem:[#allocation8 + $0x88] sm:$0xff]  }
 0x117   : > { %11095 = vst [vmem:[#allocation44_spill] sm:$0xff] %v9074_v14  ;;  %4367 = vmatmul.mubr.bf16.vlgmr.msra.gmra.mrb[32].mxu1 %v8999_v59  ;;  %v9088_v51 = vsel %vm3378_vm8, %v3397_v25, %v3401_v47  ;;  %v9090_v27 = vcombine.low %v1493_v39, %v1496_v58  ;;  %v6020_v28 = vrot.slane %v462_v1, 9  ;;  %v3404_v46 = vshrl.u32 %v9074_v14, 16  ;;  %v9100_v59 = vld [vmem:[%s8563_s9 + $0x2c] ss:$0 sps:$4 sm:$0x11]  }
 0x118   : > { %11096 = vst [vmem:[#allocation45_spill] sm:$0xff] %v9088_v51  ;;  %v1503_v4 = vsel %vm8929_vm7, %v1501_v49, %v1502_v10  ;;  %6708 = vmatpush3.bf16.msra.mxu1 %v7895_v2  ;;  %4374 = vmatprep.mubr.bf16.mxu1 %v9088_v51  ;;  %v3406_v40 = vshll.u32 %v9074_v14, 16  ;;  %v1508_v47 = vrot.slane %v1506_v8, 4  ;;  %v1509_v39 = vrot.slane %v8761_v54, 5  ;;  %v7907_v1 = vld [vmem:[#allocation8 + $0xd0] sm:$0xff]  }
 0x119   : > { %11097 = vst [vmem:[#allocation46_spill] sm:$0xff] %v9090_v27  ;;  %v9095_v36 = vcombine.low %v1500_v32, %v1503_v4  ;;  %6709 = vmatprep.subr.bf16.mxu1 %v7901_v3  ;;  %v6021_v31 = vrot.slane %v463_v11, 9  ;;  %v1513_v10 = vrot.slane %v8748_v23, 5  ;;  %v3413_v25 = vrot.slane %v3411_v62, 1  ;;  %v7908_v23 = vld [vmem:[#allocation8 + $0x90] sm:$0xff]   ;;  %v7913_v11 = vld [vmem:[#allocation8 + $0xd8] sm:$0xff]  }
 0x11a   : > { %v3408_v2 = vrot.slane %v3406_v40, 1  ;;  %v1516_v32 = vrot.slane %v8778_v42, 5  ;;  %v9106_v49 = vcombine.low %v3168_v34, %v9084_v56  ;;  %v1507_v3 = vsel %vm8929_vm7, %v6020_v28, %v1506_v8  ;;  %v464_v4 = vld [vmem:[%s8555_s8 + $0x6c] sm:$0xe]  ;;  %v465_v40 = vld [vmem:[%s8555_s8 + $0x78] sm:$0xe] }
 0x11b   : > { %11098 = vst [vmem:[#allocation47_spill] sm:$0xff] %v9095_v36  ;;  %v1515_v54 = vrot.slane %v1513_v10, 4  ;;  %v1510_v42 = vsel %vm8929_vm7, %v1508_v47, %v1509_v39  ;;  %v3423_v34 = vshll.u32 %v9100_v59, 16  ;;  %v1514_v8 = vsel %vm8929_vm7, %v6021_v31, %v1513_v10  ;;  %v9128_v47 = vld [vmem:[%s8563_s9 + $0x34] sm:$0xf] }
 0x11c   : > { %11099 = vst [vmem:[#allocation48_spill] sm:$0xff] %v9106_v49  ;;  %v3409_v58 = vor.u32 %v3408_v2, %v3404_v46  ;;  %6710 = vmatpush3.bf16.msra.mxu1 %v7902_v52  ;;  %v3418_v62 = vshll.u32 %v9106_v49, 16  ;;  %v3416_v51 = vshrl.u32 %v9106_v49, 16  ;;  %v1520_v46 = vrot.slane %v8767_v6, 5  ;;  %v3170_v2 = vld [vmem:[%s8563_s9 + $0x30] sm:$0xf] }
 0x11d   : > { %7146 = vmatmul.mubr.msk.bf16.gmra.mrb[8].mxu0 %vm914_vm1, %v9090_v27  ;;  %v1517_v28 = vsel %vm8929_vm7, %v1515_v54, %v1516_v32  ;;  %6711 = vmatprep.subr.bf16.mxu1 %v7907_v1  ;;  %v9134_v31 = vcombine.low %v1507_v3, %v1510_v42  ;;  %v6022_v10 = vrot.slane %v464_v4, 9  ;;  %v1523_v32 = vrot.slane %v8801_v30, 5  ;;  %v9139_v6 = vld [vmem:[%s8563_s9 + $0x38] ss:$0 sps:$4 sm:$0x11]   ;;  %v7919_v27 = vld [vmem:[#allocation8 + $0xe0] sm:$0xff]  }
 0x11e   : > { %7149 = vmatprep.mubr.msk.bf16.mxu0 %vm914_vm1, %v9095_v36  ;;  %v9131_v52 = vsel %vm3378_vm8, %v3409_v58, %v3413_v25  ;;  %v3420_v39 = vrot.slane %v3418_v62, 1  ;;  %v7914_v36 = vld [vmem:[#allocation8 + $0x98] sm:$0xff]   ;;  %v1527_v54 = vrot.slane %v8788_v20, 5  ;;  %v9142_v1 = vcombine.low %v1514_v8, %v1517_v28 }
 0x11f   : > { %11100 = vst [vmem:[#allocation49_spill] sm:$0xff] %v9131_v52  ;;  %4375 = vmatmul.mubr.bf16.gmra.mrb[36].mxu1 %v9036_v38  ;;  %11101 = vst [vmem:[#allocation50_spill] sm:$0xff] %v9134_v31  ;;  %v1522_v25 = vrot.slane %v1520_v46, 4  ;;  %v6023_v58 = vrot.slane %v465_v40, 9  ;;  %v9145_v62 = vcombine.low %v3170_v2, %v9128_v47  ;;  %v3172_v3 = vld [vmem:[%s8563_s9 + $0x3c] sm:$0xf] }
 0x120   : > { %4382 = vmatprep.mubr.bf16.mxu1 %v9131_v52  ;;  %11102 = vst [vmem:[#allocation51_spill] sm:$0xff] %v9142_v1  ;;  %6712 = vmatpush3.bf16.msra.mxu1 %v7908_v23  ;;  %v3421_v42 = vor.u32 %v3420_v39, %v3416_v51  ;;  %v3425_v4 = vrot.slane %v3423_v34, 1  ;;  %v1529_v30 = vrot.slane %v1527_v54, 4  ;;  %v1530_v20 = vrot.slane %v8824_v33, 5  ;;  %v9151_v8 = vld [vmem:[%s8563_s9 + $0x40] sm:$0xf] }
 0x121   : > { %11103 = vst [vmem:[#allocation52_spill] sm:$0xff] %v9145_v62  ;;  %6713 = vmatprep.subr.bf16.mxu1 %v7913_v11  ;;  %v3430_v21 = vshll.u32 %v9145_v62, 16  ;;  %v1521_v23 = vsel %vm8929_vm7, %v6022_v10, %v1520_v46  ;;  %v3435_v51 = vshll.u32 %v9139_v6, 16  ;;  %v1534_v34 = vrot.slane %v8813_v63, 5  ;;  %v466_v2 = vld [vmem:[%s8555_s8 + $0x84] sm:$0xe] }
 0x122   : > { %v1524_v33 = vsel %vm8929_vm7, %v1522_v25, %v1523_v32  ;;  %v1528_v11 = vsel %vm8929_vm7, %v6023_v58, %v1527_v54  ;;  %v3428_v40 = vshrl.u32 %v9145_v62, 16  ;;  %v7920_v46 = vld [vmem:[#allocation8 + $0xa0] sm:$0xff]   ;;  %v9168_v39 = vsel %vm3378_vm8, %v3421_v42, %v3425_v4  ;;  %v467_v10 = vld [vmem:[%s8555_s8 + $0x90] sm:$0xe]  ;;  %v7925_v54 = vld [vmem:[#allocation8 + $0xe8] sm:$0xff]  }
 0x123   : > { %v3432_v28 = vrot.slane %v3430_v21, 1  ;;  %11104 = vst [vmem:[#allocation53_spill] sm:$0xff] %v9168_v39  ;;  %v1531_v63 = vsel %vm8929_vm7, %v1529_v30, %v1530_v20  ;;  %v1541_v52 = vrot.slane %v8840_v12, 5  ;;  %v9175_v32 = vcombine.low %v3172_v3, %v9151_v8  ;;  %v9181_v42 = vld [vmem:[%s8563_s9 + $0x44] ss:$0 sps:$4 sm:$0x11]  }
 0x124   : > { %6714 = vmatpush3.bf16.msra.mxu1 %v7914_v36  ;;  %v9178_v21 = vcombine.low %v1521_v23, %v1524_v33  ;;  %v3437_v36 = vrot.slane %v3435_v51, 1  ;;  %v6024_v25 = vrot.slane %v466_v2, 9  ;;  %v1536_v58 = vrot.slane %v1534_v34, 4  ;;  %v7926_v4 = vld [vmem:[#allocation8 + $0xa8] sm:$0xff]   ;;  %v7931_v33 = vld [vmem:[#allocation8 + $0xf0] sm:$0xff]  }
 0x125   : > { %7150 = vmatmul.mubr.msk.bf16.gmra.mrb[12].mxu0 %vm914_vm1, %v9134_v31  ;;  %11105 = vst [vmem:[#allocation54_spill] sm:$0xff] %v9175_v32  ;;  %6715 = vmatprep.subr.bf16.mxu1 %v7919_v27  ;;  %v9184_v12 = vcombine.low %v1528_v11, %v1531_v63  ;;  %v3433_v3 = vor.u32 %v3432_v28, %v3428_v40  ;;  %v1537_v27 = vrot.slane %v8853_v19, 5  ;;  %v6025_v30 = vrot.slane %v467_v10, 9  ;;  %v3174_v2 = vld [vmem:[%s8563_s9 + $0x48] sm:$0xf] }
 0x126   : > { %7153 = vmatprep.mubr.msk.bf16.mxu0 %vm914_vm1, %v9142_v1  ;;  %11106 = vst [vmem:[#allocation55_spill] sm:$0xff] %v9178_v21  ;;  %v1543_v20 = vrot.slane %v1541_v52, 4  ;;  %v1544_v23 = vrot.slane %v8870_v22, 5  ;;  %v3442_v51 = vshll.u32 %v9175_v32, 16  ;;  %v9191_v1 = vld [vmem:[%s8563_s9 + $0x4c] sm:$0xf]  ;;  %v1535_v11 = vsel %vm8929_vm7, %v6024_v25, %v1534_v34 }
 0x127   : > { %4383 = vmatmul.mubr.bf16.gmra.mrb[40].mxu1 %v9074_v14  ;;  %11107 = vst [vmem:[#allocation56_spill] sm:$0xff] %v9184_v12  ;;  %v3447_v19 = vshll.u32 %v9181_v42, 16  ;;  %v468_v40 = vld [vmem:[%s8555_s8 + $0x9c] sm:$0xe]  ;;  %v1548_v28 = vrot.slane %v8859_v61, 5  ;;  %v1538_v63 = vsel %vm8929_vm7, %v1536_v58, %v1537_v27  ;;  %v1542_v34 = vsel %vm8929_vm7, %v6025_v30, %v1541_v52  ;;  %v7932_v58 = vld [vmem:[#allocation8 + $0xb0] sm:$0xff]  }
 0x128   : > { %4390 = vmatprep.mubr.bf16.mxu1 %v9168_v39  ;;  %6716 = vmatpush3.bf16.msra.mxu1 %v7920_v46  ;;  %v9200_v22 = vld [vmem:[#allocation7 + $0x8] sm:$0x3]  ;;  %v9205_v46 = vsel %vm3378_vm8, %v3433_v3, %v3437_v36  ;;  %v3440_v10 = vshrl.u32 %v9175_v32, 16  ;;  %v1545_v61 = vsel %vm8929_vm7, %v1543_v20, %v1544_v23  ;;  %v1555_v36 = vrot.slane %v8880_v13, 5  ;;  %v7937_v30 = vld [vmem:[#allocation8 + $0xf8] sm:$0xff]  }
 0x129   : > { %6717 = vmatprep.subr.bf16.mxu1 %v7925_v54  ;;  %11108 = vst [vmem:[#allocation57_spill] sm:$0xff] %v9205_v46  ;;  %7745 = vmatprep.subr.msk.bf16.mxu0 %vm963_vm0, %v9200_v22  ;;  %v3444_v54 = vrot.slane %v3442_v51, 1  ;;  %v469_v25 = vld [vmem:[%s8555_s8 + $0xa8] sm:$0xe]  ;;  %v9219_v3 = vcombine.low %v3174_v2, %v9191_v1  ;;  %v6026_v52 = vrot.slane %v468_v40, 9  ;;  %v9225_v39 = vcombine.low %v1535_v11, %v1538_v63 }
 0x12a   : > { %v9222_v27 = vld [vmem:[%s8563_s9 + $0x50] ss:$0 sps:$4 sm:$0x11]   ;;  %v3449_v20 = vrot.slane %v3447_v19, 1  ;;  %v1550_v23 = vrot.slane %v1548_v28, 4  ;;  %v9229_v13 = vcombine.low %v1542_v34, %v1545_v61  ;;  %v6027_v2 = vrot.slane %v469_v25, 9 }
 0x12b   : > { %11109 = vst [vmem:[#allocation58_spill] sm:$0xff] %v9219_v3  ;;  %11110 = vst [vmem:[#allocation59_spill] sm:$0xff] %v9225_v39  ;;  %v3176_v51 = vld [vmem:[%s8563_s9 + $0x54] sm:$0xf]  ;;  %v1558_v40 = vrot.slane %v8916_v15, 5  ;;  %v1557_v31 = vrot.slane %v1555_v36, 4 }
 0x12c   : > { %6718 = vmatpush3.bf16.msra.mxu1 %v7926_v4  ;;  %11111 = vst [vmem:[#allocation60_spill] sm:$0xff] %v9229_v13  ;;  %v1551_v4 = vrot.slane %v8899_v5, 5  ;;  %v3454_v11 = vshll.u32 %v9219_v3, 16  ;;  %v7942_v19 = vld [vmem:[#allocation8 + $0x140] sm:$0xff]   ;;  %v1549_v5 = vsel %vm8929_vm7, %v6026_v52, %v1548_v28  ;;  %v3459_v63 = vshll.u32 %v9222_v27, 16 }
 0x12d   : > { %7154 = vmatmul.mubr.msk.bf16.gmra.mrb[16].mxu0 %vm914_vm1, %v9178_v21  ;;  %6719 = vmatprep.subr.bf16.mxu1 %v7931_v33  ;;  %v7939_v33 = vld [vmem:[#allocation8 + $0xb8] sm:$0xff]   ;;  %v3445_v21 = vor.u32 %v3444_v54, %v3440_v10  ;;  %v1556_v34 = vsel %vm8929_vm7, %v6027_v2, %v1555_v36  ;;  %v1562_v61 = vrot.slane %v8905_v55, 5  ;;  %v1559_v25 = vsel %vm8929_vm7, %v1557_v31, %v1558_v40 }
 0x12e   : > { %7157 = vmatprep.mubr.msk.bf16.mxu0 %vm914_vm1, %v9184_v12  ;;  %v9234_v12 = vld [vmem:[%s8563_s9 + $0x58] sm:$0xf]  ;;  %v1552_v15 = vsel %vm8929_vm7, %v1550_v23, %v1551_v4  ;;  %v470_v10 = vld [vmem:[%s8555_s8 + $0xb4] sm:$0xe]  ;;  %v3456_v52 = vrot.slane %v3454_v11, 1  ;;  %v3461_v36 = vrot.slane %v3459_v63, 1 }
 0x12f   : > { %4391 = vmatmul.mubr.bf16.gmra.mrb[44].mxu1 %v9106_v49  ;;  %v9251_v54 = vcombine.low %v3176_v51, %v9234_v12  ;;  %v9254_v28 = vsel %vm3378_vm8, %v3445_v21, %v3449_v20  ;;  %v9260_v55 = vcombine.low %v1549_v5, %v1552_v15  ;;  %v9263_v21 = vcombine.low %v1556_v34, %v1559_v25  ;;  %v9267_v23 = vld [vmem:[%s8563_s9 + $0x5c] ss:$0 sps:$4 sm:$0x11]   ;;  %v3178_v2 = vld [vmem:[%s8563_s9 + $0x60] sm:$0xf] }
 0x130   : > { %4398 = vmatprep.mubr.bf16.mxu1 %v9205_v46  ;;  %6720 = vmatpush3.bf16.msra.mxu1 %v7932_v58  ;;  %11113 = vst [vmem:[#allocation62_spill] sm:$0xff] %v9254_v28  ;;  %v3452_v58 = vshrl.u32 %v9219_v3, 16  ;;  %v1564_v31 = vrot.slane %v1562_v61, 4  ;;  %v1565_v20 = vrot.slane %v8934_v53, 5  ;;  %v9272_v40 = vld [vmem:[%s8563_s9 + $0x64] sm:$0xf] }
 0x131   : > { %6721 = vmatprep.subr.bf16.mxu1 %v7937_v30  ;;  %11112 = vst [vmem:[#allocation61_spill] sm:$0xff] %v9251_v54  ;;  %11114 = vst [vmem:[#allocation63_spill] sm:$0xff] %v9260_v55  ;;  %v6028_v30 = vrot.slane %v470_v10, 9  ;;  %v3466_v51 = vshll.u32 %v9251_v54, 16  ;;  %v3180_v11 = vld [vmem:[%s8563_s9 + $0x6c] sm:$0xf]  ;;  %v9295_v25 = vcombine.low %v3178_v2, %v9272_v40 }
 0x132   : > { %11115 = vst [vmem:[#allocation64_spill] sm:$0xff] %v9263_v21  ;;  %v3457_v4 = vor.u32 %v3456_v52, %v3452_v58  ;;  %v3464_v5 = vshrl.u32 %v9251_v54, 16  ;;  %v9288_v63 = vld [vmem:[%s8563_s9 + $0x70] sm:$0xf]  ;;  %v3471_v10 = vshll.u32 %v9267_v23, 16  ;;  %vm3635_vm9 = vcmask 1046528  }
 0x133   : > { %v1563_v53 = vsel %vm8929_vm7, %v6028_v30, %v1562_v61  ;;  %v3468_v34 = vrot.slane %v3466_v51, 1  ;;  %11117 = vst [vmem:[#allocation66_spill] sm:$0xff] %v9295_v25  ;;  %v9301_v58 = vcombine.low %v3180_v11, %v9288_v63  ;;  %v9304_v52 = vld [vmem:[%s8563_s9 + $0x74] ss:$0 sps:$4 sm:$0x11]   ;;  %v3640_v35 = vrot.slane %v9013_v48, 1 }
 0x134   : > { %6722 = vmatpush3.bf16.msra.mxu1 %v7939_v33  ;;  %v9277_v33 = vld [vmem:[%s8563_s9 + $0x68] ss:$0 sps:$4 sm:$0x11]   ;;  %v9291_v15 = vsel %vm3378_vm8, %v3457_v4, %v3461_v36  ;;  %v3182_v30 = vld [vmem:[%s8563_s9 + $0x78] sm:$0xf]  ;;  %v3473_v51 = vrot.slane %v3471_v10, 1 }
 0x135   : > { %7158 = vmatmul.mubr.msk.bf16.gmra.mrb[20].mxu0 %vm914_vm1, %v9225_v39  ;;  %6819 = vmatprep.subr.bf16.mxu1 %v7942_v19  ;;  %v1566_v19 = vsel %vm8929_vm7, %v1564_v31, %v1565_v20  ;;  %11116 = vst [vmem:[#allocation65_spill] sm:$0xff] %v9291_v15  ;;  %11119 = vst [vmem:[#allocation68_spill] sm:$0xff] %v9301_v58  ;;  %v3483_v36 = vshll.u32 %v9277_v33, 16  ;;  %v9310_v31 = vld [vmem:[%s8563_s9 + $0x7c] sm:$0xf]  ;;  %v3469_v20 = vor.u32 %v3468_v34, %v3464_v5  ;;  %vm5665_vm10 = vcmask 1043456  }
 0x136   : > { %7161 = vmatprep.mubr.msk.bf16.mxu0 %vm914_vm1, %v9229_v13  ;;  %v9298_v61 = vcombine.low %v1563_v53, %v1566_v19  ;;  %v3478_v4 = vshll.u32 %v9295_v25, 16  ;;  %v9314_v2 = vld [vmem:[%s8563_s9 + $0x80] ss:$0 sps:$4 sm:$0x11]   ;;  %v3490_v11 = vshll.u32 %v9301_v58, 16  ;;  %v3495_v53 = vshll.u32 %v9304_v52, 16 }
 0x137   : > { %4399 = vmatmul.mubr.bf16.gmra.mrb[48].mxu1 %v9145_v62  ;;  %v3476_v19 = vshrl.u32 %v9295_v25, 16  ;;  %v3485_v5 = vrot.slane %v3483_v36, 1  ;;  %v2101_v34 = vsel %vm963_vm0, %v9200_v22, 0  ;;  %v9326_v10 = vcombine.low %v3182_v30, %v9310_v31  ;;  %v3216_v36 = vld [vmem:[%s8563_s9] sm:$0xe] }
 0x138   : > { %4406 = vmatprep.mubr.bf16.mxu1 %v9254_v28  ;;  %11118 = vst [vmem:[#allocation67_spill] sm:$0xff] %v9298_v61  ;;  %v3480_v28 = vrot.slane %v3478_v4, 1  ;;  %v3488_v46 = vshrl.u32 %v9301_v58, 16  ;;  %v3492_v22 = vrot.slane %v3490_v11, 1  ;;  %v9339_v30 = vrot.slane %v3495_v53, 1 }
 0x139   : > { %11120 = vst [vmem:[#allocation69_spill] sm:$0xff] %v9326_v10  ;;  %v3637_v4 = vrot.slane %v8966_v18, 1  ;;  %v3217_v39 = vld [vmem:[%s8563_s9 + $0xc] sm:$0xe]  ;;  %v3643_v11 = vrot.slane %v9057_v45, 1  ;;  %vm5672_vm14 = vcmask 1040384  }
 0x13a   : > { %v3481_v13 = vor.u32 %v3480_v28, %v3476_v19  ;;  %v9351_v53 = vld [vmem:[%s8563_s9 + $0x8c] ss:$0 sps:$4 sm:$0x11]   ;;  %v3219_v45 = vld [vmem:[%s8563_s9 + $0x24] sm:$0xe]  ;;  %v3646_v19 = vrot.slane %v9100_v59, 1 }
 0x13b   : > { %vm5666_vm11 = vsmask.f32 7938  ;;  %vm5339_vm12 = vsmask.f32 256  ;;  %vm5340_vm13 = vsmask.f32 4368 }
 0x13c   : > { %vm10405_vm15 = vmand %vm5665_vm10, %vm5666_vm11 }
 0x13d   : > { %7162 = vmatmul.mubr.msk.bf16.gmra.mrb[24].mxu0 %vm914_vm1, %v9260_v55  ;;  %v9345_v55 = vld [vmem:[#allocation7 + $0x8] ss:$0 sps:$4 sm:$0xcc]  }
 0x13e   : > { %7165 = vmatprep.mubr.msk.bf16.mxu0 %vm914_vm1, %v9263_v21  ;;  %v3184_v21 = vld [vmem:[%s8563_s9 + $0x84] sm:$0xf] }
 0x13f   : > { %4407 = vmatmul.mubr.bf16.gmra.mrb[52].mxu1 %v9175_v32 }
 0x140   : > { %4414 = vmatprep.mubr.bf16.mxu1 %v9291_v15  ;;  %v9329_v15 = vsel %vm3378_vm8, %v3469_v20, %v3473_v51  ;;  %v6200_v51 = vcombine.low %v3216_v36, %v8979_v44  ;;  %v10990_v20 = vrot.slane %v9345_v55, 2  ;;  %v3218_v44 = vld [vmem:[%s8563_s9 + $0x18] sm:$0xe]  ;;  %v9371_v36 = vsel %vm3378_vm8, %v3481_v13, %v3485_v5  ;;  %v3221_v5 = vld [vmem:[%s8563_s9 + $0x3c] sm:$0xe] }
 0x141   : > { %11121 = vst [vmem:[#allocation70_spill] sm:$0xff] %v9329_v15  ;;  %v6202_v48 = vcombine.low %v3218_v44, %v9051_v50  ;;  %11123 = vst [vmem:[#allocation72_spill] sm:$0xff] %v9371_v36  ;;  %v3186_v50 = vld [vmem:[%s8563_s9 + $0x90] sm:$0xf]  ;;  %v3649_v13 = vrot.slane %v9139_v6, 1 }
 0x142   : > { %v3636_v43 = vrot.slane %v6200_v51, 1  ;;  %v9376_v51 = vld [vmem:[%s8563_s9 + $0x94] sm:$0xf] }
 0x144   : > { %v9366_v28 = vsel %vm3635_vm9, %v3636_v43, %v3637_v4  ;;  %v3220_v43 = vld [vmem:[%s8563_s9 + $0x30] sm:$0xe] }
 0x145   : > { %7166 = vmatmul.mubr.msk.bf16.gmra.mrb[28].mxu0 %vm914_vm1, %v9298_v61  ;;  %v3507_v61 = vshll.u32 %v9314_v2, 16  ;;  %v6204_v59 = vcombine.low %v3220_v43, %v9128_v47  ;;  %v3519_v47 = vshll.u32 %v9351_v53, 16 }
 0x146   : > { %7171 = vmatprep.mubr.msk.bf16.mxu0 %vm914_vm1, %v8592_v16  ;;  %v9335_v16 = vld [vmem:[%s8563_s9 + $0x88] sm:$0xf] }
 0x147   : > { %4415 = vmatmul.mubr.bf16.gmra.mrb[56].mxu1 %v9219_v3  ;;  %v9359_v18 = vcombine.low %v3184_v21, %v9335_v16  ;;  %v3502_v21 = vshll.u32 %v9326_v10, 16  ;;  %v3509_v43 = vrot.slane %v3507_v61, 1 }
 0x148   : > { %4422 = vmatprep.mubr.bf16.mxu1 %v9329_v15  ;;  %v6201_v15 = vcombine.low %v3217_v39, %v9004_v0  ;;  %v6203_v39 = vcombine.low %v3219_v45, %v9084_v56  ;;  %v3652_v45 = vrot.slane %v9181_v42, 1  ;;  %v9404_v42 = vcombine.low %v3186_v50, %v9376_v51 }
 0x149   : > { %11122 = vst [vmem:[#allocation71_spill] sm:$0xff] %v9359_v18  ;;  %v3514_v4 = vshll.u32 %v9359_v18, 16 }
 0x14a   : > { %v3639_v0 = vrot.slane %v6201_v15, 1  ;;  %v3645_v56 = vrot.slane %v6203_v39, 1  ;;  %v3222_v39 = vld [vmem:[%s8563_s9 + $0x48] sm:$0xe]  ;;  %11126 = vst [vmem:[#allocation75_spill] sm:$0xff] %v9404_v42 }
 0x14b   : > { %v3516_v61 = vrot.slane %v3514_v4, 1 }
 0x14c   : > { %v9383_v15 = vsel %vm3635_vm9, %v3639_v0, %v3640_v35  ;;  %v3493_v35 = vor.u32 %v3492_v22, %v3488_v46  ;;  %v9398_v6 = vsel %vm3635_vm9, %v3645_v56, %v3646_v19  ;;  %v3648_v0 = vrot.slane %v6204_v59, 1  ;;  %v3223_v19 = vld [vmem:[%s8563_s9 + $0x54] sm:$0xe]  ;;  %v3188_v59 = vld [vmem:[%s8563_s9 + $0x9c] sm:$0xf] }
 0x14d   : > { %7172 = vmatmul.mubr.msk.bf16.vlgmr.msra.gmra.mrb[0].mxu0 %vm914_vm1, %v8624_v41  ;;  %11125 = vst [vmem:[#allocation74_spill] sm:$0xff] %v9398_v6  ;;  %v3655_v22 = vrot.slane %v9222_v27, 1  ;;  %v3521_v27 = vrot.slane %v3519_v47, 1  ;;  %v11132_v47 = vshrl.u32 %v9326_v10, 16 }
 0x14e   : > { %7175 = vmatprep.mubr.msk.bf16.mxu0 %vm914_vm1, %v8644_v60  ;;  %7204 = vmatpush3.bf16.msra.mxu0 %v2101_v34  ;;  %v3642_v34 = vrot.slane %v6202_v48, 1  ;;  %v6205_v48 = vcombine.low %v3221_v5, %v9151_v8  ;;  %v6206_v8 = vcombine.low %v3222_v39, %v9191_v1  ;;  %v9407_v46 = vsel %vm3635_vm9, %v3648_v0, %v3649_v13  ;;  %v3224_v5 = vld [vmem:[%s8563_s9 + $0x60] sm:$0xe]  ;;  %v9432_v0 = vld [vmem:[%s8563_s9 + $0x98] ss:$0 sps:$4 sm:$0x11]  }
 0x14f   : > { %7746 = vmatprep.subr.msk.bf16.mxu0 %vm963_vm0, %v10990_v20  ;;  %4423 = vmatmul.mubr.bf16.gmra.mrb[60].mxu1 %v9251_v54  ;;  %v3512_v20 = vshrl.u32 %v9359_v18, 16  ;;  %11127 = vst [vmem:[#allocation76_spill] sm:$0xff] %v9407_v46  ;;  %v9421_v50 = vsel %vm3378_vm8, %v3493_v35, %v9339_v30  ;;  %v3658_v13 = vrot.slane %v9267_v23, 1  ;;  %v9435_v39 = vld [vmem:[%s8563_s9 + $0xa0] sm:$0xf]  ;;  %v3526_v30 = vshll.u32 %v9404_v42, 16 }
 0x150   : > { %v9391_v44 = vsel %vm3635_vm9, %v3642_v34, %v3643_v11  ;;  %4430 = vmatprep.mubr.bf16.mxu1 %v9371_v36  ;;  %v3651_v11 = vrot.slane %v6205_v48, 1  ;;  %v3504_v34 = vrot.slane %v3502_v21, 1  ;;  %v3654_v1 = vrot.slane %v6206_v8, 1  ;;  %11129 = vst [vmem:[#allocation78_spill] sm:$0xff] %v9421_v50  ;;  %v3225_v8 = vld [vmem:[%s8563_s9 + $0x6c] sm:$0xe] }
 0x151   : > { %11124 = vst [vmem:[#allocation73_spill] sm:$0xff] %v9391_v44  ;;  %v6207_v21 = vcombine.low %v3223_v19, %v9234_v12  ;;  %v3661_v12 = vrot.slane %v9277_v33, 1  ;;  %v11135_v19 = vld [vmem:[#allocation20_spill] sm:$0xff] }
 0x152   : > { %v9414_v56 = vsel %vm3635_vm9, %v3651_v11, %v3652_v45  ;;  %v9427_v4 = vsel %vm3635_vm9, %v3654_v1, %v3655_v22  ;;  %v6208_v45 = vcombine.low %v3224_v5, %v9272_v40  ;;  %v3505_v11 = vor.u32 %v3504_v34, %v11132_v47  ;;  %v11136_v1 = vld [vmem:[#allocation22_spill] sm:$0xff] }
 0x153   : > { %11128 = vst [vmem:[#allocation77_spill] sm:$0xff] %v9414_v56  ;;  %11130 = vst [vmem:[#allocation79_spill] sm:$0xff] %v9427_v4  ;;  %v3657_v48 = vrot.slane %v6207_v21, 1  ;;  %v9446_v40 = vcombine.low %v3188_v59, %v9435_v39  ;;  %v6209_v22 = vcombine.low %v3225_v8, %v9288_v63  ;;  %v3524_v21 = vshrl.u32 %v9404_v42, 16  ;;  %v3226_v47 = vld [vmem:[%s8563_s9 + $0x78] sm:$0xe] }
 0x154   : > { %v3660_v35 = vrot.slane %v6208_v45, 1  ;;  %v3531_v34 = vshll.u32 %v9432_v0, 16  ;;  %v9461_v5 = vsel %vm3378_vm8, %v3505_v11, %v3509_v43  ;;  %v11139_v43 = vld [vmem:[#allocation24_spill] sm:$0xff]  ;;  %v3667_v8 = vrot.slane %v9314_v2, 1 }
 0x155   : > { %7176 = vmatmul.mubr.msk.bf16.gmra.mrb[4].mxu0 %vm914_vm1, %v8666_v26  ;;  %v9440_v23 = vsel %vm3635_vm9, %v3657_v48, %v3658_v13  ;;  %11133 = vst [vmem:[#allocation81_spill] sm:$0xff] %v9446_v40  ;;  %v3663_v59 = vrot.slane %v6209_v22, 1  ;;  %v3664_v13 = vrot.slane %v9304_v52, 1  ;;  %11137 = vst [vmem:[#allocation20_spill] sm:$0xff] %v9461_v5  ;;  %v3528_v48 = vrot.slane %v3526_v30, 1  ;;  %v11140_v30 = vld [vmem:[#allocation26_spill] sm:$0xff] }
 0x156   : > { %7179 = vmatprep.mubr.msk.bf16.mxu0 %vm914_vm1, %v8692_v57  ;;  %11131 = vst [vmem:[#allocation80_spill] sm:$0xff] %v9440_v23  ;;  %v9449_v33 = vsel %vm3635_vm9, %v3660_v35, %v3661_v12  ;;  %v3538_v45 = vshll.u32 %v9446_v40, 16  ;;  %v3517_v12 = vor.u32 %v3516_v61, %v3512_v20  ;;  %v9470_v35 = vld [vmem:[%s8563_s9 + $0xa4] ss:$0 sps:$4 sm:$0x11]   ;;  %v6210_v52 = vcombine.low %v3226_v47, %v9310_v31 }
 0x157   : > { %4431 = vmatmul.mubr.bf16.gmra.mrb[64].mxu1 %v9295_v25  ;;  %11134 = vst [vmem:[#allocation82_spill] sm:$0xff] %v9449_v33  ;;  %v9465_v63 = vsel %vm3635_vm9, %v3663_v59, %v3664_v13  ;;  %v3533_v20 = vrot.slane %v3531_v34, 1  ;;  %v3536_v61 = vshrl.u32 %v9446_v40, 16  ;;  %v3543_v13 = vshll.u32 %v9470_v35, 16  ;;  %v3190_v47 = vld [vmem:[%s8563_s9 + $0xa8] sm:$0xf] }
 0x158   : > { %4438 = vmatprep.mubr.bf16.mxu1 %v9421_v50  ;;  %11138 = vst [vmem:[#allocation22_spill] sm:$0xff] %v9465_v63  ;;  %v3666_v11 = vrot.slane %v6210_v52, 1  ;;  %v9480_v22 = vsel %vm3378_vm8, %v3517_v12, %v3521_v27  ;;  %v3540_v31 = vrot.slane %v3538_v45, 1  ;;  %v9491_v52 = vld [vmem:[%s8563_s9 + $0xac] sm:$0xf]  ;;  %v3529_v2 = vor.u32 %v3528_v48, %v3524_v21 }
 0x159   : > { %11141 = vst [vmem:[#allocation24_spill] sm:$0xff] %v9480_v22  ;;  %v3227_v27 = vld [vmem:[%s8563_s9 + $0x84] sm:$0xe]  ;;  %v9504_v21 = vcombine.low %v3190_v47, %v9491_v52  ;;  %v3192_v50 = vld [vmem:[%s8563_s9 + $0xb4] sm:$0xf] }
 0x15a   : > { %v9484_v59 = vsel %vm3635_vm9, %v3666_v11, %v3667_v8  ;;  %v6211_v34 = vcombine.low %v3227_v27, %v9335_v16  ;;  %v11143_v12 = vld [vmem:[#allocation28_spill] sm:$0xff]  ;;  %v11144_v11 = vld [vmem:[#allocation30_spill] sm:$0xff]  ;;  %v3670_v8 = vrot.slane %v9351_v53, 1  ;;  %v3541_v27 = vor.u32 %v3540_v31, %v3536_v61 }
 0x15b   : > { %11142 = vst [vmem:[#allocation83_spill] sm:$0xff] %v9484_v59  ;;  %11146 = vst [vmem:[#allocation85_spill] sm:$0xff] %v9504_v21  ;;  %v9512_v16 = vld [vmem:[%s8563_s9 + $0xb0] ss:$0 sps:$4 sm:$0x11]   ;;  %v3673_v31 = vrot.slane %v9432_v0, 1 }
 0x15c   : > { %v3669_v45 = vrot.slane %v6211_v34, 1  ;;  %v3550_v34 = vshll.u32 %v9504_v21, 16  ;;  %v3228_v53 = vld [vmem:[%s8563_s9 + $0x90] sm:$0xe] }
 0x15d   : > { %7180 = vmatmul.mubr.msk.bf16.gmra.mrb[8].mxu0 %vm914_vm1, %v11135_v19  ;;  %v6212_v47 = vcombine.low %v3228_v53, %v9376_v51 }
 0x15e   : > { %7183 = vmatprep.mubr.msk.bf16.mxu0 %vm914_vm1, %v11136_v1  ;;  %v9507_v48 = vsel %vm3635_vm9, %v3669_v45, %v3670_v8  ;;  %v11149_v45 = vld [vmem:[#allocation34_spill] sm:$0xff]  ;;  %v3555_v8 = vshll.u32 %v9512_v16, 16  ;;  %v3552_v51 = vrot.slane %v3550_v34, 1  ;;  %v11153_v34 = vld [vmem:[#allocation36_spill] sm:$0xff] }
 0x15f   : > { %4439 = vmatmul.mubr.bf16.gmra.mrb[68].mxu1 %v9301_v58  ;;  %11147 = vst [vmem:[#allocation86_spill] sm:$0xff] %v9507_v48  ;;  %v3672_v61 = vrot.slane %v6212_v47, 1 }
 0x160   : > { %4446 = vmatprep.mubr.bf16.mxu1 %v9461_v5  ;;  %v3545_v5 = vrot.slane %v3543_v13, 1  ;;  %v3557_v47 = vrot.slane %v3555_v8, 1  ;;  %v3676_v8 = vrot.slane %v9470_v35, 1 }
 0x161   : > { %v9535_v36 = vsel %vm3635_vm9, %v3672_v61, %v3673_v31  ;;  %v9550_v61 = vld [vmem:[%s8555_s8 + $0xc0] sm:$0xf]  ;;  %v9553_v31 = vld [vmem:[%s8555_s8 + $0xc4] sm:$0xf] }
 0x162   : > { %v9528_v13 = vsel %vm3378_vm8, %v3541_v27, %v3545_v5  ;;  %11152 = vst [vmem:[#allocation89_spill] sm:$0xff] %v9535_v36  ;;  %v3229_v27 = vld [vmem:[%s8563_s9 + $0x9c] sm:$0xe]  ;;  %v2300_v35 = vrot.slane %v9553_v31, 5 }
 0x163   : > { %11150 = vst [vmem:[#allocation87_spill] sm:$0xff] %v9528_v13 }
 0x165   : > { %7184 = vmatmul.mubr.msk.bf16.gmra.mrb[12].mxu0 %vm914_vm1, %v11139_v43 }
 0x166   : > { %7187 = vmatprep.mubr.msk.bf16.mxu0 %vm914_vm1, %v11140_v30  ;;  %v11161_v30 = vld [vmem:[#allocation19_spill] sm:$0xff] }
 0x167   : > { %4447 = vmatmul.mubr.bf16.gmra.mrb[72].mxu1 %v9326_v10 }
 0x168   : > { %4454 = vmatprep.mubr.bf16.mxu1 %v9480_v22  ;;  %v9501_v22 = vsel %vm3378_vm8, %v3529_v2, %v3533_v20  ;;  %v9518_v20 = vld [vmem:[%s8563_s9 + $0xb8] sm:$0xf]  ;;  %v11148_v2 = vld [vmem:[#allocation32_spill] sm:$0xff] }
 0x169   : > { %11145 = vst [vmem:[#allocation84_spill] sm:$0xff] %v9501_v22  ;;  %v9532_v53 = vcombine.low %v3192_v50, %v9518_v20  ;;  %v11154_v50 = vld [vmem:[#allocation38_spill] sm:$0xff] }
 0x16b   : > { %11151 = vst [vmem:[#allocation88_spill] sm:$0xff] %v9532_v53  ;;  %v3562_v5 = vshll.u32 %v9532_v53, 16 }
 0x16d   : > { %7188 = vmatmul.mubr.msk.bf16.gmra.mrb[16].mxu0 %vm914_vm1, %v11143_v12  ;;  %v2302_v12 = vrot.slane %v2300_v35, 4 }
 0x16e   : > { %7191 = vmatprep.mubr.msk.bf16.mxu0 %vm914_vm1, %v11144_v11 }
 0x16f   : > { %4455 = vmatmul.mubr.bf16.gmra.mrb[76].mxu1 %v9359_v18 }
 0x170   : > { %4462 = vmatprep.mubr.bf16.mxu1 %v9501_v22  ;;  %v3548_v22 = vshrl.u32 %v9504_v21, 16 }
 0x172   : > { %v3553_v0 = vor.u32 %v3552_v51, %v3548_v22 }
 0x174   : > { %v9557_v51 = vsel %vm3378_vm8, %v3553_v0, %v3557_v47  ;;  %v9572_v0 = vld [vmem:[%s8555_s8 + $0xc8] sm:$0x1] }
 0x175   : > { %7192 = vmatmul.mubr.msk.bf16.gmra.mrb[20].mxu0 %vm914_vm1, %v11148_v2  ;;  %v6213_v2 = vcombine.low %v3229_v27, %v9435_v39  ;;  %11155 = vst [vmem:[#allocation90_spill] sm:$0xff] %v9557_v51  ;;  %v3560_v39 = vshrl.u32 %v9532_v53, 16  ;;  %v3564_v27 = vrot.slane %v3562_v5, 1  ;;  %v471_v5 = vld [vmem:[%s8555_s8 + $0xc0] sm:$0xe] }
 0x176   : > { %7195 = vmatprep.mubr.msk.bf16.mxu0 %vm914_vm1, %v11149_v45  ;;  %v9540_v45 = vld [vmem:[%s8563_s9 + $0xbc] ss:$0 sps:$4 sm:$0x11]   ;;  %v6096_v11 = vrot.slane %v471_v5, 9  ;;  %v11160_v5 = vrot.slane %v9345_v55, 2  ;;  %v7944_v55 = vld [vmem:[#allocation8 + $0x100] sm:$0xff]  }
 0x177   : > { %4463 = vmatmul.mubr.bf16.gmra.mrb[80].mxu1 %v9404_v42  ;;  %v3675_v22 = vrot.slane %v6213_v2, 1  ;;  %v3565_v2 = vor.u32 %v3564_v27, %v3560_v39 }
 0x178   : > { %4470 = vmatprep.mubr.bf16.mxu1 %v9528_v13  ;;  %v3567_v13 = vshll.u32 %v9540_v45, 16 }
 0x17a   : > { %v3569_v47 = vrot.slane %v3567_v13, 1 }
 0x17c   : > { %v9585_v13 = vsel %vm3378_vm8, %v3565_v2, %v3569_v47  ;;  %v7951_v2 = vld [vmem:[#allocation8 + $0x150] sm:$0xff]   ;;  %v11165_v47 = vld [vmem:[#allocation27_spill] sm:$0xff] }
 0x17d   : > { %7196 = vmatmul.mubr.msk.bf16.gmra.mrb[24].mxu0 %vm914_vm1, %v11153_v34  ;;  %v9562_v34 = vsel %vm3635_vm9, %v3675_v22, %v3676_v8  ;;  %v2303_v22 = vrot.slane %v9572_v0, 5  ;;  %v11157_v8 = vld [vmem:[#allocation18_spill] sm:$0xff] }
 0x17e   : > { %7199 = vmatprep.mubr.msk.bf16.mxu0 %vm914_vm1, %v11154_v50  ;;  %v9567_v50 = vcombine.low %v9550_v61, %v9553_v31  ;;  %11158 = vst [vmem:[#allocation18_spill] sm:$0xff] %v9585_v13 }
 0x17f   : > { %4471 = vmatmul.mubr.bf16.gmra.mrb[84].mxu1 %v9446_v40  ;;  %v2304_v39 = vsel %vm8929_vm7, %v2302_v12, %v2303_v22  ;;  %v11163_v12 = vld [vmem:[#allocation23_spill] sm:$0xff]  ;;  %v7953_v22 = vld [vmem:[#allocation8 + $0x110] sm:$0xff]  }
 0x180   : > { %11156 = vst [vmem:[#allocation91_spill] sm:$0xff] %v9567_v50  ;;  %4478 = vmatprep.mubr.bf16.mxu1 %v9557_v51  ;;  %v2301_v51 = vsel %vm8929_vm7, %v6096_v11, %v2300_v35  ;;  %v11162_v11 = vld [vmem:[#allocation21_spill] sm:$0xff] }
 0x181   : > { %v9587_v27 = vcombine.low %v2301_v51, %v2304_v39  ;;  %v11164_v51 = vld [vmem:[#allocation25_spill] sm:$0xff]  ;;  %v7955_v39 = vld [vmem:[#allocation8 + $0x158] sm:$0xff]  }
 0x182   : > { %v7947_v35 = vld [vmem:[#allocation8 + $0x148] sm:$0xff]  }
 0x183   : > { %11159 = vst [vmem:[#allocation92_spill] sm:$0xff] %v9587_v27 }
 0x185   : > { %7200 = vmatmul.mubr.msk.bf16.gmra.mrb[28].mxu0 %vm914_vm1, %v9567_v50  ;;  %v2317_v50 = vsel %vm963_vm0, %v11160_v5, 0  ;;  %v7959_v5 = vld [vmem:[#allocation8 + $0x160] sm:$0xff]  }
 0x186   : > { %7205 = vmatprep.mubr.msk.bf16.mxu0 %vm914_vm1, %v11157_v8  ;;  %v9594_v8 = vld [vmem:[#allocation7 + $0xc] sm:$0x3] }
 0x187   : > { %4479 = vmatmul.mubr.bf16.gmra.mrb[88].mxu1 %v9504_v21 }
 0x188   : > { %4486 = vmatprep.mubr.bf16.mxu1 %v9585_v13 }
 0x18d   : > { %7206 = vmatmul.mubr.msk.bf16.vlgmr.msra.gmra.mrb[0].mxu0 %vm914_vm1, %v11161_v30 }
 0x18e   : > { %7209 = vmatprep.mubr.msk.bf16.mxu0 %vm914_vm1, %v11162_v11  ;;  %7238 = vmatpush3.bf16.msra.mxu0 %v2317_v50  ;;  %v7949_v50 = vld [vmem:[#allocation8 + $0x108] sm:$0xff]  }
 0x18f   : > { %7747 = vmatprep.subr.msk.bf16.mxu0 %vm963_vm0, %v9594_v8  ;;  %4487 = vmatmul.mubr.bf16.gmra.mrb[92].mxu1 %v9532_v53 }
 0x190   : > { %4527 = vmatprep.mubr.bf16.mxu1 %v9036_v38  ;;  %v11166_v38 = vld [vmem:[#allocation29_spill] sm:$0xff] }
 0x195   : > { %7210 = vmatmul.mubr.msk.bf16.gmra.mrb[4].mxu0 %vm914_vm1, %v11163_v12 }
 0x196   : > { %7213 = vmatprep.mubr.msk.bf16.mxu0 %vm914_vm1, %v11164_v51 }
 0x197   : > { %4528 = vmatmul.mubr.bf16.vlgmr.msra.gmra.mrb[96].mxu1 %v9366_v28  ;;  %v7957_v28 = vld [vmem:[#allocation8 + $0x118] sm:$0xff]  }
 0x198   : > { %6820 = vmatpush3.bf16.msra.mxu1 %v7944_v55  ;;  %4535 = vmatprep.mubr.bf16.mxu1 %v9074_v14  ;;  %v11167_v55 = vld [vmem:[#allocation31_spill] sm:$0xff]  ;;  %v7963_v14 = vld [vmem:[#allocation8 + $0x168] sm:$0xff]  }
 0x199   : > { %6821 = vmatprep.subr.bf16.mxu1 %v7947_v35 }
 0x19c   : > { %6822 = vmatpush3.bf16.msra.mxu1 %v7949_v50  ;;  %v7961_v50 = vld [vmem:[#allocation8 + $0x120] sm:$0xff]  }
 0x19d   : > { %7214 = vmatmul.mubr.msk.bf16.gmra.mrb[8].mxu0 %vm914_vm1, %v11165_v47  ;;  %6823 = vmatprep.subr.bf16.mxu1 %v7951_v2  ;;  %v11179_v47 = vld [vmem:[#allocation40_spill] sm:$0xff] }
 0x19e   : > { %7217 = vmatprep.mubr.msk.bf16.mxu0 %vm914_vm1, %v11166_v38 }
 0x19f   : > { %4536 = vmatmul.mubr.bf16.gmra.mrb[100].mxu1 %v9383_v15 }
 0x1a0   : > { %4543 = vmatprep.mubr.bf16.mxu1 %v9106_v49  ;;  %6824 = vmatpush3.bf16.msra.mxu1 %v7953_v22  ;;  %v11173_v49 = vld [vmem:[#allocation35_spill] sm:$0xff] }
 0x1a1   : > { %6825 = vmatprep.subr.bf16.mxu1 %v7955_v39  ;;  %v7965_v39 = vld [vmem:[#allocation8 + $0x128] sm:$0xff]  }
 0x1a2   : > { %v9618_v35 = vpop.f32.mrb[0].mxu1 }
 0x1a3   : > { %11168 = vst [vmem:[#allocation19_spill] sm:$0xff] %v9618_v35  ;;  %v9622_v2 = vpop.f32.mrb[1].mxu1  ;;  %v7967_v35 = vld [vmem:[#allocation8 + $0x170] sm:$0xff]  }
 0x1a4   : > { %6826 = vmatpush3.bf16.msra.mxu1 %v7957_v28  ;;  %11170 = vst [vmem:[#allocation21_spill] sm:$0xff] %v9622_v2  ;;  %v9624_v13 = vpop.f32.mrb[2].mxu1  ;;  %v2070_v28 = vshrl.u32 %v9550_v61, 16  ;;  %v2083_v2 = vshrl.u32 %v9553_v31, 16 }
 0x1a5   : > { %7218 = vmatmul.mubr.msk.bf16.gmra.mrb[12].mxu0 %vm914_vm1, %v11167_v55  ;;  %6827 = vmatprep.subr.bf16.mxu1 %v7959_v5  ;;  %11171 = vst [vmem:[#allocation23_spill] sm:$0xff] %v9624_v13  ;;  %v9627_v22 = vpop.f32.mrb[3].mxu1  ;;  %v2073_v5 = vshll.u32 %v9550_v61, 16  ;;  %v11174_v13 = vld [vmem:[#allocation37_spill] sm:$0xff] }
 0x1a6   : > { %7221 = vmatprep.mubr.msk.bf16.mxu0 %vm914_vm1, %v11169_v9  ;;  %11172 = vst [vmem:[#allocation25_spill] sm:$0xff] %v9627_v22  ;;  %v2079_v22 = vshll.u32 %v9553_v31, 16  ;;  %v2072_v9 = vrot.slane %v2070_v28, 4  ;;  %v7973_v31 = vld [vmem:[#allocation8 + $0x138] sm:$0xff]  }
 0x1a7   : > { %4544 = vmatmul.mubr.bf16.gmra.mrb[104].mxu1 %v9391_v44  ;;  %v2075_v55 = vrot.slane %v2073_v5, 5 }
 0x1a8   : > { %4551 = vmatprep.mubr.bf16.mxu1 %v9145_v62  ;;  %6828 = vmatpush3.bf16.msra.mxu1 %v7961_v50  ;;  %v7969_v62 = vld [vmem:[#allocation8 + $0x130] sm:$0xff]   ;;  %v7971_v50 = vld [vmem:[#allocation8 + $0x178] sm:$0xff]   ;;  %v2081_v38 = vrot.slane %v2079_v22, 5 }
 0x1a9   : > { %6829 = vmatprep.subr.bf16.mxu1 %v7963_v14  ;;  %v2076_v28 = vor.u32 %v2075_v55, %v2072_v9 }
 0x1ac   : > { %6830 = vmatpush3.bf16.msra.mxu1 %v7965_v39  ;;  %v9638_v14 = vpop.f32.mrb[4].mxu1 }
 0x1ad   : > { %7222 = vmatmul.mubr.msk.bf16.gmra.mrb[16].mxu0 %vm914_vm1, %v11173_v49  ;;  %6831 = vmatprep.subr.bf16.mxu1 %v7967_v35  ;;  %11175 = vst [vmem:[#allocation93_spill] sm:$0xff] %v9638_v14  ;;  %v9641_v49 = vpop.f32.mrb[5].mxu1  ;;  %v7976_v35 = vld [vmem:[#allocation8 + $0x1c0] sm:$0xff]  }
 0x1ae   : > { %7225 = vmatprep.mubr.msk.bf16.mxu0 %vm914_vm1, %v11174_v13  ;;  %11176 = vst [vmem:[#allocation94_spill] sm:$0xff] %v9641_v49  ;;  %v9643_v61 = vpop.f32.mrb[6].mxu1  ;;  %v2085_v13 = vrot.slane %v2083_v2, 4 }
 0x1af   : > { %4552 = vmatmul.mubr.bf16.gmra.mrb[108].mxu1 %v9398_v6  ;;  %11177 = vst [vmem:[#allocation95_spill] sm:$0xff] %v9643_v61  ;;  %v9646_v39 = vpop.f32.mrb[7].mxu1  ;;  %v2089_v61 = vshll.u32 %v9572_v0, 16 }
 0x1b0   : > { %4559 = vmatprep.mubr.bf16.mxu1 %v9175_v32  ;;  %6832 = vmatpush3.bf16.msra.mxu1 %v7969_v62  ;;  %11178 = vst [vmem:[#allocation96_spill] sm:$0xff] %v9646_v39  ;;  %v2086_v5 = vor.u32 %v2085_v13, %v2081_v38  ;;  %v3679_v32 = vrot.slane %v9512_v16, 1 }
 0x1b1   : > { %6833 = vmatprep.subr.bf16.mxu1 %v7971_v50  ;;  %v2077_v50 = vrot.slane %v2076_v28, 4  ;;  %v2091_v39 = vrot.slane %v2089_v61, 5  ;;  %v2522_v28 = vsel %vm963_vm0, %v9594_v8, 0 }
 0x1b2   : > { %v2087_v14 = vrot.slane %v2086_v5, 4 }
 0x1b3   : > { %v2082_v9 = vsel %vm8613_vm4, %v2077_v50, %v2081_v38  ;;  %v9687_v38 = vld [vmem:[#allocation7 + $0xc] ss:$0 sps:$4 sm:$0xcc]  }
 0x1b4   : > { %6834 = vmatpush3.bf16.msra.mxu1 %v7973_v31  ;;  %v9653_v22 = vpop.f32.mrb[8].mxu1  ;;  %v2092_v0 = vsel %vm8613_vm4, %v2087_v14, %v2091_v39  ;;  %v11013_v5 = vrot.slane %v9687_v38, 2 }
 0x1b5   : > { %7226 = vmatmul.mubr.msk.bf16.gmra.mrb[20].mxu0 %vm914_vm1, %v11179_v47  ;;  %6931 = vmatprep.subr.bf16.mxu1 %v7976_v35  ;;  %11180 = vst [vmem:[#allocation40_spill] sm:$0xff] %v9653_v22  ;;  %v9656_v62 = vpop.f32.mrb[9].mxu1  ;;  %v9672_v13 = vcombine.low %v2082_v9, %v2092_v0  ;;  %v11193_v0 = vld [vmem:[#allocation42_spill] sm:$0xff]  ;;  %v11212_v22 = vld [vmem:[#allocation56_spill] sm:$0xff] }
 0x1b6   : > { %7229 = vmatprep.mubr.msk.bf16.mxu0 %vm914_vm1, %v8961_v17  ;;  %11181 = vst [vmem:[#allocation97_spill] sm:$0xff] %v9656_v62  ;;  %v9658_v2 = vpop.f32.mrb[10].mxu1 }
 0x1b7   : > { %4560 = vmatmul.mubr.bf16.gmra.mrb[112].mxu1 %v9407_v46  ;;  %11182 = vst [vmem:[#allocation98_spill] sm:$0xff] %v9658_v2  ;;  %v9661_v49 = vpop.f32.mrb[11].mxu1 }
 0x1b8   : > { %4567 = vmatprep.mubr.bf16.mxu1 %v9219_v3  ;;  %11183 = vst [vmem:[#allocation99_spill] sm:$0xff] %v9661_v49  ;;  %v11213_v49 = vld [vmem:[#allocation59_spill] sm:$0xff] }
 0x1b9   : > { %v11217_v3 = vld [vmem:[#allocation67_spill] sm:$0xff] }
 0x1bd   : > { %7230 = vmatmul.mubr.msk.bf16.gmra.mrb[24].mxu0 %vm914_vm1, %v8996_v7 }
 0x1be   : > { %7233 = vmatprep.mubr.msk.bf16.mxu0 %vm914_vm1, %v9023_v24  ;;  %v9674_v55 = vpop.f32.mrb[12].mxu1 }
 0x1bf   : > { %4568 = vmatmul.mubr.bf16.gmra.mrb[116].mxu1 %v9414_v56  ;;  %11184 = vst [vmem:[#allocation100_spill] sm:$0xff] %v9674_v55  ;;  %v9677_v61 = vpop.f32.mrb[13].mxu1  ;;  %v11204_v55 = vld [vmem:[#allocation50_spill] sm:$0xff] }
 0x1c0   : > { %4575 = vmatprep.mubr.bf16.mxu1 %v9251_v54  ;;  %11185 = vst [vmem:[#allocation101_spill] sm:$0xff] %v9677_v61  ;;  %v9679_v31 = vpop.f32.mrb[14].mxu1  ;;  %v11210_v61 = vld [vmem:[#allocation55_spill] sm:$0xff]  ;;  %v11216_v54 = vld [vmem:[#allocation64_spill] sm:$0xff] }
 0x1c1   : > { %11186 = vst [vmem:[#allocation102_spill] sm:$0xff] %v9679_v31  ;;  %v9681_v35 = vpop.f32.mrb[15].mxu1 }
 0x1c2   : > { %11187 = vst [vmem:[#allocation103_spill] sm:$0xff] %v9681_v35 }
 0x1c5   : > { %7234 = vmatmul.mubr.msk.bf16.gmra.mrb[28].mxu0 %vm914_vm1, %v9672_v13 }
 0x1c6   : > { %7239 = vmatprep.mubr.msk.bf16.mxu0 %vm914_vm1, %v8991_v37  ;;  %v9690_v14 = vpop.f32.mrb[16].mxu1  ;;  %v11192_v37 = vld [vmem:[#allocation41_spill] sm:$0xff] }
 0x1c7   : > { %4576 = vmatmul.mubr.bf16.gmra.mrb[120].mxu1 %v9427_v4  ;;  %11188 = vst [vmem:[#allocation104_spill] sm:$0xff] %v9690_v14  ;;  %v9693_v39 = vpop.f32.mrb[17].mxu1  ;;  %v11198_v14 = vld [vmem:[#allocation46_spill] sm:$0xff] }
 0x1c8   : > { %4583 = vmatprep.mubr.bf16.mxu1 %v9295_v25  ;;  %11189 = vst [vmem:[#allocation105_spill] sm:$0xff] %v9693_v39  ;;  %v9698_v50 = vpop.f32.mrb[18].mxu1 }
 0x1c9   : > { %11190 = vst [vmem:[#allocation106_spill] sm:$0xff] %v9698_v50  ;;  %v9700_v9 = vpop.f32.mrb[19].mxu1 }
 0x1ca   : > { %11191 = vst [vmem:[#allocation107_spill] sm:$0xff] %v9700_v9  ;;  %v11196_v9 = vld [vmem:[#allocation43_spill] sm:$0xff] }
 0x1cd   : > { %7240 = vmatmul.mubr.msk.bf16.vlgmr.msra.gmra.mrb[0].mxu0 %vm914_vm1, %v11192_v37 }
 0x1ce   : > { %7243 = vmatprep.mubr.msk.bf16.mxu0 %vm914_vm1, %v11193_v0  ;;  %7272 = vmatpush3.bf16.msra.mxu0 %v2522_v28 }
 0x1cf   : > { %7748 = vmatprep.subr.msk.bf16.mxu0 %vm963_vm0, %v11013_v5  ;;  %4584 = vmatmul.mubr.bf16.gmra.mrb[124].mxu1 %v9440_v23 }
 0x1d0   : > { %4591 = vmatprep.mubr.bf16.mxu1 %v9301_v58 }
 0x1d1   : > { %v9711_v8 = vpop.f32.mrb[20].mxu1 }
 0x1d2   : > { %11194 = vst [vmem:[#allocation41_spill] sm:$0xff] %v9711_v8  ;;  %v9713_v50 = vpop.f32.mrb[21].mxu1  ;;  %v11202_v8 = vld [vmem:[#allocation47_spill] sm:$0xff] }
 0x1d3   : > { %11195 = vst [vmem:[#allocation42_spill] sm:$0xff] %v9713_v50  ;;  %v9717_v39 = vpop.f32.mrb[22].mxu1 }
 0x1d4   : > { %11197 = vst [vmem:[#allocation43_spill] sm:$0xff] %v9717_v39  ;;  %v9721_v28 = vpop.f32.mrb[23].mxu1 }
 0x1d5   : > { %7244 = vmatmul.mubr.msk.bf16.gmra.mrb[4].mxu0 %vm914_vm1, %v11196_v9  ;;  %11199 = vst [vmem:[#allocation46_spill] sm:$0xff] %v9721_v28 }
 0x1d6   : > { %7247 = vmatprep.mubr.msk.bf16.mxu0 %vm914_vm1, %v11198_v14 }
 0x1d7   : > { %4592 = vmatmul.mubr.bf16.gmra.mrb[128].mxu1 %v9449_v33 }
 0x1d8   : > { %4599 = vmatprep.mubr.bf16.mxu1 %v9326_v10 }
 0x1d9   : > { %v9725_v5 = vpop.f32.mrb[24].mxu1 }
 0x1da   : > { %11200 = vst [vmem:[#allocation108_spill] sm:$0xff] %v9725_v5  ;;  %v9727_v31 = vpop.f32.mrb[25].mxu1  ;;  %v11208_v5 = vld [vmem:[#allocation51_spill] sm:$0xff] }
 0x1db   : > { %11201 = vst [vmem:[#allocation109_spill] sm:$0xff] %v9727_v31  ;;  %v9731_v50 = vpop.f32.mrb[26].mxu1 }
 0x1dc   : > { %11203 = vst [vmem:[#allocation47_spill] sm:$0xff] %v9731_v50  ;;  %v9735_v39 = vpop.f32.mrb[27].mxu1 }
 0x1dd   : > { %7248 = vmatmul.mubr.msk.bf16.gmra.mrb[8].mxu0 %vm914_vm1, %v11202_v8  ;;  %11205 = vst [vmem:[#allocation50_spill] sm:$0xff] %v9735_v39 }
 0x1de   : > { %7251 = vmatprep.mubr.msk.bf16.mxu0 %vm914_vm1, %v11204_v55 }
 0x1df   : > { %4600 = vmatmul.mubr.bf16.gmra.mrb[132].mxu1 %v9465_v63 }
 0x1e0   : > { %4607 = vmatprep.mubr.bf16.mxu1 %v9359_v18  ;;  %v11214_v18 = vld [vmem:[#allocation60_spill] sm:$0xff] }
 0x1e2   : > { %v9739_v28 = vpop.f32.mrb[28].mxu1 }
 0x1e3   : > { %11206 = vst [vmem:[#allocation110_spill] sm:$0xff] %v9739_v28  ;;  %v9741_v35 = vpop.f32.mrb[29].mxu1 }
 0x1e4   : > { %11207 = vst [vmem:[#allocation111_spill] sm:$0xff] %v9741_v35  ;;  %v9745_v31 = vpop.f32.mrb[30].mxu1 }
 0x1e5   : > { %7252 = vmatmul.mubr.msk.bf16.gmra.mrb[12].mxu0 %vm914_vm1, %v11208_v5  ;;  %11209 = vst [vmem:[#allocation51_spill] sm:$0xff] %v9745_v31  ;;  %v9749_v50 = vpop.f32.mrb[31].mxu1 }
 0x1e6   : > { %7255 = vmatprep.mubr.msk.bf16.mxu0 %vm914_vm1, %v11210_v61  ;;  %11211 = vst [vmem:[#allocation55_spill] sm:$0xff] %v9749_v50 }
 0x1e7   : > { %4608 = vmatmul.mubr.bf16.gmra.mrb[136].mxu1 %v9484_v59 }
 0x1e8   : > { %4615 = vmatprep.mubr.bf16.mxu1 %v9404_v42 }
 0x1ea   : > { %v6611_v39 = vpop.f32.mrb[32].mxu1 }
 0x1eb   : > { %v6612_v2 = vpop.f32.mrb[33].mxu1 }
 0x1ec   : > { %v9755_v28 = vadd.f32 %v6612_v2, %v6611_v39  ;;  %v6614_v35 = vpop.f32.mrb[34].mxu1  ;;  %v11215_v39 = vld [vmem:[#allocation63_spill] sm:$0xff] }
 0x1ed   : > { %7256 = vmatmul.mubr.msk.bf16.gmra.mrb[16].mxu0 %vm914_vm1, %v11212_v22  ;;  %v6615_v31 = vpop.f32.mrb[35].mxu1 }
 0x1ee   : > { %7259 = vmatprep.mubr.msk.bf16.mxu0 %vm914_vm1, %v11213_v49  ;;  %v9759_v62 = vadd.f32 %v6615_v31, %v6614_v35  ;;  %v3230_v31 = vld [vmem:[%s8563_s9 + $0xa8] sm:$0xe] }
 0x1ef   : > { %4616 = vmatmul.mubr.bf16.gmra.mrb[140].mxu1 %v9507_v48 }
 0x1f0   : > { %4623 = vmatprep.mubr.bf16.mxu1 %v9446_v40 }
 0x1f2   : > { %v6617_v50 = vpop.f32.mrb[36].mxu1 }
 0x1f3   : > { %v6618_v42 = vpop.f32.mrb[37].mxu1 }
 0x1f4   : > { %v9765_v10 = vadd.f32 %v6618_v42, %v6617_v50  ;;  %v6620_v2 = vpop.f32.mrb[38].mxu1 }
 0x1f5   : > { %7260 = vmatmul.mubr.msk.bf16.gmra.mrb[20].mxu0 %vm914_vm1, %v11214_v18  ;;  %v6621_v58 = vpop.f32.mrb[39].mxu1  ;;  %v3194_v18 = vld [vmem:[%s8563_s9 + $0xc0] sm:$0xf] }
 0x1f6   : > { %7263 = vmatprep.mubr.msk.bf16.mxu0 %vm914_vm1, %v11215_v39  ;;  %v9769_v25 = vadd.f32 %v6621_v58, %v6620_v2  ;;  %v6214_v58 = vcombine.low %v3230_v31, %v9491_v52 }
 0x1f7   : > { %4624 = vmatmul.mubr.bf16.gmra.mrb[144].mxu1 %v9535_v36 }
 0x1f8   : > { %4631 = vmatprep.mubr.bf16.mxu1 %v9504_v21  ;;  %v3678_v21 = vrot.slane %v6214_v58, 1 }
 0x1fa   : > { %v6623_v35 = vpop.f32.mrb[40].mxu1 }
 0x1fb   : > { %v6624_v40 = vpop.f32.mrb[41].mxu1 }
 0x1fc   : > { %v9776_v42 = vadd.f32 %v6624_v40, %v6623_v35  ;;  %v6626_v50 = vpop.f32.mrb[42].mxu1  ;;  %v3231_v40 = vld [vmem:[%s8563_s9 + $0xb4] sm:$0xe] }
 0x1fd   : > { %7264 = vmatmul.mubr.msk.bf16.gmra.mrb[24].mxu0 %vm914_vm1, %v11216_v54  ;;  %v6627_v2 = vpop.f32.mrb[43].mxu1  ;;  %v9788_v54 = vld [vmem:[%s8563_s9 + $0xc4] sm:$0xf]  ;;  %v6215_v58 = vcombine.low %v3231_v40, %v9518_v20 }
 0x1fe   : > { %7267 = vmatprep.mubr.msk.bf16.mxu0 %vm914_vm1, %v11217_v3  ;;  %v9781_v39 = vadd.f32 %v6627_v2, %v6626_v50  ;;  %v9796_v50 = vsel %vm3635_vm9, %v3678_v21, %v3679_v32  ;;  %v9801_v16 = vcombine.low %v3194_v18, %v9788_v54  ;;  %v11218_v32 = vrot.slane %v9687_v38, 2  ;;  %v11225_v3 = vld [vmem:[#allocation30_spill] sm:$0xff] }
 0x1ff   : > { %4632 = vmatmul.mubr.bf16.gmra.mrb[148].mxu1 %v9562_v34 }
 0x200   : > { %4639 = vmatprep.mubr.bf16.mxu1 %v9532_v53  ;;  %v2753_v21 = vsel %vm963_vm0, %v11218_v32, 0  ;;  %v7979_v32 = vld [vmem:[#allocation8 + $0x1c8] sm:$0xff]  }
 0x202   : > { %v6629_v35 = vpop.f32.mrb[44].mxu1 }
 0x203   : > { %v6630_v49 = vpop.f32.mrb[45].mxu1 }
 0x204   : > { %v9793_v52 = vadd.f32 %v6630_v49, %v6629_v35  ;;  %v6632_v31 = vpop.f32.mrb[46].mxu1  ;;  %v3681_v49 = vrot.slane %v6215_v58, 1  ;;  %v3682_v35 = vrot.slane %v9540_v45, 1 }
 0x205   : > { %7268 = vmatmul.mubr.msk.bf16.gmra.mrb[28].mxu0 %vm914_vm1, %v9587_v27  ;;  %v6633_v2 = vpop.f32.mrb[47].mxu1  ;;  %v9812_v27 = vld [vmem:[#allocation7 + $0x10] sm:$0x3] }
 0x206   : > { %7273 = vmatprep.mubr.msk.bf16.mxu0 %vm914_vm1, %v8624_v41  ;;  %v9804_v53 = vadd.f32 %v6633_v2, %v6632_v31  ;;  %v9819_v31 = vsel %vm3635_vm9, %v3681_v49, %v3682_v35 }
 0x207   : > { %4640 = vmatmul.mubr.bf16.gmra.mrb[152].mxu1 %v9796_v50 }
 0x208   : > { %4647 = vmatprep.mubr.bf16.mxu1 %v9801_v16 }
 0x20a   : > { %v6635_v41 = vpop.f32.mrb[48].mxu1 }
 0x20b   : > { %v6636_v18 = vpop.f32.mrb[49].mxu1 }
 0x20c   : > { %v9816_v20 = vadd.f32 %v6636_v18, %v6635_v41  ;;  %v6638_v40 = vpop.f32.mrb[50].mxu1  ;;  %v11219_v41 = vld [vmem:[#allocation45_spill] sm:$0xff] }
 0x20d   : > { %7274 = vmatmul.mubr.msk.bf16.vlgmr.msra.gmra.mrb[0].mxu0 %vm914_vm1, %v8644_v60  ;;  %v6639_v45 = vpop.f32.mrb[51].mxu1  ;;  %v7981_v18 = vld [vmem:[#allocation8 + $0x1d0] sm:$0xff]  }
 0x20e   : > { %7277 = vmatprep.mubr.msk.bf16.mxu0 %vm914_vm1, %v8666_v26  ;;  %7306 = vmatpush3.bf16.msra.mxu0 %v2753_v21  ;;  %v9825_v38 = vadd.f32 %v6639_v45, %v6638_v40  ;;  %v7977_v26 = vld [vmem:[#allocation8 + $0x180] sm:$0xff]  }
 0x20f   : > { %7749 = vmatprep.subr.msk.bf16.mxu0 %vm963_vm0, %v9812_v27  ;;  %4648 = vmatmul.mubr.bf16.gmra.mrb[156].mxu1 %v9819_v31 }
 0x210   : > { %4688 = vmatprep.mubr.bf16.mxu1 %v9383_v15  ;;  %v7980_v15 = vld [vmem:[#allocation8 + $0x188] sm:$0xff]  }
 0x212   : > { %v6641_v60 = vpop.f32.mrb[52].mxu1 }
 0x213   : > { %v6642_v58 = vpop.f32.mrb[53].mxu1 }
 0x214   : > { %v9831_v2 = vadd.f32 %v6642_v58, %v6641_v60  ;;  %v6644_v49 = vpop.f32.mrb[54].mxu1  ;;  %v7982_v60 = vld [vmem:[#allocation8 + $0x190] sm:$0xff]  }
 0x215   : > { %7278 = vmatmul.mubr.msk.bf16.gmra.mrb[4].mxu0 %vm914_vm1, %v8692_v57  ;;  %v6645_v35 = vpop.f32.mrb[55].mxu1 }
 0x216   : > { %7281 = vmatprep.mubr.msk.bf16.mxu0 %vm914_vm1, %v11135_v19  ;;  %v9835_v21 = vadd.f32 %v6645_v35, %v6644_v49  ;;  %v7983_v49 = vld [vmem:[#allocation8 + $0x1d8] sm:$0xff]   ;;  %v11220_v35 = vld [vmem:[#allocation49_spill] sm:$0xff] }
 0x217   : > { %4689 = vmatmul.mubr.bf16.vlgmr.msra.gmra.mrb[160].mxu1 %v11219_v41 }
 0x218   : > { %6932 = vmatpush3.bf16.msra.mxu1 %v7977_v26  ;;  %4696 = vmatprep.mubr.bf16.mxu1 %v9391_v44  ;;  %v7989_v44 = vld [vmem:[#allocation8 + $0x1a8] sm:$0xff]  }
 0x219   : > { %6933 = vmatprep.subr.bf16.mxu1 %v7979_v32  ;;  %v7985_v32 = vld [vmem:[#allocation8 + $0x198] sm:$0xff]  }
 0x21a   : > { %v6647_v57 = vpop.f32.mrb[56].mxu1 }
 0x21b   : > { %v6648_v40 = vpop.f32.mrb[57].mxu1 }
 0x21c   : > { %v9841_v45 = vadd.f32 %v6648_v40, %v6647_v57  ;;  %v6650_v19 = vpop.f32.mrb[58].mxu1  ;;  %6934 = vmatpush3.bf16.msra.mxu1 %v7980_v15  ;;  %v11221_v40 = vld [vmem:[#allocation26_spill] sm:$0xff] }
 0x21d   : > { %7282 = vmatmul.mubr.msk.bf16.gmra.mrb[8].mxu0 %vm914_vm1, %v11136_v1  ;;  %v6651_v58 = vpop.f32.mrb[59].mxu1  ;;  %6935 = vmatprep.subr.bf16.mxu1 %v7981_v18  ;;  %v7986_v1 = vld [vmem:[#allocation8 + $0x1e0] sm:$0xff]  }
 0x21e   : > { %7285 = vmatprep.mubr.msk.bf16.mxu0 %vm914_vm1, %v11139_v43  ;;  %v9845_v26 = vadd.f32 %v6651_v58, %v6650_v19  ;;  %v11222_v18 = vld [vmem:[#allocation28_spill] sm:$0xff] }
 0x21f   : > { %4697 = vmatmul.mubr.bf16.gmra.mrb[164].mxu1 %v11220_v35  ;;  %v7987_v19 = vld [vmem:[#allocation8 + $0x1a0] sm:$0xff]  }
 0x220   : > { %4704 = vmatprep.mubr.bf16.mxu1 %v9398_v6  ;;  %6936 = vmatpush3.bf16.msra.mxu1 %v7982_v60  ;;  %v7988_v6 = vld [vmem:[#allocation8 + $0x1e8] sm:$0xff]  }
 0x221   : > { %6937 = vmatprep.subr.bf16.mxu1 %v7983_v49  ;;  %v11224_v49 = vld [vmem:[#allocation53_spill] sm:$0xff] }
 0x222   : > { %v6653_v41 = vpop.f32.mrb[60].mxu1 }
 0x223   : > { %v6654_v57 = vpop.f32.mrb[61].mxu1 }
 0x224   : > { %v9851_v43 = vadd.f32 %v6654_v57, %v6653_v41  ;;  %v6656_v15 = vpop.f32.mrb[62].mxu1  ;;  %6938 = vmatpush3.bf16.msra.mxu1 %v7985_v32  ;;  %v7990_v41 = vld [vmem:[#allocation8 + $0x1f0] sm:$0xff]  }
 0x225   : > { %7286 = vmatmul.mubr.msk.bf16.gmra.mrb[12].mxu0 %vm914_vm1, %v11221_v40  ;;  %v6657_v58 = vpop.f32.mrb[63].mxu1  ;;  %6939 = vmatprep.subr.bf16.mxu1 %v7986_v1  ;;  %v11226_v1 = vld [vmem:[#allocation32_spill] sm:$0xff] }
 0x226   : > { %7289 = vmatprep.mubr.msk.bf16.mxu0 %vm914_vm1, %v11222_v18  ;;  %v9855_v60 = vadd.f32 %v6657_v58, %v6656_v15  ;;  %v7991_v15 = vld [vmem:[#allocation8 + $0x1b0] sm:$0xff]  }
 0x227   : > { %4705 = vmatmul.mubr.bf16.gmra.mrb[168].mxu1 %v11224_v49 }
 0x228   : > { %11223 = vst [vmem:[#allocation56_spill] sm:$0xff] %v9855_v60  ;;  %4712 = vmatprep.mubr.bf16.mxu1 %v9407_v46  ;;  %6940 = vmatpush3.bf16.msra.mxu1 %v7987_v19  ;;  %v7992_v46 = vld [vmem:[#allocation8 + $0x1f8] sm:$0xff]  }
 0x229   : > { %6941 = vmatprep.subr.bf16.mxu1 %v7988_v6  ;;  %v11228_v6 = vld [vmem:[#allocation57_spill] sm:$0xff]  ;;  %v7993_v60 = vld [vmem:[#allocation8 + $0x1b8] sm:$0xff]  }
 0x22a   : > { %v6659_v57 = vpop.f32.mrb[64].mxu1 }
 0x22b   : > { %v6660_v40 = vpop.f32.mrb[65].mxu1 }
 0x22c   : > { %v9861_v32 = vadd.f32 %v6660_v40, %v6659_v57  ;;  %v6662_v18 = vpop.f32.mrb[66].mxu1  ;;  %6942 = vmatpush3.bf16.msra.mxu1 %v7989_v44  ;;  %v11229_v40 = vld [vmem:[#allocation34_spill] sm:$0xff] }
 0x22d   : > { %7290 = vmatmul.mubr.msk.bf16.gmra.mrb[16].mxu0 %vm914_vm1, %v11225_v3  ;;  %v6663_v58 = vpop.f32.mrb[67].mxu1  ;;  %6943 = vmatprep.subr.bf16.mxu1 %v7990_v41 }
 0x22e   : > { %7293 = vmatprep.mubr.msk.bf16.mxu0 %vm914_vm1, %v11226_v1  ;;  %v9865_v19 = vadd.f32 %v6663_v58, %v6662_v18  ;;  %v11231_v1 = vld [vmem:[#allocation36_spill] sm:$0xff] }
 0x22f   : > { %4713 = vmatmul.mubr.bf16.gmra.mrb[172].mxu1 %v11228_v6 }
 0x230   : > { %11227 = vst [vmem:[#allocation45_spill] sm:$0xff] %v9865_v19  ;;  %4720 = vmatprep.mubr.bf16.mxu1 %v9414_v56  ;;  %6944 = vmatpush3.bf16.msra.mxu1 %v7991_v15  ;;  %v11233_v15 = vld [vmem:[#allocation62_spill] sm:$0xff] }
 0x231   : > { %6945 = vmatprep.subr.bf16.mxu1 %v7992_v46  ;;  %v11234_v19 = vld [vmem:[#allocation38_spill] sm:$0xff] }
 0x232   : > { %v6665_v3 = vpop.f32.mrb[68].mxu1 }
 0x233   : > { %v6666_v57 = vpop.f32.mrb[69].mxu1 }
 0x234   : > { %v9871_v44 = vadd.f32 %v6666_v57, %v6665_v3  ;;  %v6668_v41 = vpop.f32.mrb[70].mxu1  ;;  %6946 = vmatpush3.bf16.msra.mxu1 %v7993_v60  ;;  %v11236_v57 = vld [vmem:[#allocation91_spill] sm:$0xff] }
 0x235   : > { %7294 = vmatmul.mubr.msk.bf16.gmra.mrb[20].mxu0 %vm914_vm1, %v11229_v40  ;;  %v6669_v18 = vpop.f32.mrb[71].mxu1  ;;  %v9889_v60 = vld [vmem:[%s8555_s8 + $0xd0] sm:$0xf] }
 0x236   : > { %11230 = vst [vmem:[#allocation49_spill] sm:$0xff] %v9871_v44  ;;  %7297 = vmatprep.mubr.msk.bf16.mxu0 %vm914_vm1, %v11231_v1  ;;  %v9875_v58 = vadd.f32 %v6669_v18, %v6668_v41  ;;  %v9886_v1 = vld [vmem:[%s8555_s8 + $0xcc] sm:$0xf] }
 0x237   : > { %4721 = vmatmul.mubr.bf16.gmra.mrb[176].mxu1 %v11233_v15 }
 0x238   : > { %11232 = vst [vmem:[#allocation26_spill] sm:$0xff] %v9875_v58  ;;  %4728 = vmatprep.mubr.bf16.mxu1 %v9427_v4  ;;  %v11238_v58 = vld [vmem:[#allocation65_spill] sm:$0xff]  ;;  %v6115_v4 = vcombine.low %v9886_v1, %v9889_v60 }
 0x23a   : > { %v6671_v46 = vpop.f32.mrb[72].mxu1 }
 0x23b   : > { %v6672_v56 = vpop.f32.mrb[73].mxu1 }
 0x23c   : > { %v9881_v40 = vadd.f32 %v6672_v56, %v6671_v46  ;;  %v6674_v3 = vpop.f32.mrb[74].mxu1 }
 0x23d   : > { %7298 = vmatmul.mubr.msk.bf16.gmra.mrb[24].mxu0 %vm914_vm1, %v11234_v19  ;;  %v6675_v41 = vpop.f32.mrb[75].mxu1 }
 0x23e   : > { %11235 = vst [vmem:[#allocation28_spill] sm:$0xff] %v9881_v40  ;;  %7301 = vmatprep.mubr.msk.bf16.mxu0 %vm914_vm1, %v11236_v57  ;;  %v9891_v18 = vadd.f32 %v6675_v41, %v6674_v3  ;;  %v11239_v41 = vld [vmem:[#allocation70_spill] sm:$0xff] }
 0x23f   : > { %4729 = vmatmul.mubr.bf16.gmra.mrb[180].mxu1 %v11238_v58 }
 0x240   : > { %11237 = vst [vmem:[#allocation53_spill] sm:$0xff] %v9891_v18  ;;  %4736 = vmatprep.mubr.bf16.mxu1 %v9440_v23  ;;  %v2965_v23 = vsel %vm963_vm0, %v9812_v27, 0  ;;  %v9908_v18 = vld [vmem:[#allocation8 + $0x200] sm:$0xff]   ;;  %vm10414_vm0 = vmor %vm5339_vm12, %vm5340_vm13 }
 0x241   : > { %v11242_v27 = vld [vmem:[#allocation72_spill] sm:$0xff] }
 0x242   : > { %v6677_v56 = vpop.f32.mrb[76].mxu1 }
 0x243   : > { %v6678_v19 = vpop.f32.mrb[77].mxu1 }
 0x244   : > { %v9898_v46 = vadd.f32 %v6678_v19, %v6677_v56  ;;  %v6680_v57 = vpop.f32.mrb[78].mxu1 }
 0x245   : > { %7302 = vmatmul.mubr.msk.bf16.gmra.mrb[28].mxu0 %vm914_vm1, %v6115_v4  ;;  %v6681_v40 = vpop.f32.mrb[79].mxu1 }
 0x246   : > { %7307 = vmatprep.mubr.msk.bf16.mxu0 %vm914_vm1, %v11161_v30  ;;  %v9902_v3 = vadd.f32 %v6681_v40, %v6680_v57 }
 0x247   : > { %4737 = vmatmul.mubr.bf16.gmra.mrb[184].mxu1 %v11239_v41 }
 0x248   : > { %4744 = vmatprep.mubr.bf16.mxu1 %v9449_v33 }
 0x24a   : > { %v6683_v44 = vpop.f32.mrb[80].mxu1 }
 0x24b   : > { %v6684_v4 = vpop.f32.mrb[81].mxu1 }
 0x24c   : > { %v9912_v56 = vadd.f32 %v6684_v4, %v6683_v44  ;;  %v6686_v30 = vpop.f32.mrb[82].mxu1  ;;  %v11244_v4 = vld [vmem:[#allocation27_spill] sm:$0xff] }
 0x24d   : > { %7308 = vmatmul.mubr.msk.bf16.vlgmr.msra.gmra.mrb[0].mxu0 %vm914_vm1, %v11162_v11  ;;  %v6687_v40 = vpop.f32.mrb[83].mxu1 }
 0x24e   : > { %11240 = vst [vmem:[#allocation30_spill] sm:$0xff] %v9912_v56  ;;  %7311 = vmatprep.mubr.msk.bf16.mxu0 %vm914_vm1, %v11163_v12  ;;  %7340 = vmatpush3.bf16.msra.mxu0 %v2965_v23  ;;  %v9917_v19 = vadd.f32 %v6687_v40, %v6686_v30  ;;  %v11246_v30 = vld [vmem:[#allocation78_spill] sm:$0xff] }
 0x24f   : > { %7373 = vmatprep.subr.bf16.mxu0 %v9908_v18  ;;  %4745 = vmatmul.mubr.bf16.gmra.mrb[188].mxu1 %v11242_v27 }
 0x250   : > { %11241 = vst [vmem:[#allocation32_spill] sm:$0xff] %v9917_v19  ;;  %4752 = vmatprep.mubr.bf16.mxu1 %v9465_v63  ;;  %v11247_v19 = vld [vmem:[#allocation29_spill] sm:$0xff] }
 0x252   : > { %v6689_v57 = vpop.f32.mrb[84].mxu1 }
 0x253   : > { %v6690_v33 = vpop.f32.mrb[85].mxu1 }
 0x254   : > { %v9923_v11 = vadd.f32 %v6690_v33, %v6689_v57  ;;  %v6692_v44 = vpop.f32.mrb[86].mxu1 }
 0x255   : > { %7312 = vmatmul.mubr.msk.bf16.gmra.mrb[4].mxu0 %vm914_vm1, %v11164_v51  ;;  %v6693_v23 = vpop.f32.mrb[87].mxu1  ;;  %v11249_v51 = vld [vmem:[#allocation31_spill] sm:$0xff] }
 0x256   : > { %11243 = vst [vmem:[#allocation57_spill] sm:$0xff] %v9923_v11  ;;  %7315 = vmatprep.mubr.msk.bf16.mxu0 %vm914_vm1, %v11244_v4  ;;  %v9927_v12 = vadd.f32 %v6693_v23, %v6692_v44  ;;  %v11251_v44 = vld [vmem:[#allocation20_spill] sm:$0xff] }
 0x257   : > { %4753 = vmatmul.mubr.bf16.gmra.mrb[192].mxu1 %v11246_v30 }
 0x258   : > { %11245 = vst [vmem:[#allocation34_spill] sm:$0xff] %v9927_v12  ;;  %4760 = vmatprep.mubr.bf16.mxu1 %v9484_v59  ;;  %v11252_v12 = vld [vmem:[#allocation33_spill] sm:$0xff] }
 0x25a   : > { %v6695_v40 = vpop.f32.mrb[88].mxu1 }
 0x25b   : > { %v6696_v63 = vpop.f32.mrb[89].mxu1 }
 0x25c   : > { %v9933_v56 = vadd.f32 %v6696_v63, %v6695_v40  ;;  %v6698_v33 = vpop.f32.mrb[90].mxu1 }
 0x25d   : > { %7316 = vmatmul.mubr.msk.bf16.gmra.mrb[8].mxu0 %vm914_vm1, %v11247_v19  ;;  %v6699_v57 = vpop.f32.mrb[91].mxu1  ;;  %v11254_v19 = vld [vmem:[#allocation35_spill] sm:$0xff] }
 0x25e   : > { %11248 = vst [vmem:[#allocation36_spill] sm:$0xff] %v9933_v56  ;;  %7319 = vmatprep.mubr.msk.bf16.mxu0 %vm914_vm1, %v11249_v51  ;;  %v9937_v4 = vadd.f32 %v6699_v57, %v6698_v33  ;;  %v11256_v33 = vld [vmem:[#allocation24_spill] sm:$0xff]  ;;  %v11257_v56 = vld [vmem:[#allocation37_spill] sm:$0xff] }
 0x25f   : > { %4761 = vmatmul.mubr.bf16.gmra.mrb[196].mxu1 %v11251_v44  ;;  %v9968_v44 = vld [vmem:[%s8555_s8 + $0xd4] sm:$0x1] }
 0x260   : > { %11250 = vst [vmem:[#allocation62_spill] sm:$0xff] %v9937_v4  ;;  %4768 = vmatprep.mubr.bf16.mxu1 %v9507_v48  ;;  %v2718_v48 = vshrl.u32 %v9886_v1, 16 }
 0x262   : > { %v6701_v23 = vpop.f32.mrb[92].mxu1 }
 0x263   : > { %v6702_v59 = vpop.f32.mrb[93].mxu1 }
 0x264   : > { %v9943_v11 = vadd.f32 %v6702_v59, %v6701_v23  ;;  %v6704_v63 = vpop.f32.mrb[94].mxu1  ;;  %v2721_v59 = vshll.u32 %v9886_v1, 16 }
 0x265   : > { %7320 = vmatmul.mubr.msk.bf16.gmra.mrb[12].mxu0 %vm914_vm1, %v11252_v12  ;;  %v6705_v40 = vpop.f32.mrb[95].mxu1  ;;  %v2731_v12 = vshrl.u32 %v9889_v60, 16 }
 0x266   : > { %11253 = vst [vmem:[#allocation38_spill] sm:$0xff] %v9943_v11  ;;  %7323 = vmatprep.mubr.msk.bf16.mxu0 %vm914_vm1, %v11254_v19  ;;  %v9947_v51 = vadd.f32 %v6705_v40, %v6704_v63  ;;  %v2727_v63 = vshll.u32 %v9889_v60, 16  ;;  %v2720_v11 = vrot.slane %v2718_v48, 4 }
 0x267   : > { %4769 = vmatmul.mubr.bf16.gmra.mrb[200].mxu1 %v11256_v33  ;;  %v11258_v33 = vld [vmem:[#allocation84_spill] sm:$0xff] }
 0x268   : > { %11255 = vst [vmem:[#allocation91_spill] sm:$0xff] %v9947_v51  ;;  %4776 = vmatprep.mubr.bf16.mxu1 %v9535_v36 }
 0x26a   : > { %v6723_v57 = vpop.f32.mrb[96].mxu1 }
 0x26b   : > { %v6724_v4 = vpop.f32.mrb[97].mxu1 }
 0x26c   : > { %v6725_v23 = vadd.f32 %v6724_v4, %v6723_v57  ;;  %v6726_v19 = vpop.f32.mrb[98].mxu1  ;;  %v2729_v4 = vrot.slane %v2727_v63, 5  ;;  %v2733_v57 = vrot.slane %v2731_v12, 4  ;;  %v11259_v63 = vld [vmem:[#allocation87_spill] sm:$0xff] }
 0x26d   : > { %7324 = vmatmul.mubr.msk.bf16.gmra.mrb[16].mxu0 %vm914_vm1, %v11257_v56  ;;  %v6727_v40 = vpop.f32.mrb[99].mxu1  ;;  %v2723_v56 = vrot.slane %v2721_v59, 5 }
 0x26e   : > { %7327 = vmatprep.mubr.msk.bf16.mxu0 %vm914_vm1, %v11179_v47  ;;  %v9960_v36 = vadd.f32 %v6725_v23, %v9755_v28  ;;  %v6728_v51 = vadd.f32 %v6727_v40, %v6726_v19 }
 0x26f   : > { %4777 = vmatmul.mubr.bf16.gmra.mrb[204].mxu1 %v11258_v33  ;;  %v2724_v59 = vor.u32 %v2723_v56, %v2720_v11  ;;  %v3232_v56 = vld [vmem:[%s8563_s9 + $0xc0] sm:$0xe] }
 0x270   : > { %v9964_v1 = vadd.f32 %v6728_v51, %v9759_v62  ;;  %4784 = vmatprep.mubr.bf16.mxu1 %v9562_v34  ;;  %v2734_v62 = vor.u32 %v2733_v57, %v2729_v4  ;;  %v2737_v51 = vshll.u32 %v9968_v44, 16 }
 0x272   : > { %v6729_v47 = vpop.f32.mrb[100].mxu1  ;;  %v2735_v40 = vrot.slane %v2734_v62, 4  ;;  %v6218_v62 = vcombine.low %v3232_v56, %v9788_v54 }
 0x273   : > { %v6730_v30 = vpop.f32.mrb[101].mxu1 }
 0x274   : > { %v6731_v28 = vadd.f32 %v6730_v30, %v6729_v47  ;;  %v6732_v48 = vpop.f32.mrb[102].mxu1  ;;  %v2725_v30 = vrot.slane %v2724_v59, 4  ;;  %v7994_v59 = vld [vmem:[%s8563_s9 + $0xc8] ss:$0 sps:$4 sm:$0x11]   ;;  %v3725_v29 = vrot.slane %v6218_v62, 1 }
 0x275   : > { %7328 = vmatmul.mubr.msk.bf16.gmra.mrb[20].mxu0 %vm914_vm1, %v8961_v17  ;;  %v6733_v23 = vpop.f32.mrb[103].mxu1 }
 0x276   : > { %7331 = vmatprep.mubr.msk.bf16.mxu0 %vm914_vm1, %v8996_v7  ;;  %v9976_v12 = vadd.f32 %v6731_v28, %v9765_v10  ;;  %v6734_v19 = vadd.f32 %v6733_v23, %v6732_v48  ;;  %v2739_v7 = vrot.slane %v2737_v51, 5 }
 0x277   : > { %4785 = vmatmul.mubr.bf16.gmra.mrb[208].mxu1 %v11259_v63 }
 0x278   : > { %v9980_v17 = vadd.f32 %v6734_v19, %v9769_v25  ;;  %4792 = vmatprep.mubr.bf16.mxu1 %v9796_v50  ;;  %v2730_v25 = vsel %vm8613_vm4, %v2725_v30, %v2729_v4  ;;  %v2740_v28 = vsel %vm8613_vm4, %v2735_v40, %v2739_v7  ;;  %v3726_v4 = vrot.slane %v7994_v59, 1 }
 0x279   : > { %v6132_v19 = vcombine.low %v2730_v25, %v2740_v28  ;;  %v3710_v7 = vshrl.u32 %v9801_v16, 16  ;;  %v11261_v28 = vld [vmem:[#allocation18_spill] sm:$0xff] }
 0x27a   : > { %v6735_v11 = vpop.f32.mrb[104].mxu1 }
 0x27b   : > { %v6736_v57 = vpop.f32.mrb[105].mxu1 }
 0x27c   : > { %v6737_v10 = vadd.f32 %v6736_v57, %v6735_v11  ;;  %v6738_v47 = vpop.f32.mrb[106].mxu1 }
 0x27d   : > { %7332 = vmatmul.mubr.msk.bf16.gmra.mrb[24].mxu0 %vm914_vm1, %v9023_v24  ;;  %v6739_v48 = vpop.f32.mrb[107].mxu1  ;;  %v11260_v24 = vld [vmem:[#allocation90_spill] sm:$0xff] }
 0x27e   : > { %7335 = vmatprep.mubr.msk.bf16.mxu0 %vm914_vm1, %v9672_v13  ;;  %v9995_v51 = vadd.f32 %v6737_v10, %v9776_v42  ;;  %v6740_v23 = vadd.f32 %v6739_v48, %v6738_v47  ;;  %v3712_v13 = vshll.u32 %v9801_v16, 16  ;;  %v10008_v10 = vsel %vm3635_vm9, %v3725_v29, %v3726_v4  ;;  %v7998_v4 = vld [vmem:[#allocation8 + $0x210] sm:$0xff]  }
 0x27f   : > { %4793 = vmatmul.mubr.bf16.gmra.mrb[212].mxu1 %v11260_v24 }
 0x280   : > { %v9999_v11 = vadd.f32 %v6740_v23, %v9781_v39  ;;  %4800 = vmatprep.mubr.bf16.mxu1 %v9819_v31  ;;  %v3714_v56 = vrot.slane %v3712_v13, 1  ;;  %v3717_v39 = vshll.u32 %v7994_v59, 16  ;;  %v7997_v23 = vld [vmem:[#allocation8 + $0x208] sm:$0xff]  }
 0x282   : > { %v6741_v30 = vpop.f32.mrb[108].mxu1  ;;  %v3719_v62 = vrot.slane %v3717_v39, 1  ;;  %v11262_v39 = vld [vmem:[#allocation44_spill] sm:$0xff] }
 0x283   : > { %v6742_v40 = vpop.f32.mrb[109].mxu1 }
 0x284   : > { %v6743_v54 = vadd.f32 %v6742_v40, %v6741_v30  ;;  %v6744_v42 = vpop.f32.mrb[110].mxu1 }
 0x285   : > { %7336 = vmatmul.mubr.msk.bf16.gmra.mrb[28].mxu0 %vm914_vm1, %v6132_v19  ;;  %v6745_v57 = vpop.f32.mrb[111].mxu1 }
 0x286   : > { %7341 = vmatprep.mubr.msk.bf16.mxu0 %vm914_vm1, %v11192_v37  ;;  %v10011_v47 = vadd.f32 %v6743_v54, %v9793_v52  ;;  %v6746_v25 = vadd.f32 %v6745_v57, %v6744_v42  ;;  %v3715_v37 = vor.u32 %v3714_v56, %v3710_v7  ;;  %v7999_v54 = vld [vmem:[#allocation8 + $0x218] sm:$0xff]  }
 0x287   : > { %4801 = vmatmul.mubr.bf16.gmra.mrb[216].mxu1 %v11261_v28 }
 0x288   : > { %v10015_v48 = vadd.f32 %v6746_v25, %v9804_v53  ;;  %4808 = vmatprep.mubr.bf16.mxu1 %v10008_v10  ;;  %v10021_v52 = vsel %vm3378_vm8, %v3715_v37, %v3719_v62 }
 0x28a   : > { %v6747_v19 = vpop.f32.mrb[112].mxu1 }
 0x28b   : > { %v6748_v59 = vpop.f32.mrb[113].mxu1 }
 0x28c   : > { %v6749_v13 = vadd.f32 %v6748_v59, %v6747_v19  ;;  %v6750_v29 = vpop.f32.mrb[114].mxu1  ;;  %v11263_v19 = vld [vmem:[#allocation48_spill] sm:$0xff] }
 0x28d   : > { %7342 = vmatmul.mubr.msk.bf16.vlgmr.msra.gmra.mrb[0].mxu0 %vm914_vm1, %v11193_v0  ;;  %v6751_v53 = vpop.f32.mrb[115].mxu1 }
 0x28e   : > { %7345 = vmatprep.mubr.msk.bf16.mxu0 %vm914_vm1, %v11196_v9  ;;  %7374 = vmatpush3.bf16.msra.mxu0 %v9908_v18  ;;  %v10027_v30 = vadd.f32 %v6749_v13, %v9816_v20  ;;  %v6752_v40 = vadd.f32 %v6751_v53, %v6750_v29 }
 0x28f   : > { %7375 = vmatprep.subr.bf16.mxu0 %v7997_v23  ;;  %4809 = vmatmul.mubr.bf16.gmra.mrb[220].mxu1 %v10021_v52 }
 0x290   : > { %v10031_v0 = vadd.f32 %v6752_v40, %v9825_v38  ;;  %4849 = vmatprep.mubr.bf16.mxu1 %v11220_v35  ;;  %v8000_v38 = vld [vmem:[#allocation8 + $0x220] sm:$0xff]  }
 0x291   : > { %v11265_v40 = vld [vmem:[#allocation56_spill] sm:$0xff] }
 0x292   : > { %7376 = vmatpush3.bf16.msra.mxu0 %v7997_v23  ;;  %v6753_v9 = vpop.f32.mrb[116].mxu1 }
 0x293   : > { %7377 = vmatprep.subr.bf16.mxu0 %v7998_v4  ;;  %v6754_v42 = vpop.f32.mrb[117].mxu1 }
 0x294   : > { %v6755_v18 = vadd.f32 %v6754_v42, %v6753_v9  ;;  %v6756_v7 = vpop.f32.mrb[118].mxu1  ;;  %v11266_v42 = vld [vmem:[#allocation59_spill] sm:$0xff] }
 0x295   : > { %7346 = vmatmul.mubr.msk.bf16.gmra.mrb[4].mxu0 %vm914_vm1, %v11198_v14  ;;  %v6757_v20 = vpop.f32.mrb[119].mxu1  ;;  %v8001_v14 = vld [vmem:[#allocation8 + $0x228] sm:$0xff]  }
 0x296   : > { %7349 = vmatprep.mubr.msk.bf16.mxu0 %vm914_vm1, %v11202_v8  ;;  %7378 = vmatpush3.bf16.msra.mxu0 %v7998_v4  ;;  %v10039_v56 = vadd.f32 %v6755_v18, %v9831_v2  ;;  %v6758_v35 = vadd.f32 %v6757_v20, %v6756_v7  ;;  %v11264_v4 = vld [vmem:[#allocation52_spill] sm:$0xff] }
 0x297   : > { %7379 = vmatprep.subr.bf16.mxu0 %v7999_v54  ;;  %4850 = vmatmul.mubr.bf16.vlgmr.msra.gmra.mrb[224].mxu1 %v11262_v39  ;;  %v11267_v7 = vld [vmem:[#allocation60_spill] sm:$0xff] }
 0x298   : > { %v10043_v57 = vadd.f32 %v6758_v35, %v9835_v21  ;;  %4857 = vmatprep.mubr.bf16.mxu1 %v11224_v49  ;;  %v8002_v21 = vld [vmem:[#allocation8 + $0x230] sm:$0xff]  }
 0x299   : > { %v11268_v35 = vld [vmem:[#allocation54_spill] sm:$0xff] }
 0x29a   : > { %7380 = vmatpush3.bf16.msra.mxu0 %v7999_v54  ;;  %v6759_v25 = vpop.f32.mrb[120].mxu1 }
 0x29b   : > { %7381 = vmatprep.subr.bf16.mxu0 %v8000_v38  ;;  %v6760_v8 = vpop.f32.mrb[121].mxu1 }
 0x29c   : > { %v6761_v37 = vadd.f32 %v6760_v8, %v6759_v25  ;;  %v6762_v62 = vpop.f32.mrb[122].mxu1  ;;  %v11270_v8 = vld [vmem:[#allocation63_spill] sm:$0xff] }
 0x29d   : > { %7350 = vmatmul.mubr.msk.bf16.gmra.mrb[8].mxu0 %vm914_vm1, %v11204_v55  ;;  %v6763_v2 = vpop.f32.mrb[123].mxu1  ;;  %v8003_v55 = vld [vmem:[#allocation8 + $0x238] sm:$0xff]  }
 0x29e   : > { %7353 = vmatprep.mubr.msk.bf16.mxu0 %vm914_vm1, %v11208_v5  ;;  %7382 = vmatpush3.bf16.msra.mxu0 %v8000_v38  ;;  %v10051_v23 = vadd.f32 %v6761_v37, %v9841_v45  ;;  %v6764_v49 = vadd.f32 %v6763_v2, %v6762_v62  ;;  %v11271_v2 = vld [vmem:[#allocation64_spill] sm:$0xff] }
 0x29f   : > { %7383 = vmatprep.subr.bf16.mxu0 %v8001_v14  ;;  %4858 = vmatmul.mubr.bf16.gmra.mrb[228].mxu1 %v11263_v19  ;;  %v11272_v19 = vld [vmem:[#allocation49_spill] sm:$0xff] }
 0x2a0   : > { %v10055_v59 = vadd.f32 %v6764_v49, %v9845_v26  ;;  %4865 = vmatprep.mubr.bf16.mxu1 %v11228_v6  ;;  %v472_v49 = vld [vmem:[%s8555_s8 + $0xcc] sm:$0xe] }
 0x2a2   : > { %7384 = vmatpush3.bf16.msra.mxu0 %v8001_v14  ;;  %v6765_v13 = vpop.f32.mrb[124].mxu1 }
 0x2a3   : > { %7385 = vmatprep.subr.bf16.mxu0 %v8002_v21  ;;  %v6766_v5 = vpop.f32.mrb[125].mxu1 }
 0x2a4   : > { %v6767_v29 = vadd.f32 %v6766_v5, %v6765_v13  ;;  %v6768_v53 = vpop.f32.mrb[126].mxu1  ;;  %v11273_v5 = vld [vmem:[#allocation58_spill] sm:$0xff] }
 0x2a5   : > { %7354 = vmatmul.mubr.msk.bf16.gmra.mrb[12].mxu0 %vm914_vm1, %v11210_v61  ;;  %v6769_v45 = vpop.f32.mrb[127].mxu1 }
 0x2a6   : > { %7357 = vmatprep.mubr.msk.bf16.mxu0 %vm914_vm1, %v11212_v22  ;;  %7386 = vmatpush3.bf16.msra.mxu0 %v8002_v21  ;;  %v10063_v26 = vadd.f32 %v6767_v29, %v9851_v43  ;;  %v6770_v6 = vadd.f32 %v6769_v45, %v6768_v53  ;;  %v6150_v53 = vrot.slane %v472_v49, 9 }
 0x2a7   : > { %7387 = vmatprep.subr.bf16.mxu0 %v8003_v55  ;;  %4866 = vmatmul.mubr.bf16.gmra.mrb[232].mxu1 %v11264_v4 }
 0x2a8   : > { %v10067_v54 = vadd.f32 %v6770_v6, %v11265_v40  ;;  %4873 = vmatprep.mubr.bf16.mxu1 %v11233_v15  ;;  %v11269_v15 = vld [vmem:[#allocation45_spill] sm:$0xff]  ;;  %v2955_v6 = vrot.slane %v9968_v44, 5 }
 0x2aa   : > { %7388 = vmatpush3.bf16.msra.mxu0 %v8003_v55  ;;  %v6771_v61 = vpop.f32.mrb[128].mxu1 }
 0x2ab   : > { %v6772_v9 = vpop.f32.mrb[129].mxu1 }
 0x2ac   : > { %v6773_v22 = vadd.f32 %v6772_v9, %v6771_v61  ;;  %v6774_v18 = vpop.f32.mrb[130].mxu1 }
 0x2ad   : > { %7358 = vmatmul.mubr.msk.bf16.gmra.mrb[16].mxu0 %vm914_vm1, %v11266_v42  ;;  %v6775_v43 = vpop.f32.mrb[131].mxu1  ;;  %v11276_v42 = vld [vmem:[#allocation92_spill] sm:$0xff] }
 0x2ae   : > { %7361 = vmatprep.mubr.msk.bf16.mxu0 %vm914_vm1, %v11267_v7  ;;  %v10075_v20 = vadd.f32 %v6773_v22, %v9861_v32  ;;  %v6776_v38 = vadd.f32 %v6775_v43, %v6774_v18  ;;  %v2952_v32 = vrot.slane %v9889_v60, 5  ;;  %v11275_v60 = vld [vmem:[#allocation67_spill] sm:$0xff]  ;;  %v11278_v43 = vld [vmem:[#allocation28_spill] sm:$0xff] }
 0x2af   : > { %4874 = vmatmul.mubr.bf16.gmra.mrb[236].mxu1 %v11268_v35  ;;  %v11279_v35 = vld [vmem:[#allocation61_spill] sm:$0xff]  ;;  %v11288_v22 = vld [vmem:[#allocation32_spill] sm:$0xff] }
 0x2b0   : > { %v10079_v39 = vadd.f32 %v6776_v38, %v11269_v15  ;;  %4881 = vmatprep.mubr.bf16.mxu1 %v11238_v58  ;;  %v11274_v58 = vld [vmem:[#allocation26_spill] sm:$0xff]  ;;  %v2954_v45 = vrot.slane %v2952_v32, 4  ;;  %v2953_v18 = vsel %vm8929_vm7, %v6150_v53, %v2952_v32  ;;  %v11281_v32 = vld [vmem:[#allocation73_spill] sm:$0xff] }
 0x2b2   : > { %v6777_v14 = vpop.f32.mrb[132].mxu1 }
 0x2b3   : > { %v6778_v25 = vpop.f32.mrb[133].mxu1 }
 0x2b4   : > { %v6779_v37 = vadd.f32 %v6778_v25, %v6777_v14  ;;  %v6780_v62 = vpop.f32.mrb[134].mxu1  ;;  %v11280_v14 = vld [vmem:[#allocation53_spill] sm:$0xff] }
 0x2b5   : > { %7362 = vmatmul.mubr.msk.bf16.gmra.mrb[20].mxu0 %vm914_vm1, %v11270_v8  ;;  %v6781_v21 = vpop.f32.mrb[135].mxu1 }
 0x2b6   : > { %7365 = vmatprep.mubr.msk.bf16.mxu0 %vm914_vm1, %v11271_v2  ;;  %v10089_v55 = vadd.f32 %v6779_v37, %v11272_v19  ;;  %v6782_v13 = vadd.f32 %v6781_v21, %v6780_v62 }
 0x2b7   : > { %4882 = vmatmul.mubr.bf16.gmra.mrb[240].mxu1 %v11273_v5 }
 0x2b8   : > { %v10093_v29 = vadd.f32 %v6782_v13, %v11274_v58  ;;  %4889 = vmatprep.mubr.bf16.mxu1 %v11239_v41  ;;  %v2956_v41 = vsel %vm8929_vm7, %v2954_v45, %v2955_v6  ;;  %v11282_v13 = vld [vmem:[#allocation66_spill] sm:$0xff] }
 0x2b9   : > { %v6151_v15 = vcombine.low %v2953_v18, %v2956_v41  ;;  %v11283_v58 = vld [vmem:[#allocation78_spill] sm:$0xff]  ;;  %v11289_v18 = vld [vmem:[#allocation20_spill] sm:$0xff] }
 0x2ba   : > { %v6783_v4 = vpop.f32.mrb[136].mxu1  ;;  %v11284_v45 = vld [vmem:[#allocation74_spill] sm:$0xff] }
 0x2bb   : > { %v6784_v40 = vpop.f32.mrb[137].mxu1 }
 0x2bc   : > { %v6785_v61 = vadd.f32 %v6784_v40, %v6783_v4  ;;  %v6786_v9 = vpop.f32.mrb[138].mxu1  ;;  %v11285_v40 = vld [vmem:[#allocation76_spill] sm:$0xff] }
 0x2bd   : > { %7366 = vmatmul.mubr.msk.bf16.gmra.mrb[24].mxu0 %vm914_vm1, %v11275_v60  ;;  %v6787_v7 = vpop.f32.mrb[139].mxu1 }
 0x2be   : > { %7369 = vmatprep.mubr.msk.bf16.mxu0 %vm914_vm1, %v11276_v42  ;;  %v10106_v38 = vadd.f32 %v6785_v61, %v11278_v43  ;;  %v6788_v44 = vadd.f32 %v6787_v7, %v6786_v9  ;;  %v11286_v61 = vld [vmem:[#allocation30_spill] sm:$0xff]  ;;  %v11287_v42 = vld [vmem:[#allocation68_spill] sm:$0xff]  ;;  %v11290_v43 = vld [vmem:[#allocation77_spill] sm:$0xff] }
 0x2bf   : > { %4890 = vmatmul.mubr.bf16.gmra.mrb[244].mxu1 %v11279_v35 }
 0x2c0   : > { %v10110_v25 = vadd.f32 %v6788_v44, %v11280_v14  ;;  %4897 = vmatprep.mubr.bf16.mxu1 %v11242_v27 }
 0x2c2   : > { %v6789_v8 = vpop.f32.mrb[140].mxu1 }
 0x2c3   : > { %v6790_v37 = vpop.f32.mrb[141].mxu1 }
 0x2c4   : > { %v6791_v62 = vadd.f32 %v6790_v37, %v6789_v8  ;;  %v6792_v2 = vpop.f32.mrb[142].mxu1  ;;  %v11292_v8 = vld [vmem:[#allocation57_spill] sm:$0xff] }
 0x2c5   : > { %7370 = vmatmul.mubr.msk.bf16.gmra.mrb[28].mxu0 %vm914_vm1, %v6151_v15  ;;  %v6793_v21 = vpop.f32.mrb[143].mxu1  ;;  %v11291_v15 = vld [vmem:[#allocation79_spill] sm:$0xff]  ;;  %vm10420_vm1 = vmand %vm5672_vm14, %vm5339_vm12 }
 0x2c6   : > { %7389 = vmatprep.mubr.bf16.mxu0 %v11281_v32  ;;  %v10116_v49 = vadd.f32 %v6791_v62, %v9898_v46  ;;  %v6794_v19 = vadd.f32 %v6793_v21, %v6792_v2  ;;  %v11293_v2 = vld [vmem:[#allocation69_spill] sm:$0xff]  ;;  %v11294_v32 = vld [vmem:[#allocation34_spill] sm:$0xff] }
 0x2c7   : > { %4898 = vmatmul.mubr.bf16.gmra.mrb[248].mxu1 %v11282_v13 }
 0x2c8   : > { %v10120_v5 = vadd.f32 %v6794_v19, %v9902_v3  ;;  %4905 = vmatprep.mubr.bf16.mxu1 %v11283_v58  ;;  %v11295_v19 = vld [vmem:[#allocation24_spill] sm:$0xff] }
 0x2ca   : > { %v6795_v27 = vpop.f32.mrb[144].mxu1 }
 0x2cb   : > { %v6796_v53 = vpop.f32.mrb[145].mxu1 }
 0x2cc   : > { %v6797_v6 = vadd.f32 %v6796_v53, %v6795_v27  ;;  %v6798_v4 = vpop.f32.mrb[146].mxu1  ;;  %v11296_v27 = vld [vmem:[#allocation80_spill] sm:$0xff] }
 0x2cd   : > { %7390 = vmatmul.mubr.bf16.vlgmr.msra.gmra.mrb[0].mxu0 %v11284_v45  ;;  %v6799_v60 = vpop.f32.mrb[147].mxu1 }
 0x2ce   : > { %7393 = vmatprep.mubr.bf16.mxu0 %v11285_v40  ;;  %v10126_v46 = vadd.f32 %v6797_v6, %v11286_v61  ;;  %v6800_v9 = vadd.f32 %v6799_v60, %v6798_v4  ;;  %v11297_v6 = vld [vmem:[#allocation82_spill] sm:$0xff]  ;;  %v11298_v40 = vld [vmem:[#allocation36_spill] sm:$0xff] }
 0x2cf   : > { %4906 = vmatmul.mubr.bf16.gmra.mrb[252].mxu1 %v11287_v42  ;;  %v11300_v42 = vld [vmem:[#allocation62_spill] sm:$0xff] }
 0x2d0   : > { %v10130_v3 = vadd.f32 %v6800_v9, %v11288_v22  ;;  %4913 = vmatprep.mubr.bf16.mxu1 %v11289_v18  ;;  %v11299_v9 = vld [vmem:[#allocation71_spill] sm:$0xff] }
 0x2d2   : > { %v6801_v41 = vpop.f32.mrb[148].mxu1 }
 0x2d3   : > { %v6802_v7 = vpop.f32.mrb[149].mxu1 }
 0x2d4   : > { %v6803_v44 = vadd.f32 %v6802_v7, %v6801_v41  ;;  %v6804_v35 = vpop.f32.mrb[150].mxu1  ;;  %v11301_v7 = vld [vmem:[#allocation22_spill] sm:$0xff] }
 0x2d5   : > { %7394 = vmatmul.mubr.bf16.gmra.mrb[4].mxu0 %v11290_v43  ;;  %v6805_v14 = vpop.f32.mrb[151].mxu1 }
 0x2d6   : > { %7397 = vmatprep.mubr.bf16.mxu0 %v11291_v15  ;;  %v10136_v37 = vadd.f32 %v6803_v44, %v11292_v8  ;;  %v6806_v62 = vadd.f32 %v6805_v14, %v6804_v35  ;;  %v11302_v35 = vld [vmem:[#allocation83_spill] sm:$0xff]  ;;  %v11303_v14 = vld [vmem:[#allocation38_spill] sm:$0xff] }
 0x2d7   : > { %4914 = vmatmul.mubr.bf16.gmra.mrb[0].mxu1 %v11293_v2  ;;  %v11304_v2 = vld [vmem:[#allocation75_spill] sm:$0xff] }
 0x2d8   : > { %v10140_v21 = vadd.f32 %v6806_v62, %v11294_v32  ;;  %4921 = vmatprep.mubr.bf16.mxu1 %v11295_v19  ;;  %v11305_v32 = vld [vmem:[#allocation91_spill] sm:$0xff] }
 0x2da   : > { %v6807_v13 = vpop.f32.mrb[152].mxu1 }
 0x2db   : > { %v6808_v58 = vpop.f32.mrb[153].mxu1 }
 0x2dc   : > { %v6809_v53 = vadd.f32 %v6808_v58, %v6807_v13  ;;  %v6810_v45 = vpop.f32.mrb[154].mxu1  ;;  %v11306_v58 = vld [vmem:[#allocation86_spill] sm:$0xff] }
 0x2dd   : > { %7398 = vmatmul.mubr.bf16.gmra.mrb[8].mxu0 %v11296_v27  ;;  %v6811_v4 = vpop.f32.mrb[155].mxu1 }
 0x2de   : > { %7401 = vmatprep.mubr.bf16.mxu0 %v11297_v6  ;;  %v10146_v60 = vadd.f32 %v6809_v53, %v11298_v40  ;;  %v6812_v61 = vadd.f32 %v6811_v4, %v6810_v45  ;;  %v11307_v45 = vld [vmem:[#allocation89_spill] sm:$0xff] }
 0x2df   : > { %4922 = vmatmul.mubr.bf16.gmra.mrb[4].mxu1 %v11299_v9 }
 0x2e0   : > { %v10150_v22 = vadd.f32 %v6812_v61, %v11300_v42  ;;  %4929 = vmatprep.mubr.bf16.mxu1 %v11258_v33  ;;  %v11308_v61 = vld [vmem:[#allocation81_spill] sm:$0xff] }
 0x2e1   : > { %v3196_v42 = vld [vmem:[%s8563_s9 + $0xcc] sm:$0xf] }
 0x2e2   : > { %v6813_v18 = vpop.f32.mrb[156].mxu1 }
 0x2e3   : > { %v6814_v41 = vpop.f32.mrb[157].mxu1 }
 0x2e4   : > { %v6815_v43 = vadd.f32 %v6814_v41, %v6813_v18  ;;  %v6816_v44 = vpop.f32.mrb[158].mxu1 }
 0x2e5   : > { %7402 = vmatmul.mubr.bf16.gmra.mrb[12].mxu0 %v11301_v7  ;;  %v6817_v15 = vpop.f32.mrb[159].mxu1 }
 0x2e6   : > { %7405 = vmatprep.mubr.bf16.mxu0 %v11302_v35  ;;  %v10156_v8 = vadd.f32 %v6815_v43, %v11303_v14  ;;  %v6818_v62 = vadd.f32 %v6817_v15, %v6816_v44  ;;  %v3233_v44 = vld [vmem:[%s8563_s9 + $0xcc] sm:$0xe] }
 0x2e7   : > { %4930 = vmatmul.mubr.bf16.gmra.mrb[8].mxu1 %v11304_v2  ;;  %v11309_v14 = vld [vmem:[#allocation85_spill] sm:$0xff] }
 0x2e8   : > { %v10160_v19 = vadd.f32 %v6818_v62, %v11305_v32  ;;  %4937 = vmatprep.mubr.bf16.mxu1 %v11259_v63 }
 0x2ea   : > { %v6835_v33 = vpop.f32.mrb[160].mxu1 }
 0x2eb   : > { %v6836_v13 = vpop.f32.mrb[161].mxu1 }
 0x2ec   : > { %v6837_v27 = vadd.f32 %v6836_v13, %v6835_v33  ;;  %v6838_v53 = vpop.f32.mrb[162].mxu1 }
 0x2ed   : > { %7406 = vmatmul.mubr.bf16.gmra.mrb[16].mxu0 %v11306_v58  ;;  %v6839_v6 = vpop.f32.mrb[163].mxu1 }
 0x2ee   : > { %7409 = vmatprep.mubr.bf16.mxu0 %v11307_v45  ;;  %v10166_v4 = vadd.f32 %v6837_v27, %v9960_v36  ;;  %v6840_v40 = vadd.f32 %v6839_v6, %v6838_v53  ;;  %v3197_v36 = vld [vmem:[%s8563_s9 + $0xd0] sm:$0xf] }
 0x2ef   : > { %4938 = vmatmul.mubr.bf16.gmra.mrb[12].mxu1 %v11308_v61  ;;  %v6219_v35 = vcombine.low %v3196_v42, %v3197_v36  ;;  %v6221_v62 = vcombine.low %v3233_v44, %v3197_v36 }
 0x2f0   : > { %v10170_v9 = vadd.f32 %v6840_v40, %v9964_v1  ;;  %4945 = vmatprep.mubr.bf16.mxu1 %v11260_v24  ;;  %v11310_v40 = vld [vmem:[#allocation88_spill] sm:$0xff] }
 0x2f1   : > { %v3741_v2 = vshll.u32 %v6219_v35, 16  ;;  %v3739_v53 = vshrl.u32 %v6219_v35, 16 }
 0x2f2   : > { %v6841_v63 = vpop.f32.mrb[164].mxu1 }
 0x2f3   : > { %v6842_v18 = vpop.f32.mrb[165].mxu1  ;;  %v3743_v45 = vrot.slane %v3741_v2, 1 }
 0x2f4   : > { %v6843_v41 = vadd.f32 %v6842_v18, %v6841_v63  ;;  %v6844_v7 = vpop.f32.mrb[166].mxu1 }
 0x2f5   : > { %7410 = vmatmul.mubr.bf16.gmra.mrb[20].mxu0 %v9562_v34  ;;  %v6845_v43 = vpop.f32.mrb[167].mxu1  ;;  %v8005_v34 = vld [vmem:[%s8563_s9 + $0xd4] ss:$0 sps:$4 sm:$0x11]  }
 0x2f6   : > { %7413 = vmatprep.mubr.bf16.mxu0 %v9796_v50  ;;  %v10179_v15 = vadd.f32 %v6843_v41, %v9976_v12  ;;  %v6846_v1 = vadd.f32 %v6845_v43, %v6844_v7  ;;  %v3754_v12 = vrot.slane %v6221_v62, 1  ;;  %v3755_v58 = vrot.slane %v8005_v34, 1 }
 0x2f7   : > { %4946 = vmatmul.mubr.bf16.gmra.mrb[16].mxu1 %v11309_v14 }
 0x2f8   : > { %v10183_v24 = vadd.f32 %v6846_v1, %v9980_v17  ;;  %4953 = vmatprep.mubr.bf16.mxu1 %v11261_v28  ;;  %v3746_v17 = vshll.u32 %v8005_v34, 16 }
 0x2fa   : > { %v6847_v32 = vpop.f32.mrb[168].mxu1  ;;  %v3748_v63 = vrot.slane %v3746_v17, 1 }
 0x2fb   : > { %v6848_v50 = vpop.f32.mrb[169].mxu1 }
 0x2fc   : > { %v6849_v33 = vadd.f32 %v6848_v50, %v6847_v32  ;;  %v6850_v13 = vpop.f32.mrb[170].mxu1 }
 0x2fd   : > { %7414 = vmatmul.mubr.bf16.gmra.mrb[24].mxu0 %v9819_v31  ;;  %v6851_v27 = vpop.f32.mrb[171].mxu1  ;;  %v3756_v31 = vsel %vm3635_vm9, %v3754_v12, %v3755_v58 }
 0x2fe   : > { %7417 = vmatprep.mubr.bf16.mxu0 %v10008_v10  ;;  %v10190_v6 = vadd.f32 %v6849_v33, %v9995_v51  ;;  %v6852_v28 = vadd.f32 %v6851_v27, %v6850_v13  ;;  %v3744_v10 = vor.u32 %v3743_v45, %v3739_v53 }
 0x2ff   : > { %4954 = vmatmul.mubr.bf16.gmra.mrb[20].mxu1 %v11310_v40 }
 0x300   : > { %v10194_v61 = vadd.f32 %v6852_v28, %v9999_v11  ;;  %4961 = vmatprep.mubr.bf16.mxu1 %v10021_v52  ;;  %v3749_v51 = vsel %vm3378_vm8, %v3744_v10, %v3748_v63 }
 0x302   : > { %v6853_v42 = vpop.f32.mrb[172].mxu1 }
 0x303   : > { %v6854_v18 = vpop.f32.mrb[173].mxu1 }
 0x304   : > { %v6855_v41 = vadd.f32 %v6854_v18, %v6853_v42  ;;  %v6856_v7 = vpop.f32.mrb[174].mxu1 }
 0x305   : > { %7418 = vmatmul.mubr.bf16.gmra.mrb[28].mxu0 %v3756_v31  ;;  %v6857_v36 = vpop.f32.mrb[175].mxu1 }
 0x306   : > { %v10200_v43 = vadd.f32 %v6855_v41, %v10011_v47  ;;  %v6858_v44 = vadd.f32 %v6857_v36, %v6856_v7 }
 0x307   : > { %4962 = vmatmul.mubr.bf16.gmra.mrb[24].mxu1 %v9801_v16 }
 0x308   : > { %v10204_v11 = vadd.f32 %v6858_v44, %v10015_v48  ;;  %4969 = vmatprep.mubr.bf16.mxu1 %v3749_v51 }
 0x30a   : > { %v6859_v52 = vpop.f32.mrb[176].mxu1 }
 0x30b   : > { %v6860_v1 = vpop.f32.mrb[177].mxu1 }
 0x30c   : > { %v6861_v14 = vadd.f32 %v6860_v1, %v6859_v52  ;;  %v6862_v34 = vpop.f32.mrb[178].mxu1 }
 0x30d   : > { %v6863_v62 = vpop.f32.mrb[179].mxu1 }
 0x30e   : > { %v10207_v2 = vadd.f32 %v6861_v14, %v10027_v30  ;;  %v6864_v32 = vadd.f32 %v6863_v62, %v6862_v34 }
 0x30f   : > { %4970 = vmatmul.mubr.bf16.gmra.mrb[28].mxu1 %v6219_v35 }
 0x310   : > { %v10210_v47 = vadd.f32 %v6864_v32, %v10031_v0 }
 0x312   : > { %v6865_v50 = vpop.f32.mrb[180].mxu1 }
 0x313   : > { %v6866_v33 = vpop.f32.mrb[181].mxu1 }
 0x314   : > { %v6867_v16 = vadd.f32 %v6866_v33, %v6865_v50  ;;  %v6868_v48 = vpop.f32.mrb[182].mxu1 }
 0x315   : > { %v6869_v13 = vpop.f32.mrb[183].mxu1 }
 0x316   : > { %v10213_v12 = vadd.f32 %v6867_v16, %v10039_v56  ;;  %v6870_v58 = vadd.f32 %v6869_v13, %v6868_v48  ;;  %v8255_v56 = vmov 0  }
 0x317   : > { %350 = vst [vmem:[%s10225_s24 + $0x18] sm:$0xf] %v8255_v56  ;;  %344 = vst [vmem:[%s10225_s24] sm:$0xf] %v8255_v56 }
 0x318   : > { %v10216_v27 = vadd.f32 %v6870_v58, %v10043_v57  ;;  %345 = vst [vmem:[%s10225_s24 + $0x4] sm:$0xf] %v8255_v56  ;;  %346 = vst [vmem:[%s10225_s24 + $0x8] sm:$0x1] %v8255_v56 }
 0x319   : > { %347 = vst [vmem:[%s10225_s24 + $0xc] sm:$0xf] %v8255_v56  ;;  %348 = vst [vmem:[%s10225_s24 + $0x10] sm:$0xf] %v8255_v56 }
 0x31a   : > { %v6871_v30 = vpop.f32.mrb[184].mxu1  ;;  %349 = vst [vmem:[%s10225_s24 + $0x14] sm:$0x1] %v8255_v56  ;;  %351 = vst [vmem:[%s10225_s24 + $0x1c] sm:$0xf] %v8255_v56 }
 0x31b   : > { %v6872_v53 = vpop.f32.mrb[185].mxu1  ;;  %352 = vst [vmem:[%s10225_s24 + $0x20] sm:$0x1] %v8255_v56  ;;  %353 = vst [vmem:[%s10225_s24 + $0x24] sm:$0xf] %v8255_v56 }
 0x31c   : > { %v6873_v45 = vadd.f32 %v6872_v53, %v6871_v30  ;;  %v6874_v35 = vpop.f32.mrb[186].mxu1  ;;  %354 = vst [vmem:[%s10225_s24 + $0x28] sm:$0xf] %v8255_v56  ;;  %355 = vst [vmem:[%s10225_s24 + $0x2c] sm:$0x1] %v8255_v56 }
 0x31d   : > { %v6875_v17 = vpop.f32.mrb[187].mxu1  ;;  %356 = vst [vmem:[%s10225_s24 + $0x30] sm:$0xf] %v8255_v56  ;;  %357 = vst [vmem:[%s10225_s24 + $0x34] sm:$0xf] %v8255_v56 }
 0x31e   : > { %v10219_v0 = vadd.f32 %v6873_v45, %v10051_v23  ;;  %v6876_v28 = vadd.f32 %v6875_v17, %v6874_v35  ;;  %358 = vst [vmem:[%s10225_s24 + $0x38] sm:$0x1] %v8255_v56  ;;  %359 = vst [vmem:[%s10225_s24 + $0x3c] sm:$0xf] %v8255_v56 }
 0x31f   : > { %360 = vst [vmem:[%s10225_s24 + $0x40] sm:$0xf] %v8255_v56  ;;  %361 = vst [vmem:[%s10225_s24 + $0x44] sm:$0x1] %v8255_v56 }
 0x320   : > { %v10222_v40 = vadd.f32 %v6876_v28, %v10055_v59  ;;  %362 = vst [vmem:[%s10225_s24 + $0x48] sm:$0xf] %v8255_v56  ;;  %363 = vst [vmem:[%s10225_s24 + $0x4c] sm:$0xf] %v8255_v56 }
 0x321   : > { %364 = vst [vmem:[%s10225_s24 + $0x50] sm:$0x1] %v8255_v56  ;;  %365 = vst [vmem:[%s10225_s24 + $0x54] sm:$0xf] %v8255_v56 }
 0x322   : > { %v6877_v31 = vpop.f32.mrb[188].mxu1  ;;  %366 = vst [vmem:[%s10225_s24 + $0x58] sm:$0xf] %v8255_v56  ;;  %367 = vst [vmem:[%s10225_s24 + $0x5c] sm:$0x1] %v8255_v56 }
 0x323   : > { %v6878_v10 = vpop.f32.mrb[189].mxu1  ;;  %368 = vst [vmem:[%s10225_s24 + $0x60] sm:$0xf] %v8255_v56  ;;  %369 = vst [vmem:[%s10225_s24 + $0x64] sm:$0xf] %v8255_v56 }
 0x324   : > { %370 = vst [vmem:[%s10225_s24 + $0x68] sm:$0x1] %v8255_v56  ;;  %371 = vst [vmem:[%s10225_s24 + $0x6c] sm:$0xf] %v8255_v56  ;;  %v6879_v57 = vadd.f32 %v6878_v10, %v6877_v31  ;;  %v6880_v23 = vpop.f32.mrb[190].mxu1 }
 0x325   : > { %372 = vst [vmem:[%s10225_s24 + $0x70] sm:$0xf] %v8255_v56  ;;  %373 = vst [vmem:[%s10225_s24 + $0x74] sm:$0x1] %v8255_v56  ;;  %v6881_v59 = vpop.f32.mrb[191].mxu1 }
 0x326   : > { %374 = vst [vmem:[%s10225_s24 + $0x78] sm:$0xf] %v8255_v56  ;;  %375 = vst [vmem:[%s10225_s24 + $0x7c] sm:$0xf] %v8255_v56  ;;  %v10282_v63 = vadd.f32 %v6879_v57, %v10063_v26  ;;  %v6882_v42 = vadd.f32 %v6881_v59, %v6880_v23 }
 0x327   : > { %376 = vst [vmem:[%s10225_s24 + $0x80] sm:$0x1] %v8255_v56  ;;  %377 = vst [vmem:[%s10225_s24 + $0x84] sm:$0xf] %v8255_v56 }
 0x328   : > { %378 = vst [vmem:[%s10225_s24 + $0x88] sm:$0xf] %v8255_v56  ;;  %379 = vst [vmem:[%s10225_s24 + $0x8c] sm:$0x1] %v8255_v56  ;;  %v10285_v18 = vadd.f32 %v6882_v42, %v10067_v54 }
 0x329   : > { %380 = vst [vmem:[%s10225_s24 + $0x90] sm:$0xf] %v8255_v56  ;;  %381 = vst [vmem:[%s10225_s24 + $0x94] sm:$0xf] %v8255_v56 }
 0x32a   : > { %382 = vst [vmem:[%s10225_s24 + $0x98] sm:$0x1] %v8255_v56  ;;  %383 = vst [vmem:[%s10225_s24 + $0x9c] sm:$0xf] %v8255_v56  ;;  %v6883_v41 = vpop.f32.mrb[192].mxu1 }
 0x32b   : > { %384 = vst [vmem:[%s10225_s24 + $0xa0] sm:$0xf] %v8255_v56  ;;  %385 = vst [vmem:[%s10225_s24 + $0xa4] sm:$0x1] %v8255_v56  ;;  %v6884_v7 = vpop.f32.mrb[193].mxu1 }
 0x32c   : > { %386 = vst [vmem:[%s10225_s24 + $0xa8] sm:$0xf] %v8255_v56  ;;  %387 = vst [vmem:[%s10225_s24 + $0xac] sm:$0xf] %v8255_v56  ;;  %v6885_v36 = vadd.f32 %v6884_v7, %v6883_v41  ;;  %v6886_v51 = vpop.f32.mrb[194].mxu1 }
 0x32d   : > { %388 = vst [vmem:[%s10225_s24 + $0xb0] sm:$0x1] %v8255_v56  ;;  %389 = vst [vmem:[%s10225_s24 + $0xb4] sm:$0xf] %v8255_v56  ;;  %v6887_v44 = vpop.f32.mrb[195].mxu1 }
 0x32e   : > { %390 = vst [vmem:[%s10225_s24 + $0xb8] sm:$0xf] %v8255_v56  ;;  %391 = vst [vmem:[%s10225_s24 + $0xbc] sm:$0x1] %v8255_v56  ;;  %v10288_v52 = vadd.f32 %v6885_v36, %v10075_v20  ;;  %v6888_v1 = vadd.f32 %v6887_v44, %v6886_v51 }
 0x32f   : > { %392 = vst [vmem:[%s10225_s24 + $0xc0] sm:$0xf] %v8255_v56  ;;  %393 = vst [vmem:[%s10225_s24 + $0xc4] sm:$0xf] %v8255_v56 }
 0x330   : > { %394 = vst [vmem:[%s10225_s24 + $0xc8] sm:$0x1] %v8255_v56  ;;  %395 = vst [vmem:[%s10225_s24 + $0xcc] sm:$0xf] %v8255_v56  ;;  %v10291_v14 = vadd.f32 %v6888_v1, %v10079_v39 }
 0x331   : > { %396 = vst [vmem:[%s10225_s24 + $0xd0] sm:$0xf] %v8255_v56  ;;  %397 = vst [vmem:[%s10225_s24 + $0xd4] sm:$0x1] %v8255_v56 }
 0x332   : > { %v6889_v34 = vpop.f32.mrb[196].mxu1 }
 0x333   : > { %v6890_v62 = vpop.f32.mrb[197].mxu1 }
 0x334   : > { %v6891_v26 = vadd.f32 %v6890_v62, %v6889_v34  ;;  %v6892_v32 = vpop.f32.mrb[198].mxu1 }
 0x335   : > { %v6893_v50 = vpop.f32.mrb[199].mxu1 }
 0x336   : > { %v10294_v54 = vadd.f32 %v6891_v26, %v10089_v55  ;;  %v6894_v33 = vadd.f32 %v6893_v50, %v6892_v32 }
 0x338   : > { %v10297_v16 = vadd.f32 %v6894_v33, %v10093_v29 }
 0x33a   : > { %v6895_v48 = vpop.f32.mrb[200].mxu1 }
 0x33b   : > { %v6896_v13 = vpop.f32.mrb[201].mxu1 }
 0x33c   : > { %v6897_v20 = vadd.f32 %v6896_v13, %v6895_v48  ;;  %v6898_v58 = vpop.f32.mrb[202].mxu1 }
 0x33d   : > { %v6899_v30 = vpop.f32.mrb[203].mxu1 }
 0x33e   : > { %v10300_v39 = vadd.f32 %v6897_v20, %v10106_v38  ;;  %v6900_v53 = vadd.f32 %v6899_v30, %v6898_v58 }
 0x340   : > { %v10303_v45 = vadd.f32 %v6900_v53, %v10110_v25 }
 0x342   : > { %v6901_v35 = vpop.f32.mrb[204].mxu1 }
 0x343   : > { %v6902_v17 = vpop.f32.mrb[205].mxu1 }
 0x344   : > { %v6903_v55 = vadd.f32 %v6902_v17, %v6901_v35  ;;  %v6904_v28 = vpop.f32.mrb[206].mxu1 }
 0x345   : > { %v6905_v31 = vpop.f32.mrb[207].mxu1 }
 0x346   : > { %v10306_v29 = vadd.f32 %v6903_v55, %v10116_v49  ;;  %v6906_v10 = vadd.f32 %v6905_v31, %v6904_v28 }
 0x348   : > { %v10309_v56 = vadd.f32 %v6906_v10, %v10120_v5 }
 0x34a   : > { %v6907_v57 = vpop.f32.mrb[208].mxu1 }
 0x34b   : > { %v6908_v23 = vpop.f32.mrb[209].mxu1 }
 0x34c   : > { %v6909_v38 = vadd.f32 %v6908_v23, %v6907_v57  ;;  %v6910_v59 = vpop.f32.mrb[210].mxu1 }
 0x34d   : > { %v6911_v42 = vpop.f32.mrb[211].mxu1 }
 0x34e   : > { %v10312_v25 = vadd.f32 %v6909_v38, %v10126_v46  ;;  %v6912_v41 = vadd.f32 %v6911_v42, %v6910_v59  ;;  %v11311_v38 = vld [vmem:[#allocation21_spill] sm:$0xff] }
 0x350   : > { %v10315_v7 = vadd.f32 %v6912_v41, %v10130_v3 }
 0x352   : > { %v6913_v36 = vpop.f32.mrb[212].mxu1 }
 0x353   : > { %v6914_v51 = vpop.f32.mrb[213].mxu1 }
 0x354   : > { %v6915_v49 = vadd.f32 %v6914_v51, %v6913_v36  ;;  %v6916_v44 = vpop.f32.mrb[214].mxu1 }
 0x355   : > { %v6917_v1 = vpop.f32.mrb[215].mxu1 }
 0x356   : > { %v10318_v5 = vadd.f32 %v6915_v49, %v10136_v37  ;;  %v6918_v34 = vadd.f32 %v6917_v1, %v6916_v44 }
 0x358   : > { %v10321_v62 = vadd.f32 %v6918_v34, %v10140_v21 }
 0x35a   : > { %v6919_v26 = vpop.f32.mrb[216].mxu1 }
 0x35b   : > { %v6920_v32 = vpop.f32.mrb[217].mxu1 }
 0x35c   : > { %v6921_v46 = vadd.f32 %v6920_v32, %v6919_v26  ;;  %v6922_v50 = vpop.f32.mrb[218].mxu1 }
 0x35d   : > { %v6923_v33 = vpop.f32.mrb[219].mxu1 }
 0x35e   : > { %v10324_v3 = vadd.f32 %v6921_v46, %v10146_v60  ;;  %v6924_v48 = vadd.f32 %v6923_v33, %v6922_v50 }
 0x360   : > { %v10327_v13 = vadd.f32 %v6924_v48, %v10150_v22 }
 0x362   : > { %v6925_v20 = vpop.f32.mrb[220].mxu1 }
 0x363   : > { %v6926_v58 = vpop.f32.mrb[221].mxu1 }
 0x364   : > { %v6927_v37 = vadd.f32 %v6926_v58, %v6925_v20  ;;  %v6928_v30 = vpop.f32.mrb[222].mxu1 }
 0x365   : > { %v6929_v53 = vpop.f32.mrb[223].mxu1 }
 0x366   : > { %v10330_v21 = vadd.f32 %v6927_v37, %v10156_v8  ;;  %v6930_v35 = vadd.f32 %v6929_v53, %v6928_v30  ;;  %v11312_v8 = vld [vmem:[#allocation25_spill] sm:$0xff]  ;;  %v11315_v53 = vld [vmem:[#allocation94_spill] sm:$0xff] }
 0x368   : > { %v10333_v17 = vadd.f32 %v6930_v35, %v10160_v19 }
 0x36a   : > { %v6947_v55 = vpop.f32.mrb[224].mxu1 }
 0x36b   : > { %v6948_v28 = vpop.f32.mrb[225].mxu1 }
 0x36c   : > { %v6949_v60 = vadd.f32 %v6948_v28, %v6947_v55  ;;  %v6950_v31 = vpop.f32.mrb[226].mxu1  ;;  %v11316_v55 = vld [vmem:[#allocation96_spill] sm:$0xff] }
 0x36d   : > { %v6951_v10 = vpop.f32.mrb[227].mxu1 }
 0x36e   : > { %v4852_v22 = vadd.f32 %v6949_v60, %v10166_v4  ;;  %v6952_v57 = vadd.f32 %v6951_v10, %v6950_v31  ;;  %v11313_v4 = vld [vmem:[#allocation19_spill] sm:$0xff] }
 0x370   : > { %v4855_v23 = vadd.f32 %v6952_v57, %v10170_v9  ;;  %v10338_v59 = vadd.f32 %v4852_v22, %v11311_v38  ;;  %v11314_v9 = vld [vmem:[#allocation23_spill] sm:$0xff] }
 0x372   : > { %v6953_v42 = vpop.f32.mrb[228].mxu1  ;;  %v10341_v41 = vadd.f32 %v4855_v23, %v11312_v8 }
 0x373   : > { %v6954_v36 = vpop.f32.mrb[229].mxu1 }
 0x374   : > { %v6955_v19 = vadd.f32 %v6954_v36, %v6953_v42  ;;  %v6956_v51 = vpop.f32.mrb[230].mxu1  ;;  %v11318_v42 = vld [vmem:[#allocation95_spill] sm:$0xff] }
 0x375   : > { %v6957_v49 = vpop.f32.mrb[231].mxu1 }
 0x376   : > { %v4860_v44 = vadd.f32 %v6955_v19, %v10179_v15  ;;  %v6958_v1 = vadd.f32 %v6957_v49, %v6956_v51 }
 0x378   : > { %v4863_v34 = vadd.f32 %v6958_v1, %v10183_v24  ;;  %v7421_v26 = vadd.f32 %v11313_v4, %v4860_v44 }
 0x37a   : > { %v6959_v32 = vpop.f32.mrb[232].mxu1  ;;  %v7425_v46 = vadd.f32 %v11314_v9, %v4863_v34 }
 0x37b   : > { %v6960_v50 = vpop.f32.mrb[233].mxu1 }
 0x37c   : > { %v6961_v33 = vadd.f32 %v6960_v50, %v6959_v32  ;;  %v6962_v48 = vpop.f32.mrb[234].mxu1  ;;  %v11320_v32 = vld [vmem:[#allocation99_spill] sm:$0xff] }
 0x37d   : > { %v6963_v20 = vpop.f32.mrb[235].mxu1 }
 0x37e   : > { %v4868_v58 = vadd.f32 %v6961_v33, %v10190_v6  ;;  %v6964_v37 = vadd.f32 %v6963_v20, %v6962_v48  ;;  %v11317_v6 = vld [vmem:[#allocation93_spill] sm:$0xff] }
 0x380   : > { %v4871_v30 = vadd.f32 %v6964_v37, %v10194_v61  ;;  %v10350_v35 = vadd.f32 %v4868_v58, %v11315_v53 }
 0x382   : > { %v6965_v15 = vpop.f32.mrb[236].mxu1  ;;  %v10353_v24 = vadd.f32 %v4871_v30, %v11316_v55 }
 0x383   : > { %v6966_v28 = vpop.f32.mrb[237].mxu1 }
 0x384   : > { %v6967_v60 = vadd.f32 %v6966_v28, %v6965_v15  ;;  %v6968_v31 = vpop.f32.mrb[238].mxu1  ;;  %v11322_v15 = vld [vmem:[#allocation98_spill] sm:$0xff] }
 0x385   : > { %v6969_v10 = vpop.f32.mrb[239].mxu1 }
 0x386   : > { %v4876_v22 = vadd.f32 %v6967_v60, %v10200_v43  ;;  %v6970_v57 = vadd.f32 %v6969_v10, %v6968_v31  ;;  %v11319_v43 = vld [vmem:[#allocation97_spill] sm:$0xff] }
 0x388   : > { %v4879_v23 = vadd.f32 %v6970_v57, %v10204_v11  ;;  %v10358_v38 = vadd.f32 %v11317_v6, %v4876_v22  ;;  %v10380_v6 = vld [vmem:[#allocation10] ss:$0 sm:$0xff] }
 0x38a   : > { %v6971_v61 = vpop.f32.mrb[240].mxu1  ;;  %v10361_v8 = vadd.f32 %v11318_v42, %v4879_v23 }
 0x38b   : > { %v6972_v36 = vpop.f32.mrb[241].mxu1 }
 0x38c   : > { %v6973_v19 = vadd.f32 %v6972_v36, %v6971_v61  ;;  %v6974_v51 = vpop.f32.mrb[242].mxu1 }
 0x38d   : > { %v6975_v49 = vpop.f32.mrb[243].mxu1 }
 0x38e   : > { %v4884_v44 = vadd.f32 %v6973_v19, %v10207_v2  ;;  %v6976_v1 = vadd.f32 %v6975_v49, %v6974_v51  ;;  %v11321_v2 = vld [vmem:[#allocation40_spill] sm:$0xff]  ;;  %v11323_v19 = vld [vmem:[#allocation101_spill] sm:$0xff] }
 0x390   : > { %v4887_v34 = vadd.f32 %v6976_v1, %v10210_v47  ;;  %v10366_v4 = vadd.f32 %v4884_v44, %v11319_v43 }
 0x392   : > { %v6977_v11 = vpop.f32.mrb[244].mxu1  ;;  %v10369_v9 = vadd.f32 %v4887_v34, %v11320_v32 }
 0x393   : > { %v6978_v50 = vpop.f32.mrb[245].mxu1 }
 0x394   : > { %v6979_v33 = vadd.f32 %v6978_v50, %v6977_v11  ;;  %v6980_v48 = vpop.f32.mrb[246].mxu1  ;;  %v11324_v11 = vld [vmem:[#allocation103_spill] sm:$0xff] }
 0x395   : > { %v6981_v20 = vpop.f32.mrb[247].mxu1 }
 0x396   : > { %v4892_v58 = vadd.f32 %v6979_v33, %v10213_v12  ;;  %v6982_v37 = vadd.f32 %v6981_v20, %v6980_v48 }
 0x398   : > { %v4895_v30 = vadd.f32 %v6982_v37, %v10216_v27  ;;  %v10374_v53 = vadd.f32 %v11321_v2, %v4892_v58 }
 0x39a   : > { %v6983_v47 = vpop.f32.mrb[248].mxu1  ;;  %v10377_v55 = vadd.f32 %v11322_v15, %v4895_v30 }
 0x39b   : > { %v6984_v28 = vpop.f32.mrb[249].mxu1 }
 0x39c   : > { %v6985_v60 = vadd.f32 %v6984_v28, %v6983_v47  ;;  %v6986_v31 = vpop.f32.mrb[250].mxu1 }
 0x39d   : > { %v6987_v10 = vpop.f32.mrb[251].mxu1 }
 0x39e   : > { %v4900_v22 = vadd.f32 %v6985_v60, %v10219_v0  ;;  %v6988_v57 = vadd.f32 %v6987_v10, %v6986_v31 }
 0x3a0   : > { %v7391_v23 = vpop.f32.mrb[0].mxu0  ;;  %v4903_v27 = vadd.f32 %v6988_v57, %v10222_v40  ;;  %v10385_v51 = vadd.f32 %v4900_v22, %v11323_v19 }
 0x3a1   : > { %v7422_v12 = vadd.f32 %v7421_v26, %v7391_v23  ;;  %v5012_v61 = vpop.f32.mrb[1].mxu0 }
 0x3a2   : > { %v7424_v42 = vadd.f32 %v10338_v59, %v5012_v61  ;;  %v7392_v36 = vpop.f32.mrb[2].mxu0  ;;  %v6989_v34 = vpop.f32.mrb[252].mxu1  ;;  %v10391_v26 = vadd.f32 %v4903_v27, %v11324_v11 }
 0x3a3   : > { %v5180_v49 = vadd.f32 %v7422_v12, %v10380_v6  ;;  %v7426_v44 = vadd.f32 %v7425_v46, %v7392_v36  ;;  %v5015_v1 = vpop.f32.mrb[3].mxu0  ;;  %v6990_v40 = vpop.f32.mrb[253].mxu1 }
 0x3a4   : > { %v5178_v0 = vadd.f32 %v7424_v42, %v10380_v6  ;;  %v7428_v43 = vadd.f32 %v10341_v41, %v5015_v1  ;;  %v6991_v50 = vadd.f32 %v6990_v40, %v6989_v34  ;;  %v6992_v48 = vpop.f32.mrb[254].mxu1  ;;  %v6327_v40 = vld [vmem:[%s10225_s24 + $0xc] sm:$0xf] }
 0x3a5   : > { %v5212_v32 = vmax.f32 %v5180_v49, 0.0  ;;  %v5181_v59 = vadd.f32 %v7426_v44, %v10380_v6  ;;  %v6993_v41 = vpop.f32.mrb[255].mxu1 }
 0x3a6   : > { %v5210_v33 = vmax.f32 %v5178_v0, 0.0  ;;  %v5179_v46 = vadd.f32 %v7428_v43, %v10380_v6  ;;  %v10396_v37 = vadd.f32 %v6991_v50, %v10282_v63  ;;  %v6994_v2 = vadd.f32 %v6993_v41, %v6992_v48 }
 0x3a7   : > { %v6412_v20 = vpack.c.bf16 %v5212_v32, %v5212_v32  ;;  %v5213_v58 = vmax.f32 %v5181_v59, 0.0 }
 0x3a8   : > { %v6410_v30 = vpack.c.bf16 %v5210_v33, %v5210_v33  ;;  %v5211_v47 = vmax.f32 %v5179_v46, 0.0  ;;  %v7395_v15 = vpop.f32.mrb[4].mxu0  ;;  %v10400_v12 = vadd.f32 %v6994_v2, %v10285_v18 }
 0x3a9   : > { %v5360_v28 = vshrl.u32 %v6412_v20, 16  ;;  %v5363_v60 = vshll.u32 %v6412_v20, 16  ;;  %v6413_v31 = vpack.c.bf16 %v5213_v58, %v5213_v58  ;;  %v7430_v10 = vadd.f32 %v10358_v38, %v7395_v15  ;;  %v5028_v22 = vpop.f32.mrb[5].mxu0  ;;  %v6332_v38 = vld [vmem:[%s10225_s24 + $0x18] sm:$0xf] }
 0x3aa   : > { %v5343_v57 = vshrl.u32 %v6410_v30, 16  ;;  %v5346_v23 = vshll.u32 %v6410_v30, 16  ;;  %v6411_v61 = vpack.c.bf16 %v5211_v47, %v5211_v47  ;;  %v7396_v63 = vpop.f32.mrb[6].mxu0  ;;  %v6995_v0 = vpop.f32.mrb[0].mxu1  ;;  %v7432_v43 = vadd.f32 %v10350_v35, %v5028_v22  ;;  %v6335_v58 = vld [vmem:[%s10225_s24 + $0x20] sm:$0x1] }
 0x3ab   : > { %v5362_v27 = vrot.slane %v5360_v28, 7  ;;  %v5368_v42 = vshrl.u32 %v6413_v31, 16  ;;  %v5371_v36 = vshll.u32 %v6413_v31, 16  ;;  %v5184_v19 = vadd.f32 %v7430_v10, %v10380_v6  ;;  %v5031_v49 = vpop.f32.mrb[7].mxu0  ;;  %v6996_v48 = vpop.f32.mrb[1].mxu1 }
 0x3ac   : > { %v5345_v1 = vrot.slane %v5343_v57, 7  ;;  %v5351_v18 = vshrl.u32 %v6411_v61, 16  ;;  %v5354_v34 = vshll.u32 %v6411_v61, 16  ;;  %v6997_v30 = vadd.f32 %v6996_v48, %v6995_v0  ;;  %v6998_v2 = vpop.f32.mrb[2].mxu1 }
 0x3ad   : > { %v5365_v11 = vor.u32 %v5363_v60, %v5362_v27  ;;  %v5366_v32 = vrot.slane %v5362_v27, 4  ;;  %v5370_v50 = vrot.slane %v5368_v42, 7  ;;  %v5216_v33 = vmax.f32 %v5184_v19, 0.0  ;;  %v6330_v60 = vld [vmem:[%s10225_s24 + $0x14] sm:$0x1]  ;;  %v6999_v10 = vpop.f32.mrb[3].mxu1 }
 0x3ae   : > { %v5348_v46 = vor.u32 %v5346_v23, %v5345_v1  ;;  %v5349_v20 = vrot.slane %v5345_v1, 4  ;;  %v5353_v41 = vrot.slane %v5351_v18, 7  ;;  %v10432_v61 = vadd.f32 %v6997_v30, %v10288_v52 }
 0x3af   : > { %v5678_v47 = vsel %vm10405_vm15, %v5365_v11, %v6332_v38  ;;  %v5373_v15 = vor.u32 %v5371_v36, %v5370_v50  ;;  %v5375_v28 = vrot.slane %v5370_v50, 4  ;;  %v6416_v31 = vpack.c.bf16 %v5216_v33, %v5216_v33 }
 0x3b0   : > { %6333 = vst [vmem:[%s10225_s24 + $0x18] sm:$0xf] %v5678_v47  ;;  %v5669_v22 = vsel %vm10405_vm15, %v5348_v46, %v6327_v40  ;;  %v5356_v57 = vor.u32 %v5354_v34, %v5353_v41  ;;  %v5358_v23 = vrot.slane %v5353_v41, 4  ;;  %v7399_v27 = vpop.f32.mrb[8].mxu0  ;;  %v5182_v34 = vadd.f32 %v7432_v43, %v10380_v6  ;;  %v6342_v46 = vld [vmem:[%s10225_s24 + $0x30] sm:$0xf] }
 0x3b1   : > { %6328 = vst [vmem:[%s10225_s24 + $0xc] sm:$0xf] %v5669_v22  ;;  %v5374_v42 = vsel %vm10414_vm0, %v5366_v32, %v5373_v15  ;;  %v5682_v36 = vsel %vm10420_vm1, %v5375_v28, %v6335_v58  ;;  %v5394_v19 = vshrl.u32 %v6416_v31, 16  ;;  %v5397_v38 = vshll.u32 %v6416_v31, 16  ;;  %v5044_v1 = vpop.f32.mrb[9].mxu0 }
 0x3b2   : > { %6334 = vst [vmem:[%s10225_s24 + $0x1c] sm:$0xf] %v5374_v42  ;;  %6336 = vst [vmem:[%s10225_s24 + $0x20] sm:$0x1] %v5682_v36  ;;  %v5357_v18 = vsel %vm10414_vm0, %v5349_v20, %v5356_v57  ;;  %v5675_v52 = vsel %vm10420_vm1, %v5358_v23, %v6330_v60  ;;  %v7434_v0 = vadd.f32 %v10361_v8, %v7396_v63  ;;  %v7400_v11 = vpop.f32.mrb[10].mxu0  ;;  %v5214_v20 = vmax.f32 %v5182_v34, 0.0 }
 0x3b3   : > { %6329 = vst [vmem:[%s10225_s24 + $0x10] sm:$0xf] %v5357_v18  ;;  %6331 = vst [vmem:[%s10225_s24 + $0x14] sm:$0x1] %v5675_v52  ;;  %v10449_v32 = vrot.slane %v5394_v19, 7  ;;  %v7000_v40 = vadd.f32 %v6999_v10, %v6998_v2  ;;  %v7436_v50 = vadd.f32 %v10353_v24, %v5031_v49  ;;  %v7438_v33 = vadd.f32 %v10374_v53, %v7399_v27  ;;  %v10453_v48 = vpop.f32.mrb[11].mxu0 }
 0x3b4   : > { %v5185_v58 = vadd.f32 %v7434_v0, %v10380_v6  ;;  %v7001_v41 = vpop.f32.mrb[4].mxu1  ;;  %v7440_v43 = vadd.f32 %v10366_v4, %v5044_v1  ;;  %v7442_v8 = vadd.f32 %v10377_v55, %v7400_v11  ;;  %v6414_v2 = vpack.c.bf16 %v5214_v20, %v5214_v20 }
 0x3b5   : > { %v5399_v63 = vor.u32 %v5397_v38, %v10449_v32  ;;  %v5400_v30 = vrot.slane %v10449_v32, 4  ;;  %v10462_v24 = vadd.f32 %v7000_v40, %v10291_v14  ;;  %v5183_v53 = vadd.f32 %v7436_v50, %v10380_v6  ;;  %v7002_v49 = vpop.f32.mrb[5].mxu1  ;;  %v6337_v40 = vld [vmem:[%s10225_s24 + $0x24] sm:$0xf] }
 0x3b6   : > { %v5217_v47 = vmax.f32 %v5185_v58, 0.0  ;;  %v5188_v15 = vadd.f32 %v7438_v33, %v10380_v6  ;;  %v7003_v28 = vadd.f32 %v7002_v49, %v7001_v41  ;;  %v10466_v60 = vpop.f32.mrb[6].mxu1  ;;  %v5186_v31 = vadd.f32 %v7440_v43, %v10380_v6 }
 0x3b7   : > { %v5692_v4 = vsel %vm10405_vm15, %v5399_v63, %v6342_v46  ;;  %v5215_v55 = vmax.f32 %v5183_v53, 0.0  ;;  %v5189_v10 = vadd.f32 %v7442_v8, %v10380_v6  ;;  %v10472_v14 = vpop.f32.mrb[7].mxu1  ;;  %v5377_v22 = vshrl.u32 %v6414_v2, 16  ;;  %v6345_v8 = vld [vmem:[%s10225_s24 + $0x38] sm:$0x1] }
 0x3b8   : > { %6343 = vst [vmem:[%s10225_s24 + $0x30] sm:$0xf] %v5692_v4  ;;  %v5380_v57 = vshll.u32 %v6414_v2, 16  ;;  %v6417_v23 = vpack.c.bf16 %v5217_v47, %v5217_v47  ;;  %v5220_v27 = vmax.f32 %v5188_v15, 0.0  ;;  %v10475_v42 = vpop.f32.mrb[12].mxu0  ;;  %v10478_v19 = vadd.f32 %v7003_v28, %v10294_v54 }
 0x3b9   : > { %v6415_v36 = vpack.c.bf16 %v5215_v55, %v5215_v55  ;;  %v5218_v38 = vmax.f32 %v5186_v31, 0.0  ;;  %v5221_v1 = vmax.f32 %v5189_v10, 0.0  ;;  %v10480_v18 = vpop.f32.mrb[13].mxu0  ;;  %v5379_v52 = vrot.slane %v5377_v22, 7  ;;  %v6340_v10 = vld [vmem:[%s10225_s24 + $0x2c] sm:$0x1] }
 0x3ba   : > { %v5402_v34 = vshrl.u32 %v6417_v23, 16  ;;  %v5405_v0 = vshll.u32 %v6417_v23, 16  ;;  %v6420_v11 = vpack.c.bf16 %v5220_v27, %v5220_v27  ;;  %v10482_v32 = vpop.f32.mrb[14].mxu0  ;;  %v7007_v53 = vpop.f32.mrb[8].mxu1 }
 0x3bb   : > { %v5385_v50 = vshrl.u32 %v6415_v36, 16  ;;  %v5388_v33 = vshll.u32 %v6415_v36, 16  ;;  %v6418_v46 = vpack.c.bf16 %v5218_v38, %v5218_v38  ;;  %v6421_v20 = vpack.c.bf16 %v5221_v1, %v5221_v1  ;;  %v10485_v58 = vpop.f32.mrb[15].mxu0  ;;  %v7008_v28 = vpop.f32.mrb[9].mxu1  ;;  %v6352_v36 = vld [vmem:[%s10225_s24 + $0x48] sm:$0xf] }
 0x3bc   : > { %v5382_v54 = vor.u32 %v5380_v57, %v5379_v52  ;;  %v5383_v41 = vrot.slane %v5379_v52, 4  ;;  %v5404_v43 = vrot.slane %v5402_v34, 7  ;;  %v5428_v63 = vshrl.u32 %v6420_v11, 16  ;;  %v7010_v57 = vpop.f32.mrb[10].mxu1 }
 0x3bd   : > { %v5387_v49 = vrot.slane %v5385_v50, 7  ;;  %v5431_v2 = vshll.u32 %v6420_v11, 16  ;;  %v5411_v47 = vshrl.u32 %v6418_v46, 16  ;;  %v5414_v15 = vshll.u32 %v6418_v46, 16  ;;  %v7011_v52 = vpop.f32.mrb[11].mxu1 }
 0x3be   : > { %v5685_v4 = vsel %vm10405_vm15, %v5382_v54, %v6337_v40  ;;  %v5407_v55 = vor.u32 %v5405_v0, %v5404_v43  ;;  %v5409_v31 = vrot.slane %v5404_v43, 4  ;;  %v5430_v22 = vrot.slane %v5428_v63, 7  ;;  %v6347_v50 = vld [vmem:[%s10225_s24 + $0x3c] sm:$0xf] }
 0x3bf   : > { %6338 = vst [vmem:[%s10225_s24 + $0x24] sm:$0xf] %v5685_v4  ;;  %v5390_v23 = vor.u32 %v5388_v33, %v5387_v49  ;;  %v5392_v27 = vrot.slane %v5387_v49, 4  ;;  %v10493_v38 = vrot.slane %v5411_v47, 7  ;;  %v5436_v1 = vshrl.u32 %v6421_v20, 16 }
 0x3c0   : > { %v5408_v34 = vsel %vm10414_vm0, %v5400_v30, %v5407_v55  ;;  %v5696_v0 = vsel %vm10420_vm1, %v5409_v31, %v6345_v8  ;;  %v5433_v11 = vor.u32 %v5431_v2, %v5430_v22  ;;  %v5434_v40 = vrot.slane %v5430_v22, 4  ;;  %v7407_v46 = vpop.f32.mrb[16].mxu0  ;;  %v6355_v4 = vld [vmem:[%s10225_s24 + $0x50] sm:$0x1]  ;;  %v11331_v31 = vld [vmem:[#allocation100_spill] sm:$0xff] }
 0x3c1   : > { %6344 = vst [vmem:[%s10225_s24 + $0x34] sm:$0xf] %v5408_v34  ;;  %6346 = vst [vmem:[%s10225_s24 + $0x38] sm:$0x1] %v5696_v0  ;;  %v5391_v33 = vsel %vm10414_vm0, %v5383_v41, %v5390_v23  ;;  %v5689_v54 = vsel %vm10420_vm1, %v5392_v27, %v6340_v10  ;;  %v5416_v43 = vor.u32 %v5414_v15, %v10493_v38  ;;  %v5417_v30 = vrot.slane %v10493_v38, 4  ;;  %v10508_v8 = vpop.f32.mrb[17].mxu0 }
 0x3c2   : > { %6339 = vst [vmem:[%s10225_s24 + $0x28] sm:$0xf] %v5391_v33  ;;  %6341 = vst [vmem:[%s10225_s24 + $0x2c] sm:$0x1] %v5689_v54  ;;  %v5706_v63 = vsel %vm10405_vm15, %v5433_v11, %v6352_v36  ;;  %v5438_v49 = vrot.slane %v5436_v1, 7  ;;  %v5439_v2 = vshll.u32 %v6421_v20, 16  ;;  %v7006_v41 = vadd.f32 %v10472_v14, %v10466_v60 }
 0x3c3   : > { %v10516_v47 = vpop.f32.mrb[18].mxu0  ;;  %6353 = vst [vmem:[%s10225_s24 + $0x48] sm:$0xf] %v5706_v63  ;;  %v5699_v15 = vsel %vm10405_vm15, %v5416_v43, %v6347_v50  ;;  %v7444_v55 = vadd.f32 %v10369_v9, %v10453_v48  ;;  %v7445_v10 = vadd.f32 %v11331_v31, %v10396_v37  ;;  %v7009_v22 = vadd.f32 %v7008_v28, %v7007_v53  ;;  %v7013_v36 = vpop.f32.mrb[12].mxu1  ;;  %v11332_v53 = vld [vmem:[#allocation102_spill] sm:$0xff] }
 0x3c4   : > { %v10526_v23 = vpop.f32.mrb[19].mxu0  ;;  %6348 = vst [vmem:[%s10225_s24 + $0x3c] sm:$0xf] %v5699_v15  ;;  %v5441_v20 = vor.u32 %v5439_v2, %v5438_v49  ;;  %v5443_v60 = vrot.slane %v5438_v49, 4  ;;  %v10530_v14 = vadd.f32 %v7006_v41, %v10297_v16  ;;  %v7448_v27 = vadd.f32 %v10385_v51, %v10480_v18  ;;  %v7014_v1 = vpop.f32.mrb[13].mxu1 }
 0x3c5   : > { %v5187_v9 = vadd.f32 %v7444_v55, %v10380_v6  ;;  %v7446_v48 = vadd.f32 %v7445_v10, %v10475_v42  ;;  %v10537_v37 = vadd.f32 %v7009_v22, %v10300_v39  ;;  %v7449_v28 = vadd.f32 %v11332_v53, %v10400_v12  ;;  %v10546_v0 = vpop.f32.mrb[14].mxu1 }
 0x3c6   : > { %v5442_v34 = vsel %vm10414_vm0, %v5434_v40, %v5441_v20  ;;  %v5710_v16 = vsel %vm10420_vm1, %v5443_v60, %v6355_v4  ;;  %v5190_v51 = vadd.f32 %v7448_v27, %v10380_v6  ;;  %v7012_v18 = vadd.f32 %v7011_v52, %v7010_v57  ;;  %v10554_v50 = vpop.f32.mrb[15].mxu1  ;;  %v11333_v57 = vld [vmem:[#allocation104_spill] sm:$0xff] }
 0x3c7   : > { %6354 = vst [vmem:[%s10225_s24 + $0x4c] sm:$0xf] %v5442_v34  ;;  %6356 = vst [vmem:[%s10225_s24 + $0x50] sm:$0x1] %v5710_v16  ;;  %v5219_v42 = vmax.f32 %v5187_v9, 0.0  ;;  %v5192_v39 = vadd.f32 %v7446_v48, %v10380_v6  ;;  %v7450_v11 = vadd.f32 %v7449_v28, %v10482_v32  ;;  %v7452_v12 = vadd.f32 %v10391_v26, %v10485_v58 }
 0x3c8   : > { %v5222_v40 = vmax.f32 %v5190_v51, 0.0  ;;  %v10557_v33 = vadd.f32 %v7012_v18, %v10303_v45  ;;  %v7453_v52 = vadd.f32 %v11333_v57, %v10478_v19  ;;  %v7015_v54 = vadd.f32 %v7014_v1, %v7013_v36  ;;  %v10561_v43 = vpop.f32.mrb[20].mxu0  ;;  %v11334_v45 = vld [vmem:[#allocation105_spill] sm:$0xff]  ;;  %v6350_v1 = vld [vmem:[%s10225_s24 + $0x44] sm:$0x1] }
 0x3c9   : > { %v6419_v63 = vpack.c.bf16 %v5219_v42, %v5219_v42  ;;  %v5224_v49 = vmax.f32 %v5192_v39, 0.0  ;;  %v5193_v2 = vadd.f32 %v7450_v11, %v10380_v6  ;;  %v5191_v32 = vadd.f32 %v7452_v12, %v10380_v6  ;;  %v10565_v41 = vpop.f32.mrb[21].mxu0 }
 0x3ca   : > { %v6422_v26 = vpack.c.bf16 %v5222_v40, %v5222_v40  ;;  %v7454_v58 = vadd.f32 %v7453_v52, %v7407_v46  ;;  %v10568_v15 = vadd.f32 %v7015_v54, %v10306_v29  ;;  %v7455_v4 = vadd.f32 %v10432_v61, %v11334_v45  ;;  %v10572_v19 = vpop.f32.mrb[22].mxu0  ;;  %v10577_v29 = vpop.f32.mrb[16].mxu1  ;;  %v6357_v40 = vld [vmem:[%s10225_s24 + $0x54] sm:$0xf]  ;;  %v6362_v54 = vld [vmem:[%s10225_s24 + $0x60] sm:$0xf] }
 0x3cb   : > { %v5419_v55 = vshrl.u32 %v6419_v63, 16  ;;  %v5422_v31 = vshll.u32 %v6419_v63, 16  ;;  %v6424_v10 = vpack.c.bf16 %v5224_v49, %v5224_v49  ;;  %v5225_v22 = vmax.f32 %v5193_v2, 0.0  ;;  %v10574_v20 = vpop.f32.mrb[23].mxu0  ;;  %v10579_v28 = vpop.f32.mrb[17].mxu1 }
 0x3cc   : > { %v5445_v60 = vshrl.u32 %v6422_v26, 16  ;;  %v5448_v27 = vshll.u32 %v6422_v26, 16  ;;  %v5223_v36 = vmax.f32 %v5191_v32, 0.0  ;;  %v5196_v46 = vadd.f32 %v7454_v58, %v10380_v6  ;;  %v10583_v42 = vpop.f32.mrb[18].mxu1 }
 0x3cd   : > { %v5421_v9 = vrot.slane %v5419_v55, 7  ;;  %v5462_v48 = vshrl.u32 %v6424_v10, 16  ;;  %v5465_v61 = vshll.u32 %v6424_v10, 16  ;;  %v6425_v53 = vpack.c.bf16 %v5225_v22, %v5225_v22  ;;  %v10586_v52 = vpop.f32.mrb[19].mxu1 }
 0x3ce   : > { %v5447_v34 = vrot.slane %v5445_v60, 7  ;;  %v6423_v16 = vpack.c.bf16 %v5223_v36, %v5223_v36  ;;  %v5228_v51 = vmax.f32 %v5196_v46, 0.0  ;;  %v7456_v18 = vadd.f32 %v7455_v4, %v10508_v8  ;;  %v6360_v36 = vld [vmem:[%s10225_s24 + $0x5c] sm:$0x1] }
 0x3cf   : > { %v5424_v39 = vor.u32 %v5422_v31, %v5421_v9  ;;  %v5426_v11 = vrot.slane %v5421_v9, 4  ;;  %v5464_v12 = vrot.slane %v5462_v48, 7  ;;  %v5470_v57 = vshrl.u32 %v6425_v53, 16  ;;  %v11335_v48 = vld [vmem:[#allocation106_spill] sm:$0xff] }
 0x3d0   : > { %v5450_v63 = vor.u32 %v5448_v27, %v5447_v34  ;;  %v5451_v49 = vrot.slane %v5447_v34, 4  ;;  %v5473_v2 = vshll.u32 %v6425_v53, 16  ;;  %v5453_v32 = vshrl.u32 %v6423_v16, 16  ;;  %v10589_v26 = vpop.f32.mrb[24].mxu0  ;;  %v6365_v27 = vld [vmem:[%s10225_s24 + $0x68] sm:$0x1] }
 0x3d1   : > { %v5425_v8 = vsel %vm10414_vm0, %v5417_v30, %v5424_v39  ;;  %v5703_v58 = vsel %vm10420_vm1, %v5426_v11, %v6350_v1  ;;  %v5467_v45 = vor.u32 %v5465_v61, %v5464_v12  ;;  %v5468_v4 = vrot.slane %v5464_v12, 4  ;;  %v10597_v55 = vpop.f32.mrb[25].mxu0 }
 0x3d2   : > { %6349 = vst [vmem:[%s10225_s24 + $0x40] sm:$0xf] %v5425_v8  ;;  %6351 = vst [vmem:[%s10225_s24 + $0x44] sm:$0x1] %v5703_v58  ;;  %v5713_v31 = vsel %vm10405_vm15, %v5450_v63, %v6357_v40  ;;  %v5472_v10 = vrot.slane %v5470_v57, 7  ;;  %v5455_v22 = vrot.slane %v5453_v32, 7  ;;  %v6428_v46 = vpack.c.bf16 %v5228_v51, %v5228_v51 }
 0x3d3   : > { %v5456_v38 = vshll.u32 %v6423_v16, 16  ;;  %v10603_v60 = vpop.f32.mrb[26].mxu0  ;;  %v5720_v30 = vsel %vm10405_vm15, %v5467_v45, %v6362_v54  ;;  %6358 = vst [vmem:[%s10225_s24 + $0x54] sm:$0xf] %v5713_v31  ;;  %v5194_v9 = vadd.f32 %v7456_v18, %v10380_v6  ;;  %v7457_v61 = vadd.f32 %v11335_v48, %v10530_v14  ;;  %v10616_v11 = vpop.f32.mrb[20].mxu1  ;;  %v11336_v31 = vld [vmem:[#allocation107_spill] sm:$0xff] }
 0x3d4   : > { %v10613_v53 = vpop.f32.mrb[27].mxu0  ;;  %6363 = vst [vmem:[%s10225_s24 + $0x60] sm:$0xf] %v5720_v30  ;;  %v5475_v1 = vor.u32 %v5473_v2, %v5472_v10  ;;  %v5477_v34 = vrot.slane %v5472_v10, 4  ;;  %v5460_v39 = vrot.slane %v5455_v22, 4  ;;  %v5496_v12 = vshrl.u32 %v6428_v46, 16 }
 0x3d5   : > { %v5458_v16 = vor.u32 %v5456_v38, %v5455_v22  ;;  %v5499_v51 = vshll.u32 %v6428_v46, 16  ;;  %v5226_v40 = vmax.f32 %v5194_v9, 0.0  ;;  %v7458_v18 = vadd.f32 %v7457_v61, %v10516_v47  ;;  %v10619_v14 = vpop.f32.mrb[21].mxu1  ;;  %v11337_v22 = vld [vmem:[#allocation41_spill] sm:$0xff] }
 0x3d6   : > { %v5476_v57 = vsel %vm10414_vm0, %v5468_v4, %v5475_v1  ;;  %v5724_v54 = vsel %vm10420_vm1, %v5477_v34, %v6365_v27  ;;  %v5717_v2 = vsel %vm10420_vm1, %v5460_v39, %v6360_v36  ;;  %v10629_v32 = vpop.f32.mrb[22].mxu1  ;;  %v10635_v47 = vrot.slane %v5496_v12, 7  ;;  %v11338_v27 = vld [vmem:[#allocation42_spill] sm:$0xff] }
 0x3d7   : > { %v5459_v63 = vsel %vm10414_vm0, %v5451_v49, %v5458_v16  ;;  %6364 = vst [vmem:[%s10225_s24 + $0x64] sm:$0xf] %v5476_v57  ;;  %6366 = vst [vmem:[%s10225_s24 + $0x68] sm:$0x1] %v5724_v54  ;;  %v6426_v8 = vpack.c.bf16 %v5226_v40, %v5226_v40  ;;  %v5197_v58 = vadd.f32 %v7458_v18, %v10380_v6  ;;  %v10640_v4 = vpop.f32.mrb[23].mxu1  ;;  %v11339_v40 = vld [vmem:[#allocation43_spill] sm:$0xff] }
 0x3d8   : > { %6359 = vst [vmem:[%s10225_s24 + $0x58] sm:$0xf] %v5459_v63  ;;  %6361 = vst [vmem:[%s10225_s24 + $0x5c] sm:$0x1] %v5717_v2  ;;  %v7018_v45 = vadd.f32 %v10554_v50, %v10546_v0  ;;  %v6372_v49 = vld [vmem:[%s10225_s24 + $0x78] sm:$0xf]  ;;  %v7459_v10 = vadd.f32 %v10462_v24, %v11336_v31  ;;  %v7461_v38 = vadd.f32 %v11337_v22, %v10568_v15 }
 0x3d9   : > { %v7021_v30 = vadd.f32 %v10579_v28, %v10577_v29  ;;  %v7463_v36 = vadd.f32 %v10537_v37, %v11338_v27  ;;  %v10651_v46 = vpop.f32.mrb[28].mxu0  ;;  %v5501_v0 = vor.u32 %v5499_v51, %v10635_v47  ;;  %v5502_v50 = vrot.slane %v10635_v47, 4  ;;  %v6367_v51 = vld [vmem:[%s10225_s24 + $0x6c] sm:$0xf] }
 0x3da   : > { %v5479_v9 = vshrl.u32 %v6426_v8, 16  ;;  %v5482_v48 = vshll.u32 %v6426_v8, 16  ;;  %v10655_v24 = vpop.f32.mrb[29].mxu0  ;;  %v5229_v61 = vmax.f32 %v5197_v58, 0.0  ;;  %v4943_v15 = vadd.f32 %v7018_v45, %v10309_v56  ;;  %v10675_v57 = vpop.f32.mrb[24].mxu1 }
 0x3db   : > { %v7460_v29 = vadd.f32 %v7459_v10, %v10526_v23  ;;  %v7462_v28 = vadd.f32 %v7461_v38, %v10561_v43  ;;  %v10660_v37 = vpop.f32.mrb[30].mxu0  ;;  %v5734_v1 = vsel %vm10405_vm15, %v5501_v0, %v6372_v49  ;;  %v4948_v16 = vadd.f32 %v7021_v30, %v10312_v25  ;;  %v10682_v2 = vpop.f32.mrb[25].mxu1 }
 0x3dc   : > { %v10664_v34 = vrot.slane %v5479_v9, 7  ;;  %v7464_v39 = vadd.f32 %v7463_v36, %v10565_v41  ;;  %v10668_v12 = vpop.f32.mrb[31].mxu0  ;;  %6373 = vst [vmem:[%s10225_s24 + $0x78] sm:$0xf] %v5734_v1  ;;  %v6429_v56 = vpack.c.bf16 %v5229_v61, %v5229_v61  ;;  %v7465_v18 = vadd.f32 %v11339_v40, %v4943_v15  ;;  %v10684_v49 = vpop.f32.mrb[26].mxu1  ;;  %v11340_v36 = vld [vmem:[#allocation46_spill] sm:$0xff] }
 0x3dd   : > { %v5195_v23 = vadd.f32 %v7460_v29, %v10380_v6  ;;  %v5200_v43 = vadd.f32 %v7462_v28, %v10380_v6  ;;  %v7024_v63 = vadd.f32 %v10586_v52, %v10583_v42  ;;  %v10690_v30 = vpop.f32.mrb[27].mxu1  ;;  %v7467_v0 = vadd.f32 %v10557_v33, %v11340_v36  ;;  %v6375_v9 = vld [vmem:[%s10225_s24 + $0x80] sm:$0x1]  ;;  %v6370_v40 = vld [vmem:[%s10225_s24 + $0x74] sm:$0x1] }
 0x3de   : > { %v5484_v54 = vor.u32 %v5482_v48, %v10664_v34  ;;  %v5485_v25 = vrot.slane %v10664_v34, 4  ;;  %v5198_v41 = vadd.f32 %v7464_v39, %v10380_v6  ;;  %v5504_v47 = vshrl.u32 %v6429_v56, 16 }
 0x3df   : > { %v5507_v8 = vshll.u32 %v6429_v56, 16  ;;  %v5227_v58 = vmax.f32 %v5195_v23, 0.0  ;;  %v5232_v45 = vmax.f32 %v5200_v43, 0.0  ;;  %v7466_v22 = vadd.f32 %v7465_v18, %v10572_v19  ;;  %v11341_v19 = vld [vmem:[#allocation109_spill] sm:$0xff] }
 0x3e0   : > { %v5727_v31 = vsel %vm10405_vm15, %v5484_v54, %v6367_v51  ;;  %v5230_v10 = vmax.f32 %v5198_v41, 0.0  ;;  %v4951_v38 = vadd.f32 %v7024_v63, %v10315_v7  ;;  %v5506_v42 = vrot.slane %v5504_v47, 7 }
 0x3e1   : > { %6368 = vst [vmem:[%s10225_s24 + $0x6c] sm:$0xf] %v5727_v31  ;;  %v6427_v52 = vpack.c.bf16 %v5227_v58, %v5227_v58  ;;  %v6432_v27 = vpack.c.bf16 %v5232_v45, %v5232_v45  ;;  %v5201_v61 = vadd.f32 %v7466_v22, %v10380_v6  ;;  %v7027_v15 = vadd.f32 %v10619_v14, %v10616_v11  ;;  %v6382_v58 = vld [vmem:[%s10225_s24 + $0x90] sm:$0xf]  ;;  %v6377_v45 = vld [vmem:[%s10225_s24 + $0x84] sm:$0xf] }
 0x3e2   : > { %v6430_v48 = vpack.c.bf16 %v5230_v10, %v5230_v10  ;;  %v7471_v7 = vadd.f32 %v4948_v16, %v11341_v19  ;;  %v5509_v29 = vor.u32 %v5507_v8, %v5506_v42  ;;  %v5511_v28 = vrot.slane %v5506_v42, 4  ;;  %v10704_v16 = vpop.f32.mrb[28].mxu1  ;;  %v11342_v19 = vld [vmem:[#allocation108_spill] sm:$0xff] }
 0x3e3   : > { %v5487_v1 = vshrl.u32 %v6427_v52, 16  ;;  %v5490_v34 = vshll.u32 %v6427_v52, 16  ;;  %v5530_v39 = vshrl.u32 %v6432_v27, 16  ;;  %v5533_v51 = vshll.u32 %v6432_v27, 16  ;;  %v10713_v47 = vpop.f32.mrb[29].mxu1 }
 0x3e4   : > { %v5513_v56 = vshrl.u32 %v6430_v48, 16  ;;  %v5516_v33 = vshll.u32 %v6430_v48, 16  ;;  %v5510_v23 = vsel %vm10414_vm0, %v5502_v50, %v5509_v29  ;;  %v5738_v11 = vsel %vm10420_vm1, %v5511_v28, %v6375_v9  ;;  %v10718_v22 = vpop.f32.mrb[30].mxu1 }
 0x3e5   : > { %v5489_v14 = vrot.slane %v5487_v1, 7  ;;  %v5233_v43 = vmax.f32 %v5201_v61, 0.0  ;;  %6374 = vst [vmem:[%s10225_s24 + $0x7c] sm:$0xf] %v5510_v23  ;;  %6376 = vst [vmem:[%s10225_s24 + $0x80] sm:$0x1] %v5738_v11  ;;  %v7468_v41 = vadd.f32 %v7467_v0, %v10574_v20  ;;  %v4956_v63 = vadd.f32 %v7027_v15, %v10318_v5 }
 0x3e6   : > { %v5532_v18 = vrot.slane %v5530_v39, 7  ;;  %v10709_v54 = vrot.slane %v5513_v56, 7  ;;  %v7472_v10 = vadd.f32 %v7471_v7, %v10597_v55  ;;  %v10722_v27 = vpop.f32.mrb[31].mxu1  ;;  %v7030_v28 = vadd.f32 %v10640_v4, %v10629_v32  ;;  %v11343_v1 = vld [vmem:[#allocation50_spill] sm:$0xff] }
 0x3e7   : > { %v5492_v50 = vor.u32 %v5490_v34, %v5489_v14  ;;  %v5494_v8 = vrot.slane %v5489_v14, 4  ;;  %v6433_v31 = vpack.c.bf16 %v5233_v43, %v5233_v43  ;;  %v5199_v15 = vadd.f32 %v7468_v41, %v10380_v6  ;;  %v6385_v39 = vld [vmem:[%s10225_s24 + $0x98] sm:$0x1] }
 0x3e8   : > { %v5535_v42 = vor.u32 %v5533_v51, %v5532_v18  ;;  %v5536_v52 = vrot.slane %v5532_v18, 4  ;;  %v5518_v20 = vor.u32 %v5516_v33, %v10709_v54  ;;  %v5519_v5 = vrot.slane %v10709_v54, 4 }
 0x3e9   : > { %v5493_v36 = vsel %vm10414_vm0, %v5485_v25, %v5492_v50  ;;  %v5731_v0 = vsel %vm10420_vm1, %v5494_v8, %v6370_v40  ;;  %v5538_v55 = vshrl.u32 %v6433_v31, 16  ;;  %v5541_v9 = vshll.u32 %v6433_v31, 16 }
 0x3ea   : > { %6369 = vst [vmem:[%s10225_s24 + $0x70] sm:$0xf] %v5493_v36  ;;  %6371 = vst [vmem:[%s10225_s24 + $0x74] sm:$0x1] %v5731_v0  ;;  %v5748_v48 = vsel %vm10405_vm15, %v5535_v42, %v6382_v58  ;;  %v5741_v61 = vsel %vm10405_vm15, %v5518_v20, %v6377_v45  ;;  %v7469_v7 = vadd.f32 %v11342_v19, %v4956_v63  ;;  %v5231_v51 = vmax.f32 %v5199_v15, 0.0  ;;  %v11345_v58 = vld [vmem:[#allocation111_spill] sm:$0xff] }
 0x3eb   : > { %6383 = vst [vmem:[%s10225_s24 + $0x90] sm:$0xf] %v5748_v48  ;;  %6378 = vst [vmem:[%s10225_s24 + $0x84] sm:$0xf] %v5741_v61  ;;  %v5540_v25 = vrot.slane %v5538_v55, 7  ;;  %v5202_v29 = vadd.f32 %v7472_v10, %v10380_v6  ;;  %v7475_v34 = vadd.f32 %v4951_v38, %v11343_v1  ;;  %v7033_v33 = vadd.f32 %v10682_v2, %v10675_v57 }
 0x3ec   : > { %v7470_v56 = vadd.f32 %v7469_v7, %v10589_v26  ;;  %v7036_v23 = vadd.f32 %v10690_v30, %v10684_v49  ;;  %v4959_v40 = vadd.f32 %v7030_v28, %v10321_v62  ;;  %v6431_v32 = vpack.c.bf16 %v5231_v51, %v5231_v51  ;;  %v11344_v49 = vld [vmem:[#allocation47_spill] sm:$0xff]  ;;  %v6380_v20 = vld [vmem:[%s10225_s24 + $0x8c] sm:$0x1]  ;;  %v6392_v1 = vld [vmem:[%s10225_s24 + $0xa8] sm:$0xf] }
 0x3ed   : > { %v5543_v11 = vor.u32 %v5541_v9, %v5540_v25  ;;  %v5545_v14 = vrot.slane %v5540_v25, 4  ;;  %v5234_v43 = vmax.f32 %v5202_v29, 0.0  ;;  %v7476_v38 = vadd.f32 %v7475_v34, %v10613_v53  ;;  %v6387_v19 = vld [vmem:[%s10225_s24 + $0x9c] sm:$0xf] }
 0x3ee   : > { %v5204_v4 = vadd.f32 %v7470_v56, %v10380_v6  ;;  %v4964_v18 = vadd.f32 %v7033_v33, %v10324_v3  ;;  %v7473_v30 = vadd.f32 %v11344_v49, %v4959_v40  ;;  %v5521_v62 = vshrl.u32 %v6431_v32, 16 }
 0x3ef   : > { %v5544_v26 = vsel %vm10414_vm0, %v5536_v52, %v5543_v11  ;;  %v5752_v57 = vsel %vm10420_vm1, %v5545_v14, %v6385_v39  ;;  %v6434_v2 = vpack.c.bf16 %v5234_v43, %v5234_v43  ;;  %v5524_v41 = vshll.u32 %v6431_v32, 16 }
 0x3f0   : > { %6384 = vst [vmem:[%s10225_s24 + $0x94] sm:$0xf] %v5544_v26  ;;  %6386 = vst [vmem:[%s10225_s24 + $0x98] sm:$0x1] %v5752_v57  ;;  %v5236_v63 = vmax.f32 %v5204_v4, 0.0  ;;  %v5203_v50 = vadd.f32 %v7476_v38, %v10380_v6  ;;  %v7474_v3 = vadd.f32 %v7473_v30, %v10603_v60  ;;  %v7479_v45 = vadd.f32 %v4964_v18, %v11345_v58 }
 0x3f1   : > { %v5547_v53 = vshrl.u32 %v6434_v2, 16  ;;  %v5550_v8 = vshll.u32 %v6434_v2, 16  ;;  %v5523_v31 = vrot.slane %v5521_v62, 7  ;;  %v4967_v52 = vadd.f32 %v7036_v23, %v10327_v13  ;;  %v11346_v23 = vld [vmem:[#allocation55_spill] sm:$0xff]  ;;  %v11347_v62 = vld [vmem:[#allocation110_spill] sm:$0xff] }
 0x3f2   : > { %v6436_v10 = vpack.c.bf16 %v5236_v63, %v5236_v63  ;;  %v5235_v42 = vmax.f32 %v5203_v50, 0.0  ;;  %v5205_v0 = vadd.f32 %v7474_v3, %v10380_v6  ;;  %v7480_v55 = vadd.f32 %v7479_v45, %v10655_v24  ;;  %v6390_v38 = vld [vmem:[%s10225_s24 + $0xa4] sm:$0x1]  ;;  %v6395_v63 = vld [vmem:[%s10225_s24 + $0xb0] sm:$0x1] }
 0x3f3   : > { %v5549_v36 = vrot.slane %v5547_v53, 7  ;;  %v7039_v9 = vadd.f32 %v10713_v47, %v10704_v16  ;;  %v5526_v60 = vor.u32 %v5524_v41, %v5523_v31  ;;  %v5528_v48 = vrot.slane %v5523_v31, 4 }
 0x3f4   : > { %v5564_v61 = vshrl.u32 %v6436_v10, 16  ;;  %v5567_v15 = vshll.u32 %v6436_v10, 16  ;;  %v5237_v13 = vmax.f32 %v5205_v0, 0.0  ;;  %v6435_v29 = vpack.c.bf16 %v5235_v42, %v5235_v42  ;;  %v11348_v10 = vld [vmem:[#allocation51_spill] sm:$0xff] }
 0x3f5   : > { %v5552_v7 = vor.u32 %v5550_v8, %v5549_v36  ;;  %v5553_v25 = vrot.slane %v5549_v36, 4  ;;  %v5527_v24 = vsel %vm10414_vm0, %v5519_v5, %v5526_v60  ;;  %v5745_v28 = vsel %vm10420_vm1, %v5528_v48, %v6380_v20  ;;  %v6397_v20 = vld [vmem:[%s10225_s24 + $0xb4] sm:$0xf] }
 0x3f6   : > { %v5566_v16 = vrot.slane %v5564_v61, 7  ;;  %v5206_v47 = vadd.f32 %v7480_v55, %v10380_v6  ;;  %6379 = vst [vmem:[%s10225_s24 + $0x88] sm:$0xf] %v5527_v24  ;;  %6381 = vst [vmem:[%s10225_s24 + $0x8c] sm:$0x1] %v5745_v28  ;;  %v6437_v39 = vpack.c.bf16 %v5237_v13, %v5237_v13  ;;  %v5555_v51 = vshrl.u32 %v6435_v29, 16 }
 0x3f7   : > { %v5755_v34 = vsel %vm10405_vm15, %v5552_v7, %v6387_v19  ;;  %v5558_v54 = vshll.u32 %v6435_v29, 16  ;;  %v7483_v11 = vadd.f32 %v4967_v52, %v11346_v23  ;;  %v4972_v32 = vadd.f32 %v7039_v9, %v10330_v21  ;;  %v8007_v61 = vld [vmem:[#allocation10] ss:$0 sm:$0xff]  ;;  %v6400_v13 = vld [vmem:[%s10225_s24 + $0xbc] sm:$0x1] }
 0x3f8   : > { %v5569_v56 = vor.u32 %v5567_v15, %v5566_v16  ;;  %v5570_v33 = vrot.slane %v5566_v16, 4  ;;  %6388 = vst [vmem:[%s10225_s24 + $0x9c] sm:$0xf] %v5755_v34  ;;  %v5238_v5 = vmax.f32 %v5206_v47, 0.0  ;;  %v5572_v14 = vshrl.u32 %v6437_v39, 16 }
 0x3f9   : > { %v5575_v43 = vshll.u32 %v6437_v39, 16  ;;  %v5557_v40 = vrot.slane %v5555_v51, 7  ;;  %v7484_v26 = vadd.f32 %v7483_v11, %v10668_v12  ;;  %v7042_v57 = vadd.f32 %v10722_v27, %v10718_v22  ;;  %v6402_v51 = vld [vmem:[%s10225_s24 + $0xc0] sm:$0xf]  ;;  %v6405_v11 = vld [vmem:[%s10225_s24 + $0xc8] sm:$0x1] }
 0x3fa   : > { %v5762_v4 = vsel %vm10405_vm15, %v5569_v56, %v6392_v1  ;;  %v6438_v18 = vpack.c.bf16 %v5238_v5, %v5238_v5  ;;  %v5574_v2 = vrot.slane %v5572_v14, 7  ;;  %v7477_v41 = vadd.f32 %v11347_v62, %v4972_v32 }
 0x3fb   : > { %6393 = vst [vmem:[%s10225_s24 + $0xa8] sm:$0xf] %v5762_v4  ;;  %v5560_v49 = vor.u32 %v5558_v54, %v5557_v40  ;;  %v5562_v30 = vrot.slane %v5557_v40, 4  ;;  %v5207_v53 = vadd.f32 %v7484_v26, %v10380_v6  ;;  %v4975_v12 = vadd.f32 %v7042_v57, %v10333_v17 }
 0x3fc   : > { %v5581_v21 = vshrl.u32 %v6438_v18, 16  ;;  %v5584_v50 = vshll.u32 %v6438_v18, 16  ;;  %v5577_v8 = vor.u32 %v5575_v43, %v5574_v2  ;;  %v5579_v3 = vrot.slane %v5574_v2, 4 }
 0x3fd   : > { %v5561_v22 = vsel %vm10414_vm0, %v5553_v25, %v5560_v49  ;;  %v5759_v27 = vsel %vm10420_vm1, %v5562_v30, %v6390_v38  ;;  %v5239_v45 = vmax.f32 %v5207_v53, 0.0  ;;  %v7478_v31 = vadd.f32 %v7477_v41, %v10651_v46 }
 0x3fe   : > { %6389 = vst [vmem:[%s10225_s24 + $0xa0] sm:$0xf] %v5561_v22  ;;  %6391 = vst [vmem:[%s10225_s24 + $0xa4] sm:$0x1] %v5759_v27  ;;  %v5583_v58 = vrot.slane %v5581_v21, 7  ;;  %v7481_v42 = vadd.f32 %v11348_v10, %v4975_v12  ;;  %v5578_v17 = vsel %vm10414_vm0, %v5570_v33, %v5577_v8  ;;  %v5766_v52 = vsel %vm10420_vm1, %v5579_v3, %v6395_v63 }
 0x3ff   : > { %6394 = vst [vmem:[%s10225_s24 + $0xac] sm:$0xf] %v5578_v17  ;;  %6396 = vst [vmem:[%s10225_s24 + $0xb0] sm:$0x1] %v5766_v52  ;;  %v6439_v0 = vpack.c.bf16 %v5239_v45, %v5239_v45  ;;  %v5208_v55 = vadd.f32 %v7478_v31, %v10380_v6 }
 0x400   : > { %v5586_v36 = vor.u32 %v5584_v50, %v5583_v58  ;;  %v7482_v9 = vadd.f32 %v7481_v42, %v10660_v37  ;;  %v5587_v6 = vrot.slane %v5583_v58, 4 }
 0x401   : > { %v5589_v60 = vshrl.u32 %v6439_v0, 16  ;;  %v5240_v48 = vmax.f32 %v5208_v55, 0.0  ;;  %v5592_v7 = vshll.u32 %v6439_v0, 16 }
 0x402   : > { %v5769_v46 = vsel %vm10405_vm15, %v5586_v36, %v6397_v20  ;;  %v5209_v15 = vadd.f32 %v8007_v61, %v7482_v9 }
 0x403   : > { %6398 = vst [vmem:[%s10225_s24 + $0xb4] sm:$0xf] %v5769_v46  ;;  %v5591_v19 = vrot.slane %v5589_v60, 7  ;;  %v6440_v25 = vpack.c.bf16 %v5240_v48, %v5240_v48 }
 0x404   : > { %v5241_v29 = vmax.f32 %v5209_v15, 0.0 }
 0x405   : > { %v5594_v24 = vor.u32 %v5592_v7, %v5591_v19  ;;  %v5596_v37 = vrot.slane %v5591_v19, 4  ;;  %v5598_v28 = vshrl.u32 %v6440_v25, 16  ;;  %v5601_v39 = vshll.u32 %v6440_v25, 16 }
 0x406   : > { %v6441_v16 = vpack.c.bf16 %v5241_v29, %v5241_v29 }
 0x407   : > { %v5595_v47 = vsel %vm10414_vm0, %v5587_v6, %v5594_v24  ;;  %v5773_v1 = vsel %vm10420_vm1, %v5596_v37, %v6400_v13  ;;  %v5600_v34 = vrot.slane %v5598_v28, 7 }
 0x408   : > { %6399 = vst [vmem:[%s10225_s24 + $0xb8] sm:$0xf] %v5595_v47  ;;  %6401 = vst [vmem:[%s10225_s24 + $0xbc] sm:$0x1] %v5773_v1  ;;  %v5606_v54 = vshrl.u32 %v6441_v16, 16  ;;  %v5609_v5 = vshll.u32 %v6441_v16, 16 }
 0x409   : > { %v5603_v56 = vor.u32 %v5601_v39, %v5600_v34  ;;  %v5604_v14 = vrot.slane %v5600_v34, 4 }
 0x40a   : > { %v5608_v33 = vrot.slane %v5606_v54, 7 }
 0x40b   : > { %v5776_v23 = vsel %vm10405_vm15, %v5603_v56, %v6402_v51 }
 0x40c   : > { %6403 = vst [vmem:[%s10225_s24 + $0xc0] sm:$0xf] %v5776_v23  ;;  %v5611_v43 = vor.u32 %v5609_v5, %v5608_v33  ;;  %v5613_v40 = vrot.slane %v5608_v33, 4 }
 0x40e   : > { %v5612_v44 = vsel %vm10414_vm0, %v5604_v14, %v5611_v43  ;;  %v5780_v32 = vsel %vm10420_vm1, %v5613_v40, %v6405_v11 }
 0x40f   : > { %6404 = vst [vmem:[%s10225_s24 + $0xc4] sm:$0xf] %v5612_v44  ;;  %6406 = vst [vmem:[%s10225_s24 + $0xc8] sm:$0x1] %v5780_v32 }
 0x410   : > { %8165 = shalt.err (!%p8162_p11)
}
 0x411   : > { %s8166_s27 = scalar_lea.hbm %s10832_s11, 3456  ;;  %s8170_s17 = scalar_lea.hbm %s10894_s5, 6912 }
 0x412   : > { %p8167_p12 = scmp.ne.s32.totalorder %s10832_s11, %s8166_s27  ;;  %p8171_p9 = scmp.lt.u32.totalorder %s10832_s11, %s10894_s5 }
 0x413   : > { %p8172_p0 = scmp.lt.u32.totalorder %s8170_s17, %s8166_s27  ;;  %p8174_p4 = scmp.lt.u32.totalorder %s8166_s27, %s10832_s11 }
 0x414   : > { %p8168_p6 = pnand %p8167_p12, %p8442_p10 }
 0x415   : > { %p8173_p2 = por %p8172_p0, %p8171_p9 }
 0x416   : > { %p8169_p7 = pneg %p8168_p6 }
 0x417   : > { %p8175_p8 = por %p8174_p4, %p8173_p2 }
 0x419   : > { %p8176_p1 = pnand %p8175_p8, %p8169_p7 }
 0x41b   : > { %8179 = shalt.err (!%p8176_p1)
}
 0x41c   : > { %s8257_s28 = smov 64   ;;  %s8258_s9 = smov 4  }
 0x41d   : > { %7772 = dma.vmem_to_hbm [thread:$0]  (%p8442_p10), %s10834_s15, 3456, %s10832_s11, %s5783_s21, %s8257_s28, %s8257_s28, %s8258_s9  }
 0x41e PF: > { %s11349_s24 = sld [smem:[#allocation17_spill]]  ;;  %s5811_s26 = sand.u32 1, %s8226_s18  }
 0x41f   : > { %p11351_p3 = scmp.ge.s32.totalorder %s8246_s23, 2  ;;  %s5812_s13 = scalar_lea.sflag [#allocation4], %s5811_s26 }
 0x424   : > { %p11350_p13 = scmp.ne.s32.totalorder %s11349_s24, 0 }
 0x426   : > { %p7792_p5 = pnand %p11351_p3, %p11350_p13 }
 0x428   : > { %8221 = dma.done.wait (!%p7792_p5), %s5812_s13, 3456  }
 0x429   : > { %8223 = vsyncadd (!%p7792_p5), %s5812_s13, 4294963840  ;;  %s25_s23 = sadd.s32 1, %s8246_s23   ;;  %s11352_s18 = smov %s8230_s19 }
 0x42a   : > { %p22_p11 = scmp.ge.s32.totalorder %s25_s23, 4   ;;  %s11353_s19 = smov %s8234_s20 }
 0x42b   : > { %s11354_s20 = smov %s8460_s25  ;;  %s11355_s21 = smov %s8242_s22 }
 0x42c   : > { %s11356_s22 = smov %s11358_s12  ;;  %24 = sbr.rel (!%p22_p11) target bundleno = 13 (0xd), region = 117 }
 0x433   :  { %5817 = vsyncpa [#allocation3], 1 }
 0x434   :  { %5819 = vsyncpa [#allocation3 + $0x1], 1 }
 0x435   :  { %5820 = vsyncpa [#allocation6], 1 }
 0x436   :  { %5822 = vsyncpa [#allocation6 + $0x1], 1 }
 0x437   :  { %5823 = vsyncpa [#allocation9], 1 }
 0x438   :  { %5824 = vsyncpa [#allocation4], 1 }
 0x439   :  { %5826 = vsyncpa [#allocation4 + $0x1], 1 }

</bundles_post_ra>
